<compile_context>
chip_gen: v7x
topology: tpu7x:2x2x1
jax: 0.10.0
libtpu: 0.0.40
codegen_flags: <defaults>
</compile_context>

<pallas_src>
import functools

import jax
import jax.numpy as jnp
from jax import lax
from jax.experimental import pallas as pl
from jax.experimental.pallas import tpu as pltpu


def _round_up(x, m):
    return (x + m - 1) // m * m


def _vmem_limit_bytes():
    # Size the scoped VMEM limit off the physical capacity (64 MiB on v7x,
    # 128 MiB on v5e/v6e), leaving headroom for double buffering.
    try:
        cap = pltpu.get_tpu_info().vmem_capacity_bytes
        return int(cap * 3 // 4)
    except Exception:
        return None  # fall back to the compiler default


# ---------------------------------------------------------------------------
# Fused Pallas kernel: one image per grid step, all activations VMEM-resident
# ---------------------------------------------------------------------------
def _fused_sr_kernel(xcols_ref, wh_ref, bh_ref, w1_ref, b1_ref,
                     w2_ref, b2_ref, wt_ref, bt_ref, o_ref,
                     pad_a, pad_b, patch, *, H, W, F):
    # xcols_ref: (1, H*W, Kh)  bf16 -- head im2col (K padded to 32) from wrapper
    # w*_ref:    (K, Cout)     bf16,  b*_ref: (1, Cout) f32
    # o_ref:     (1, H, W, Ct) bf16  -- only the real tail channels reach HBM
    # pad_a/b:   (H+2, W+2, F) bf16  zero-halo activation buffers
    # patch:     (H, W, 9F)    bf16  shared im2col scratch (reused per conv)
    bf = pad_a.dtype

    # Zero only the 1-pixel halo ring; interiors are fully overwritten below.
    # Done every grid step: scratch is per-TensorCore under the parallel axis.
    def zero_halo(pad):
        pad[0:1, :, :] = jnp.zeros((1, W + 2, F), bf)
        pad[H + 1:H + 2, :, :] = jnp.zeros((1, W + 2, F), bf)
        pad[:, 0:1, :] = jnp.zeros((H + 2, 1, F), bf)
        pad[:, W + 1:W + 2, :] = jnp.zeros((H + 2, 1, F), bf)

    zero_halo(pad_a)
    zero_halo(pad_b)

    def conv3x3(pad_ref, w_ref, b_ref, relu):
        # Write each shifted tap straight into its channel window of the
        # shared patch scratch (no concat temporary), then one K = 9*F
        # matmul with an explicit 2-D M = H*W.
        for dy in range(3):
            for dx in range(3):
                t = dy * 3 + dx
                patch[:, :, t * F:(t + 1) * F] = pad_ref[dy:dy + H, dx:dx + W, :]
        acc = jnp.dot(patch[...].reshape(H * W, 9 * F), w_ref[...],
                      preferred_element_type=jnp.float32)       # (H*W, Cout) f32
        acc = acc + b_ref[...]
        if relu:
            acc = jnp.maximum(acc, 0.0)
        return acc

    # ---- head: single 2-D matmul, K padded to 32 in the wrapper ----
    h = jnp.dot(xcols_ref[0], wh_ref[...],
                preferred_element_type=jnp.float32)             # (H*W, F) f32
    h = h + bh_ref[...]
    pad_a[1:1 + H, 1:1 + W, :] = h.reshape(H, W, F).astype(bf)

    # ---- residual body: conv -> ReLU -> conv, skip add, all in VMEM ----
    r = conv3x3(pad_a, w1_ref, b1_ref, relu=True)
    pad_b[1:1 + H, 1:1 + W, :] = r.reshape(H, W, F).astype(bf)

    r2 = conv3x3(pad_b, w2_ref, b2_ref, relu=False)
    skip = pad_a[1:1 + H, 1:1 + W, :].reshape(H * W, F).astype(jnp.float32) + r2
    pad_b[1:1 + H, 1:1 + W, :] = skip.reshape(H, W, F).astype(bf)

    # ---- tail: only the real Ct channels, stored as bf16 ----
    t = conv3x3(pad_b, wt_ref, bt_ref, relu=False)              # (H*W, Ct) f32
    o_ref[0] = t.reshape(H, W, -1).astype(o_ref.dtype)


# ---------------------------------------------------------------------------
# Plain-JAX glue
# ---------------------------------------------------------------------------
def _head_im2col_nhwc(x):
    """(N,H,W,C) -> (N,H,W,9*C) with tap order (dy, dx, c)."""
    N, H, W, C = x.shape
    xp = jnp.pad(x, ((0, 0), (1, 1), (1, 1), (0, 0)))
    taps = [xp[:, dy:dy + H, dx:dx + W, :]
            for dy in range(3) for dx in range(3)]
    return jnp.concatenate(taps, axis=-1)


def pixel_shuffle_nhwc(x, r):
    # channel index laid out as (C, r, r), C outermost (torch.nn.PixelShuffle)
    N, H, W, Crr = x.shape
    C = Crr // (r * r)
    x = x.reshape(N, H, W, C, r, r)
    x = jnp.transpose(x, (0, 1, 4, 2, 5, 3))   # (N, H, r, W, r, C)
    return x.reshape(N, H * r, W * r, C)


# ---------------------------------------------------------------------------
# Parameters (deterministic init) and forward pass
# ---------------------------------------------------------------------------
def init_params(key, c_in, feats, scale):
    ks = jax.random.split(key, 4)

    def conv_p(k, ci, co):
        kw, kb = jax.random.split(k)
        fan_in = 9 * ci
        w = jax.random.normal(kw, (3, 3, ci, co), jnp.float32) / jnp.sqrt(fan_in)
        b = jax.random.normal(kb, (co,), jnp.float32) * 0.01
        return w, b

    return {
        "head": conv_p(ks[0], c_in, feats),
        "body1": conv_p(ks[1], feats, feats),
        "body2": conv_p(ks[2], feats, feats),
        "tail": conv_p(ks[3], feats, c_in * scale * scale),
    }


def sr_forward_pallas(x_nchw, params, scale):
    N, C, H, W = x_nchw.shape
    F = params["body1"][0].shape[-1]
    Ct = C * scale * scale
    K_head = 9 * C
    K_head_pad = _round_up(K_head, 32)   # pad ragged K=27 to a clean sub-tile

    # NCHW -> NHWC, bf16 storage; head im2col in the wrapper (Cin is tiny).
    x = jnp.transpose(x_nchw, (0, 2, 3, 1)).astype(jnp.bfloat16)
    xcols = _head_im2col_nhwc(x).reshape(N, H * W, K_head)
    xcols = jnp.pad(xcols, ((0, 0), (0, 0), (0, K_head_pad - K_head)))

    def flat_w(w):  # (3,3,Ci,Co) -> (9*Ci, Co); matches kernel tap order
        return w.reshape(-1, w.shape[-1]).astype(jnp.bfloat16)

    wh = jnp.pad(flat_w(params["head"][0]), ((0, K_head_pad - K_head), (0, 0)))
    bh = params["head"][1].reshape(1, -1)
    w1, b1 = flat_w(params["body1"][0]), params["body1"][1].reshape(1, -1)
    w2, b2 = flat_w(params["body2"][0]), params["body2"][1].reshape(1, -1)
    wt, bt = flat_w(params["tail"][0]), params["tail"][1].reshape(1, -1)

    kernel = functools.partial(_fused_sr_kernel, H=H, W=W, F=F)
    out = pl.pallas_call(
        kernel,
        out_shape=jax.ShapeDtypeStruct((N, H, W, Ct), jnp.bfloat16),
        grid=(N,),
        in_specs=[
            pl.BlockSpec((1, H * W, K_head_pad), lambda n: (n, 0, 0)),
            pl.BlockSpec((K_head_pad, F), lambda n: (0, 0)),
            pl.BlockSpec((1, F), lambda n: (0, 0)),
            pl.BlockSpec((9 * F, F), lambda n: (0, 0)),
            pl.BlockSpec((1, F), lambda n: (0, 0)),
            pl.BlockSpec((9 * F, F), lambda n: (0, 0)),
            pl.BlockSpec((1, F), lambda n: (0, 0)),
            pl.BlockSpec((9 * F, Ct), lambda n: (0, 0)),
            pl.BlockSpec((1, Ct), lambda n: (0, 0)),
        ],
        out_specs=pl.BlockSpec((1, H, W, Ct), lambda n: (n, 0, 0, 0)),
        scratch_shapes=[
            pltpu.VMEM((H + 2, W + 2, F), jnp.bfloat16),   # pad_a
            pltpu.VMEM((H + 2, W + 2, F), jnp.bfloat16),   # pad_b
            pltpu.VMEM((H, W, 9 * F), jnp.bfloat16),       # shared im2col patch
        ],
        compiler_params=pltpu.CompilerParams(
            dimension_semantics=("parallel",),   # shards batch across TCs (v7x)
            vmem_limit_bytes=_vmem_limit_bytes()),
    )(xcols, wh, bh, w1, b1, w2, b2, wt, bt)

    y = pixel_shuffle_nhwc(out.astype(jnp.float32), scale)
    return jnp.transpose(y, (0, 3, 1, 2))                       # back to NCHW


def sr_forward_reference(x_nchw, params, scale):
    """Pure-JAX (lax.conv) reference mirroring the kernel's bf16 storage /
    f32 accumulation quantization points."""
    bf = jnp.bfloat16
    x = jnp.transpose(x_nchw, (0, 2, 3, 1)).astype(bf)
    dn = lax.conv_dimension_numbers(x.shape, (3, 3, 1, 1), ("NHWC", "HWIO", "NHWC"))

    def conv(xx, w, b, relu=False):
        y = lax.conv_general_dilated(
            xx, w.astype(bf), (1, 1), "SAME", dimension_numbers=dn,
            preferred_element_type=jnp.float32)
        y = y + b[None, None, None, :]
        return jnp.maximum(y, 0.0) if relu else y

    h = conv(x, *params["head"])                    # f32
    h_q = h.astype(bf)
    r = conv(h_q, *params["body1"], relu=True).astype(bf)
    r2 = conv(r, *params["body2"])                  # f32
    s = (h_q.astype(jnp.float32) + r2).astype(bf)
    t = conv(s, *params["tail"])                    # f32
    y = pixel_shuffle_nhwc(t, scale)
    return jnp.transpose(y, (0, 3, 1, 2))


if __name__ == "__main__":
    key = jax.random.PRNGKey(0)
    k_x, k_p = jax.random.split(key)

    # Small shapes consistent with input_constructor: (n_sequence*batch, C, H, W)
    N, C, H, W = 2, 3, 16, 16
    FEATS = 32
    SCALE = 2

    x = jax.random.normal(k_x, (N, C, H, W), jnp.float32)
    params = init_params(k_p, C, FEATS, SCALE)

    fwd = jax.jit(lambda xx: sr_forward_pallas(xx, params, SCALE))
    out = jax.block_until_ready(fwd(x))
    assert out.shape == (N, C, H * SCALE, W * SCALE), out.shape

    ref = jax.block_until_ready(sr_forward_reference(x, params, SCALE))
    max_err = float(jnp.max(jnp.abs(out - ref)))
    assert jnp.allclose(out, ref, atol=2e-2, rtol=2e-2), max_err

    print("KERNEL_OK")
</pallas_src>

<mosaic_0001>
module attributes {stable_mosaic.version = 11 : i64} {
  func.func @_fused_sr_kernel(%arg0: i32, %arg1: memref<1x256x32xbf16, #tpu.memory_space<vmem>>, %arg2: memref<32x32xbf16, #tpu.memory_space<vmem>>, %arg3: memref<1x32xf32, #tpu.memory_space<vmem>>, %arg4: memref<288x32xbf16, #tpu.memory_space<vmem>>, %arg5: memref<1x32xf32, #tpu.memory_space<vmem>>, %arg6: memref<288x32xbf16, #tpu.memory_space<vmem>>, %arg7: memref<1x32xf32, #tpu.memory_space<vmem>>, %arg8: memref<288x12xbf16, #tpu.memory_space<vmem>>, %arg9: memref<1x12xf32, #tpu.memory_space<vmem>>, %arg10: memref<1x16x16x12xbf16, #tpu.memory_space<vmem>>, %arg11: memref<18x18x32xbf16, #tpu.memory_space<vmem>>, %arg12: memref<18x18x32xbf16, #tpu.memory_space<vmem>>, %arg13: memref<16x16x288xbf16, #tpu.memory_space<vmem>>) attributes {dimension_semantics = [#tpu.dimension_semantics<parallel>], iteration_bounds = array<i64: 2>, scalar_prefetch = 0 : i64, scratch_operands = 3 : i64, tpu.core_type = #tpu.core_type<tc>, window_params = [{transform_indices = @transform_0, window_bounds = array<i64: 1, 256, 32>}, {pipeline_mode = #tpu.pipeline_mode<synchronous>, transform_indices = @transform_1, window_bounds = array<i64: 32, 32>}, {pipeline_mode = #tpu.pipeline_mode<synchronous>, transform_indices = @transform_2, window_bounds = array<i64: 1, 32>}, {pipeline_mode = #tpu.pipeline_mode<synchronous>, transform_indices = @transform_3, window_bounds = array<i64: 288, 32>}, {pipeline_mode = #tpu.pipeline_mode<synchronous>, transform_indices = @transform_4, window_bounds = array<i64: 1, 32>}, {pipeline_mode = #tpu.pipeline_mode<synchronous>, transform_indices = @transform_5, window_bounds = array<i64: 288, 32>}, {pipeline_mode = #tpu.pipeline_mode<synchronous>, transform_indices = @transform_6, window_bounds = array<i64: 1, 32>}, {pipeline_mode = #tpu.pipeline_mode<synchronous>, transform_indices = @transform_7, window_bounds = array<i64: 288, 12>}, {pipeline_mode = #tpu.pipeline_mode<synchronous>, transform_indices = @transform_8, window_bounds = array<i64: 1, 12>}, {transform_indices = @transform_9, window_bounds = array<i64: 1, 16, 16, 12>}]} {
    %cst = arith.constant 0.000000e+00 : bf16
    %0 = vector.broadcast %cst : bf16 to vector<1x18x32xbf16>
    %c0 = arith.constant 0 : index
    %c0_0 = arith.constant 0 : index
    %c0_1 = arith.constant 0 : index
    %1 = vector.load %arg11[%c0, %c0_0, %c0_1] : memref<18x18x32xbf16, #tpu.memory_space<vmem>>, vector<1x18x32xbf16>
    tpu.vector_store %arg11[%c0, %c0_0, %c0_1], %0 {strides = array<i32>} : memref<18x18x32xbf16, #tpu.memory_space<vmem>>, vector<1x18x32xbf16>,
    %cst_2 = arith.constant 0.000000e+00 : bf16
    %2 = vector.broadcast %cst_2 : bf16 to vector<1x18x32xbf16>
    %c17 = arith.constant 17 : index
    %c0_3 = arith.constant 0 : index
    %c0_4 = arith.constant 0 : index
    %3 = vector.load %arg11[%c17, %c0_3, %c0_4] : memref<18x18x32xbf16, #tpu.memory_space<vmem>>, vector<1x18x32xbf16>
    tpu.vector_store %arg11[%c17, %c0_3, %c0_4], %2 {strides = array<i32>} : memref<18x18x32xbf16, #tpu.memory_space<vmem>>, vector<1x18x32xbf16>,
    %cst_5 = arith.constant 0.000000e+00 : bf16
    %4 = vector.broadcast %cst_5 : bf16 to vector<18x1x32xbf16>
    %c0_6 = arith.constant 0 : index
    %c0_7 = arith.constant 0 : index
    %c0_8 = arith.constant 0 : index
    %5 = vector.load %arg11[%c0_6, %c0_7, %c0_8] : memref<18x18x32xbf16, #tpu.memory_space<vmem>>, vector<18x1x32xbf16>
    tpu.vector_store %arg11[%c0_6, %c0_7, %c0_8], %4 {strides = array<i32>} : memref<18x18x32xbf16, #tpu.memory_space<vmem>>, vector<18x1x32xbf16>,
    %cst_9 = arith.constant 0.000000e+00 : bf16
    %6 = vector.broadcast %cst_9 : bf16 to vector<18x1x32xbf16>
    %c0_10 = arith.constant 0 : index
    %c17_11 = arith.constant 17 : index
    %c0_12 = arith.constant 0 : index
    %7 = vector.load %arg11[%c0_10, %c17_11, %c0_12] : memref<18x18x32xbf16, #tpu.memory_space<vmem>>, vector<18x1x32xbf16>
    tpu.vector_store %arg11[%c0_10, %c17_11, %c0_12], %6 {strides = array<i32>} : memref<18x18x32xbf16, #tpu.memory_space<vmem>>, vector<18x1x32xbf16>,
    %cst_13 = arith.constant 0.000000e+00 : bf16
    %8 = vector.broadcast %cst_13 : bf16 to vector<1x18x32xbf16>
    %c0_14 = arith.constant 0 : index
    %c0_15 = arith.constant 0 : index
    %c0_16 = arith.constant 0 : index
    %9 = vector.load %arg12[%c0_14, %c0_15, %c0_16] : memref<18x18x32xbf16, #tpu.memory_space<vmem>>, vector<1x18x32xbf16>
    tpu.vector_store %arg12[%c0_14, %c0_15, %c0_16], %8 {strides = array<i32>} : memref<18x18x32xbf16, #tpu.memory_space<vmem>>, vector<1x18x32xbf16>,
    %cst_17 = arith.constant 0.000000e+00 : bf16
    %10 = vector.broadcast %cst_17 : bf16 to vector<1x18x32xbf16>
    %c17_18 = arith.constant 17 : index
    %c0_19 = arith.constant 0 : index
    %c0_20 = arith.constant 0 : index
    %11 = vector.load %arg12[%c17_18, %c0_19, %c0_20] : memref<18x18x32xbf16, #tpu.memory_space<vmem>>, vector<1x18x32xbf16>
    tpu.vector_store %arg12[%c17_18, %c0_19, %c0_20], %10 {strides = array<i32>} : memref<18x18x32xbf16, #tpu.memory_space<vmem>>, vector<1x18x32xbf16>,
    %cst_21 = arith.constant 0.000000e+00 : bf16
    %12 = vector.broadcast %cst_21 : bf16 to vector<18x1x32xbf16>
    %c0_22 = arith.constant 0 : index
    %c0_23 = arith.constant 0 : index
    %c0_24 = arith.constant 0 : index
    %13 = vector.load %arg12[%c0_22, %c0_23, %c0_24] : memref<18x18x32xbf16, #tpu.memory_space<vmem>>, vector<18x1x32xbf16>
    tpu.vector_store %arg12[%c0_22, %c0_23, %c0_24], %12 {strides = array<i32>} : memref<18x18x32xbf16, #tpu.memory_space<vmem>>, vector<18x1x32xbf16>,
    %cst_25 = arith.constant 0.000000e+00 : bf16
    %14 = vector.broadcast %cst_25 : bf16 to vector<18x1x32xbf16>
    %c0_26 = arith.constant 0 : index
    %c17_27 = arith.constant 17 : index
    %c0_28 = arith.constant 0 : index
    %15 = vector.load %arg12[%c0_26, %c17_27, %c0_28] : memref<18x18x32xbf16, #tpu.memory_space<vmem>>, vector<18x1x32xbf16>
    tpu.vector_store %arg12[%c0_26, %c17_27, %c0_28], %14 {strides = array<i32>} : memref<18x18x32xbf16, #tpu.memory_space<vmem>>, vector<18x1x32xbf16>,
    %c0_29 = arith.constant 0 : index
    %c0_30 = arith.constant 0 : index
    %c0_31 = arith.constant 0 : index
    %16 = vector.load %arg1[%c0_29, %c0_30, %c0_31] : memref<1x256x32xbf16, #tpu.memory_space<vmem>>, vector<1x256x32xbf16>
    %17 = vector.shape_cast %16 : vector<1x256x32xbf16> to vector<256x32xbf16>
    %c0_32 = arith.constant 0 : index
    %c0_33 = arith.constant 0 : index
    %18 = vector.load %arg2[%c0_32, %c0_33] : memref<32x32xbf16, #tpu.memory_space<vmem>>, vector<32x32xbf16>
    %cst_34 = arith.constant dense<0.000000e+00> : vector<256x32xf32>
    %19 = tpu.matmul %17, %18, %cst_34 {dimension_numbers = #tpu.dot_dimension_numbers<[1], [0], [0], [1], [0, 0, 1, 1], [], []>} : vector<256x32xbf16>, vector<32x32xbf16>, vector<256x32xf32> -> vector<256x32xf32>
    %c0_35 = arith.constant 0 : index
    %c0_36 = arith.constant 0 : index
    %20 = vector.load %arg3[%c0_35, %c0_36] : memref<1x32xf32, #tpu.memory_space<vmem>>, vector<1x32xf32>
    %21 = vector.broadcast %20 : vector<1x32xf32> to vector<256x32xf32>
    %22 = arith.addf %19, %21 : vector<256x32xf32>
    %23 = vector.shape_cast %22 : vector<256x32xf32> to vector<16x16x32xf32>
    %24 = arith.truncf %23 : vector<16x16x32xf32> to vector<16x16x32xbf16>
    %c1 = arith.constant 1 : index
    %c1_37 = arith.constant 1 : index
    %c0_38 = arith.constant 0 : index
    %25 = vector.load %arg11[%c1, %c1_37, %c0_38] : memref<18x18x32xbf16, #tpu.memory_space<vmem>>, vector<16x16x32xbf16>
    tpu.vector_store %arg11[%c1, %c1_37, %c0_38], %24 {strides = array<i32>} : memref<18x18x32xbf16, #tpu.memory_space<vmem>>, vector<16x16x32xbf16>,
    %c0_39 = arith.constant 0 : index
    %c0_40 = arith.constant 0 : index
    %c0_41 = arith.constant 0 : index
    %26 = vector.load %arg11[%c0_39, %c0_40, %c0_41] : memref<18x18x32xbf16, #tpu.memory_space<vmem>>, vector<16x16x32xbf16>
    %c0_42 = arith.constant 0 : index
    %c0_43 = arith.constant 0 : index
    %c0_44 = arith.constant 0 : index
    %27 = vector.load %arg13[%c0_42, %c0_43, %c0_44] : memref<16x16x288xbf16, #tpu.memory_space<vmem>>, vector<16x16x32xbf16>
    tpu.vector_store %arg13[%c0_42, %c0_43, %c0_44], %26 {strides = array<i32>} : memref<16x16x288xbf16, #tpu.memory_space<vmem>>, vector<16x16x32xbf16>,
    %c0_45 = arith.constant 0 : index
    %c1_46 = arith.constant 1 : index
    %c0_47 = arith.constant 0 : index
    %28 = vector.load %arg11[%c0_45, %c1_46, %c0_47] : memref<18x18x32xbf16, #tpu.memory_space<vmem>>, vector<16x16x32xbf16>
    %c0_48 = arith.constant 0 : index
    %c0_49 = arith.constant 0 : index
    %c32 = arith.constant 32 : index
    %29 = vector.load %arg13[%c0_48, %c0_49, %c32] : memref<16x16x288xbf16, #tpu.memory_space<vmem>>, vector<16x16x32xbf16>
    tpu.vector_store %arg13[%c0_48, %c0_49, %c32], %28 {strides = array<i32>} : memref<16x16x288xbf16, #tpu.memory_space<vmem>>, vector<16x16x32xbf16>,
    %c0_50 = arith.constant 0 : index
    %c2 = arith.constant 2 : index
    %c0_51 = arith.constant 0 : index
    %30 = vector.load %arg11[%c0_50, %c2, %c0_51] : memref<18x18x32xbf16, #tpu.memory_space<vmem>>, vector<16x16x32xbf16>
    %c0_52 = arith.constant 0 : index
    %c0_53 = arith.constant 0 : index
    %c64 = arith.constant 64 : index
    %31 = vector.load %arg13[%c0_52, %c0_53, %c64] : memref<16x16x288xbf16, #tpu.memory_space<vmem>>, vector<16x16x32xbf16>
    tpu.vector_store %arg13[%c0_52, %c0_53, %c64], %30 {strides = array<i32>} : memref<16x16x288xbf16, #tpu.memory_space<vmem>>, vector<16x16x32xbf16>,
    %c1_54 = arith.constant 1 : index
    %c0_55 = arith.constant 0 : index
    %c0_56 = arith.constant 0 : index
    %32 = vector.load %arg11[%c1_54, %c0_55, %c0_56] : memref<18x18x32xbf16, #tpu.memory_space<vmem>>, vector<16x16x32xbf16>
    %c0_57 = arith.constant 0 : index
    %c0_58 = arith.constant 0 : index
    %c96 = arith.constant 96 : index
    %33 = vector.load %arg13[%c0_57, %c0_58, %c96] : memref<16x16x288xbf16, #tpu.memory_space<vmem>>, vector<16x16x32xbf16>
    tpu.vector_store %arg13[%c0_57, %c0_58, %c96], %32 {strides = array<i32>} : memref<16x16x288xbf16, #tpu.memory_space<vmem>>, vector<16x16x32xbf16>,
    %c1_59 = arith.constant 1 : index
    %c1_60 = arith.constant 1 : index
    %c0_61 = arith.constant 0 : index
    %34 = vector.load %arg11[%c1_59, %c1_60, %c0_61] : memref<18x18x32xbf16, #tpu.memory_space<vmem>>, vector<16x16x32xbf16>
    %c0_62 = arith.constant 0 : index
    %c0_63 = arith.constant 0 : index
    %c128 = arith.constant 128 : index
    %35 = vector.load %arg13[%c0_62, %c0_63, %c128] : memref<16x16x288xbf16, #tpu.memory_space<vmem>>, vector<16x16x32xbf16>
    tpu.vector_store %arg13[%c0_62, %c0_63, %c128], %34 {strides = array<i32>} : memref<16x16x288xbf16, #tpu.memory_space<vmem>>, vector<16x16x32xbf16>,
    %c1_64 = arith.constant 1 : index
    %c2_65 = arith.constant 2 : index
    %c0_66 = arith.constant 0 : index
    %36 = vector.load %arg11[%c1_64, %c2_65, %c0_66] : memref<18x18x32xbf16, #tpu.memory_space<vmem>>, vector<16x16x32xbf16>
    %c0_67 = arith.constant 0 : index
    %c0_68 = arith.constant 0 : index
    %c160 = arith.constant 160 : index
    %37 = vector.load %arg13[%c0_67, %c0_68, %c160] : memref<16x16x288xbf16, #tpu.memory_space<vmem>>, vector<16x16x32xbf16>
    tpu.vector_store %arg13[%c0_67, %c0_68, %c160], %36 {strides = array<i32>} : memref<16x16x288xbf16, #tpu.memory_space<vmem>>, vector<16x16x32xbf16>,
    %c2_69 = arith.constant 2 : index
    %c0_70 = arith.constant 0 : index
    %c0_71 = arith.constant 0 : index
    %38 = vector.load %arg11[%c2_69, %c0_70, %c0_71] : memref<18x18x32xbf16, #tpu.memory_space<vmem>>, vector<16x16x32xbf16>
    %c0_72 = arith.constant 0 : index
    %c0_73 = arith.constant 0 : index
    %c192 = arith.constant 192 : index
    %39 = vector.load %arg13[%c0_72, %c0_73, %c192] : memref<16x16x288xbf16, #tpu.memory_space<vmem>>, vector<16x16x32xbf16>
    tpu.vector_store %arg13[%c0_72, %c0_73, %c192], %38 {strides = array<i32>} : memref<16x16x288xbf16, #tpu.memory_space<vmem>>, vector<16x16x32xbf16>,
    %c2_74 = arith.constant 2 : index
    %c1_75 = arith.constant 1 : index
    %c0_76 = arith.constant 0 : index
    %40 = vector.load %arg11[%c2_74, %c1_75, %c0_76] : memref<18x18x32xbf16, #tpu.memory_space<vmem>>, vector<16x16x32xbf16>
    %c0_77 = arith.constant 0 : index
    %c0_78 = arith.constant 0 : index
    %c224 = arith.constant 224 : index
    %41 = vector.load %arg13[%c0_77, %c0_78, %c224] : memref<16x16x288xbf16, #tpu.memory_space<vmem>>, vector<16x16x32xbf16>
    tpu.vector_store %arg13[%c0_77, %c0_78, %c224], %40 {strides = array<i32>} : memref<16x16x288xbf16, #tpu.memory_space<vmem>>, vector<16x16x32xbf16>,
    %c2_79 = arith.constant 2 : index
    %c2_80 = arith.constant 2 : index
    %c0_81 = arith.constant 0 : index
    %42 = vector.load %arg11[%c2_79, %c2_80, %c0_81] : memref<18x18x32xbf16, #tpu.memory_space<vmem>>, vector<16x16x32xbf16>
    %c0_82 = arith.constant 0 : index
    %c0_83 = arith.constant 0 : index
    %c256 = arith.constant 256 : index
    %43 = vector.load %arg13[%c0_82, %c0_83, %c256] : memref<16x16x288xbf16, #tpu.memory_space<vmem>>, vector<16x16x32xbf16>
    tpu.vector_store %arg13[%c0_82, %c0_83, %c256], %42 {strides = array<i32>} : memref<16x16x288xbf16, #tpu.memory_space<vmem>>, vector<16x16x32xbf16>,
    %c0_84 = arith.constant 0 : index
    %c0_85 = arith.constant 0 : index
    %c0_86 = arith.constant 0 : index
    %44 = vector.load %arg13[%c0_84, %c0_85, %c0_86] : memref<16x16x288xbf16, #tpu.memory_space<vmem>>, vector<16x16x288xbf16>
    %45 = vector.shape_cast %44 : vector<16x16x288xbf16> to vector<256x288xbf16>
    %c0_87 = arith.constant 0 : index
    %c0_88 = arith.constant 0 : index
    %46 = vector.load %arg4[%c0_87, %c0_88] : memref<288x32xbf16, #tpu.memory_space<vmem>>, vector<288x32xbf16>
    %cst_89 = arith.constant dense<0.000000e+00> : vector<256x32xf32>
    %47 = tpu.matmul %45, %46, %cst_89 {dimension_numbers = #tpu.dot_dimension_numbers<[1], [0], [0], [1], [0, 0, 1, 1], [], []>} : vector<256x288xbf16>, vector<288x32xbf16>, vector<256x32xf32> -> vector<256x32xf32>
    %c0_90 = arith.constant 0 : index
    %c0_91 = arith.constant 0 : index
    %48 = vector.load %arg5[%c0_90, %c0_91] : memref<1x32xf32, #tpu.memory_space<vmem>>, vector<1x32xf32>
    %49 = vector.broadcast %48 : vector<1x32xf32> to vector<256x32xf32>
    %50 = arith.addf %47, %49 : vector<256x32xf32>
    %cst_92 = arith.constant 0.000000e+00 : f32
    %51 = vector.broadcast %cst_92 : f32 to vector<256x32xf32>
    %52 = arith.maximumf %50, %51 : vector<256x32xf32>
    %53 = vector.shape_cast %52 : vector<256x32xf32> to vector<16x16x32xf32>
    %54 = arith.truncf %53 : vector<16x16x32xf32> to vector<16x16x32xbf16>
    %c1_93 = arith.constant 1 : index
    %c1_94 = arith.constant 1 : index
    %c0_95 = arith.constant 0 : index
    %55 = vector.load %arg12[%c1_93, %c1_94, %c0_95] : memref<18x18x32xbf16, #tpu.memory_space<vmem>>, vector<16x16x32xbf16>
    tpu.vector_store %arg12[%c1_93, %c1_94, %c0_95], %54 {strides = array<i32>} : memref<18x18x32xbf16, #tpu.memory_space<vmem>>, vector<16x16x32xbf16>,
    %c0_96 = arith.constant 0 : index
    %c0_97 = arith.constant 0 : index
    %c0_98 = arith.constant 0 : index
    %56 = vector.load %arg12[%c0_96, %c0_97, %c0_98] : memref<18x18x32xbf16, #tpu.memory_space<vmem>>, vector<16x16x32xbf16>
    %c0_99 = arith.constant 0 : index
    %c0_100 = arith.constant 0 : index
    %c0_101 = arith.constant 0 : index
    %57 = vector.load %arg13[%c0_99, %c0_100, %c0_101] : memref<16x16x288xbf16, #tpu.memory_space<vmem>>, vector<16x16x32xbf16>
    tpu.vector_store %arg13[%c0_99, %c0_100, %c0_101], %56 {strides = array<i32>} : memref<16x16x288xbf16, #tpu.memory_space<vmem>>, vector<16x16x32xbf16>,
    %c0_102 = arith.constant 0 : index
    %c1_103 = arith.constant 1 : index
    %c0_104 = arith.constant 0 : index
    %58 = vector.load %arg12[%c0_102, %c1_103, %c0_104] : memref<18x18x32xbf16, #tpu.memory_space<vmem>>, vector<16x16x32xbf16>
    %c0_105 = arith.constant 0 : index
    %c0_106 = arith.constant 0 : index
    %c32_107 = arith.constant 32 : index
    %59 = vector.load %arg13[%c0_105, %c0_106, %c32_107] : memref<16x16x288xbf16, #tpu.memory_space<vmem>>, vector<16x16x32xbf16>
    tpu.vector_store %arg13[%c0_105, %c0_106, %c32_107], %58 {strides = array<i32>} : memref<16x16x288xbf16, #tpu.memory_space<vmem>>, vector<16x16x32xbf16>,
    %c0_108 = arith.constant 0 : index
    %c2_109 = arith.constant 2 : index
    %c0_110 = arith.constant 0 : index
    %60 = vector.load %arg12[%c0_108, %c2_109, %c0_110] : memref<18x18x32xbf16, #tpu.memory_space<vmem>>, vector<16x16x32xbf16>
    %c0_111 = arith.constant 0 : index
    %c0_112 = arith.constant 0 : index
    %c64_113 = arith.constant 64 : index
    %61 = vector.load %arg13[%c0_111, %c0_112, %c64_113] : memref<16x16x288xbf16, #tpu.memory_space<vmem>>, vector<16x16x32xbf16>
    tpu.vector_store %arg13[%c0_111, %c0_112, %c64_113], %60 {strides = array<i32>} : memref<16x16x288xbf16, #tpu.memory_space<vmem>>, vector<16x16x32xbf16>,
    %c1_114 = arith.constant 1 : index
    %c0_115 = arith.constant 0 : index
    %c0_116 = arith.constant 0 : index
    %62 = vector.load %arg12[%c1_114, %c0_115, %c0_116] : memref<18x18x32xbf16, #tpu.memory_space<vmem>>, vector<16x16x32xbf16>
    %c0_117 = arith.constant 0 : index
    %c0_118 = arith.constant 0 : index
    %c96_119 = arith.constant 96 : index
    %63 = vector.load %arg13[%c0_117, %c0_118, %c96_119] : memref<16x16x288xbf16, #tpu.memory_space<vmem>>, vector<16x16x32xbf16>
    tpu.vector_store %arg13[%c0_117, %c0_118, %c96_119], %62 {strides = array<i32>} : memref<16x16x288xbf16, #tpu.memory_space<vmem>>, vector<16x16x32xbf16>,
    %c1_120 = arith.constant 1 : index
    %c1_121 = arith.constant 1 : index
    %c0_122 = arith.constant 0 : index
    %64 = vector.load %arg12[%c1_120, %c1_121, %c0_122] : memref<18x18x32xbf16, #tpu.memory_space<vmem>>, vector<16x16x32xbf16>
    %c0_123 = arith.constant 0 : index
    %c0_124 = arith.constant 0 : index
    %c128_125 = arith.constant 128 : index
    %65 = vector.load %arg13[%c0_123, %c0_124, %c128_125] : memref<16x16x288xbf16, #tpu.memory_space<vmem>>, vector<16x16x32xbf16>
    tpu.vector_store %arg13[%c0_123, %c0_124, %c128_125], %64 {strides = array<i32>} : memref<16x16x288xbf16, #tpu.memory_space<vmem>>, vector<16x16x32xbf16>,
    %c1_126 = arith.constant 1 : index
    %c2_127 = arith.constant 2 : index
    %c0_128 = arith.constant 0 : index
    %66 = vector.load %arg12[%c1_126, %c2_127, %c0_128] : memref<18x18x32xbf16, #tpu.memory_space<vmem>>, vector<16x16x32xbf16>
    %c0_129 = arith.constant 0 : index
    %c0_130 = arith.constant 0 : index
    %c160_131 = arith.constant 160 : index
    %67 = vector.load %arg13[%c0_129, %c0_130, %c160_131] : memref<16x16x288xbf16, #tpu.memory_space<vmem>>, vector<16x16x32xbf16>
    tpu.vector_store %arg13[%c0_129, %c0_130, %c160_131], %66 {strides = array<i32>} : memref<16x16x288xbf16, #tpu.memory_space<vmem>>, vector<16x16x32xbf16>,
    %c2_132 = arith.constant 2 : index
    %c0_133 = arith.constant 0 : index
    %c0_134 = arith.constant 0 : index
    %68 = vector.load %arg12[%c2_132, %c0_133, %c0_134] : memref<18x18x32xbf16, #tpu.memory_space<vmem>>, vector<16x16x32xbf16>
    %c0_135 = arith.constant 0 : index
    %c0_136 = arith.constant 0 : index
    %c192_137 = arith.constant 192 : index
    %69 = vector.load %arg13[%c0_135, %c0_136, %c192_137] : memref<16x16x288xbf16, #tpu.memory_space<vmem>>, vector<16x16x32xbf16>
    tpu.vector_store %arg13[%c0_135, %c0_136, %c192_137], %68 {strides = array<i32>} : memref<16x16x288xbf16, #tpu.memory_space<vmem>>, vector<16x16x32xbf16>,
    %c2_138 = arith.constant 2 : index
    %c1_139 = arith.constant 1 : index
    %c0_140 = arith.constant 0 : index
    %70 = vector.load %arg12[%c2_138, %c1_139, %c0_140] : memref<18x18x32xbf16, #tpu.memory_space<vmem>>, vector<16x16x32xbf16>
    %c0_141 = arith.constant 0 : index
    %c0_142 = arith.constant 0 : index
    %c224_143 = arith.constant 224 : index
    %71 = vector.load %arg13[%c0_141, %c0_142, %c224_143] : memref<16x16x288xbf16, #tpu.memory_space<vmem>>, vector<16x16x32xbf16>
    tpu.vector_store %arg13[%c0_141, %c0_142, %c224_143], %70 {strides = array<i32>} : memref<16x16x288xbf16, #tpu.memory_space<vmem>>, vector<16x16x32xbf16>,
    %c2_144 = arith.constant 2 : index
    %c2_145 = arith.constant 2 : index
    %c0_146 = arith.constant 0 : index
    %72 = vector.load %arg12[%c2_144, %c2_145, %c0_146] : memref<18x18x32xbf16, #tpu.memory_space<vmem>>, vector<16x16x32xbf16>
    %c0_147 = arith.constant 0 : index
    %c0_148 = arith.constant 0 : index
    %c256_149 = arith.constant 256 : index
    %73 = vector.load %arg13[%c0_147, %c0_148, %c256_149] : memref<16x16x288xbf16, #tpu.memory_space<vmem>>, vector<16x16x32xbf16>
    tpu.vector_store %arg13[%c0_147, %c0_148, %c256_149], %72 {strides = array<i32>} : memref<16x16x288xbf16, #tpu.memory_space<vmem>>, vector<16x16x32xbf16>,
    %c0_150 = arith.constant 0 : index
    %c0_151 = arith.constant 0 : index
    %c0_152 = arith.constant 0 : index
    %74 = vector.load %arg13[%c0_150, %c0_151, %c0_152] : memref<16x16x288xbf16, #tpu.memory_space<vmem>>, vector<16x16x288xbf16>
    %75 = vector.shape_cast %74 : vector<16x16x288xbf16> to vector<256x288xbf16>
    %c0_153 = arith.constant 0 : index
    %c0_154 = arith.constant 0 : index
    %76 = vector.load %arg6[%c0_153, %c0_154] : memref<288x32xbf16, #tpu.memory_space<vmem>>, vector<288x32xbf16>
    %cst_155 = arith.constant dense<0.000000e+00> : vector<256x32xf32>
    %77 = tpu.matmul %75, %76, %cst_155 {dimension_numbers = #tpu.dot_dimension_numbers<[1], [0], [0], [1], [0, 0, 1, 1], [], []>} : vector<256x288xbf16>, vector<288x32xbf16>, vector<256x32xf32> -> vector<256x32xf32>
    %c0_156 = arith.constant 0 : index
    %c0_157 = arith.constant 0 : index
    %78 = vector.load %arg7[%c0_156, %c0_157] : memref<1x32xf32, #tpu.memory_space<vmem>>, vector<1x32xf32>
    %79 = vector.broadcast %78 : vector<1x32xf32> to vector<256x32xf32>
    %80 = arith.addf %77, %79 : vector<256x32xf32>
    %c1_158 = arith.constant 1 : index
    %c1_159 = arith.constant 1 : index
    %c0_160 = arith.constant 0 : index
    %81 = vector.load %arg11[%c1_158, %c1_159, %c0_160] : memref<18x18x32xbf16, #tpu.memory_space<vmem>>, vector<16x16x32xbf16>
    %82 = vector.shape_cast %81 : vector<16x16x32xbf16> to vector<256x32xbf16>
    %83 = arith.extf %82 : vector<256x32xbf16> to vector<256x32xf32>
    %84 = arith.addf %83, %80 : vector<256x32xf32>
    %85 = vector.shape_cast %84 : vector<256x32xf32> to vector<16x16x32xf32>
    %86 = arith.truncf %85 : vector<16x16x32xf32> to vector<16x16x32xbf16>
    %c1_161 = arith.constant 1 : index
    %c1_162 = arith.constant 1 : index
    %c0_163 = arith.constant 0 : index
    %87 = vector.load %arg12[%c1_161, %c1_162, %c0_163] : memref<18x18x32xbf16, #tpu.memory_space<vmem>>, vector<16x16x32xbf16>
    tpu.vector_store %arg12[%c1_161, %c1_162, %c0_163], %86 {strides = array<i32>} : memref<18x18x32xbf16, #tpu.memory_space<vmem>>, vector<16x16x32xbf16>,
    %c0_164 = arith.constant 0 : index
    %c0_165 = arith.constant 0 : index
    %c0_166 = arith.constant 0 : index
    %88 = vector.load %arg12[%c0_164, %c0_165, %c0_166] : memref<18x18x32xbf16, #tpu.memory_space<vmem>>, vector<16x16x32xbf16>
    %c0_167 = arith.constant 0 : index
    %c0_168 = arith.constant 0 : index
    %c0_169 = arith.constant 0 : index
    %89 = vector.load %arg13[%c0_167, %c0_168, %c0_169] : memref<16x16x288xbf16, #tpu.memory_space<vmem>>, vector<16x16x32xbf16>
    tpu.vector_store %arg13[%c0_167, %c0_168, %c0_169], %88 {strides = array<i32>} : memref<16x16x288xbf16, #tpu.memory_space<vmem>>, vector<16x16x32xbf16>,
    %c0_170 = arith.constant 0 : index
    %c1_171 = arith.constant 1 : index
    %c0_172 = arith.constant 0 : index
    %90 = vector.load %arg12[%c0_170, %c1_171, %c0_172] : memref<18x18x32xbf16, #tpu.memory_space<vmem>>, vector<16x16x32xbf16>
    %c0_173 = arith.constant 0 : index
    %c0_174 = arith.constant 0 : index
    %c32_175 = arith.constant 32 : index
    %91 = vector.load %arg13[%c0_173, %c0_174, %c32_175] : memref<16x16x288xbf16, #tpu.memory_space<vmem>>, vector<16x16x32xbf16>
    tpu.vector_store %arg13[%c0_173, %c0_174, %c32_175], %90 {strides = array<i32>} : memref<16x16x288xbf16, #tpu.memory_space<vmem>>, vector<16x16x32xbf16>,
    %c0_176 = arith.constant 0 : index
    %c2_177 = arith.constant 2 : index
    %c0_178 = arith.constant 0 : index
    %92 = vector.load %arg12[%c0_176, %c2_177, %c0_178] : memref<18x18x32xbf16, #tpu.memory_space<vmem>>, vector<16x16x32xbf16>
    %c0_179 = arith.constant 0 : index
    %c0_180 = arith.constant 0 : index
    %c64_181 = arith.constant 64 : index
    %93 = vector.load %arg13[%c0_179, %c0_180, %c64_181] : memref<16x16x288xbf16, #tpu.memory_space<vmem>>, vector<16x16x32xbf16>
    tpu.vector_store %arg13[%c0_179, %c0_180, %c64_181], %92 {strides = array<i32>} : memref<16x16x288xbf16, #tpu.memory_space<vmem>>, vector<16x16x32xbf16>,
    %c1_182 = arith.constant 1 : index
    %c0_183 = arith.constant 0 : index
    %c0_184 = arith.constant 0 : index
    %94 = vector.load %arg12[%c1_182, %c0_183, %c0_184] : memref<18x18x32xbf16, #tpu.memory_space<vmem>>, vector<16x16x32xbf16>
    %c0_185 = arith.constant 0 : index
    %c0_186 = arith.constant 0 : index
    %c96_187 = arith.constant 96 : index
    %95 = vector.load %arg13[%c0_185, %c0_186, %c96_187] : memref<16x16x288xbf16, #tpu.memory_space<vmem>>, vector<16x16x32xbf16>
    tpu.vector_store %arg13[%c0_185, %c0_186, %c96_187], %94 {strides = array<i32>} : memref<16x16x288xbf16, #tpu.memory_space<vmem>>, vector<16x16x32xbf16>,
    %c1_188 = arith.constant 1 : index
    %c1_189 = arith.constant 1 : index
    %c0_190 = arith.constant 0 : index
    %96 = vector.load %arg12[%c1_188, %c1_189, %c0_190] : memref<18x18x32xbf16, #tpu.memory_space<vmem>>, vector<16x16x32xbf16>
    %c0_191 = arith.constant 0 : index
    %c0_192 = arith.constant 0 : index
    %c128_193 = arith.constant 128 : index
    %97 = vector.load %arg13[%c0_191, %c0_192, %c128_193] : memref<16x16x288xbf16, #tpu.memory_space<vmem>>, vector<16x16x32xbf16>
    tpu.vector_store %arg13[%c0_191, %c0_192, %c128_193], %96 {strides = array<i32>} : memref<16x16x288xbf16, #tpu.memory_space<vmem>>, vector<16x16x32xbf16>,
    %c1_194 = arith.constant 1 : index
    %c2_195 = arith.constant 2 : index
    %c0_196 = arith.constant 0 : index
    %98 = vector.load %arg12[%c1_194, %c2_195, %c0_196] : memref<18x18x32xbf16, #tpu.memory_space<vmem>>, vector<16x16x32xbf16>
    %c0_197 = arith.constant 0 : index
    %c0_198 = arith.constant 0 : index
    %c160_199 = arith.constant 160 : index
    %99 = vector.load %arg13[%c0_197, %c0_198, %c160_199] : memref<16x16x288xbf16, #tpu.memory_space<vmem>>, vector<16x16x32xbf16>
    tpu.vector_store %arg13[%c0_197, %c0_198, %c160_199], %98 {strides = array<i32>} : memref<16x16x288xbf16, #tpu.memory_space<vmem>>, vector<16x16x32xbf16>,
    %c2_200 = arith.constant 2 : index
    %c0_201 = arith.constant 0 : index
    %c0_202 = arith.constant 0 : index
    %100 = vector.load %arg12[%c2_200, %c0_201, %c0_202] : memref<18x18x32xbf16, #tpu.memory_space<vmem>>, vector<16x16x32xbf16>
    %c0_203 = arith.constant 0 : index
    %c0_204 = arith.constant 0 : index
    %c192_205 = arith.constant 192 : index
    %101 = vector.load %arg13[%c0_203, %c0_204, %c192_205] : memref<16x16x288xbf16, #tpu.memory_space<vmem>>, vector<16x16x32xbf16>
    tpu.vector_store %arg13[%c0_203, %c0_204, %c192_205], %100 {strides = array<i32>} : memref<16x16x288xbf16, #tpu.memory_space<vmem>>, vector<16x16x32xbf16>,
    %c2_206 = arith.constant 2 : index
    %c1_207 = arith.constant 1 : index
    %c0_208 = arith.constant 0 : index
    %102 = vector.load %arg12[%c2_206, %c1_207, %c0_208] : memref<18x18x32xbf16, #tpu.memory_space<vmem>>, vector<16x16x32xbf16>
    %c0_209 = arith.constant 0 : index
    %c0_210 = arith.constant 0 : index
    %c224_211 = arith.constant 224 : index
    %103 = vector.load %arg13[%c0_209, %c0_210, %c224_211] : memref<16x16x288xbf16, #tpu.memory_space<vmem>>, vector<16x16x32xbf16>
    tpu.vector_store %arg13[%c0_209, %c0_210, %c224_211], %102 {strides = array<i32>} : memref<16x16x288xbf16, #tpu.memory_space<vmem>>, vector<16x16x32xbf16>,
    %c2_212 = arith.constant 2 : index
    %c2_213 = arith.constant 2 : index
    %c0_214 = arith.constant 0 : index
    %104 = vector.load %arg12[%c2_212, %c2_213, %c0_214] : memref<18x18x32xbf16, #tpu.memory_space<vmem>>, vector<16x16x32xbf16>
    %c0_215 = arith.constant 0 : index
    %c0_216 = arith.constant 0 : index
    %c256_217 = arith.constant 256 : index
    %105 = vector.load %arg13[%c0_215, %c0_216, %c256_217] : memref<16x16x288xbf16, #tpu.memory_space<vmem>>, vector<16x16x32xbf16>
    tpu.vector_store %arg13[%c0_215, %c0_216, %c256_217], %104 {strides = array<i32>} : memref<16x16x288xbf16, #tpu.memory_space<vmem>>, vector<16x16x32xbf16>,
    %c0_218 = arith.constant 0 : index
    %c0_219 = arith.constant 0 : index
    %c0_220 = arith.constant 0 : index
    %106 = vector.load %arg13[%c0_218, %c0_219, %c0_220] : memref<16x16x288xbf16, #tpu.memory_space<vmem>>, vector<16x16x288xbf16>
    %107 = vector.shape_cast %106 : vector<16x16x288xbf16> to vector<256x288xbf16>
    %c0_221 = arith.constant 0 : index
    %c0_222 = arith.constant 0 : index
    %108 = vector.load %arg8[%c0_221, %c0_222] : memref<288x12xbf16, #tpu.memory_space<vmem>>, vector<288x12xbf16>
    %cst_223 = arith.constant dense<0.000000e+00> : vector<256x12xf32>
    %109 = tpu.matmul %107, %108, %cst_223 {dimension_numbers = #tpu.dot_dimension_numbers<[1], [0], [0], [1], [0, 0, 1, 1], [], []>} : vector<256x288xbf16>, vector<288x12xbf16>, vector<256x12xf32> -> vector<256x12xf32>
    %c0_224 = arith.constant 0 : index
    %c0_225 = arith.constant 0 : index
    %110 = vector.load %arg9[%c0_224, %c0_225] : memref<1x12xf32, #tpu.memory_space<vmem>>, vector<1x12xf32>
    %111 = vector.broadcast %110 : vector<1x12xf32> to vector<256x12xf32>
    %112 = arith.addf %109, %111 : vector<256x12xf32>
    %113 = vector.shape_cast %112 : vector<256x12xf32> to vector<16x16x12xf32>
    %114 = arith.truncf %113 : vector<16x16x12xf32> to vector<16x16x12xbf16>
    %c0_226 = arith.constant 0 : index
    %c0_227 = arith.constant 0 : index
    %c0_228 = arith.constant 0 : index
    %c0_229 = arith.constant 0 : index
    %115 = vector.load %arg10[%c0_226, %c0_227, %c0_228, %c0_229] : memref<1x16x16x12xbf16, #tpu.memory_space<vmem>>, vector<1x16x16x12xbf16>
    %116 = vector.shape_cast %115 : vector<1x16x16x12xbf16> to vector<16x16x12xbf16>
    %117 = vector.shape_cast %114 : vector<16x16x12xbf16> to vector<1x16x16x12xbf16>
    tpu.vector_store %arg10[%c0_226, %c0_227, %c0_228, %c0_229], %117 {strides = array<i32>} : memref<1x16x16x12xbf16, #tpu.memory_space<vmem>>, vector<1x16x16x12xbf16>,
    return
  }
  func.func @transform_0(%arg0: i32) -> (i32, i32, i32) {
    %c0_i32 = arith.constant 0 : i32
    %c0_i32_0 = arith.constant 0 : i32
    %c0_i32_1 = arith.constant 0 : i32
    return %arg0, %c0_i32, %c0_i32_0 : i32, i32, i32
  }
  func.func @transform_1(%arg0: i32) -> (i32, i32) {
    %c0_i32 = arith.constant 0 : i32
    %c0_i32_0 = arith.constant 0 : i32
    %c0_i32_1 = arith.constant 0 : i32
    return %c0_i32, %c0_i32_0 : i32, i32
  }
  func.func @transform_2(%arg0: i32) -> (i32, i32) {
    %c0_i32 = arith.constant 0 : i32
    %c0_i32_0 = arith.constant 0 : i32
    %c0_i32_1 = arith.constant 0 : i32
    return %c0_i32, %c0_i32_0 : i32, i32
  }
  func.func @transform_3(%arg0: i32) -> (i32, i32) {
    %c0_i32 = arith.constant 0 : i32
    %c0_i32_0 = arith.constant 0 : i32
    %c0_i32_1 = arith.constant 0 : i32
    return %c0_i32, %c0_i32_0 : i32, i32
  }
  func.func @transform_4(%arg0: i32) -> (i32, i32) {
    %c0_i32 = arith.constant 0 : i32
    %c0_i32_0 = arith.constant 0 : i32
    %c0_i32_1 = arith.constant 0 : i32
    return %c0_i32, %c0_i32_0 : i32, i32
  }
  func.func @transform_5(%arg0: i32) -> (i32, i32) {
    %c0_i32 = arith.constant 0 : i32
    %c0_i32_0 = arith.constant 0 : i32
    %c0_i32_1 = arith.constant 0 : i32
    return %c0_i32, %c0_i32_0 : i32, i32
  }
  func.func @transform_6(%arg0: i32) -> (i32, i32) {
    %c0_i32 = arith.constant 0 : i32
    %c0_i32_0 = arith.constant 0 : i32
    %c0_i32_1 = arith.constant 0 : i32
    return %c0_i32, %c0_i32_0 : i32, i32
  }
  func.func @transform_7(%arg0: i32) -> (i32, i32) {
    %c0_i32 = arith.constant 0 : i32
    %c0_i32_0 = arith.constant 0 : i32
    %c0_i32_1 = arith.constant 0 : i32
    return %c0_i32, %c0_i32_0 : i32, i32
  }
  func.func @transform_8(%arg0: i32) -> (i32, i32) {
    %c0_i32 = arith.constant 0 : i32
    %c0_i32_0 = arith.constant 0 : i32
    %c0_i32_1 = arith.constant 0 : i32
    return %c0_i32, %c0_i32_0 : i32, i32
  }
  func.func @transform_9(%arg0: i32) -> (i32, i32, i32, i32) {
    %c0_i32 = arith.constant 0 : i32
    %c0_i32_0 = arith.constant 0 : i32
    %c0_i32_1 = arith.constant 0 : i32
    %c0_i32_2 = arith.constant 0 : i32
    return %arg0, %c0_i32, %c0_i32_0, %c0_i32_1 : i32, i32, i32, i32
  }
}

</mosaic_0001>

<bundles_post_ra>
// kernel: _lambda_.1
= control target key start
LH: loop header
LB: loop body
LE: loop exit
PB: predicated region body
PF: predicated region fallthrough
CT: control target
= control target key end

     0   :  { %14 = vsyncpa [#allocation6], 0  ;;  %s19096_s0 = inlined_call_operand.vmem [shape: bf16[2,256,32], index: 0, kind: input, shape index: {}]   ;;  %s19097_s1 = inlined_call_operand.hbm [shape: bf16[32,32], index: 1, kind: input, shape index: {}]   ;;  %s19098_s2 = inlined_call_operand.hbm [shape: f32[1,32], index: 2, kind: input, shape index: {}]   ;;  %s19099_s3 = inlined_call_operand.hbm [shape: bf16[288,32], index: 3, kind: input, shape index: {}]   ;;  %s19100_s4 = inlined_call_operand.hbm [shape: f32[1,32], index: 4, kind: input, shape index: {}]   ;;  %s19101_s5 = inlined_call_operand.hbm [shape: bf16[288,32], index: 5, kind: input, shape index: {}]   ;;  %s19102_s6 = inlined_call_operand.hbm [shape: f32[1,32], index: 6, kind: input, shape index: {}]   ;;  %s19103_s7 = inlined_call_operand.hbm [shape: bf16[288,12], index: 7, kind: input, shape index: {}]   ;;  %s19104_s8 = inlined_call_operand.hbm [shape: f32[1,12], index: 8, kind: input, shape index: {}]   ;;  %s19105_s9 = inlined_call_operand.vmem [shape: bf16[2,16,16,12], index: 9, kind: output, shape index: {}]  }
   0x1   :  { %15 = vsyncpa [#allocation8], 0 }
   0x2   :  { %16 = vsyncpa [#allocation11], 0 }
   0x3   :  { %17 = vsyncpa [#allocation14], 0 }
   0x4   :  { %18 = vsyncpa [#allocation17], 0  ;;  %s15885_s30 = smov 0  }
   0x5 LB: > { %s15821_s10 = smov [#allocation7]   ;;  %s15891_s12 = sadd.s32 4294967295, %s15819_s30   ;;  %s15819_s30 = sphi %s15885_s30, %s24_s30  }
   0x6   : > { %s275_s11 = sshll.u32 %s15821_s10, 4  ;;  %p12965_p0 = scmp.ge.s32.totalorder %s15819_s30, 1  ;;  %s15896_s11 = int_to_ptr.vmem [resolvable:$true] %s275_s11 }
   0x7   : > { %p249_p1 = scmp.lt.s32.totalorder %s15819_s30, 3  ;;  %p19106_p2 = scmp.eq.s32.totalorder %s15891_s12, 0 }
   0x8   : > { %s15822_s14 = smov [#allocation10]   ;;  %s15823_s16 = smov [#allocation13]  }
   0x9   : > { %p15898_p3 = pnand %p12965_p0, %p249_p1  ;;  %s299_s15 = sshll.u32 %s15822_s14, 4  ;;  %s15904_s15 = int_to_ptr.vmem [resolvable:$true] %s299_s15 }
   0xa   : > { %s323_s17 = sshll.u32 %s15823_s16, 4  ;;  %s15824_s19 = smov [#allocation5]   ;;  %s15912_s17 = int_to_ptr.vmem [resolvable:$true] %s323_s17 }
   0xb   : > { %s19112_s13 = scalar_select %p15898_p3, 1, 0 }
   0xc   : > { %p14708_p4 = pneg %p15898_p3  ;;  %s261_s20 = sshll.u32 %s15824_s19, 4  ;;  %s15914_s20 = int_to_ptr.vmem [resolvable:$true] %s261_s20 }
   0xd   : > { %s15569_s23 = scalar_lea.hbm %s19098_s2, 16 }
   0xe   : > { %p15908_p5 = pnand %p19106_p2, %p14708_p4  ;;  %p15570_p6 = scmp.ne.s32.totalorder %s19098_s2, %s15569_s23 }
   0xf   : > { %p15576_p10 = scmp.lt.u32.totalorder %s15569_s23, %s19098_s2 }
  0x10   : > { %p15924_p7 = pneg %p15908_p5 }
  0x12   : > { %p15572_p8 = pnand %p15924_p7, %p15570_p6 }
  0x14   : > { %p15573_p9 = pneg %p15572_p8 }
  0x16   : > { %p15578_p11 = pnand %p15576_p10, %p15573_p9 }
  0x18   : > { %15581 = shalt.err (!%p15578_p11)
}
  0x19   : > { %s15582_s29 = scalar_lea.vmem %s15896_s11, 16  ;;  %s15589_s10 = scalar_lea.vmem %s15896_s11, 32 }
  0x1a   : > { %p15583_p12 = scmp.ne.s32.totalorder %s15896_s11, %s15582_s29  ;;  %p15590_p1 = scmp.lt.s32.totalorder %s15896_s11, %s15896_s11 }
  0x1b   : > { %p15591_p4 = scmp.lt.s32.totalorder %s15589_s10, %s15582_s29 }
  0x1c   : > { %p15585_p13 = pnand %p15583_p12, %p15924_p7 }
  0x1d   : > { %p15592_p6 = por %p15591_p4, %p15590_p1 }
  0x1e   : > { %p15586_p0 = pneg %p15585_p13 }
  0x20   : > { %p15593_p8 = pnand %p15592_p6, %p15586_p0 }
  0x22   : > { %15596 = shalt.err (!%p15593_p8)
}
  0x23   : > { %14714 = dma.hbm_to_vmem [thread:$0]  (!%p15908_p5), %s19098_s2, 16, %s15896_s11, [#allocation8]  }
  0x24   : > { %s15597_s22 = scalar_lea.hbm %s19100_s4, 16 }
  0x25   : > { %p15598_p9 = scmp.ne.s32.totalorder %s19100_s4, %s15597_s22  ;;  %p15604_p12 = scmp.lt.u32.totalorder %s15597_s22, %s19100_s4 }
  0x27   : > { %p15600_p10 = pnand %p15598_p9, %p15924_p7 }
  0x29   : > { %p15601_p11 = pneg %p15600_p10 }
  0x2b   : > { %p15606_p13 = pnand %p15604_p12, %p15601_p11 }
  0x2d   : > { %15609 = shalt.err (!%p15606_p13)
}
  0x2e   : > { %s15610_s11 = scalar_lea.vmem %s15904_s15, 16  ;;  %s15617_s28 = scalar_lea.vmem %s15904_s15, 32 }
  0x2f   : > { %p15611_p0 = scmp.ne.s32.totalorder %s15904_s15, %s15610_s11  ;;  %p15618_p6 = scmp.lt.s32.totalorder %s15904_s15, %s15904_s15 }
  0x30   : > { %p15619_p8 = scmp.lt.s32.totalorder %s15617_s28, %s15610_s11 }
  0x31   : > { %p15613_p1 = pnand %p15611_p0, %p15924_p7 }
  0x32   : > { %p15620_p9 = por %p15619_p8, %p15618_p6 }
  0x33   : > { %p15614_p4 = pneg %p15613_p1 }
  0x35   : > { %p15621_p10 = pnand %p15620_p9, %p15614_p4 }
  0x37   : > { %15624 = shalt.err (!%p15621_p10)
}
  0x38   : > { %14720 = dma.hbm_to_vmem [thread:$0]  (!%p15908_p5), %s19100_s4, 16, %s15904_s15, [#allocation11]  }
  0x39   : > { %s15625_s19 = scalar_lea.hbm %s19102_s6, 16 }
  0x3a   : > { %p15626_p11 = scmp.ne.s32.totalorder %s19102_s6, %s15625_s19  ;;  %p15632_p0 = scmp.lt.u32.totalorder %s15625_s19, %s19102_s6 }
  0x3c   : > { %p15628_p12 = pnand %p15626_p11, %p15924_p7 }
  0x3e   : > { %p15629_p13 = pneg %p15628_p12 }
  0x40   : > { %p15634_p1 = pnand %p15632_p0, %p15629_p13 }
  0x42   : > { %15637 = shalt.err (!%p15634_p1)
}
  0x43   : > { %s15638_s15 = scalar_lea.vmem %s15912_s17, 16  ;;  %s15645_s25 = scalar_lea.vmem %s15912_s17, 32 }
  0x44   : > { %p15639_p4 = scmp.ne.s32.totalorder %s15912_s17, %s15638_s15  ;;  %p15646_p9 = scmp.lt.s32.totalorder %s15912_s17, %s15912_s17 }
  0x45   : > { %p15647_p10 = scmp.lt.s32.totalorder %s15645_s25, %s15638_s15 }
  0x46   : > { %p15641_p6 = pnand %p15639_p4, %p15924_p7 }
  0x47   : > { %p15648_p11 = por %p15647_p10, %p15646_p9 }
  0x48   : > { %p15642_p8 = pneg %p15641_p6 }
  0x4a   : > { %p15649_p12 = pnand %p15648_p11, %p15642_p8 }
  0x4c   : > { %15652 = shalt.err (!%p15649_p12)
}
  0x4d   : > { %14726 = dma.hbm_to_vmem [thread:$0]  (!%p15908_p5), %s19102_s6, 16, %s15912_s17, [#allocation14]  }
  0x4e   : > { %s15653_s10 = scalar_lea.hbm %s19097_s1, 256 }
  0x4f   : > { %p15654_p13 = scmp.ne.s32.totalorder %s19097_s1, %s15653_s10  ;;  %p15660_p4 = scmp.lt.u32.totalorder %s15653_s10, %s19097_s1 }
  0x51   : > { %p15656_p0 = pnand %p15654_p13, %p15924_p7 }
  0x53   : > { %p15657_p1 = pneg %p15656_p0 }
  0x55   : > { %p15662_p6 = pnand %p15660_p4, %p15657_p1 }
  0x57   : > { %15665 = shalt.err (!%p15662_p6)
}
  0x58   : > { %s15666_s17 = scalar_lea.vmem %s15914_s20, 256  ;;  %p15674_p11 = scmp.lt.s32.totalorder %s15914_s20, %s15914_s20 }
  0x59   : > { %p15667_p8 = scmp.ne.s32.totalorder %s15914_s20, %s15666_s17  ;;  %p15675_p12 = scmp.lt.s32.totalorder %s15666_s17, %s15666_s17 }
  0x5b   : > { %p15669_p9 = pnand %p15667_p8, %p15924_p7  ;;  %p15676_p13 = por %p15675_p12, %p15674_p11 }
  0x5d   : > { %p15670_p10 = pneg %p15669_p9 }
  0x5f   : > { %p15677_p0 = pnand %p15676_p13, %p15670_p10 }
  0x61   : > { %15680 = shalt.err (!%p15677_p0)
}
  0x62   : > { %s15825_s22 = smov 64   ;;  %s15826_s23 = smov 4  }
  0x63   : > { %14711 = dma.hbm_to_vmem [thread:$0]  (!%p15908_p5), %s19097_s1, 256, %s15914_s20, [#allocation6], %s15825_s22, %s15825_s22, %s15826_s23  }
  0x64   : > { %s15827_s25 = smov [#allocation9]   ;;  %s15828_s11 = smov [#allocation12]  }
  0x65   : > { %s285_s27 = sshll.u32 %s15827_s25, 4  ;;  %s309_s28 = sshll.u32 %s15828_s11, 4  ;;  %s286_s27 = int_to_ptr.vmem [resolvable:$true] %s285_s27  ;;  %s310_s28 = int_to_ptr.vmem [resolvable:$true] %s309_s28 }
  0x66   : > { %s15681_s14 = scalar_lea.hbm %s19099_s3, 2304 }
  0x67   : > { %p15682_p1 = scmp.ne.s32.totalorder %s19099_s3, %s15681_s14  ;;  %p15688_p8 = scmp.lt.u32.totalorder %s15681_s14, %s19099_s3 }
  0x69   : > { %p15684_p4 = pnand %p15682_p1, %p15924_p7 }
  0x6b   : > { %p15685_p6 = pneg %p15684_p4 }
  0x6d   : > { %p15690_p9 = pnand %p15688_p8, %p15685_p6 }
  0x6f   : > { %15693 = shalt.err (!%p15690_p9)
}
  0x70   : > { %s15694_s20 = scalar_lea.vmem %s286_s27, 2304  ;;  %p15702_p13 = scmp.lt.s32.totalorder %s286_s27, %s286_s27 }
  0x71   : > { %p15695_p10 = scmp.ne.s32.totalorder %s286_s27, %s15694_s20  ;;  %p15703_p0 = scmp.lt.s32.totalorder %s15694_s20, %s15694_s20 }
  0x73   : > { %p15697_p11 = pnand %p15695_p10, %p15924_p7  ;;  %p15704_p2 = por %p15703_p0, %p15702_p13 }
  0x75   : > { %p15698_p12 = pneg %p15697_p11 }
  0x77   : > { %p15705_p3 = pnand %p15704_p2, %p15698_p12 }
  0x79   : > { %15708 = shalt.err (!%p15705_p3)
}
  0x7a   : > { %14717 = dma.hbm_to_vmem [thread:$0]  (!%p15908_p5), %s19099_s3, 2304, %s286_s27, [#allocation8], %s15825_s22, %s15825_s22, %s15826_s23  }
  0x7b   : > { %s15709_s29 = scalar_lea.hbm %s19101_s5, 2304 }
  0x7c   : > { %p15710_p2 = scmp.ne.s32.totalorder %s19101_s5, %s15709_s29  ;;  %p15716_p4 = scmp.lt.u32.totalorder %s15709_s29, %s19101_s5 }
  0x7e   : > { %p15712_p3 = pnand %p15710_p2, %p15924_p7 }
  0x80   : > { %p15713_p1 = pneg %p15712_p3 }
  0x82   : > { %p15718_p6 = pnand %p15716_p4, %p15713_p1 }
  0x84   : > { %15721 = shalt.err (!%p15718_p6)
}
  0x85   : > { %s15722_s21 = scalar_lea.vmem %s310_s28, 2304  ;;  %p15730_p11 = scmp.lt.s32.totalorder %s310_s28, %s310_s28 }
  0x86   : > { %p15723_p8 = scmp.ne.s32.totalorder %s310_s28, %s15722_s21  ;;  %p15731_p12 = scmp.lt.s32.totalorder %s15722_s21, %s15722_s21 }
  0x88   : > { %p15725_p9 = pnand %p15723_p8, %p15924_p7  ;;  %p15732_p13 = por %p15731_p12, %p15730_p11 }
  0x8a   : > { %p15726_p10 = pneg %p15725_p9 }
  0x8c   : > { %p15733_p0 = pnand %p15732_p13, %p15726_p10 }
  0x8e   : > { %15736 = shalt.err (!%p15733_p0)
}
  0x8f   : > { %14723 = dma.hbm_to_vmem [thread:$0]  (!%p15908_p5), %s19101_s5, 2304, %s310_s28, [#allocation11], %s15825_s22, %s15825_s22, %s15826_s23  }
  0x90   : > { %s15829_s20 = smov [#allocation15]   ;;  %s15830_s15 = smov [#allocation16]  }
  0x91   : > { %s333_s24 = sshll.u32 %s15829_s20, 4  ;;  %s347_s25 = sshll.u32 %s15830_s15, 4  ;;  %s334_s24 = int_to_ptr.vmem [resolvable:$true] %s333_s24  ;;  %s348_s25 = int_to_ptr.vmem [resolvable:$true] %s347_s25 }
  0x92   : > { %s15737_s10 = scalar_lea.hbm %s19103_s7, 2304 }
  0x93   : > { %p15738_p2 = scmp.ne.s32.totalorder %s19103_s7, %s15737_s10  ;;  %p15744_p4 = scmp.lt.u32.totalorder %s15737_s10, %s19103_s7 }
  0x95   : > { %p15740_p3 = pnand %p15738_p2, %p15924_p7 }
  0x97   : > { %p15741_p1 = pneg %p15740_p3 }
  0x99   : > { %p15746_p6 = pnand %p15744_p4, %p15741_p1 }
  0x9b   : > { %15749 = shalt.err (!%p15746_p6)
}
  0x9c   : > { %s15750_s28 = scalar_lea.vmem %s334_s24, 2304  ;;  %p15758_p11 = scmp.lt.s32.totalorder %s334_s24, %s334_s24 }
  0x9d   : > { %p15751_p8 = scmp.ne.s32.totalorder %s334_s24, %s15750_s28  ;;  %p15759_p12 = scmp.lt.s32.totalorder %s15750_s28, %s15750_s28 }
  0x9f   : > { %p15753_p9 = pnand %p15751_p8, %p15924_p7  ;;  %p15760_p13 = por %p15759_p12, %p15758_p11 }
  0xa1   : > { %p15754_p10 = pneg %p15753_p9 }
  0xa3   : > { %p15761_p0 = pnand %p15760_p13, %p15754_p10 }
  0xa5   : > { %15764 = shalt.err (!%p15761_p0)
}
  0xa6   : > { %14729 = dma.hbm_to_vmem [thread:$0]  (!%p15908_p5), %s19103_s7, 2304, %s334_s24, [#allocation14], %s15825_s22, %s15825_s22, %s15826_s23  }
  0xa7   : > { %s15765_s11 = scalar_lea.hbm %s19104_s8, 16 }
  0xa8   : > { %p15766_p2 = scmp.ne.s32.totalorder %s19104_s8, %s15765_s11  ;;  %p15772_p4 = scmp.lt.u32.totalorder %s15765_s11, %s19104_s8 }
  0xaa   : > { %p15768_p3 = pnand %p15766_p2, %p15924_p7 }
  0xac   : > { %p15769_p1 = pneg %p15768_p3 }
  0xae   : > { %p15774_p6 = pnand %p15772_p4, %p15769_p1 }
  0xb0   : > { %15777 = shalt.err (!%p15774_p6)
}
  0xb1   : > { %s15778_s19 = scalar_lea.vmem %s348_s25, 16  ;;  %s15785_s22 = scalar_lea.vmem %s348_s25, 32 }
  0xb2   : > { %p15779_p8 = scmp.ne.s32.totalorder %s348_s25, %s15778_s19  ;;  %p15786_p11 = scmp.lt.s32.totalorder %s348_s25, %s348_s25 }
  0xb3   : > { %p15787_p12 = scmp.lt.s32.totalorder %s15785_s22, %s15778_s19 }
  0xb4   : > { %p15781_p9 = pnand %p15779_p8, %p15924_p7 }
  0xb5   : > { %p15788_p13 = por %p15787_p12, %p15786_p11 }
  0xb6   : > { %p15782_p10 = pneg %p15781_p9 }
  0xb8   : > { %p15789_p0 = pnand %p15788_p13, %p15782_p10 }
  0xba   : > { %15792 = shalt.err (!%p15789_p0)
}
  0xbb   : > { %14732 = dma.hbm_to_vmem [thread:$0]  (!%p15908_p5), %s19104_s8, 16, %s348_s25, [#allocation17]  }
  0xbc   : > { %p19115_p2 = scmp.ne.s32.totalorder %s19112_s13, 0 }
  0xbe   : > { %368 = sbr.rel (%p19115_p2) target bundleno = 1857 (0x741), region = 56 }
  0xc5   : > { %p19116_p3 = scmp.eq.s32.totalorder %s15891_s12, 0 }
  0xc7   : > { %15798 = dma.done.wait (%p19116_p3), [#allocation6], 256   ;;  %p19117_p7 = pmov %p19116_p3 }
  0xc8   : > { %p19118_p1 = pmov %p19116_p3 }
  0xc9   : > { %15800 = vsyncadd (%p19117_p7), [#allocation6], 4294967040 }
  0xca   : > { %15802 = dma.done.wait (%p19118_p1), [#allocation8], 2320   ;;  %p19119_p4 = pmov %p19118_p1 }
  0xcb   : > { %p19120_p6 = pmov %p19118_p1 }
  0xcc   : > { %15804 = vsyncadd (%p19119_p4), [#allocation8], 4294964976 }
  0xcd   : > { %15806 = dma.done.wait (%p19120_p6), [#allocation11], 2320   ;;  %p19121_p5 = pmov %p19118_p1 }
  0xce   : > { %p19122_p8 = pmov %p19118_p1 }
  0xcf   : > { %15808 = vsyncadd (%p19121_p5), [#allocation11], 4294964976 }
  0xd0   : > { %15810 = dma.done.wait (%p19122_p8), [#allocation14], 2320   ;;  %p19123_p9 = pmov %p19118_p1 }
  0xd1   : > { %p19124_p10 = pmov %p19118_p1 }
  0xd2   : > { %15812 = vsyncadd (%p19123_p9), [#allocation14], 4294964976 }
  0xd3   : > { %15814 = dma.done.wait (%p19124_p10), [#allocation17], 16   ;;  %p19125_p11 = pmov %p19118_p1 }
  0xd4   : > { %p432_p12 = scmp.lt.s32.totalorder %s15891_s12, 1  ;;  %v14771_v0 = vld [vmem:[#allocation5] sm:$0xff]   ;;  %v14772_v1 = vld [vmem:[#allocation5 + $0x8] sm:$0xff]   ;;  %vm815_vm0 = vcmask 261120   ;;  %vm453_vm1 = vsmask.f32 256 }
  0xd5   : > { %15816 = vsyncadd (%p19125_p11), [#allocation17], 4294967280  ;;  %14516 = vmatprep.subr.bf16.mxu0 %v14771_v0  ;;  %vm446_vm2 = vcmask 253952   ;;  %v461_v8 = vld [vmem:[#allocation2 + $0x18] sm:$0x1]  ;;  %vm443_vm4 = vcmask 257024  }
  0xd6   : > { %s19224_s12 = smov (!%p432_p12, %s15891_s12), 1  ;;  %14517 = vmatpush3.bf16.msra.mxu0 %v14771_v0  ;;  %vm16145_vm3 = vmand %vm446_vm2, %vm453_vm1  ;;  %vm509_vm5 = vsmask.f32 7938  ;;  %v15831_v21 = vmov 0   ;;  %v458_v22 = vld [vmem:[#allocation2 + $0xc] sm:$0x1] }
  0xd7   : > { %s13978_s13 = sshll.u32 %s19224_s12, 7  ;;  %14518 = vmatprep.subr.bf16.mxu0 %v14772_v1  ;;  %v462_v9 = vsel %vm16145_vm3, 0, %v461_v8  ;;  %444 = vst.msk [vmem:[#allocation2] sm:$0xf] %vm443_vm4, %v15831_v21  ;;  %445 = vst.msk [vmem:[#allocation2 + $0x4] sm:$0xf] %vm443_vm4, %v15831_v21 }
  0xd8   : > { %s16133_s25 = scalar_lea.vmem %s19096_s0, %s13978_s13  ;;  %463 = vst [vmem:[#allocation2 + $0x18] sm:$0x1] %v462_v9  ;;  %447 = vst.msk [vmem:[#allocation2 + $0x8] sm:$0x1] %vm446_vm2, %v15831_v21  ;;  %v459_v23 = vsel %vm16145_vm3, 0, %v458_v22  ;;  %vm2312_vm7 = vcmask 1046528   ;;  %s18942_s15 = scalar_lea.vmem %s19105_s9, %s13978_s13 }
  0xd9   : > { %v14773_v2 = vld [vmem:[%s16133_s25] sm:$0xff]   ;;  %v14774_v3 = vld [vmem:[%s16133_s25 + $0x8] sm:$0xff]   ;;  %v14775_v4 = vld [vmem:[%s16133_s25 + $0x10] sm:$0xff]   ;;  %449 = vst.msk [vmem:[#allocation2 + $0xcc] sm:$0xf] %vm443_vm4, %v15831_v21  ;;  %s15832_s21 = smov 64  }
  0xda   : > { %14520 = vmatprep.mubr.msk.bf16.mxu0 %vm815_vm0, %v14773_v2  ;;  %14519 = vmatpush3.bf16.msra.mxu0 %v14772_v1  ;;  %v14776_v5 = vld [vmem:[%s16133_s25 + $0x18] sm:$0xff]   ;;  %v14777_v6 = vld [vmem:[%s16133_s25 + $0x20] sm:$0xff]   ;;  %v14778_v10 = vld [vmem:[%s16133_s25 + $0x28] sm:$0xff]   ;;  %450 = vst.msk [vmem:[#allocation2 + $0xd0] sm:$0xf] %vm443_vm4, %v15831_v21  ;;  %s15833_s28 = smov 32  }
  0xdb   : > { %v14779_v11 = vld [vmem:[%s16133_s25 + $0x30] sm:$0xff]   ;;  %v14780_v12 = vld [vmem:[%s16133_s25 + $0x38] sm:$0xff]   ;;  %v14781_v13 = vld [vmem:[%s16133_s25 + $0x40] sm:$0xff]   ;;  %451 = vst.msk [vmem:[#allocation2 + $0xd4] sm:$0x1] %vm446_vm2, %v15831_v21  ;;  %s15834_s27 = smov 96  }
  0xdc   : > { %v14782_v14 = vld [vmem:[%s16133_s25 + $0x48] sm:$0xff]   ;;  %v14783_v15 = vld [vmem:[%s16133_s25 + $0x50] sm:$0xff]   ;;  %v14784_v16 = vld [vmem:[%s16133_s25 + $0x58] sm:$0xff]   ;;  %565 = vst.msk [vmem:[#allocation3] sm:$0xf] %vm443_vm4, %v15831_v21  ;;  %vm2119_vm12 = vcmask 523520  }
  0xdd   : > { %14521 = vmatmul.mubr.msk.bf16.vlgmr.msra.gmra.mrb[0].mxu0 %vm815_vm0, %v14774_v3  ;;  %v14785_v17 = vld [vmem:[%s16133_s25 + $0x60] sm:$0xff]   ;;  %v14786_v18 = vld [vmem:[%s16133_s25 + $0x68] sm:$0xff]   ;;  %v14787_v19 = vld [vmem:[%s16133_s25 + $0x70] sm:$0xff]   ;;  %566 = vst.msk [vmem:[#allocation3 + $0x4] sm:$0xf] %vm443_vm4, %v15831_v21  ;;  %vm2409_vm13 = vcmask 785920  }
  0xde   : > { %14524 = vmatprep.mubr.msk.bf16.mxu0 %vm815_vm0, %v14775_v4  ;;  %v14788_v20 = vld [vmem:[%s16133_s25 + $0x78] sm:$0xff]   ;;  %567 = vst.msk [vmem:[#allocation3 + $0x8] sm:$0x1] %vm446_vm2, %v15831_v21  ;;  %571 = vst.msk [vmem:[#allocation3 + $0xd4] sm:$0x1] %vm446_vm2, %v15831_v21  ;;  %vm2586_vm14 = vcmask 1048320  }
  0xdf   : > { %569 = vst.msk [vmem:[#allocation3 + $0xcc] sm:$0xf] %vm443_vm4, %v15831_v21  ;;  %570 = vst.msk [vmem:[#allocation3 + $0xd0] sm:$0xf] %vm443_vm4, %v15831_v21  ;;  %v517_v25 = vld [vmem:[#allocation2 + $0x20] sm:$0x1] }
  0xe0   : > { %vm16191_vm6 = vmand %vm446_vm2, %vm509_vm5  ;;  %460 = vst [vmem:[#allocation2 + $0xc] sm:$0x1] %v459_v23  ;;  %v514_v27 = vld [vmem:[#allocation2 + $0x14] sm:$0x1]  ;;  %v455_v29 = vld [vmem:[#allocation2] sm:$0x1] }
  0xe1   : > { %v518_v26 = vsel %vm16191_vm6, 0, %v517_v25  ;;  %v515_v28 = vsel %vm16191_vm6, 0, %v514_v27  ;;  %v511_v30 = vld [vmem:[#allocation2 + $0x8] sm:$0x1]  ;;  %v456_v31 = vsel %vm16145_vm3, 0, %v455_v29  ;;  %v14870_v27 = vld [vmem:[#allocation9 + $0x48] sm:$0xff]   ;;  %vm16257_vm10 = vmand %vm443_vm4, %vm509_vm5 }
  0xe2   : > { %519 = vst [vmem:[#allocation2 + $0x20] sm:$0x1] %v518_v26  ;;  %516 = vst [vmem:[#allocation2 + $0x14] sm:$0x1] %v515_v28  ;;  %v512_v32 = vsel %vm16191_vm6, 0, %v511_v30  ;;  %v14861_v25 = vld [vmem:[#allocation9 + $0x40] sm:$0xff]  }
  0xe3   : > { %457 = vst [vmem:[#allocation2] sm:$0x1] %v456_v31  ;;  %v467_v33 = vld [vmem:[#allocation2 + $0x30] sm:$0x1]  ;;  %v464_v34 = vld [vmem:[#allocation2 + $0x24] sm:$0x1]  ;;  %14126 = vmatprep.subr.bf16.mxu0 %v14861_v25  ;;  %14660 = vmatprep.subr.bf16.mxu1 %v14861_v25 }
  0xe4   : > { %513 = vst [vmem:[#allocation2 + $0x8] sm:$0x1] %v512_v32  ;;  %v468_v35 = vsel %vm16145_vm3, 0, %v467_v33  ;;  %v465_v36 = vsel %vm16145_vm3, 0, %v464_v34  ;;  %v523_v37 = vld [vmem:[#allocation2 + $0x38] sm:$0x1] }
  0xe5   : > { %14525 = vmatmul.mubr.msk.bf16.gmra.mrb[4].mxu0 %vm815_vm0, %v14776_v5  ;;  %469 = vst [vmem:[#allocation2 + $0x30] sm:$0x1] %v468_v35  ;;  %466 = vst [vmem:[#allocation2 + $0x24] sm:$0x1] %v465_v36  ;;  %v524_v38 = vsel %vm16191_vm6, 0, %v523_v37  ;;  %v14864_v26 = vld [vmem:[#allocation9] sm:$0xff]  }
  0xe6   : > { %14528 = vmatprep.mubr.msk.bf16.mxu0 %vm815_vm0, %v14777_v6  ;;  %525 = vst [vmem:[#allocation2 + $0x38] sm:$0x1] %v524_v38  ;;  %v520_v40 = vld [vmem:[#allocation2 + $0x2c] sm:$0x1]  ;;  %v14790_v41 = vld [vmem:[#allocation2] sm:$0xfe]   ;;  %14127 = vmatpush3.bf16.msra.mxu0 %v14864_v26 }
  0xe7   : > { %v521_v42 = vsel %vm16191_vm6, 0, %v520_v40  ;;  %v2313_v44 = vrot.slane %v14790_v41, 1  ;;  %vm1878_vm8 = vsmask.f32 7424  ;;  %v473_v55 = vld [vmem:[#allocation2 + $0x48] sm:$0x1]  ;;  %14668 = vmatpush3.bf16.msra.mxu1 %v14864_v26  ;;  %14128 = vmatprep.subr.bf16.mxu0 %v14870_v27 }
  0xe8   : > { %522 = vst [vmem:[#allocation2 + $0x2c] sm:$0x1] %v521_v42  ;;  %v470_v56 = vld [vmem:[#allocation2 + $0x3c] sm:$0x1]  ;;  %v474_v57 = vsel %vm16145_vm3, 0, %v473_v55  ;;  %v14872_v28 = vld [vmem:[#allocation9 + $0x8] sm:$0xff]   ;;  %14661 = vmatprep.subr.bf16.mxu1 %v14870_v27 }
  0xe9   : > { %v471_v58 = vsel %vm16145_vm3, 0, %v470_v56  ;;  %v529_v59 = vld [vmem:[#allocation2 + $0x50] sm:$0x1]  ;;  %475 = vst [vmem:[#allocation2 + $0x48] sm:$0x1] %v474_v57  ;;  %v14879_v33 = vld [vmem:[#allocation9 + $0x50] sm:$0xff]  }
  0xea   : > { %v14792_v39 = vld [vmem:[#allocation2] sm:$0xff]   ;;  %472 = vst [vmem:[#allocation2 + $0x3c] sm:$0x1] %v471_v58  ;;  %v530_v60 = vsel %vm16191_vm6, 0, %v529_v59  ;;  %v476_v1 = vld [vmem:[#allocation2 + $0x54] sm:$0x1]  ;;  %14129 = vmatpush3.bf16.msra.mxu0 %v14872_v28 }
  0xeb   : > { %v14791_v43 = vld [vmem:[#allocation2 + $0x8] ss:$0 sps:$4 sm:$0x11]   ;;  %v1882_v45 = vshll.u32 %v14792_v39, 16  ;;  %v1880_v48 = vshrl.u32 %v14792_v39, 16  ;;  %v477_v3 = vsel %vm16145_vm3, 0, %v476_v1  ;;  %14669 = vmatpush3.bf16.msra.mxu1 %v14872_v28  ;;  %14130 = vmatprep.subr.bf16.mxu0 %v14879_v33 }
  0xec   : > { %v2314_v46 = vrot.slane %v14791_v43, 1  ;;  %v14793_v47 = vld [vmem:[#allocation2 + $0x8] ss:$0 sps:$4 sm:$0x11]   ;;  %531 = vst [vmem:[#allocation2 + $0x50] sm:$0x1] %v530_v60  ;;  %14662 = vmatprep.subr.bf16.mxu1 %v14879_v33 }
  0xed   : > { %14529 = vmatmul.mubr.msk.bf16.gmra.mrb[8].mxu0 %vm815_vm0, %v14778_v10  ;;  %v1884_v49 = vrot.slane %v1882_v45, 1  ;;  %v1887_v51 = vshll.u32 %v14793_v47, 16  ;;  %v526_v61 = vld [vmem:[#allocation2 + $0x44] sm:$0x1]  ;;  %v479_v63 = vld [vmem:[#allocation2 + $0x60] sm:$0x1] }
  0xee   : > { %14532 = vmatprep.mubr.msk.bf16.mxu0 %vm815_vm0, %v14779_v11  ;;  %v2315_v50 = vsel %vm2312_vm7, %v2313_v44, %v2314_v46  ;;  %v527_v62 = vsel %vm16191_vm6, 0, %v526_v61  ;;  %v480_v0 = vsel %vm16145_vm3, 0, %v479_v63  ;;  %v535_v2 = vld [vmem:[#allocation2 + $0x68] sm:$0x1]  ;;  %v532_v5 = vld [vmem:[#allocation2 + $0x5c] sm:$0x1] }
  0xef   : > { %2361 = vrot.lane.b32.xlu1 %v2315_v50, %s15832_s21  ;;  %v1885_v52 = vor.u32 %v1884_v49, %v1880_v48  ;;  %v1889_v53 = vrot.slane %v1887_v51, 1  ;;  %528 = vst [vmem:[#allocation2 + $0x44] sm:$0x1] %v527_v62  ;;  %481 = vst [vmem:[#allocation2 + $0x60] sm:$0x1] %v480_v0  ;;  %v536_v4 = vsel %vm16191_vm6, 0, %v535_v2 }
  0xf0   : > { %478 = vst [vmem:[#allocation2 + $0x54] sm:$0x1] %v477_v3  ;;  %537 = vst [vmem:[#allocation2 + $0x68] sm:$0x1] %v536_v4  ;;  %v533_v6 = vsel %vm16191_vm6, 0, %v532_v5  ;;  %v14882_v36 = vld [vmem:[#allocation9 + $0x10] sm:$0xff]  }
  0xf1   : > { %v1890_v54 = vsel %vm1878_vm8, %v1885_v52, %v1889_v53  ;;  %534 = vst [vmem:[#allocation2 + $0x5c] sm:$0x1] %v533_v6  ;;  %v485_v8 = vld [vmem:[#allocation2 + $0x78] sm:$0x1]  ;;  %v482_v10 = vld [vmem:[#allocation2 + $0x6c] sm:$0x1]  ;;  %14131 = vmatpush3.bf16.msra.mxu0 %v14882_v36  ;;  %14670 = vmatpush3.bf16.msra.mxu1 %v14882_v36 }
  0xf2   : > { %2071 = vrot.lane.b32.xlu0 %v1890_v54, %s15833_s28  ;;  %v486_v9 = vsel %vm16145_vm3, 0, %v485_v8  ;;  %v483_v11 = vsel %vm16145_vm3, 0, %v482_v10  ;;  %v544_v22 = vld [vmem:[#allocation2 + $0x8c] sm:$0x1]  ;;  %v16247_v29 = vld [vmem:[#allocation7] ss:$0 sm:$0xff] }
  0xf3   : > { %487 = vst [vmem:[#allocation2 + $0x78] sm:$0x1] %v486_v9  ;;  %484 = vst [vmem:[#allocation2 + $0x6c] sm:$0x1] %v483_v11  ;;  %v545_v23 = vsel %vm16191_vm6, 0, %v544_v22  ;;  %v14887_v36 = vld [vmem:[#allocation9 + $0x58] sm:$0xff]  }
  0xf4   : > { %546 = vst [vmem:[#allocation2 + $0x8c] sm:$0x1] %v545_v23  ;;  %vm1121_vm9 = vsmask.f32 4368  ;;  %v497_v47 = vld [vmem:[#allocation2 + $0xa8] sm:$0x1]  ;;  %14132 = vmatprep.subr.bf16.mxu0 %v14887_v36  ;;  %14663 = vmatprep.subr.bf16.mxu1 %v14887_v36 }
  0xf5   : > { %14533 = vmatmul.mubr.msk.bf16.gmra.mrb[12].mxu0 %vm815_vm0, %v14780_v12  ;;  %v541_v12 = vld [vmem:[#allocation2 + $0x80] sm:$0x1]  ;;  %v1453_v49 = vld [vmem:[#allocation2 + $0x18] sm:$0xf]  ;;  %v498_v52 = vsel %vm16145_vm3, 0, %v497_v47  ;;  %vm16264_vm11 = vmor %vm453_vm1, %vm1121_vm9 }
  0xf6   : > { %14536 = vmatprep.mubr.msk.bf16.mxu0 %vm815_vm0, %v14781_v13  ;;  %v542_v13 = vsel %vm16191_vm6, 0, %v541_v12  ;;  %499 = vst [vmem:[#allocation2 + $0xa8] sm:$0x1] %v498_v52  ;;  %v1446_v61 = vld [vmem:[#allocation2 + $0xc] sm:$0xf] }
  0xf7   : > { %543 = vst [vmem:[#allocation2 + $0x80] sm:$0x1] %v542_v13  ;;  %v1457_v4 = vld [vmem:[#allocation2 + $0x20] sm:$0x1]  ;;  %v1450_v12 = vld [vmem:[#allocation2 + $0x14] sm:$0x1] }
  0xf8   : > { %v553_v25 = vld [vmem:[#allocation2 + $0xb0] sm:$0x1]  ;;  %vm8496_vm15 = vsmask.f32 3328  ;;  %vm8497_vm1 = vsmask.f32 7440 }
  0xf9   : > { %vm17839_vm2 = vmor %vm8496_vm15, %vm8497_vm1 }
  0xfd   : > { %14537 = vmatmul.mubr.msk.bf16.gmra.mrb[16].mxu0 %vm815_vm0, %v14782_v14  ;;  %v538_v14 = vld [vmem:[#allocation2 + $0x74] sm:$0x1] }
  0xfe   : > { %14540 = vmatprep.mubr.msk.bf16.mxu0 %vm815_vm0, %v14783_v15  ;;  %v539_v15 = vsel %vm16191_vm6, 0, %v538_v14 }
  0xff   : > { %540 = vst [vmem:[#allocation2 + $0x74] sm:$0x1] %v539_v15 }
 0x105   : > { %14541 = vmatmul.mubr.msk.bf16.gmra.mrb[20].mxu0 %vm815_vm0, %v14784_v16  ;;  %v491_v16 = vld [vmem:[#allocation2 + $0x90] sm:$0x1] }
 0x106   : > { %14544 = vmatprep.mubr.msk.bf16.mxu0 %vm815_vm0, %v14785_v17  ;;  %v492_v17 = vsel %vm16145_vm3, 0, %v491_v16 }
 0x107   : > { %493 = vst [vmem:[#allocation2 + $0x90] sm:$0x1] %v492_v17 }
 0x10d   : > { %14545 = vmatmul.mubr.msk.bf16.gmra.mrb[24].mxu0 %vm815_vm0, %v14786_v18  ;;  %v488_v18 = vld [vmem:[#allocation2 + $0x84] sm:$0x1] }
 0x10e   : > { %14548 = vmatprep.mubr.msk.bf16.mxu0 %vm815_vm0, %v14787_v19  ;;  %v489_v19 = vsel %vm16145_vm3, 0, %v488_v18 }
 0x10f   : > { %490 = vst [vmem:[#allocation2 + $0x84] sm:$0x1] %v489_v19  ;;  %v494_v19 = vld [vmem:[#allocation2 + $0x9c] sm:$0x1] }
 0x115   : > { %14549 = vmatmul.mubr.msk.bf16.gmra.mrb[28].mxu0 %vm815_vm0, %v14788_v20  ;;  %v547_v20 = vld [vmem:[#allocation2 + $0x98] sm:$0x1] }
 0x116   : > { %v548_v21 = vsel %vm16191_vm6, 0, %v547_v20 }
 0x117   : > { %549 = vst [vmem:[#allocation2 + $0x98] sm:$0x1] %v548_v21 }
 0x1b0   : > { %v14522_v30 = vpop.f32.mrb[0].mxu0 }
 0x1b1   : > { %v907_v31 = vadd.f32 %v14522_v30, %v16247_v29  ;;  %v898_v32 = vpop.f32.mrb[1].mxu0 }
 0x1b2   : > { %v899_v34 = vadd.f32 %v16247_v29, %v898_v32  ;;  %v14523_v35 = vpop.f32.mrb[2].mxu0 }
 0x1b3   : > { %v13982_v37 = vpack.c.bf16 %v907_v31, %v907_v31  ;;  %v910_v38 = vadd.f32 %v14523_v35, %v16247_v29  ;;  %v901_v39 = vpop.f32.mrb[3].mxu0  ;;  %v550_v31 = vld [vmem:[#allocation2 + $0xa4] sm:$0x1]  ;;  %v495_v35 = vsel %vm16145_vm3, 0, %v494_v19 }
 0x1b4   : > { %v13980_v40 = vpack.c.bf16 %v899_v34, %v899_v34  ;;  %v902_v41 = vadd.f32 %v16247_v29, %v901_v39  ;;  %496 = vst [vmem:[#allocation2 + $0x9c] sm:$0x1] %v495_v35 }
 0x1b5   : > { %v1141_v42 = vshrl.u32 %v13982_v37, 16  ;;  %v13983_v43 = vpack.c.bf16 %v910_v38, %v910_v38  ;;  %v1144_v44 = vshll.u32 %v13982_v37, 16  ;;  %v14890_v37 = vld [vmem:[#allocation9 + $0x18] sm:$0xff]   ;;  %v1467_v38 = vld [vmem:[#allocation2 + $0x30] sm:$0xf] }
 0x1b6   : > { %v1124_v45 = vshrl.u32 %v13980_v40, 16  ;;  %v13981_v46 = vpack.c.bf16 %v902_v41, %v902_v41  ;;  %v1127_v50 = vshll.u32 %v13980_v40, 16  ;;  %v554_v41 = vsel %vm16191_vm6, 0, %v553_v25  ;;  %14133 = vmatpush3.bf16.msra.mxu0 %v14890_v37  ;;  %14671 = vmatpush3.bf16.msra.mxu1 %v14890_v37 }
 0x1b7   : > { %v1143_v48 = vrot.slane %v1141_v42, 7  ;;  %v1149_v51 = vshrl.u32 %v13983_v43, 16  ;;  %v1152_v55 = vshll.u32 %v13983_v43, 16  ;;  %v551_v42 = vsel %vm16191_vm6, 0, %v550_v31  ;;  %555 = vst [vmem:[#allocation2 + $0xb0] sm:$0x1] %v554_v41 }
 0x1b8   : > { %v1126_v54 = vrot.slane %v1124_v45, 7  ;;  %v1132_v56 = vshrl.u32 %v13981_v46, 16  ;;  %v1135_v57 = vshll.u32 %v13981_v46, 16  ;;  %v14526_v58 = vpop.f32.mrb[4].mxu0  ;;  %552 = vst [vmem:[#allocation2 + $0xa4] sm:$0x1] %v551_v42 }
 0x1b9   : > { %v1146_v59 = vor.u32 %v1144_v44, %v1143_v48  ;;  %v1147_v60 = vrot.slane %v1143_v48, 4  ;;  %v1151_v62 = vrot.slane %v1149_v51, 7  ;;  %v923_v63 = vadd.f32 %v14526_v58, %v16247_v29  ;;  %v914_v0 = vpop.f32.mrb[5].mxu0  ;;  %v1460_v44 = vld [vmem:[#allocation2 + $0x24] sm:$0xf] }
 0x1ba   : > { %v1129_v1 = vor.u32 %v1127_v50, %v1126_v54  ;;  %v1130_v2 = vrot.slane %v1126_v54, 4  ;;  %v1134_v5 = vrot.slane %v1132_v56, 7  ;;  %v915_v6 = vadd.f32 %v16247_v29, %v914_v0  ;;  %v14527_v8 = vpop.f32.mrb[6].mxu0  ;;  %v14896_v0 = vld [vmem:[#allocation2] sm:$0xff]  }
 0x1bb   : > { %v1454_v9 = vsel %vm16257_vm10, %v1146_v59, %v1453_v49  ;;  %v1154_v10 = vor.u32 %v1152_v55, %v1151_v62  ;;  %v1156_v11 = vrot.slane %v1151_v62, 4  ;;  %v13986_v13 = vpack.c.bf16 %v923_v63, %v923_v63  ;;  %v917_v14 = vpop.f32.mrb[7].mxu0  ;;  %v1464_v62 = vld [vmem:[#allocation2 + $0x2c] sm:$0x1]  ;;  %1686 = vst.msk [vmem:[#allocation4] sm:$0xff] %vm815_vm0, %v14896_v0 }
 0x1bc   : > { %1455 = vst [vmem:[#allocation2 + $0x18] sm:$0xf] %v1454_v9  ;;  %v1447_v15 = vsel %vm16257_vm10, %v1129_v1, %v1446_v61  ;;  %v1137_v16 = vor.u32 %v1135_v57, %v1134_v5  ;;  %v1139_v17 = vrot.slane %v1134_v5, 4  ;;  %v13984_v18 = vpack.c.bf16 %v915_v6, %v915_v6  ;;  %v1478_v0 = vld [vmem:[#allocation2 + $0x44] sm:$0x1] }
 0x1bd   : > { %1448 = vst [vmem:[#allocation2 + $0xc] sm:$0xf] %v1447_v15  ;;  %v1155_v20 = vsel %vm16264_vm11, %v1147_v60, %v1154_v10  ;;  %v1458_v21 = vsel %vm16145_vm3, %v1156_v11, %v1457_v4  ;;  %v1175_v22 = vshrl.u32 %v13986_v13, 16  ;;  %v1178_v23 = vshll.u32 %v13986_v13, 16  ;;  %v1471_v60 = vld [vmem:[#allocation2 + $0x38] sm:$0x1] }
 0x1be   : > { %1456 = vst.msk [vmem:[#allocation2 + $0x1c] sm:$0xf] %vm443_vm4, %v1155_v20  ;;  %1459 = vst [vmem:[#allocation2 + $0x20] sm:$0x1] %v1458_v21  ;;  %v1138_v26 = vsel %vm16264_vm11, %v1130_v2, %v1137_v16  ;;  %v1451_v27 = vsel %vm16145_vm3, %v1139_v17, %v1450_v12  ;;  %v1158_v28 = vshrl.u32 %v13984_v18, 16  ;;  %v1161_v30 = vshll.u32 %v13984_v18, 16 }
 0x1bf   : > { %1449 = vst.msk [vmem:[#allocation2 + $0x10] sm:$0xf] %vm443_vm4, %v1138_v26  ;;  %1452 = vst [vmem:[#allocation2 + $0x14] sm:$0x1] %v1451_v27  ;;  %v1177_v32 = vrot.slane %v1175_v22, 7  ;;  %v926_v33 = vadd.f32 %v14527_v8, %v16247_v29  ;;  %v918_v34 = vadd.f32 %v16247_v29, %v917_v14 }
 0x1c0   : > { %v1160_v39 = vrot.slane %v1158_v28, 7  ;;  %v14530_v40 = vpop.f32.mrb[8].mxu0  ;;  %v1481_v26 = vld [vmem:[#allocation2 + $0x48] sm:$0xf] }
 0x1c1   : > { %v1180_v43 = vor.u32 %v1178_v23, %v1177_v32  ;;  %v13987_v45 = vpack.c.bf16 %v926_v33, %v926_v33  ;;  %v13985_v46 = vpack.c.bf16 %v918_v34, %v918_v34  ;;  %v930_v47 = vpop.f32.mrb[9].mxu0  ;;  %v1181_v48 = vrot.slane %v1177_v32, 4 }
 0x1c2   : > { %v1163_v49 = vor.u32 %v1161_v30, %v1160_v39  ;;  %v939_v50 = vadd.f32 %v14530_v40, %v16247_v29  ;;  %v931_v51 = vadd.f32 %v16247_v29, %v930_v47  ;;  %v14531_v52 = vpop.f32.mrb[10].mxu0  ;;  %v1164_v1 = vrot.slane %v1160_v39, 4  ;;  %v1474_v40 = vld [vmem:[#allocation2 + $0x3c] sm:$0xf] }
 0x1c3   : > { %v1468_v54 = vsel %vm16257_vm10, %v1180_v43, %v1467_v38  ;;  %v1183_v55 = vshrl.u32 %v13987_v45, 16  ;;  %v1186_v56 = vshll.u32 %v13987_v45, 16  ;;  %v1166_v57 = vshrl.u32 %v13985_v46, 16  ;;  %v933_v58 = vpop.f32.mrb[11].mxu0 }
 0x1c4   : > { %1469 = vst [vmem:[#allocation2 + $0x30] sm:$0xf] %v1468_v54  ;;  %v1461_v59 = vsel %vm16257_vm10, %v1163_v49, %v1460_v44  ;;  %v1169_v61 = vshll.u32 %v13985_v46, 16  ;;  %v13990_v63 = vpack.c.bf16 %v939_v50, %v939_v50  ;;  %v942_v6 = vadd.f32 %v14531_v52, %v16247_v29  ;;  %v1485_v46 = vld [vmem:[#allocation2 + $0x50] sm:$0x1] }
 0x1c5   : > { %1462 = vst [vmem:[#allocation2 + $0x24] sm:$0xf] %v1461_v59  ;;  %v1185_v2 = vrot.slane %v1183_v55, 7  ;;  %v1168_v4 = vrot.slane %v1166_v57, 7  ;;  %v14794_v5 = vld [vmem:[#allocation2 + $0x18] sm:$0xff]   ;;  %v13988_v9 = vpack.c.bf16 %v931_v51, %v931_v51  ;;  %v934_v10 = vadd.f32 %v16247_v29, %v933_v58 }
 0x1c6   : > { %v14795_v8 = vld [vmem:[#allocation2 + $0x18] sm:$0xfe]   ;;  %3404 = vrot.lane.b32.xlu1 %v14794_v5, %s15832_s21  ;;  %v14796_v15 = vld [vmem:[#allocation2 + $0x20] ss:$0 sps:$4 sm:$0x11]   ;;  %v1209_v18 = vshrl.u32 %v13990_v63, 16  ;;  %v13991_v19 = vpack.c.bf16 %v942_v6, %v942_v6 }
 0x1c7   : > { %v1188_v11 = vor.u32 %v1186_v56, %v1185_v2  ;;  %v1190_v12 = vrot.slane %v1185_v2, 4  ;;  %v1171_v13 = vor.u32 %v1169_v61, %v1168_v4  ;;  %v1173_v14 = vrot.slane %v1168_v4, 4  ;;  %v14797_v16 = vld [vmem:[#allocation2 + $0x18] sm:$0xff]   ;;  %v14798_v25 = vld [vmem:[#allocation2 + $0xc] sm:$0xfe]  }
 0x1c8   : > { %v3182_v17 = vrot.slane %v14795_v8, 1  ;;  %v3183_v27 = vrot.slane %v14796_v15, 1  ;;  %v14799_v28 = vld [vmem:[#allocation2 + $0x14] ss:$0 sps:$4 sm:$0x11]   ;;  %v1211_v30 = vrot.slane %v1209_v18, 7  ;;  %v13989_v32 = vpack.c.bf16 %v934_v10, %v934_v10 }
 0x1c9   : > { %v1189_v20 = vsel %vm16264_vm11, %v1181_v48, %v1188_v11  ;;  %v1472_v21 = vsel %vm16145_vm3, %v1190_v12, %v1471_v60  ;;  %v1172_v22 = vsel %vm16264_vm11, %v1164_v1, %v1171_v13  ;;  %v1465_v23 = vsel %vm16145_vm3, %v1173_v14, %v1464_v62  ;;  %v14800_v34 = vld [vmem:[#allocation2 + $0xc] sm:$0xff]   ;;  %v14801_v49 = vld [vmem:[#allocation2 + $0x18] sm:$0xff]   ;;  %v14802_v56 = vld [vmem:[#allocation2 + $0x20] ss:$0 sps:$4 sm:$0x11]  }
 0x1ca   : > { %1470 = vst.msk [vmem:[#allocation2 + $0x34] sm:$0xf] %vm443_vm4, %v1189_v20  ;;  %1473 = vst [vmem:[#allocation2 + $0x38] sm:$0x1] %v1472_v21  ;;  %v1212_v31 = vshll.u32 %v13990_v63, 16  ;;  %2540 = vrot.lane.b32.xlu1 %v14797_v16, %s15834_s27  ;;  %v3179_v33 = vrot.slane %v14798_v25, 1  ;;  %v3184_v36 = vsel %vm2312_vm7, %v3182_v17, %v3183_v27 }
 0x1cb   : > { %1463 = vst.msk [vmem:[#allocation2 + $0x28] sm:$0xf] %vm443_vm4, %v1172_v22  ;;  %1466 = vst [vmem:[#allocation2 + $0x2c] sm:$0x1] %v1465_v23  ;;  %v1192_v35 = vshrl.u32 %v13988_v9, 16  ;;  %v3180_v37 = vrot.slane %v14799_v28, 1  ;;  %3229 = vrot.lane.b32.xlu0 %v3184_v36, %s15833_s28 }
 0x1cc   : > { %v1214_v38 = vor.u32 %v1212_v31, %v1211_v30  ;;  %v1215_v39 = vrot.slane %v1211_v30, 4  ;;  %v1195_v42 = vshll.u32 %v13988_v9, 16  ;;  %v1217_v43 = vshrl.u32 %v13991_v19, 16  ;;  %v14809_v50 = vld [vmem:[#allocation2 + $0x18] sm:$0xff]  }
 0x1cd   : > { %v1194_v41 = vrot.slane %v1192_v35, 7  ;;  %v1220_v44 = vshll.u32 %v13991_v19, 16  ;;  %v1200_v47 = vshrl.u32 %v13989_v32, 16  ;;  %v1203_v48 = vshll.u32 %v13989_v32, 16  ;;  %v14803_v10 = vld [vmem:[#allocation2 + $0x18] sm:$0xfe]  }
 0x1ce   : > { %v1482_v45 = vsel %vm16257_vm10, %v1214_v38, %v1481_v26  ;;  %v3181_v51 = vsel %vm2312_vm7, %v3179_v33, %v3180_v37  ;;  %2538 = vrot.lane.b32.xlu1 %v14800_v34, %s15834_s27  ;;  %v1219_v55 = vrot.slane %v1217_v43, 7  ;;  %v3645_v58 = vshrl.u32 %v14801_v49, 16  ;;  %v14804_v11 = vld [vmem:[#allocation2 + $0x20] ss:$0 sps:$4 sm:$0x11]   ;;  %v14813_v26 = vld [vmem:[#allocation2 + $0xc] sm:$0xff]  }
 0x1cf   : > { %1483 = vst [vmem:[#allocation2 + $0x48] sm:$0xf] %v1482_v45  ;;  %v1197_v52 = vor.u32 %v1195_v42, %v1194_v41  ;;  %v1198_v54 = vrot.slane %v1194_v41, 4  ;;  %v1202_v57 = vrot.slane %v1200_v47, 7  ;;  %v3647_v59 = vshll.u32 %v14801_v49, 16  ;;  %3227 = vrot.lane.b32.xlu0 %v3181_v51, %s15833_s28 }
 0x1d0   : > { %v1904_v60 = vshrl.u32 %v14809_v50, 16  ;;  %v1222_v62 = vor.u32 %v1220_v44, %v1219_v55  ;;  %v1224_v63 = vrot.slane %v1219_v55, 4  ;;  %v3652_v1 = vshll.u32 %v14802_v56, 16  ;;  %v14806_v19 = vld [vmem:[#allocation2 + $0xc] sm:$0xfe]   ;;  %v14534_v55 = vpop.f32.mrb[12].mxu0 }
 0x1d1   : > { %v1475_v61 = vsel %vm16257_vm10, %v1197_v52, %v1474_v40  ;;  %v1205_v2 = vor.u32 %v1203_v48, %v1202_v57  ;;  %v1207_v4 = vrot.slane %v1202_v57, 4  ;;  %v3649_v5 = vrot.slane %v3647_v59, 1  ;;  %v14805_v21 = vld [vmem:[#allocation2 + $0x30] sm:$0xff]   ;;  %v14810_v28 = vld [vmem:[#allocation2 + $0x20] ss:$0 sps:$4 sm:$0x11]  }
 0x1d2   : > { %1476 = vst [vmem:[#allocation2 + $0x3c] sm:$0xf] %v1475_v61  ;;  %v1223_v6 = vsel %vm16264_vm11, %v1215_v39, %v1222_v62  ;;  %v1486_v8 = vsel %vm16145_vm3, %v1224_v63, %v1485_v46  ;;  %v3654_v9 = vrot.slane %v3652_v1, 1  ;;  %v1906_v15 = vshll.u32 %v14809_v50, 16  ;;  %v14811_v33 = vld [vmem:[#allocation2 + $0x30] sm:$0xfe]  }
 0x1d3   : > { %1484 = vst.msk [vmem:[#allocation2 + $0x4c] sm:$0xf] %vm443_vm4, %v1223_v6  ;;  %1487 = vst [vmem:[#allocation2 + $0x50] sm:$0x1] %v1486_v8  ;;  %v1206_v12 = vsel %vm16264_vm11, %v1198_v54, %v1205_v2  ;;  %v1479_v13 = vsel %vm16145_vm3, %v1207_v4, %v1478_v0  ;;  %v3650_v14 = vor.u32 %v3649_v5, %v3645_v58  ;;  %v2319_v16 = vrot.slane %v14803_v10, 1  ;;  %v14808_v35 = vld [vmem:[#allocation2 + $0x24] sm:$0xff]  }
 0x1d4   : > { %1477 = vst.msk [vmem:[#allocation2 + $0x40] sm:$0xf] %vm443_vm4, %v1206_v12  ;;  %1480 = vst [vmem:[#allocation2 + $0x44] sm:$0x1] %v1479_v13  ;;  %v2320_v17 = vrot.slane %v14804_v11, 1  ;;  %v2316_v23 = vrot.slane %v14806_v19, 1  ;;  %v955_v61 = vadd.f32 %v14534_v55, %v16247_v29 }
 0x1d5   : > { %v3655_v18 = vsel %vm1878_vm8, %v3650_v14, %v3654_v9  ;;  %v14807_v22 = vld [vmem:[#allocation2 + $0x14] ss:$0 sps:$4 sm:$0x11]   ;;  %v1908_v25 = vrot.slane %v1906_v15, 1  ;;  %v1911_v32 = vshll.u32 %v14810_v28, 16  ;;  %v3188_v37 = vrot.slane %v14811_v33, 1 }
 0x1d6   : > { %3836 = vrot.lane.b32.xlu0 %v3655_v18, %s15834_s27  ;;  %v2321_v20 = vsel %vm2312_vm7, %v2319_v16, %v2320_v17  ;;  %v2317_v27 = vrot.slane %v14807_v22, 1  ;;  %v14812_v34 = vld [vmem:[#allocation2 + $0x38] ss:$0 sps:$4 sm:$0x11]   ;;  %v1894_v40 = vshll.u32 %v14813_v26, 16  ;;  %v1892_v42 = vshrl.u32 %v14813_v26, 16 }
 0x1d7   : > { %2365 = vrot.lane.b32.xlu1 %v2321_v20, %s15832_s21  ;;  %v1909_v31 = vor.u32 %v1908_v25, %v1904_v60  ;;  %v1913_v36 = vrot.slane %v1911_v32, 1  ;;  %v14814_v38 = vld [vmem:[#allocation2 + $0x14] ss:$0 sps:$4 sm:$0x11]   ;;  %v3189_v39 = vrot.slane %v14812_v34, 1  ;;  %v946_v59 = vpop.f32.mrb[13].mxu0  ;;  %v13994_v9 = vpack.c.bf16 %v955_v61, %v955_v61 }
 0x1d8   : > { %v2318_v30 = vsel %vm2312_vm7, %v2316_v23, %v2317_v27  ;;  %v1899_v43 = vshll.u32 %v14814_v38, 16  ;;  %v14815_v44 = vld [vmem:[#allocation2 + $0x24] sm:$0xfe]   ;;  %v1896_v45 = vrot.slane %v1894_v40, 1  ;;  %v14818_v52 = vld [vmem:[#allocation2 + $0x30] sm:$0xff]   ;;  %v947_v62 = vadd.f32 %v16247_v29, %v946_v59  ;;  %v14535_v63 = vpop.f32.mrb[14].mxu0 }
 0x1d9   : > { %v1914_v41 = vsel %vm1878_vm8, %v1909_v31, %v1913_v36  ;;  %v14816_v46 = vld [vmem:[#allocation2 + $0x2c] ss:$0 sps:$4 sm:$0x11]   ;;  %v3185_v48 = vrot.slane %v14815_v44, 1  ;;  %v3190_v49 = vsel %vm2312_vm7, %v3188_v37, %v3189_v39  ;;  %v3669_v57 = vshrl.u32 %v14818_v52, 16  ;;  %v14817_v1 = vld [vmem:[#allocation2 + $0x30] sm:$0xff]  }
 0x1da   : > { %3408 = vrot.lane.b32.xlu0 %v14805_v21, %s15832_s21  ;;  %v1901_v47 = vrot.slane %v1899_v43, 1  ;;  %v1897_v50 = vor.u32 %v1896_v45, %v1892_v42  ;;  %v3186_v51 = vrot.slane %v14816_v46, 1  ;;  %v14819_v54 = vld [vmem:[#allocation2 + $0x38] ss:$0 sps:$4 sm:$0x11]   ;;  %v3671_v58 = vshll.u32 %v14818_v52, 16 }
 0x1db   : > { %2363 = vrot.lane.b32.xlu1 %v2318_v30, %s15832_s21  ;;  %v3676_v60 = vshll.u32 %v14819_v54, 16  ;;  %v958_v4 = vadd.f32 %v14535_v63, %v16247_v29  ;;  %v949_v5 = vpop.f32.mrb[15].mxu0  ;;  %v14821_v6 = vld [vmem:[#allocation2 + $0x24] sm:$0xff]   ;;  %v13992_v10 = vpack.c.bf16 %v947_v62, %v947_v62  ;;  %v14822_v12 = vld [vmem:[#allocation2 + $0x2c] ss:$0 sps:$4 sm:$0x11]  }
 0x1dc   : > { %v1902_v56 = vsel %vm1878_vm8, %v1897_v50, %v1901_v47  ;;  %v3187_v0 = vsel %vm2312_vm7, %v3185_v48, %v3186_v51  ;;  %v3673_v2 = vrot.slane %v3671_v58, 1  ;;  %v950_v11 = vadd.f32 %v16247_v29, %v949_v5  ;;  %v14823_v21 = vld [vmem:[#allocation2 + $0x30] sm:$0xfe]   ;;  %v1495_v23 = vld [vmem:[#allocation2 + $0x60] sm:$0xf]  ;;  %v14820_v25 = vld [vmem:[#allocation2 + $0x24] sm:$0xff]  }
 0x1dd   : > { %v3678_v8 = vrot.slane %v3676_v60, 1  ;;  %v13995_v14 = vpack.c.bf16 %v958_v4, %v958_v4  ;;  %v3657_v15 = vshrl.u32 %v14821_v6, 16  ;;  %v3659_v16 = vshll.u32 %v14821_v6, 16  ;;  %v1488_v26 = vld [vmem:[#allocation2 + $0x54] sm:$0xf]  ;;  %v14833_v62 = vld [vmem:[#allocation2 + $0x24] sm:$0xff]  }
 0x1de   : > { %3406 = vrot.lane.b32.xlu0 %v14808_v35, %s15832_s21  ;;  %v3674_v13 = vor.u32 %v3673_v2, %v3669_v57  ;;  %v1243_v17 = vshrl.u32 %v13994_v9, 16  ;;  %v1246_v18 = vshll.u32 %v13994_v9, 16  ;;  %v1226_v19 = vshrl.u32 %v13992_v10, 16  ;;  %v14824_v31 = vld [vmem:[#allocation2 + $0x38] ss:$0 sps:$4 sm:$0x11]  }
 0x1df   : > { %2075 = vrot.lane.b32.xlu1 %v1914_v41, %s15833_s28  ;;  %v1229_v20 = vshll.u32 %v13992_v10, 16  ;;  %v1251_v27 = vshrl.u32 %v13995_v14, 16  ;;  %v1254_v28 = vshll.u32 %v13995_v14, 16  ;;  %v13993_v30 = vpack.c.bf16 %v950_v11, %v950_v11  ;;  %v1499_v34 = vld [vmem:[#allocation2 + $0x68] sm:$0x1]  ;;  %v14829_v57 = vld [vmem:[#allocation2 + $0x30] sm:$0xff]  }
 0x1e0   : > { %v3679_v22 = vsel %vm1878_vm8, %v3674_v13, %v3678_v8  ;;  %v1245_v32 = vrot.slane %v1243_v17, 7  ;;  %v1228_v33 = vrot.slane %v1226_v19, 7  ;;  %v3661_v35 = vrot.slane %v3659_v16, 1  ;;  %v1492_v45 = vld [vmem:[#allocation2 + $0x5c] sm:$0x1]  ;;  %v14825_v6 = vld [vmem:[#allocation2 + $0x48] sm:$0xff]  }
 0x1e1   : > { %v3664_v36 = vshll.u32 %v14822_v12, 16  ;;  %v1253_v37 = vrot.slane %v1251_v27, 7  ;;  %v1234_v38 = vshrl.u32 %v13993_v30, 16  ;;  %v1237_v39 = vshll.u32 %v13993_v30, 16  ;;  %v14826_v50 = vld [vmem:[#allocation2 + $0x24] sm:$0xfe]  }
 0x1e2   : > { %3233 = vrot.lane.b32.xlu0 %v3190_v49, %s15833_s28  ;;  %v2325_v40 = vrot.slane %v14823_v21, 1  ;;  %v1248_v41 = vor.u32 %v1246_v18, %v1245_v32  ;;  %v1249_v42 = vrot.slane %v1245_v32, 4  ;;  %v1231_v43 = vor.u32 %v1229_v20, %v1228_v33  ;;  %v14830_v8 = vld [vmem:[#allocation2 + $0x38] ss:$0 sps:$4 sm:$0x11]   ;;  %v14828_v18 = vld [vmem:[#allocation2 + $0x3c] sm:$0xff]  }
 0x1e3   : > { %2073 = vrot.lane.b32.xlu1 %v1902_v56, %s15833_s28  ;;  %v1232_v44 = vrot.slane %v1228_v33, 4  ;;  %v1256_v46 = vor.u32 %v1254_v28, %v1253_v37  ;;  %v1258_v47 = vrot.slane %v1253_v37, 4  ;;  %v1236_v48 = vrot.slane %v1234_v38, 7  ;;  %v14827_v56 = vld [vmem:[#allocation2 + $0x2c] ss:$0 sps:$4 sm:$0x11]  }
 0x1e4   : > { %v3662_v49 = vor.u32 %v3661_v35, %v3657_v15  ;;  %v1496_v51 = vsel %vm16257_vm10, %v1248_v41, %v1495_v23  ;;  %v1489_v52 = vsel %vm16257_vm10, %v1231_v43, %v1488_v26  ;;  %v3666_v54 = vrot.slane %v3664_v36, 1  ;;  %v14831_v13 = vld [vmem:[#allocation2 + $0x48] sm:$0xfe]   ;;  %v14832_v17 = vld [vmem:[#allocation2 + $0x50] ss:$0 sps:$4 sm:$0x11]  }
 0x1e5   : > { %v2326_v55 = vrot.slane %v14824_v31, 1  ;;  %1497 = vst [vmem:[#allocation2 + $0x60] sm:$0xf] %v1496_v51  ;;  %1490 = vst [vmem:[#allocation2 + $0x54] sm:$0xf] %v1489_v52  ;;  %v1257_v58 = vsel %vm16264_vm11, %v1249_v42, %v1256_v46  ;;  %v1500_v59 = vsel %vm16145_vm3, %v1258_v47, %v1499_v34  ;;  %v1239_v60 = vor.u32 %v1237_v39, %v1236_v48  ;;  %v14838_v35 = vld [vmem:[#allocation2 + $0x48] sm:$0xff]  }
 0x1e6   : > { %3231 = vrot.lane.b32.xlu0 %v3187_v0, %s15833_s28  ;;  %v1241_v61 = vrot.slane %v1236_v48, 4  ;;  %1498 = vst.msk [vmem:[#allocation2 + $0x64] sm:$0xf] %vm443_vm4, %v1257_v58  ;;  %1501 = vst [vmem:[#allocation2 + $0x68] sm:$0x1] %v1500_v59  ;;  %v3667_v63 = vsel %vm1878_vm8, %v3662_v49, %v3666_v54  ;;  %v2323_v2 = vrot.slane %v14827_v56, 1 }
 0x1e7   : > { %2544 = vrot.lane.b32.xlu1 %v14817_v1, %s15834_s27  ;;  %v2327_v0 = vsel %vm2312_vm7, %v2325_v40, %v2326_v55  ;;  %v2322_v1 = vrot.slane %v14826_v50, 1  ;;  %v1240_v4 = vsel %vm16264_vm11, %v1232_v44, %v1239_v60  ;;  %v1928_v9 = vshrl.u32 %v14829_v57, 16  ;;  %v14834_v23 = vld [vmem:[#allocation2 + $0x2c] ss:$0 sps:$4 sm:$0x11]   ;;  %v14538_v37 = vpop.f32.mrb[16].mxu0 }
 0x1e8   : > { %v1493_v5 = vsel %vm16145_vm3, %v1241_v61, %v1492_v45  ;;  %1491 = vst.msk [vmem:[#allocation2 + $0x58] sm:$0xf] %vm443_vm4, %v1240_v4  ;;  %v1930_v10 = vshll.u32 %v14829_v57, 16  ;;  %v1916_v11 = vshrl.u32 %v14833_v62, 16  ;;  %v1935_v12 = vshll.u32 %v14830_v8, 16  ;;  %v14837_v42 = vld [vmem:[#allocation2 + $0x48] sm:$0xff]  }
 0x1e9   : > { %1494 = vst [vmem:[#allocation2 + $0x5c] sm:$0x1] %v1493_v5  ;;  %v1918_v14 = vshll.u32 %v14833_v62, 16  ;;  %v2324_v15 = vsel %vm2312_vm7, %v2322_v1, %v2323_v2  ;;  %v3194_v21 = vrot.slane %v14831_v13, 1  ;;  %v1923_v28 = vshll.u32 %v14834_v23, 16  ;;  %v962_v45 = vpop.f32.mrb[17].mxu0 }
 0x1ea   : > { %3840 = vrot.lane.b32.xlu0 %v3679_v22, %s15834_s27  ;;  %v1932_v16 = vrot.slane %v1930_v10, 1  ;;  %v1937_v19 = vrot.slane %v1935_v12, 1  ;;  %v3195_v22 = vrot.slane %v14832_v17, 1  ;;  %v14835_v30 = vld [vmem:[#allocation2 + $0x3c] sm:$0xfe]   ;;  %v3693_v40 = vshrl.u32 %v14838_v35, 16 }
 0x1eb   : > { %2542 = vrot.lane.b32.xlu1 %v14820_v25, %s15834_s27  ;;  %v1920_v25 = vrot.slane %v1918_v14, 1  ;;  %v14836_v31 = vld [vmem:[#allocation2 + $0x44] ss:$0 sps:$4 sm:$0x11]   ;;  %v1925_v32 = vrot.slane %v1923_v28, 1  ;;  %v3191_v33 = vrot.slane %v14835_v30, 1  ;;  %v971_v44 = vadd.f32 %v14538_v37, %v16247_v29 }
 0x1ec   : > { %v1933_v20 = vor.u32 %v1932_v16, %v1928_v9  ;;  %v3192_v34 = vrot.slane %v14836_v31, 1  ;;  %v14839_v36 = vld [vmem:[#allocation2 + $0x50] ss:$0 sps:$4 sm:$0x11]   ;;  %v3196_v38 = vsel %vm2312_vm7, %v3194_v21, %v3195_v22  ;;  %v3695_v41 = vshll.u32 %v14838_v35, 16  ;;  %v14841_v46 = vld [vmem:[#allocation2 + $0x3c] sm:$0xff]  }
 0x1ed   : > { %v1921_v27 = vor.u32 %v1920_v25, %v1916_v11  ;;  %v3700_v43 = vshll.u32 %v14839_v36, 16  ;;  %v963_v49 = vadd.f32 %v16247_v29, %v962_v45  ;;  %v14539_v50 = vpop.f32.mrb[18].mxu0  ;;  %v13998_v52 = vpack.c.bf16 %v971_v44, %v971_v44  ;;  %v14842_v56 = vld [vmem:[#allocation2 + $0x44] ss:$0 sps:$4 sm:$0x11]   ;;  %v14849_v37 = vld [vmem:[#allocation2 + $0x48] sm:$0xff]  }
 0x1ee   : > { %3838 = vrot.lane.b32.xlu0 %v3667_v63, %s15834_s27  ;;  %v1938_v26 = vsel %vm1878_vm8, %v1933_v20, %v1937_v19  ;;  %v3193_v47 = vsel %vm2312_vm7, %v3191_v33, %v3192_v34  ;;  %v3697_v48 = vrot.slane %v3695_v41, 1  ;;  %v974_v54 = vadd.f32 %v14539_v50, %v16247_v29  ;;  %v965_v55 = vpop.f32.mrb[19].mxu0  ;;  %v1509_v5 = vld [vmem:[#allocation2 + $0x78] sm:$0xf]  ;;  %v14843_v10 = vld [vmem:[#allocation2 + $0x48] sm:$0xfe]  }
 0x1ef   : > { %2369 = vrot.lane.b32.xlu1 %v2327_v0, %s15832_s21  ;;  %v1926_v39 = vsel %vm1878_vm8, %v1921_v27, %v1925_v32  ;;  %v3702_v51 = vrot.slane %v3700_v43, 1  ;;  %v3681_v57 = vshrl.u32 %v14841_v46, 16  ;;  %v13996_v59 = vpack.c.bf16 %v963_v49, %v963_v49  ;;  %v14840_v0 = vld [vmem:[#allocation2 + $0x3c] sm:$0xff]   ;;  %v1502_v12 = vld [vmem:[#allocation2 + $0x6c] sm:$0xf] }
 0x1f0   : > { %v3698_v58 = vor.u32 %v3697_v48, %v3693_v40  ;;  %v966_v60 = vadd.f32 %v16247_v29, %v965_v55  ;;  %v3683_v61 = vshll.u32 %v14841_v46, 16  ;;  %v1277_v62 = vshrl.u32 %v13998_v52, 16  ;;  %v1513_v16 = vld [vmem:[#allocation2 + $0x80] sm:$0x1]  ;;  %v1506_v23 = vld [vmem:[#allocation2 + $0x74] sm:$0x1] }
 0x1f1   : > { %v1280_v63 = vshll.u32 %v13998_v52, 16  ;;  %v13999_v1 = vpack.c.bf16 %v974_v54, %v974_v54  ;;  %v3688_v2 = vshll.u32 %v14842_v56, 16  ;;  %v1263_v8 = vshll.u32 %v13996_v59, 16  ;;  %v14846_v36 = vld [vmem:[#allocation2 + $0x3c] sm:$0xfe]   ;;  %v14542_v54 = vpop.f32.mrb[20].mxu0 }
 0x1f2   : > { %3412 = vrot.lane.b32.xlu0 %v14825_v6, %s15832_s21  ;;  %v3703_v4 = vsel %vm1878_vm8, %v3698_v58, %v3702_v51  ;;  %v1260_v6 = vshrl.u32 %v13996_v59, 16  ;;  %v13997_v9 = vpack.c.bf16 %v966_v60, %v966_v60  ;;  %v1279_v11 = vrot.slane %v1277_v62, 7  ;;  %v14845_v45 = vld [vmem:[#allocation2 + $0x60] sm:$0xff]   ;;  %v14850_v55 = vld [vmem:[#allocation2 + $0x50] ss:$0 sps:$4 sm:$0x11]  }
 0x1f3   : > { %2367 = vrot.lane.b32.xlu1 %v2324_v15, %s15832_s21  ;;  %v1285_v29 = vshrl.u32 %v13999_v1, 16  ;;  %v1288_v13 = vshll.u32 %v13999_v1, 16  ;;  %v3685_v14 = vrot.slane %v3683_v61, 1  ;;  %v3690_v19 = vrot.slane %v3688_v2, 1  ;;  %v14853_v48 = vld [vmem:[#allocation2 + $0x3c] sm:$0xff]  }
 0x1f4   : > { %v1262_v15 = vrot.slane %v1260_v6, 7  ;;  %v1268_v17 = vshrl.u32 %v13997_v9, 16  ;;  %v1282_v20 = vor.u32 %v1280_v63, %v1279_v11  ;;  %v1283_v21 = vrot.slane %v1279_v11, 4  ;;  %v14851_v60 = vld [vmem:[#allocation2 + $0x60] sm:$0xfe]  }
 0x1f5   : > { %v1287_v22 = vrot.slane %v1285_v29, 7  ;;  %v3686_v25 = vor.u32 %v3685_v14, %v3681_v57  ;;  %v2331_v31 = vrot.slane %v14843_v10, 1  ;;  %v2328_v46 = vrot.slane %v14846_v36, 1  ;;  %v14848_v57 = vld [vmem:[#allocation2 + $0x54] sm:$0xff]   ;;  %v16412_v61 = vld [vmem:[#allocation7] ss:$0 sm:$0xff] }
 0x1f6   : > { %3410 = vrot.lane.b32.xlu0 %v14828_v18, %s15832_s21  ;;  %v1271_v18 = vshll.u32 %v13997_v9, 16  ;;  %v1265_v27 = vor.u32 %v1263_v8, %v1262_v15  ;;  %v1266_v28 = vrot.slane %v1262_v15, 4  ;;  %v1270_v30 = vrot.slane %v1268_v17, 7  ;;  %v14858_v8 = vld [vmem:[#allocation2 + $0x60] sm:$0xff]   ;;  %v14855_v15 = vld [vmem:[#allocation2 + $0x54] sm:$0xfe]  }
 0x1f7   : > { %2079 = vrot.lane.b32.xlu1 %v1938_v26, %s15833_s28  ;;  %v14844_v26 = vld [vmem:[#allocation2 + $0x50] ss:$0 sps:$4 sm:$0x11]   ;;  %v1510_v32 = vsel %vm16257_vm10, %v1282_v20, %v1509_v5  ;;  %v1290_v33 = vor.u32 %v1288_v13, %v1287_v22  ;;  %v1292_v34 = vrot.slane %v1287_v22, 4  ;;  %v3691_v35 = vsel %vm1878_vm8, %v3686_v25, %v3690_v19  ;;  %v14857_v36 = vld [vmem:[#allocation2 + $0x60] sm:$0xff]  }
 0x1f8   : > { %1511 = vst [vmem:[#allocation2 + $0x78] sm:$0xf] %v1510_v32  ;;  %v1275_v40 = vrot.slane %v1270_v30, 4  ;;  %v2332_v41 = vrot.slane %v14844_v26, 1  ;;  %v1954_v56 = vshll.u32 %v14849_v37, 16  ;;  %v1959_v59 = vshll.u32 %v14850_v55, 16 }
 0x1f9   : > { %v1291_v43 = vsel %vm16264_vm11, %v1283_v21, %v1290_v33  ;;  %v1514_v44 = vsel %vm16145_vm3, %v1292_v34, %v1513_v16  ;;  %v987_v62 = vadd.f32 %v16412_v61, %v14542_v54  ;;  %v1940_v1 = vshrl.u32 %v14853_v48, 16  ;;  %v14854_v10 = vld [vmem:[#allocation2 + $0x44] ss:$0 sps:$4 sm:$0x11]   ;;  %v978_v33 = vpop.f32.mrb[21].mxu0  ;;  %v14862_v34 = vld [vmem:[#allocation2 + $0x54] sm:$0xff]  }
 0x1fa   : > { %3237 = vrot.lane.b32.xlu0 %v3196_v38, %s15833_s28  ;;  %v1503_v38 = vsel %vm16257_vm10, %v1265_v27, %v1502_v12  ;;  %1512 = vst.msk [vmem:[#allocation2 + $0x7c] sm:$0xf] %vm443_vm4, %v1291_v43  ;;  %1515 = vst [vmem:[#allocation2 + $0x80] sm:$0x1] %v1514_v44  ;;  %v1507_v50 = vsel %vm16145_vm3, %v1275_v40, %v1506_v23  ;;  %v2333_v51 = vsel %vm2312_vm7, %v2331_v31, %v2332_v41 }
 0x1fb   : > { %2077 = vrot.lane.b32.xlu1 %v1926_v39, %s15833_s28  ;;  %v1273_v39 = vor.u32 %v1271_v18, %v1270_v30  ;;  %1504 = vst [vmem:[#allocation2 + $0x6c] sm:$0xf] %v1503_v38  ;;  %1508 = vst [vmem:[#allocation2 + $0x74] sm:$0x1] %v1507_v50  ;;  %v1956_v58 = vrot.slane %v1954_v56, 1  ;;  %v3200_v5 = vrot.slane %v14851_v60, 1  ;;  %v14002_v29 = vpack.c.bf16 %v987_v62, %v987_v62 }
 0x1fc   : > { %v1942_v6 = vshll.u32 %v14853_v48, 16  ;;  %v3717_v12 = vshrl.u32 %v14858_v8, 16  ;;  %v1947_v14 = vshll.u32 %v14854_v10, 16  ;;  %v14856_v16 = vld [vmem:[#allocation2 + $0x5c] ss:$0 sps:$4 sm:$0x11]   ;;  %v979_v38 = vadd.f32 %v16412_v61, %v978_v33 }
 0x1fd   : > { %v1274_v49 = vsel %vm16264_vm11, %v1266_v28, %v1273_v39  ;;  %v3197_v20 = vrot.slane %v14855_v15, 1  ;;  %v3198_v21 = vrot.slane %v14856_v16, 1  ;;  %v3719_v22 = vshll.u32 %v14858_v8, 16  ;;  %v14859_v23 = vld [vmem:[#allocation2 + $0x68] ss:$0 sps:$4 sm:$0x11]  }
 0x1fe   : > { %3235 = vrot.lane.b32.xlu0 %v3193_v47, %s15833_s28  ;;  %v1952_v47 = vshrl.u32 %v14849_v37, 16  ;;  %1505 = vst.msk [vmem:[#allocation2 + $0x70] sm:$0xf] %vm443_vm4, %v1274_v49  ;;  %v1944_v11 = vrot.slane %v1942_v6, 1  ;;  %v1949_v19 = vrot.slane %v1947_v14, 1  ;;  %v1311_v25 = vshrl.u32 %v14002_v29, 16 }
 0x1ff   : > { %2548 = vrot.lane.b32.xlu1 %v14837_v42, %s15834_s27  ;;  %v14847_v42 = vld [vmem:[#allocation2 + $0x44] ss:$0 sps:$4 sm:$0x11]   ;;  %v3721_v27 = vrot.slane %v3719_v22, 1  ;;  %v1314_v28 = vshll.u32 %v14002_v29, 16  ;;  %v3724_v31 = vshll.u32 %v14859_v23, 16 }
 0x200   : > { %v2329_v52 = vrot.slane %v14847_v42, 1  ;;  %v1957_v2 = vor.u32 %v1956_v58, %v1952_v47  ;;  %v1945_v18 = vor.u32 %v1944_v11, %v1940_v1  ;;  %v1523_v30 = vld [vmem:[#allocation2 + $0x90] sm:$0xf]  ;;  %v16424_v32 = vrot.slane %v1311_v25, 7  ;;  %v14543_v39 = vpop.f32.mrb[22].mxu0  ;;  %v14873_v11 = vld [vmem:[#allocation2 + $0x60] sm:$0xff]  }
 0x201   : > { %v3722_v37 = vor.u32 %v3721_v27, %v3717_v12  ;;  %v3726_v40 = vrot.slane %v3724_v31, 1  ;;  %v990_v43 = vadd.f32 %v16412_v61, %v14543_v39  ;;  %v981_v44 = vpop.f32.mrb[23].mxu0  ;;  %v3705_v48 = vshrl.u32 %v14862_v34, 16  ;;  %v14865_v56 = vld [vmem:[#allocation2 + $0x60] sm:$0xfe]   ;;  %v14867_v22 = vld [vmem:[#allocation2 + $0x78] sm:$0xff]  }
 0x202   : > { %3844 = vrot.lane.b32.xlu0 %v3703_v4, %s15834_s27  ;;  %v2330_v63 = vsel %vm2312_vm7, %v2328_v46, %v2329_v52  ;;  %v1961_v4 = vrot.slane %v1959_v59, 1  ;;  %v1950_v26 = vsel %vm1878_vm8, %v1945_v18, %v1949_v19  ;;  %v1316_v41 = vor.u32 %v1314_v28, %v16424_v32  ;;  %v14860_v52 = vld [vmem:[#allocation2 + $0x54] sm:$0xff]   ;;  %v14866_v62 = vld [vmem:[#allocation2 + $0x68] ss:$0 sps:$4 sm:$0x11]  }
 0x203   : > { %2546 = vrot.lane.b32.xlu1 %v14840_v0, %s15834_s27  ;;  %v14852_v0 = vld [vmem:[#allocation2 + $0x68] ss:$0 sps:$4 sm:$0x11]   ;;  %v1317_v42 = vrot.slane %v16424_v32, 4  ;;  %v14000_v46 = vpack.c.bf16 %v979_v38, %v979_v38  ;;  %v982_v47 = vadd.f32 %v16412_v61, %v981_v44  ;;  %v3707_v49 = vshll.u32 %v14862_v34, 16 }
 0x204   : > { %v3201_v9 = vrot.slane %v14852_v0, 1  ;;  %v1962_v13 = vsel %vm1878_vm8, %v1957_v2, %v1961_v4  ;;  %v3727_v50 = vsel %vm1878_vm8, %v3722_v37, %v3726_v40  ;;  %v14003_v54 = vpack.c.bf16 %v990_v43, %v990_v43  ;;  %v1527_v6 = vld [vmem:[#allocation2 + $0x98] sm:$0x1]  ;;  %v1520_v29 = vld [vmem:[#allocation2 + $0x8c] sm:$0x1] }
 0x205   : > { %v1297_v58 = vshll.u32 %v14000_v46, 16  ;;  %v14001_v59 = vpack.c.bf16 %v982_v47, %v982_v47  ;;  %v3709_v60 = vrot.slane %v3707_v49, 1  ;;  %v2337_v4 = vrot.slane %v14865_v56, 1  ;;  %v14868_v18 = vld [vmem:[#allocation2 + $0x54] sm:$0xfe]   ;;  %v14871_v44 = vld [vmem:[#allocation2 + $0x6c] sm:$0xff]  }
 0x206   : > { %3842 = vrot.lane.b32.xlu0 %v3691_v35, %s15834_s27  ;;  %v3202_v17 = vsel %vm2312_vm7, %v3200_v5, %v3201_v9  ;;  %v3199_v35 = vsel %vm2312_vm7, %v3197_v20, %v3198_v21  ;;  %v1319_v0 = vshrl.u32 %v14003_v54, 16  ;;  %v1322_v1 = vshll.u32 %v14003_v54, 16  ;;  %v14869_v23 = vld [vmem:[#allocation2 + $0x5c] ss:$0 sps:$4 sm:$0x11]   ;;  %v14877_v43 = vld [vmem:[#allocation2 + $0x54] sm:$0xff]  }
 0x207   : > { %2373 = vrot.lane.b32.xlu1 %v2333_v51, %s15832_s21  ;;  %v1524_v51 = vsel %vm16257_vm10, %v1316_v41, %v1523_v30  ;;  %v1302_v8 = vshrl.u32 %v14001_v59, 16  ;;  %v1305_v9 = vshll.u32 %v14001_v59, 16  ;;  %v3710_v10 = vor.u32 %v3709_v60, %v3705_v48  ;;  %v14875_v38 = vld [vmem:[#allocation2 + $0x78] sm:$0xfe]  }
 0x208   : > { %1525 = vst [vmem:[#allocation2 + $0x90] sm:$0xf] %v1524_v51  ;;  %v1321_v12 = vrot.slane %v1319_v0, 7  ;;  %v2334_v28 = vrot.slane %v14868_v18, 1  ;;  %v2335_v32 = vrot.slane %v14869_v23, 1  ;;  %v1976_v33 = vshrl.u32 %v14873_v11, 16 }
 0x209   : > { %v1304_v16 = vrot.slane %v1302_v8, 7  ;;  %v1978_v37 = vshll.u32 %v14873_v11, 16  ;;  %v1964_v49 = vshrl.u32 %v14877_v43, 16  ;;  %v14878_v51 = vld [vmem:[#allocation2 + $0x5c] ss:$0 sps:$4 sm:$0x11]  }
 0x20a   : > { %3416 = vrot.lane.b32.xlu0 %v14845_v45, %s15832_s21  ;;  %v14863_v45 = vld [vmem:[#allocation2 + $0x5c] ss:$0 sps:$4 sm:$0x11]   ;;  %v1324_v19 = vor.u32 %v1322_v1, %v1321_v12  ;;  %v1326_v20 = vrot.slane %v1321_v12, 4  ;;  %v2336_v39 = vsel %vm2312_vm7, %v2334_v28, %v2335_v32  ;;  %v14546_v8 = vpop.f32.mrb[24].mxu0  ;;  %v14886_v32 = vld [vmem:[#allocation2 + $0x6c] sm:$0xff]  }
 0x20b   : > { %2371 = vrot.lane.b32.xlu1 %v2330_v63, %s15832_s21  ;;  %v3712_v55 = vshll.u32 %v14863_v45, 16  ;;  %v1516_v63 = vld [vmem:[#allocation2 + $0x84] sm:$0xf]  ;;  %v1309_v27 = vrot.slane %v1304_v16, 4  ;;  %v1980_v40 = vrot.slane %v1978_v37, 1  ;;  %v3206_v45 = vrot.slane %v14875_v38, 1 }
 0x20c   : > { %v1325_v30 = vsel %vm16264_vm11, %v1317_v42, %v1324_v19  ;;  %v1528_v31 = vsel %vm16145_vm3, %v1326_v20, %v1527_v6  ;;  %v14876_v42 = vld [vmem:[#allocation2 + $0x80] ss:$0 sps:$4 sm:$0x11]   ;;  %v1003_v12 = vadd.f32 %v16412_v61, %v14546_v8  ;;  %v14900_v8 = vld [vmem:[#allocation2 + $0x78] sm:$0xff]  }
 0x20d   : > { %v3714_v2 = vrot.slane %v3712_v55, 1  ;;  %1526 = vst.msk [vmem:[#allocation2 + $0x94] sm:$0xf] %vm443_vm4, %v1325_v30  ;;  %1529 = vst [vmem:[#allocation2 + $0x98] sm:$0x1] %v1528_v31  ;;  %v3207_v48 = vrot.slane %v14876_v42, 1 }
 0x20e   : > { %3414 = vrot.lane.b32.xlu0 %v14848_v57, %s15832_s21  ;;  %v1294_v57 = vshrl.u32 %v14000_v46, 16  ;;  %v1981_v46 = vor.u32 %v1980_v40, %v1976_v33  ;;  %v14880_v55 = vld [vmem:[#allocation2 + $0x6c] sm:$0xfe]   ;;  %v14006_v18 = vpack.c.bf16 %v1003_v12, %v1003_v12 }
 0x20f   : > { %2083 = vrot.lane.b32.xlu1 %v1962_v13, %s15833_s28  ;;  %v2338_v13 = vrot.slane %v14866_v62, 1  ;;  %v3208_v60 = vsel %vm2312_vm7, %v3206_v45, %v3207_v48  ;;  %v3203_v62 = vrot.slane %v14880_v55, 1  ;;  %v14891_v45 = vld [vmem:[#allocation2 + $0x78] sm:$0xfe]  }
 0x210   : > { %v1296_v5 = vrot.slane %v1294_v57, 7  ;;  %v1971_v57 = vshll.u32 %v14878_v51, 16  ;;  %v1345_v30 = vshrl.u32 %v14006_v18, 16  ;;  %v1348_v31 = vshll.u32 %v14006_v18, 16 }
 0x211   : > { %v2339_v21 = vsel %vm2312_vm7, %v2337_v4, %v2338_v13  ;;  %v14885_v4 = vld [vmem:[#allocation2 + $0x80] ss:$0 sps:$4 sm:$0x11]   ;;  %v14883_v13 = vld [vmem:[#allocation2 + $0x78] sm:$0xff]  }
 0x212   : > { %3241 = vrot.lane.b32.xlu0 %v3202_v17, %s15833_s28  ;;  %v1299_v14 = vor.u32 %v1297_v58, %v1296_v5  ;;  %v1300_v15 = vrot.slane %v1296_v5, 4  ;;  %v3715_v17 = vsel %vm1878_vm8, %v3710_v10, %v3714_v2  ;;  %v14881_v58 = vld [vmem:[#allocation2 + $0x74] ss:$0 sps:$4 sm:$0x11]   ;;  %v1973_v1 = vrot.slane %v1971_v57, 1 }
 0x213   : > { %2081 = vrot.lane.b32.xlu1 %v1950_v26, %s15833_s28  ;;  %v1307_v26 = vor.u32 %v1305_v9, %v1304_v16  ;;  %v3204_v2 = vrot.slane %v14881_v58, 1  ;;  %v3748_v11 = vshll.u32 %v14885_v4, 16  ;;  %v14888_v16 = vld [vmem:[#allocation2 + $0x6c] sm:$0xff]   ;;  %v1347_v40 = vrot.slane %v1345_v30, 7  ;;  %v2072_v58 = vpop.permute.xlu0 %2071 }
 0x214   : > { %v1517_v25 = vsel %vm16257_vm10, %v1299_v14, %v1516_v63  ;;  %v14892_v51 = vld [vmem:[#allocation2 + $0x80] ss:$0 sps:$4 sm:$0x11]   ;;  %2120 = vst.msk [vmem:[#allocation4] sm:$0xff] %vm2119_vm12, %v2072_v58 }
 0x215   : > { %1518 = vst [vmem:[#allocation2 + $0x84] sm:$0xf] %v1517_v25  ;;  %v1308_v34 = vsel %vm16264_vm11, %v1300_v15, %v1307_v26  ;;  %v3205_v9 = vsel %vm2312_vm7, %v3203_v62, %v3204_v2  ;;  %v14889_v25 = vld [vmem:[#allocation2 + $0x74] ss:$0 sps:$4 sm:$0x11]   ;;  %v3729_v26 = vshrl.u32 %v14888_v16, 16 }
 0x216   : > { %3239 = vrot.lane.b32.xlu0 %v3199_v35, %s15833_s28  ;;  %v1521_v35 = vsel %vm16145_vm3, %v1309_v27, %v1520_v29  ;;  %1519 = vst.msk [vmem:[#allocation2 + $0x88] sm:$0xf] %vm443_vm4, %v1308_v34  ;;  %v994_v29 = vpop.f32.mrb[25].mxu0  ;;  %v3731_v27 = vshll.u32 %v14888_v16, 16  ;;  %v1537_v34 = vld [vmem:[#allocation2 + $0xa8] sm:$0xf] }
 0x217   : > { %2552 = vrot.lane.b32.xlu1 %v14857_v36, %s15834_s27  ;;  %v14874_v36 = vld [vmem:[#allocation2 + $0x68] ss:$0 sps:$4 sm:$0x11]   ;;  %1522 = vst [vmem:[#allocation2 + $0x8c] sm:$0x1] %v1521_v35  ;;  %v995_v14 = vadd.f32 %v16412_v61, %v994_v29  ;;  %v14547_v15 = vpop.f32.mrb[26].mxu0 }
 0x218   : > { %v1983_v41 = vshll.u32 %v14874_v36, 16  ;;  %v1006_v19 = vadd.f32 %v16412_v61, %v14547_v15  ;;  %v997_v20 = vpop.f32.mrb[27].mxu0  ;;  %v3733_v38 = vrot.slane %v3731_v27, 1  ;;  %v2344_v12 = vrot.slane %v14892_v51, 1  ;;  %v14893_v29 = vld [vmem:[#allocation2 + $0x90] sm:$0xff]  }
 0x219   : > { %v998_v23 = vadd.f32 %v16412_v61, %v997_v20  ;;  %v14895_v16 = vld [vmem:[#allocation2 + $0x74] ss:$0 sps:$4 sm:$0x11]   ;;  %v14901_v30 = vld [vmem:[#allocation2 + $0x80] ss:$0 sps:$4 sm:$0x11]  }
 0x21a   : > { %3848 = vrot.lane.b32.xlu0 %v3727_v50, %s15834_s27  ;;  %v1985_v47 = vrot.slane %v1983_v41, 1  ;;  %v14884_v50 = vld [vmem:[#allocation2 + $0x78] sm:$0xff]   ;;  %v14007_v33 = vpack.c.bf16 %v1006_v19, %v1006_v19 }
 0x21b   : > { %2550 = vrot.lane.b32.xlu1 %v14860_v52, %s15834_s27  ;;  %v1966_v52 = vshll.u32 %v14877_v43, 16  ;;  %v3741_v59 = vshrl.u32 %v14884_v50, 16  ;;  %v3743_v63 = vshll.u32 %v14884_v50, 16  ;;  %v14005_v37 = vpack.c.bf16 %v998_v23, %v998_v23  ;;  %v1530_v41 = vld [vmem:[#allocation2 + $0x9c] sm:$0xf] }
 0x21c   : > { %v1986_v54 = vsel %vm1878_vm8, %v1981_v46, %v1985_v47  ;;  %v1353_v42 = vshrl.u32 %v14007_v33, 16  ;;  %v1356_v43 = vshll.u32 %v14007_v33, 16  ;;  %v1541_v47 = vld [vmem:[#allocation2 + $0xb0] sm:$0x1]  ;;  %v3734_v50 = vor.u32 %v3733_v38, %v3729_v26 }
 0x21d   : > { %v1968_v56 = vrot.slane %v1966_v52, 1  ;;  %v3745_v5 = vrot.slane %v3743_v63, 1  ;;  %v1336_v48 = vshrl.u32 %v14005_v37, 16  ;;  %v1350_v52 = vor.u32 %v1348_v31, %v1347_v40  ;;  %v14906_v38 = vld [vmem:[#allocation2 + $0x6c] sm:$0xff]  }
 0x21e   : > { %3846 = vrot.lane.b32.xlu0 %v3715_v17, %s15834_s27  ;;  %v3750_v17 = vrot.slane %v3748_v11, 1  ;;  %v1355_v55 = vrot.slane %v1353_v42, 7  ;;  %v2000_v26 = vshrl.u32 %v14900_v8, 16  ;;  %v2002_v31 = vshll.u32 %v14900_v8, 16 }
 0x21f   : > { %2377 = vrot.lane.b32.xlu1 %v2339_v21, %s15832_s21  ;;  %v1969_v0 = vor.u32 %v1968_v56, %v1964_v49  ;;  %v3746_v10 = vor.u32 %v3745_v5, %v3741_v59  ;;  %v16470_v21 = vpop.permute.xlu1 %2361  ;;  %v1339_v49 = vshll.u32 %v14005_v37, 16  ;;  %v1534_v56 = vld [vmem:[#allocation2 + $0xa4] sm:$0x1]  ;;  %v1338_v63 = vrot.slane %v1336_v48, 7 }
 0x220   : > { %v1538_v2 = vsel %vm16257_vm10, %v1350_v52, %v1537_v34  ;;  %v1358_v4 = vor.u32 %v1356_v43, %v1355_v55  ;;  %v1360_v5 = vrot.slane %v1355_v55, 4  ;;  %v14903_v37 = vld [vmem:[#allocation2 + $0x20] ss:$0 sps:$4 sm:$0x11]   ;;  %2410 = vst.msk [vmem:[#allocation4] sm:$0xff] %vm2409_vm13, %v16470_v21 }
 0x221   : > { %v1974_v6 = vsel %vm1878_vm8, %v1969_v0, %v1973_v1  ;;  %v3751_v28 = vsel %vm1878_vm8, %v3746_v10, %v3750_v17  ;;  %v2343_v0 = vrot.slane %v14891_v45, 1  ;;  %v14899_v1 = vld [vmem:[#allocation9 + $0x20] sm:$0xff]   ;;  %1539 = vst [vmem:[#allocation2 + $0xa8] sm:$0xf] %v1538_v2  ;;  %v1341_v10 = vor.u32 %v1339_v49, %v1338_v63  ;;  %v14904_v45 = vld [vmem:[#allocation2 + $0x90] sm:$0xfe]  }
 0x222   : > { %3420 = vrot.lane.b32.xlu0 %v14867_v22, %s15832_s21  ;;  %v14004_v22 = vpack.c.bf16 %v995_v14, %v995_v14  ;;  %v1343_v11 = vrot.slane %v1338_v63, 4  ;;  %v1542_v15 = vsel %vm16145_vm3, %v1360_v5, %v1541_v47  ;;  %v14905_v48 = vld [vmem:[#allocation2 + $0x98] ss:$0 sps:$4 sm:$0x11]   ;;  %v1988_v49 = vshrl.u32 %v14906_v38, 16  ;;  %v14913_v5 = vld [vmem:[#allocation9 + $0x28] sm:$0xff]  }
 0x223   : > { %2375 = vrot.lane.b32.xlu1 %v2336_v39, %s15832_s21  ;;  %v14897_v39 = vld [vmem:[#allocation9 + $0x60] sm:$0xff]   ;;  %1543 = vst [vmem:[#allocation2 + $0xb0] sm:$0x1] %v1542_v15  ;;  %v2345_v19 = vsel %vm2312_vm7, %v2343_v0, %v2344_v12  ;;  %v3212_v52 = vrot.slane %v14904_v45, 1 }
 0x224   : > { %v1328_v35 = vshrl.u32 %v14004_v22, 16  ;;  %v1331_v36 = vshll.u32 %v14004_v22, 16  ;;  %14134 = vmatprep.subr.bf16.mxu0 %v14897_v39  ;;  %14664 = vmatprep.subr.bf16.mxu1 %v14897_v39  ;;  %v1535_v18 = vsel %vm16145_vm3, %v1343_v11, %v1534_v56  ;;  %v14902_v22 = vld [vmem:[#allocation2 + $0x18] sm:$0xff]   ;;  %v14907_v55 = vld [vmem:[#allocation2 + $0x74] ss:$0 sps:$4 sm:$0x11]  }
 0x225   : > { %14135 = vmatpush3.bf16.msra.mxu0 %v14899_v1  ;;  %14672 = vmatpush3.bf16.msra.mxu1 %v14899_v1  ;;  %1536 = vst [vmem:[#allocation2 + $0xa4] sm:$0x1] %v1535_v18  ;;  %v2794_v33 = vshll.u32 %v14902_v22, 16  ;;  %v1990_v56 = vshll.u32 %v14906_v38, 16  ;;  %v1995_v63 = vshll.u32 %v14907_v55, 16  ;;  %v14915_v18 = vld [vmem:[#allocation9 + $0x70] sm:$0xff]  }
 0x226   : > { %3418 = vrot.lane.b32.xlu0 %v14871_v44, %s15832_s21  ;;  %v3736_v44 = vshll.u32 %v14889_v25, 16  ;;  %v1330_v46 = vrot.slane %v1328_v35, 7  ;;  %v2341_v25 = vrot.slane %v14895_v16, 1  ;;  %v2004_v35 = vrot.slane %v2002_v31, 1  ;;  %v14911_v12 = vld [vmem:[#allocation2 + $0x84] sm:$0xfe]  }
 0x227   : > { %2087 = vrot.lane.b32.xlu1 %v1986_v54, %s15833_s28  ;;  %v1351_v54 = vrot.slane %v1347_v40, 4  ;;  %v2796_v39 = vrot.slane %v2794_v33, 1  ;;  %v14908_v40 = vld [vmem:[#allocation2 + $0xc] sm:$0xff]   ;;  %v14909_v0 = vld [vmem:[#allocation2 + $0x14] ss:$0 sps:$4 sm:$0x11]  }
 0x228   : > { %v3738_v57 = vrot.slane %v3736_v44, 1  ;;  %v1334_v62 = vrot.slane %v1330_v46, 4  ;;  %v2005_v42 = vor.u32 %v2004_v35, %v2000_v26  ;;  %v2799_v44 = vshll.u32 %v14903_v37, 16  ;;  %v14912_v15 = vld [vmem:[#allocation2 + $0x8c] ss:$0 sps:$4 sm:$0x11]  }
 0x229   : > { %v1359_v14 = vsel %vm16264_vm11, %v1351_v54, %v1358_v4  ;;  %v3213_v54 = vrot.slane %v14905_v48, 1  ;;  %v2782_v1 = vshll.u32 %v14908_v40, 16  ;;  %v14910_v4 = vld [vmem:[#allocation9 + $0x68] sm:$0xff]   ;;  %v2787_v11 = vshll.u32 %v14909_v0, 16  ;;  %v14550_v26 = vpop.f32.mrb[28].mxu0 }
 0x22a   : > { %3245 = vrot.lane.b32.xlu0 %v3208_v60, %s15833_s28  ;;  %v1333_v60 = vor.u32 %v1331_v36, %v1330_v46  ;;  %1540 = vst.msk [vmem:[#allocation2 + $0xac] sm:$0xf] %vm443_vm4, %v1359_v14  ;;  %v1342_v17 = vsel %vm16264_vm11, %v1334_v62, %v1341_v10  ;;  %v2007_v36 = vshll.u32 %v14901_v30, 16  ;;  %v2801_v51 = vrot.slane %v2799_v44, 1  ;;  %14136 = vmatprep.subr.bf16.mxu0 %v14910_v4  ;;  %v14921_v35 = vld [vmem:[#allocation2 + $0x84] sm:$0xff]  }
 0x22b   : > { %2085 = vrot.lane.b32.xlu1 %v1974_v6, %s15833_s28  ;;  %v3739_v6 = vsel %vm1878_vm8, %v3734_v50, %v3738_v57  ;;  %1533 = vst.msk [vmem:[#allocation2 + $0xa0] sm:$0xf] %vm443_vm4, %v1342_v17  ;;  %v2780_v57 = vshrl.u32 %v14908_v40, 16  ;;  %v1992_v62 = vrot.slane %v1990_v56, 1  ;;  %v2784_v10 = vrot.slane %v2782_v1, 1  ;;  %14665 = vmatprep.subr.bf16.mxu1 %v14910_v4  ;;  %v14919_v38 = vld [vmem:[#allocation2 + $0x84] sm:$0xff]  }
 0x22c   : > { %v2009_v43 = vrot.slane %v2007_v36, 1  ;;  %v2789_v14 = vrot.slane %v2787_v11, 1  ;;  %14137 = vmatpush3.bf16.msra.mxu0 %v14913_v5  ;;  %14673 = vmatpush3.bf16.msra.mxu1 %v14913_v5  ;;  %v3209_v17 = vrot.slane %v14911_v12, 1  ;;  %v1019_v30 = vadd.f32 %v16412_v61, %v14550_v26  ;;  %v16538_v44 = vld [vmem:[#allocation2 + $0x24] sm:$0xfe]  }
 0x22d   : > { %v1993_v8 = vor.u32 %v1992_v62, %v1988_v49  ;;  %14138 = vmatprep.subr.bf16.mxu0 %v14915_v18  ;;  %14666 = vmatprep.subr.bf16.mxu1 %v14915_v18  ;;  %v3753_v45 = vshrl.u32 %v14921_v35, 16  ;;  %v14925_v55 = vld [vmem:[#allocation2 + $0x98] ss:$0 sps:$4 sm:$0x11]   ;;  %v503_v1 = vld [vmem:[#allocation2 + $0xc0] sm:$0x1] }
 0x22e   : > { %3243 = vrot.lane.b32.xlu0 %v3205_v9, %s15833_s28  ;;  %v1531_v9 = vsel %vm16257_vm10, %v1333_v60, %v1530_v41  ;;  %v2010_v50 = vsel %vm1878_vm8, %v2005_v42, %v2009_v43  ;;  %v3214_v60 = vsel %vm2312_vm7, %v3212_v52, %v3213_v54  ;;  %v14922_v43 = vld [vmem:[#allocation2 + $0x8c] ss:$0 sps:$4 sm:$0x11]   ;;  %v14924_v54 = vld [vmem:[#allocation2 + $0x90] sm:$0xfe]   ;;  %v2350_v0 = vrot.slane %v14925_v55, 1 }
 0x22f   : > { %2556 = vrot.lane.b32.xlu1 %v14883_v13, %s15834_s27  ;;  %v14894_v13 = vld [vmem:[#allocation2 + $0x6c] sm:$0xfe]   ;;  %1532 = vst [vmem:[#allocation2 + $0x9c] sm:$0xf] %v1531_v9  ;;  %v1997_v9 = vrot.slane %v1995_v63, 1  ;;  %v3760_v49 = vshll.u32 %v14922_v43, 16 }
 0x230   : > { %v2340_v20 = vrot.slane %v14894_v13, 1  ;;  %v2785_v13 = vor.u32 %v2784_v10, %v2780_v57  ;;  %v2349_v63 = vrot.slane %v14924_v54, 1  ;;  %v504_v4 = vsel %vm16145_vm3, 0, %v503_v1  ;;  %v14930_v26 = vld [vmem:[#allocation2 + $0x8c] ss:$0 sps:$4 sm:$0x11]  }
 0x231   : > { %v3762_v57 = vrot.slane %v3760_v49, 1  ;;  %505 = vst [vmem:[#allocation2 + $0xc0] sm:$0x1] %v504_v4  ;;  %v14928_v18 = vld [vmem:[#allocation2 + $0xa8] sm:$0xff]   ;;  %v15564_v43 = vld [vmem:[#allocation7] ss:$0 sm:$0xff] }
 0x232   : > { %3852 = vrot.lane.b32.xlu0 %v3751_v28, %s15834_s27  ;;  %v14898_v28 = vld [vmem:[#allocation2 + $0x84] sm:$0xff]   ;;  %v2342_v34 = vsel %vm2312_vm7, %v2340_v20, %v2341_v25  ;;  %v2790_v21 = vsel %vm1878_vm8, %v2785_v13, %v2789_v14  ;;  %v3210_v20 = vrot.slane %v14912_v15, 1  ;;  %v14918_v25 = vld [vmem:[#allocation9 + $0x30] sm:$0xff]  }
 0x233   : > { %2554 = vrot.lane.b32.xlu1 %v14886_v32, %s15834_s27  ;;  %v2792_v32 = vshrl.u32 %v14902_v22, 16  ;;  %v14916_v22 = vld [vmem:[#allocation2 + $0x90] sm:$0xff]   ;;  %2987 = vst.msk [vmem:[#allocation4 + $0x8] sm:$0xff] %vm815_vm0, %v2790_v21  ;;  %14139 = vmatpush3.bf16.msra.mxu0 %v14918_v25 }
 0x234   : > { %v3211_v31 = vsel %vm2312_vm7, %v3209_v17, %v3210_v20  ;;  %v3767_v33 = vshll.u32 %v14916_v22, 16  ;;  %14674 = vmatpush3.bf16.msra.mxu1 %v14918_v25  ;;  %v500_v14 = vld [vmem:[#allocation2 + $0xb4] sm:$0x1]  ;;  %v14929_v20 = vld [vmem:[#allocation2 + $0x84] sm:$0xfe]  }
 0x235   : > { %v2797_v47 = vor.u32 %v2796_v39, %v2792_v32  ;;  %v3765_v32 = vshrl.u32 %v14916_v22, 16  ;;  %v14923_v39 = vld [vmem:[#allocation9 + $0x38] sm:$0xff]   ;;  %v501_v21 = vsel %vm16145_vm3, 0, %v500_v14 }
 0x236   : > { %3850 = vrot.lane.b32.xlu0 %v3739_v6, %s15834_s27  ;;  %v3769_v42 = vrot.slane %v3767_v33, 1  ;;  %502 = vst [vmem:[#allocation2 + $0xb4] sm:$0x1] %v501_v21  ;;  %v14938_v21 = vld [vmem:[#allocation2 + $0x90] sm:$0xff]  }
 0x237   : > { %2381 = vrot.lane.b32.xlu1 %v2345_v19, %s15832_s21  ;;  %v2802_v58 = vsel %vm1878_vm8, %v2797_v47, %v2801_v51  ;;  %v14926_v47 = vld [vmem:[#allocation2 + $0x18] sm:$0xff]  }
 0x238   : > { %v16477_v59 = vpop.permute.xlu1 %3404  ;;  %2988 = vst.msk [vmem:[#allocation4 + $0x20] sm:$0xff] %vm815_vm0, %v2802_v58  ;;  %v3770_v48 = vor.u32 %v3769_v42, %v3765_v32  ;;  %1688 = vst.msk [vmem:[#allocation4 + $0x30] sm:$0xff] %vm815_vm0, %v14926_v47  ;;  %v14935_v32 = vld [vmem:[#allocation2 + $0xc] sm:$0xff]   ;;  %v559_v42 = vld [vmem:[#allocation2 + $0xc8] sm:$0x1] }
 0x239   : > { %1687 = vst.msk [vmem:[#allocation4 + $0x18] sm:$0xff] %vm815_vm0, %v14935_v32  ;;  %v560_v49 = vsel %vm16191_vm6, 0, %v559_v42 }
 0x23a   : > { %3424 = vrot.lane.b32.xlu0 %v14893_v29, %s15832_s21  ;;  %v1998_v29 = vsel %vm1878_vm8, %v1993_v8, %v1997_v9  ;;  %v2351_v8 = vsel %vm2312_vm7, %v2349_v63, %v2350_v0  ;;  %561 = vst [vmem:[#allocation2 + $0xc8] sm:$0x1] %v560_v49 }
 0x23b   : > { %2379 = vrot.lane.b32.xlu1 %v2342_v34, %s15832_s21  ;;  %v14920_v34 = vld [vmem:[#allocation9 + $0x78] sm:$0xff]  }
 0x23c   : > { %v16496_v23 = vpop.permute.xlu1 %2540  ;;  %14140 = vmatprep.subr.bf16.mxu0 %v14920_v34  ;;  %14667 = vmatprep.subr.bf16.mxu1 %v14920_v34 }
 0x23d   : > { %v3230_v27 = vpop.permute.xlu0 %3229  ;;  %14141 = vmatpush3.bf16.msra.mxu0 %v14923_v39  ;;  %14675 = vmatpush3.bf16.msra.mxu1 %v14923_v39  ;;  %v1544_v1 = vld [vmem:[#allocation2 + $0xb4] sm:$0xf] }
 0x23e   : > { %3422 = vrot.lane.b32.xlu0 %v14898_v28, %s15832_s21  ;;  %3276 = vst.msk [vmem:[#allocation4 + $0x20] sm:$0xff] %vm2119_vm12, %v3230_v27  ;;  %v14914_v27 = vld [vmem:[#allocation2 + $0x90] sm:$0xff]   ;;  %v14917_v28 = vld [vmem:[#allocation2 + $0x98] ss:$0 sps:$4 sm:$0x11]  }
 0x23f   : > { %2091 = vrot.lane.b32.xlu1 %v2010_v50, %s15833_s28  ;;  %v3772_v37 = vshll.u32 %v14917_v28, 16  ;;  %v16569_v28 = vld [vmem:[#allocation2 + $0x30] sm:$0xff]  }
 0x240   : > { %v2539_v46 = vpop.permute.xlu1 %2538 }
 0x241   : > { %v16503_v41 = vpop.permute.xlu0 %3227  ;;  %2587 = vst.msk [vmem:[#allocation4] sm:$0xff] %vm2586_vm14, %v2539_v46  ;;  %v3755_v46 = vshll.u32 %v14921_v35, 16  ;;  %v1555_v32 = vld [vmem:[#allocation2 + $0xc8] sm:$0x1] }
 0x242   : > { %3249 = vrot.lane.b32.xlu0 %v3214_v60, %s15833_s28  ;;  %3275 = vst.msk [vmem:[#allocation4 + $0x8] sm:$0xff] %vm2119_vm12, %v16503_v41  ;;  %v16535_v41 = vpack.c.bf16 %v1019_v30, %v1019_v30 }
 0x243   : > { %2089 = vrot.lane.b32.xlu1 %v1998_v29, %s15833_s28  ;;  %3452 = vst.msk [vmem:[#allocation4 + $0x8] sm:$0xff] %vm2409_vm13, %v16477_v59  ;;  %v3774_v59 = vrot.slane %v3772_v37, 1  ;;  %v3757_v52 = vrot.slane %v3755_v46, 1  ;;  %v1010_v29 = vpop.f32.mrb[29].mxu0  ;;  %v14931_v37 = vld [vmem:[#allocation2 + $0x18] sm:$0xfe]  }
 0x244   : > { %v1379_v50 = vshrl.u32 %v16535_v41, 16  ;;  %v1382_v10 = vshll.u32 %v16535_v41, 16  ;;  %v1011_v15 = vadd.f32 %v16412_v61, %v1010_v29  ;;  %v14551_v22 = vpop.f32.mrb[30].mxu0  ;;  %v14932_v41 = vld [vmem:[#allocation2 + $0x20] ss:$0 sps:$4 sm:$0x11]  }
 0x245   : > { %v3775_v56 = vsel %vm1878_vm8, %v3770_v48, %v3774_v59  ;;  %v3758_v62 = vor.u32 %v3757_v52, %v3753_v45  ;;  %v1013_v39 = vpop.f32.mrb[31].mxu0  ;;  %v1551_v45 = vld [vmem:[#allocation2 + $0xc0] sm:$0xf]  ;;  %v4076_v48 = vrot.slane %v14931_v37, 1  ;;  %v4077_v54 = vrot.slane %v14932_v41, 1  ;;  %v14945_v41 = vld [vmem:[#allocation2 + $0x84] sm:$0xff]  }
 0x246   : > { %3247 = vrot.lane.b32.xlu0 %v3211_v31, %s15833_s28  ;;  %v16547_v58 = vrot.slane %v1379_v50, 7  ;;  %v14008_v25 = vpack.c.bf16 %v1011_v15, %v1011_v15  ;;  %v2346_v31 = vrot.slane %v14929_v20, 1  ;;  %v1014_v59 = vadd.f32 %v15564_v43, %v1013_v39  ;;  %v14936_v50 = vld [vmem:[#allocation2 + $0x9c] sm:$0xff]   ;;  %v14941_v43 = vld [vmem:[#allocation2 + $0x2c] ss:$0 sps:$4 sm:$0x11]  }
 0x247   : > { %2560 = vrot.lane.b32.xlu1 %v14914_v27, %s15834_s27  ;;  %v3763_v13 = vsel %vm1878_vm8, %v3758_v62, %v3762_v57  ;;  %v1022_v27 = vadd.f32 %v16412_v61, %v14551_v22  ;;  %v2816_v61 = vshrl.u32 %v16569_v28, 16  ;;  %v14937_v57 = vld [vmem:[#allocation9 + $0x88] sm:$0xff]   ;;  %v556_v15 = vld [vmem:[#allocation2 + $0xbc] sm:$0x1]  ;;  %v2012_v49 = vshrl.u32 %v14945_v41, 16 }
 0x248   : > { %v3837_v2 = vpop.permute.xlu0 %3836  ;;  %v1385_v11 = vrot.slane %v16547_v58, 4  ;;  %v4156_v12 = vld [vmem:[#allocation4] sm:$0xff]  ;;  %v1384_v30 = vor.u32 %v1382_v10, %v16547_v58  ;;  %v1362_v34 = vshrl.u32 %v14008_v25, 16  ;;  %v1365_v35 = vshll.u32 %v14008_v25, 16 }
 0x249   : > { %v16513_v6 = vpop.permute.xlu1 %2365  ;;  %3884 = vst.msk [vmem:[#allocation4 + $0x8] sm:$0xff] %vm2586_vm14, %v3837_v2  ;;  %v14927_v2 = vld [vmem:[#allocation9 + $0x80] sm:$0xff]   ;;  %v14009_v0 = vpack.c.bf16 %v1014_v59, %v1014_v59  ;;  %v557_v22 = vsel %vm16191_vm6, 0, %v556_v15  ;;  %v14947_v15 = vld [vmem:[#allocation2 + $0x30] sm:$0xfe]  }
 0x24a   : > { %3856 = vrot.lane.b32.xlu0 %v3775_v56, %s15834_s27  ;;  %14552 = vmatprep.subr.bf16.mxu0 %v14927_v2  ;;  %v16578_v46 = vrot.slane %v1362_v34, 7  ;;  %v1552_v52 = vsel %vm16257_vm10, %v1384_v30, %v1551_v45  ;;  %558 = vst [vmem:[#allocation2 + $0xbc] sm:$0x1] %v557_v22  ;;  %v14948_v22 = vld [vmem:[#allocation2 + $0x38] ss:$0 sps:$4 sm:$0x11]  }
 0x24b   : > { %2558 = vrot.lane.b32.xlu1 %v14919_v38, %s15834_s27  ;;  %v14011_v38 = vpack.c.bf16 %v1022_v27, %v1022_v27  ;;  %1553 = vst [vmem:[#allocation2 + $0xc0] sm:$0xf] %v1552_v52  ;;  %v1370_v29 = vshrl.u32 %v14009_v0, 16  ;;  %v2811_v52 = vshll.u32 %v14941_v43, 16 }
 0x24c   : > { %v16519_v16 = vpop.permute.xlu0 %3408  ;;  %v1367_v62 = vor.u32 %v1365_v35, %v16578_v46  ;;  %v1368_v63 = vrot.slane %v16578_v46, 4 }
 0x24d   : > { %v16522_v19 = vpop.permute.xlu1 %2363  ;;  %v1387_v55 = vshrl.u32 %v14011_v38, 16  ;;  %v1390_v56 = vshll.u32 %v14011_v38, 16  ;;  %v1372_v25 = vrot.slane %v1370_v29, 7  ;;  %v14939_v38 = vld [vmem:[#allocation2 + $0x98] ss:$0 sps:$4 sm:$0x11]  }
 0x24e   : > { %3854 = vrot.lane.b32.xlu0 %v3763_v13, %s15834_s27  ;;  %v1545_v10 = vsel %vm16257_vm10, %v1367_v62, %v1544_v1 }
 0x24f   : > { %2385 = vrot.lane.b32.xlu1 %v2351_v8, %s15832_s21  ;;  %v1389_v4 = vrot.slane %v1387_v55, 7  ;;  %v14934_v8 = vld [vmem:[#allocation2 + $0x38] ss:$0 sps:$4 sm:$0x11]   ;;  %1546 = vst [vmem:[#allocation2 + $0xb4] sm:$0xf] %v1545_v10 }
 0x250   : > { %v3407_v36 = vpop.permute.xlu0 %3406  ;;  %v4157_v9 = vld [vmem:[#allocation4 + $0x8] sm:$0xff]  ;;  %v2823_v14 = vshll.u32 %v14934_v8, 16  ;;  %v1377_v35 = vrot.slane %v1372_v25, 4  ;;  %v14944_v8 = vld [vmem:[#allocation2 + $0x2c] ss:$0 sps:$4 sm:$0x11]  }
 0x251   : > { %3453 = vst.msk [vmem:[#allocation4 + $0x20] sm:$0xff] %vm2409_vm13, %v3407_v36  ;;  %v2076_v40 = vpop.permute.xlu1 %2075  ;;  %4435 = vmatprep.mubr.bf16.mxu0 %v4157_v9  ;;  %v2347_v36 = vrot.slane %v14930_v26, 1  ;;  %v1394_v13 = vrot.slane %v1389_v4, 4  ;;  %v1548_v55 = vld [vmem:[#allocation2 + $0xbc] sm:$0x1]  ;;  %v2014_v10 = vshll.u32 %v14945_v41, 16 }
 0x252   : > { %2122 = vst.msk [vmem:[#allocation4 + $0x30] sm:$0xff] %vm2119_vm12, %v2076_v40  ;;  %4436 = vmatmul.mubr.bf16.vlgmr.msra.gmra.mrb[32].mxu0 %v4156_v12  ;;  %3428 = vrot.lane.b32.xlu0 %v14928_v18, %s15832_s21  ;;  %v1373_v18 = vshll.u32 %v14009_v0, 16  ;;  %v2825_v27 = vrot.slane %v2823_v14, 1 }
 0x253   : > { %2412 = vst.msk [vmem:[#allocation4 + $0x30] sm:$0xff] %vm2409_vm13, %v16513_v6  ;;  %v4079_v6 = vrot.slane %v16538_v44, 1  ;;  %14553 = vmatpush3.bf16.msra.mxu0 %v14927_v2  ;;  %v2348_v47 = vsel %vm2312_vm7, %v2346_v31, %v2347_v36  ;;  %v4078_v2 = vsel %vm2312_vm7, %v4076_v48, %v4077_v54  ;;  %v2026_v36 = vshll.u32 %v14938_v21, 16  ;;  %v14942_v54 = vld [vmem:[#allocation2 + $0xa8] sm:$0xfe]  }
 0x254   : > { %v16541_v51 = vpop.permute.xlu0 %3233  ;;  %2383 = vrot.lane.b32.xlu1 %v2348_v47, %s15832_s21  ;;  %14554 = vmatprep.subr.bf16.mxu0 %v14937_v57  ;;  %4140 = vst.msk [vmem:[#allocation4 + $0x10] sm:$0xff] %vm815_vm0, %v4078_v2  ;;  %v1375_v34 = vor.u32 %v1373_v18, %v1372_v25  ;;  %v1556_v37 = vsel %vm16145_vm3, %v1394_v13, %v1555_v32  ;;  %v2016_v13 = vrot.slane %v2014_v10, 1  ;;  %v14952_v25 = vld [vmem:[#allocation2 + $0xa8] sm:$0xff]   ;;  %v4083_v32 = vrot.slane %v14948_v22, 1 }
 0x255   : > { %v2074_v60 = vpop.permute.xlu1 %2073  ;;  %1557 = vst [vmem:[#allocation2 + $0xc8] sm:$0x1] %v1556_v37 }
 0x256   : > { %2121 = vst.msk [vmem:[#allocation4 + $0x18] sm:$0xff] %vm2119_vm12, %v2074_v60  ;;  %v2818_v60 = vshll.u32 %v16569_v28, 16  ;;  %3426 = vrot.lane.b32.xlu0 %v14936_v50, %s15832_s21  ;;  %v2024_v28 = vshrl.u32 %v14938_v21, 16  ;;  %v1376_v39 = vsel %vm16264_vm11, %v1368_v63, %v1375_v34  ;;  %v2813_v63 = vrot.slane %v2811_v52, 1  ;;  %v14949_v34 = vld [vmem:[#allocation2 + $0x9c] sm:$0xfe]  }
 0x257   : > { %2411 = vst.msk [vmem:[#allocation4 + $0x18] sm:$0xff] %vm2409_vm13, %v16522_v19  ;;  %14555 = vmatpush3.bf16.msra.mxu0 %v14937_v57  ;;  %v1549_v57 = vsel %vm16145_vm3, %v1377_v35, %v1548_v55  ;;  %v14959_v55 = vld [vmem:[#allocation2 + $0x9c] sm:$0xff]  }
 0x258   : > { %v16554_v5 = vpop.permute.xlu0 %3231  ;;  %2588 = vst.msk [vmem:[#allocation4 + $0x18] sm:$0xff] %vm2586_vm14, %v16496_v23  ;;  %v2820_v12 = vrot.slane %v2818_v60, 1  ;;  %v1392_v23 = vor.u32 %v1390_v56, %v1389_v4  ;;  %v14943_v56 = vld [vmem:[#allocation2 + $0xb0] ss:$0 sps:$4 sm:$0x11]   ;;  %v3218_v60 = vrot.slane %v14942_v54, 1 }
 0x259   : > { %v16563_v17 = vpop.permute.xlu1 %2544  ;;  %1547 = vst.msk [vmem:[#allocation2 + $0xb8] sm:$0xf] %vm443_vm4, %v1376_v39  ;;  %1550 = vst [vmem:[#allocation2 + $0xbc] sm:$0x1] %v1549_v57  ;;  %v3219_v4 = vrot.slane %v14943_v56, 1  ;;  %v3791_v39 = vshll.u32 %v14952_v25, 16 }
 0x25a   : > { %v2821_v20 = vor.u32 %v2820_v12, %v2816_v61  ;;  %v1393_v26 = vsel %vm16264_vm11, %v1385_v11, %v1392_v23  ;;  %v14940_v11 = vld [vmem:[#allocation2 + $0x24] sm:$0xff]   ;;  %v2031_v61 = vshll.u32 %v14939_v38, 16  ;;  %v4080_v23 = vrot.slane %v14944_v8, 1  ;;  %v14953_v38 = vld [vmem:[#allocation2 + $0xb0] ss:$0 sps:$4 sm:$0x11]  }
 0x25b   : > { %1554 = vst.msk [vmem:[#allocation2 + $0xc4] sm:$0xf] %vm443_vm4, %v1393_v26  ;;  %v4158_v42 = vld [vmem:[#allocation4 + $0x10] sm:$0xff]  ;;  %v2804_v59 = vshrl.u32 %v14940_v11, 16  ;;  %v2806_v48 = vshll.u32 %v14940_v11, 16  ;;  %v3220_v29 = vsel %vm2312_vm7, %v3218_v60, %v3219_v4  ;;  %v2017_v26 = vor.u32 %v2016_v13, %v2012_v49  ;;  %v14963_v57 = vld [vmem:[#allocation2 + $0x30] sm:$0xff]  }
 0x25c   : > { %v16572_v33 = vpop.permute.xlu0 %3840  ;;  %v2826_v58 = vsel %vm1878_vm8, %v2821_v20, %v2825_v27  ;;  %14556 = vmatprep.mubr.msk.bf16.mxu0 %vm815_vm0, %v4158_v42  ;;  %v2033_v50 = vrot.slane %v2031_v61, 1  ;;  %3253 = vrot.lane.b32.xlu0 %v3220_v29, %s15833_s28  ;;  %v4081_v20 = vsel %vm2312_vm7, %v4079_v6, %v4080_v23  ;;  %v3789_v11 = vshrl.u32 %v14952_v25, 16  ;;  %v14954_v42 = vld [vmem:[#allocation2 + $0x3c] sm:$0xfe]   ;;  %v14957_v54 = vld [vmem:[#allocation2 + $0x48] sm:$0xfe]  }
 0x25d   : > { %v2543_v40 = vpop.permute.xlu1 %2542  ;;  %2990 = vst.msk [vmem:[#allocation4 + $0x50] sm:$0xff] %vm815_vm0, %v2826_v58  ;;  %4141 = vst.msk [vmem:[#allocation4 + $0x28] sm:$0xff] %vm815_vm0, %v4081_v20  ;;  %v14951_v58 = vld [vmem:[#allocation2 + $0xa8] sm:$0xff]   ;;  %v3796_v41 = vshll.u32 %v14953_v38, 16  ;;  %v4085_v49 = vrot.slane %v14954_v42, 1  ;;  %v3779_v10 = vshll.u32 %v14959_v55, 16 }
 0x25e   : > { %2589 = vst.msk [vmem:[#allocation4 + $0x30] sm:$0xff] %vm2586_vm14, %v2543_v40  ;;  %v2028_v40 = vrot.slane %v2026_v36, 1  ;;  %v3215_v36 = vrot.slane %v14949_v34, 1  ;;  %v14958_v56 = vld [vmem:[#allocation2 + $0x50] ss:$0 sps:$4 sm:$0x11]  }
 0x25f   : > { %3278 = vst.msk [vmem:[#allocation4 + $0x50] sm:$0xff] %vm2119_vm12, %v16541_v51  ;;  %v2808_v51 = vrot.slane %v2806_v48, 1  ;;  %v3798_v48 = vrot.slane %v3796_v41, 1  ;;  %v4089_v4 = vrot.slane %v14958_v56, 1  ;;  %v3781_v23 = vrot.slane %v3779_v10, 1  ;;  %v4159_v34 = vld [vmem:[#allocation4 + $0x18] sm:$0xff] }
 0x260   : > { %v3839_v19 = vpop.permute.xlu0 %3838  ;;  %v2029_v47 = vor.u32 %v2028_v40, %v2024_v28  ;;  %v4082_v28 = vrot.slane %v14947_v15, 1  ;;  %v3793_v40 = vrot.slane %v3791_v39, 1  ;;  %v14960_v8 = vld [vmem:[#allocation2 + $0xa4] ss:$0 sps:$4 sm:$0x11]   ;;  %1690 = vst.msk [vmem:[#allocation4 + $0x60] sm:$0xff] %vm815_vm0, %v14963_v57 }
 0x261   : > { %v16596_v9 = vpop.permute.xlu1 %2369  ;;  %3885 = vst.msk [vmem:[#allocation4 + $0x20] sm:$0xff] %vm2586_vm14, %v3839_v19  ;;  %v2809_v2 = vor.u32 %v2808_v51, %v2804_v59  ;;  %v14946_v19 = vld [vmem:[#allocation2 + $0x8c] ss:$0 sps:$4 sm:$0x11]   ;;  %v3784_v13 = vshll.u32 %v14960_v8, 16 }
 0x262   : > { %v2034_v62 = vsel %vm1878_vm8, %v2029_v47, %v2033_v50  ;;  %v2019_v14 = vshll.u32 %v14946_v19, 16  ;;  %v14955_v59 = vld [vmem:[#allocation2 + $0x44] ss:$0 sps:$4 sm:$0x11]   ;;  %v3794_v47 = vor.u32 %v3793_v40, %v3789_v11  ;;  %v3777_v19 = vshrl.u32 %v14959_v55, 16  ;;  %v14971_v40 = vld [vmem:[#allocation2 + $0x48] sm:$0xff]  }
 0x263   : > { %2095 = vrot.lane.b32.xlu1 %v2034_v62, %s15833_s28  ;;  %v2814_v12 = vsel %vm1878_vm8, %v2809_v2, %v2813_v63  ;;  %v4086_v52 = vrot.slane %v14955_v59, 1  ;;  %v4088_v2 = vrot.slane %v14957_v54, 1  ;;  %v14962_v20 = vld [vmem:[#allocation2 + $0xa4] ss:$0 sps:$4 sm:$0x11]   ;;  %v2842_v56 = vshll.u32 %v14971_v40, 16 }
 0x264   : > { %v16608_v30 = vpop.permute.xlu0 %3412  ;;  %2989 = vst.msk [vmem:[#allocation4 + $0x38] sm:$0xff] %vm815_vm0, %v2814_v12  ;;  %v2021_v27 = vrot.slane %v2019_v14, 1  ;;  %v4161_v43 = vld [vmem:[#allocation4 + $0x28] sm:$0xff]  ;;  %v3799_v51 = vsel %vm1878_vm8, %v3794_v47, %v3798_v48  ;;  %v3782_v25 = vor.u32 %v3781_v23, %v3777_v19  ;;  %v14968_v39 = vld [vmem:[#allocation2 + $0xb0] ss:$0 sps:$4 sm:$0x11]  }
 0x265   : > { %v16610_v31 = vpop.permute.xlu1 %2367  ;;  %3277 = vst.msk [vmem:[#allocation4 + $0x38] sm:$0xff] %vm2119_vm12, %v16554_v5  ;;  %v14950_v5 = vld [vmem:[#allocation2 + $0xa4] ss:$0 sps:$4 sm:$0x11]   ;;  %14557 = vmatmul.mubr.msk.bf16.vlgmr.msra.gmra.mrb[36].mxu0 %vm815_vm0, %v4161_v43  ;;  %v4087_v60 = vsel %vm2312_vm7, %v4085_v49, %v4086_v52  ;;  %v4090_v29 = vsel %vm2312_vm7, %v4088_v2, %v4089_v4  ;;  %v14961_v14 = vld [vmem:[#allocation2 + $0x9c] sm:$0xfe]  }
 0x266   : > { %3454 = vst.msk [vmem:[#allocation4 + $0x38] sm:$0xff] %vm2409_vm13, %v16519_v16  ;;  %v2022_v44 = vsel %vm1878_vm8, %v2017_v26, %v2021_v27  ;;  %v4084_v16 = vsel %vm2312_vm7, %v4082_v28, %v4083_v32  ;;  %v3216_v37 = vrot.slane %v14950_v5, 1  ;;  %v3786_v26 = vrot.slane %v3784_v13, 1  ;;  %v14964_v32 = vld [vmem:[#allocation2 + $0xc0] sm:$0xff]  }
 0x267   : > { %3886 = vst.msk [vmem:[#allocation4 + $0x38] sm:$0xff] %vm2586_vm14, %v16572_v33  ;;  %2093 = vrot.lane.b32.xlu1 %v2022_v44, %s15833_s28  ;;  %v2352_v27 = vrot.slane %v14961_v14, 1  ;;  %v2353_v28 = vrot.slane %v14962_v20, 1  ;;  %v14973_v43 = vld [vmem:[#allocation2 + $0x24] sm:$0xff]   ;;  %v2055_v47 = vshll.u32 %v14968_v39, 16  ;;  %v2840_v48 = vshrl.u32 %v14971_v40, 16 }
 0x268   : > { %v3411_v45 = vpop.permute.xlu0 %3410  ;;  %4142 = vst.msk [vmem:[#allocation4 + $0x40] sm:$0xff] %vm815_vm0, %v4084_v16  ;;  %v3217_v33 = vsel %vm2312_vm7, %v3215_v36, %v3216_v37  ;;  %4143 = vst.msk [vmem:[#allocation4 + $0x58] sm:$0xff] %vm815_vm0, %v4087_v60  ;;  %v4160_v22 = vld [vmem:[#allocation4 + $0x20] sm:$0xff]  ;;  %v3787_v5 = vsel %vm1878_vm8, %v3782_v25, %v3786_v26  ;;  %v14966_v36 = vld [vmem:[#allocation2 + $0x5c] ss:$0 sps:$4 sm:$0x11]  }
 0x269   : > { %v16622_v46 = vpop.permute.xlu1 %2079  ;;  %3455 = vst.msk [vmem:[#allocation4 + $0x50] sm:$0xff] %vm2409_vm13, %v3411_v45  ;;  %3251 = vrot.lane.b32.xlu0 %v3217_v33, %s15833_s28  ;;  %v14956_v45 = vld [vmem:[#allocation2 + $0x9c] sm:$0xff]   ;;  %4443 = vmatprep.mubr.bf16.mxu1 %v4160_v22  ;;  %v4092_v11 = vrot.slane %v14966_v36, 1  ;;  %v14970_v54 = vld [vmem:[#allocation2 + $0x68] ss:$0 sps:$4 sm:$0x11]  }
 0x26a   : > { %2124 = vst.msk [vmem:[#allocation4 + $0x60] sm:$0xff] %vm2119_vm12, %v16622_v46  ;;  %4444 = vmatmul.mubr.bf16.vlgmr.msra.gmra.mrb[0].mxu1 %v4159_v34  ;;  %v14969_v52 = vld [vmem:[#allocation2 + $0x60] sm:$0xfe]   ;;  %v4095_v60 = vrot.slane %v14970_v54, 1  ;;  %v2844_v8 = vrot.slane %v2842_v56, 1 }
 0x26b   : > { %2564 = vrot.lane.b32.xlu1 %v14951_v58, %s15834_s27  ;;  %2414 = vst.msk [vmem:[#allocation4 + $0x60] sm:$0xff] %vm2409_vm13, %v16596_v9  ;;  %v14965_v9 = vld [vmem:[#allocation2 + $0x54] sm:$0xfe]   ;;  %v14967_v58 = vld [vmem:[#allocation2 + $0xa8] sm:$0xff]   ;;  %v14975_v13 = vld [vmem:[#allocation2 + $0x9c] sm:$0xff]  }
 0x26c   : > { %v16629_v0 = vpop.permute.xlu0 %3237  ;;  %4144 = vst.msk [vmem:[#allocation4 + $0x70] sm:$0xff] %vm815_vm0, %v4090_v29  ;;  %v4091_v37 = vrot.slane %v14965_v9, 1  ;;  %v2048_v42 = vshrl.u32 %v14967_v58, 16  ;;  %1689 = vst.msk [vmem:[#allocation4 + $0x48] sm:$0xff] %vm815_vm0, %v14973_v43  ;;  %v14974_v29 = vld [vmem:[#allocation2 + $0xb4] sm:$0xff]   ;;  %v14977_v20 = vld [vmem:[#allocation2 + $0x3c] sm:$0xff]  }
 0x26d   : > { %v16631_v1 = vpop.permute.xlu1 %2077  ;;  %3860 = vrot.lane.b32.xlu0 %v3799_v51, %s15834_s27  ;;  %v2057_v51 = vrot.slane %v2055_v47, 1  ;;  %v14972_v4 = vld [vmem:[#allocation2 + $0x50] ss:$0 sps:$4 sm:$0x11]   ;;  %v2036_v26 = vshrl.u32 %v14975_v13, 16  ;;  %v4162_v36 = vld [vmem:[#allocation4 + $0x30] sm:$0xff] }
 0x26e   : > { %v4163_v33 = vld [vmem:[#allocation4 + $0x38] sm:$0xff]  ;;  %2123 = vst.msk [vmem:[#allocation4 + $0x48] sm:$0xff] %vm2119_vm12, %v16631_v1  ;;  %v2845_v1 = vor.u32 %v2844_v8, %v2840_v48  ;;  %v14976_v14 = vld [vmem:[#allocation2 + $0xa4] ss:$0 sps:$4 sm:$0x11]  }
 0x26f   : > { %v4164_v63 = vld [vmem:[#allocation4 + $0x40] sm:$0xff]  ;;  %2562 = vrot.lane.b32.xlu1 %v14956_v45, %s15834_s27  ;;  %v4167_v16 = vld [vmem:[#allocation4 + $0x58] sm:$0xff]  ;;  %4451 = vmatprep.mubr.bf16.mxu1 %v4163_v33  ;;  %v4093_v45 = vsel %vm2312_vm7, %v4091_v37, %v4092_v11  ;;  %2413 = vst.msk [vmem:[#allocation4 + $0x48] sm:$0xff] %vm2409_vm13, %v16610_v31  ;;  %v2847_v31 = vshll.u32 %v14972_v4, 16 }
 0x270   : > { %v16638_v18 = vpop.permute.xlu0 %3235  ;;  %14560 = vmatprep.mubr.msk.bf16.mxu0 %vm815_vm0, %v4164_v63  ;;  %4145 = vst.msk [vmem:[#allocation4 + $0x88] sm:$0xff] %vm815_vm0, %v4093_v45  ;;  %v4094_v63 = vrot.slane %v14969_v52, 1  ;;  %v14979_v40 = vld [vmem:[#allocation2 + $0xb4] sm:$0xfe]   ;;  %v14981_v52 = vld [vmem:[#allocation2 + $0x6c] sm:$0xfe]  }
 0x271   : > { %v16640_v21 = vpop.permute.xlu1 %2548  ;;  %3858 = vrot.lane.b32.xlu0 %v3787_v5, %s15834_s27  ;;  %14561 = vmatmul.mubr.msk.bf16.gmra.mrb[40].mxu0 %vm815_vm0, %v4167_v16  ;;  %2590 = vst.msk [vmem:[#allocation4 + $0x48] sm:$0xff] %vm2586_vm14, %v16563_v17  ;;  %v2849_v25 = vrot.slane %v2847_v31, 1  ;;  %v14978_v16 = vld [vmem:[#allocation2 + $0x44] ss:$0 sps:$4 sm:$0x11]  }
 0x272   : > { %v4096_v10 = vsel %vm2312_vm7, %v4094_v63, %v4095_v60  ;;  %4452 = vmatmul.mubr.bf16.gmra.mrb[4].mxu1 %v4162_v36  ;;  %v2835_v33 = vshll.u32 %v14978_v16, 16  ;;  %v14982_v54 = vld [vmem:[#allocation2 + $0x74] ss:$0 sps:$4 sm:$0x11]   ;;  %v14983_v60 = vld [vmem:[#allocation2 + $0xa8] sm:$0xfe]  }
 0x273   : > { %v4170_v41 = vld [vmem:[#allocation4 + $0x70] sm:$0xff]  ;;  %4146 = vst.msk [vmem:[#allocation4 + $0xa0] sm:$0xff] %vm815_vm0, %v4096_v10  ;;  %v2850_v5 = vsel %vm1878_vm8, %v2845_v1, %v2849_v25  ;;  %v4098_v63 = vrot.slane %v14982_v54, 1  ;;  %v14984_v8 = vld [vmem:[#allocation2 + $0xb0] ss:$0 sps:$4 sm:$0x11]  }
 0x274   : > { %v16653_v35 = vpop.permute.xlu0 %3844  ;;  %14564 = vmatprep.mubr.msk.bf16.mxu0 %vm815_vm0, %v4170_v41  ;;  %2992 = vst.msk [vmem:[#allocation4 + $0x80] sm:$0xff] %vm815_vm0, %v2850_v5  ;;  %v2837_v48 = vrot.slane %v2835_v33, 1  ;;  %v14985_v1 = vld [vmem:[#allocation2 + $0x78] sm:$0xfe]  }
 0x275   : > { %v2547_v6 = vpop.permute.xlu1 %2546  ;;  %3432 = vrot.lane.b32.xlu0 %v14964_v32, %s15832_s21  ;;  %v2828_v32 = vshrl.u32 %v14977_v20, 16  ;;  %3280 = vst.msk [vmem:[#allocation4 + $0x80] sm:$0xff] %vm2119_vm12, %v16629_v0  ;;  %v14991_v16 = vld [vmem:[#allocation2 + $0xc8] ss:$0 sps:$4 sm:$0x11]  }
 0x276   : > { %2591 = vst.msk [vmem:[#allocation4 + $0x60] sm:$0xff] %vm2586_vm14, %v2547_v6  ;;  %v2354_v6 = vsel %vm2312_vm7, %v2352_v27, %v2353_v28  ;;  %v2038_v27 = vshll.u32 %v14975_v13, 16  ;;  %v2043_v28 = vshll.u32 %v14976_v14, 16  ;;  %v2356_v14 = vrot.slane %v14984_v8, 1 }
 0x277   : > { %2387 = vrot.lane.b32.xlu1 %v2354_v6, %s15832_s21  ;;  %v4173_v17 = vld [vmem:[#allocation4 + $0x88] sm:$0xff]  ;;  %v2830_v6 = vshll.u32 %v14977_v20, 16  ;;  %v14986_v20 = vld [vmem:[#allocation2 + $0x80] ss:$0 sps:$4 sm:$0x11]  }
 0x278   : > { %v3843_v61 = vpop.permute.xlu0 %3842  ;;  %v2040_v9 = vrot.slane %v2038_v27, 1  ;;  %v2045_v37 = vrot.slane %v2043_v28, 1  ;;  %v4101_v25 = vrot.slane %v14986_v20, 1 }
 0x279   : > { %3887 = vst.msk [vmem:[#allocation4 + $0x50] sm:$0xff] %vm2586_vm14, %v3843_v61  ;;  %v16663_v50 = vpop.permute.xlu1 %2373  ;;  %v2050_v61 = vshll.u32 %v14967_v58, 16  ;;  %3430 = vrot.lane.b32.xlu0 %v14974_v29, %s15832_s21  ;;  %14565 = vmatmul.mubr.msk.bf16.gmra.mrb[44].mxu0 %vm815_vm0, %v4173_v17  ;;  %v2832_v39 = vrot.slane %v2830_v6, 1  ;;  %v2355_v29 = vrot.slane %v14983_v60, 1 }
 0x27a   : > { %v2041_v11 = vor.u32 %v2040_v9, %v2036_v26  ;;  %v4176_v41 = vld [vmem:[#allocation4 + $0xa0] sm:$0xff]  ;;  %v14990_v9 = vld [vmem:[#allocation2 + $0xc0] sm:$0xff]  }
 0x27b   : > { %v2052_v49 = vrot.slane %v2050_v61, 1  ;;  %v14987_v61 = vld [vmem:[#allocation2 + $0xb4] sm:$0xff]   ;;  %14568 = vmatprep.mubr.msk.bf16.mxu0 %vm815_vm0, %v4176_v41  ;;  %v2833_v47 = vor.u32 %v2832_v39, %v2828_v32  ;;  %v2357_v17 = vsel %vm2312_vm7, %v2355_v29, %v2356_v14  ;;  %v3813_v36 = vshrl.u32 %v14990_v9, 16  ;;  %v14992_v41 = vld [vmem:[#allocation2 + $0x84] sm:$0xfe]  }
 0x27c   : > { %v16666_v62 = vpop.permute.xlu0 %3416  ;;  %v2046_v45 = vsel %vm1878_vm8, %v2041_v11, %v2045_v37  ;;  %v3803_v31 = vshll.u32 %v14987_v61, 16  ;;  %v3815_v37 = vshll.u32 %v14990_v9, 16  ;;  %v15002_v11 = vld [vmem:[#allocation2 + $0x48] sm:$0xff]  }
 0x27d   : > { %v16674_v12 = vpop.permute.xlu1 %2371  ;;  %v2053_v57 = vor.u32 %v2052_v49, %v2048_v42  ;;  %v14980_v42 = vld [vmem:[#allocation2 + $0xbc] ss:$0 sps:$4 sm:$0x11]   ;;  %v3221_v49 = vrot.slane %v14979_v40, 1  ;;  %v3820_v40 = vshll.u32 %v14991_v16, 16  ;;  %1692 = vst.msk [vmem:[#allocation4 + $0x90] sm:$0xff] %vm815_vm0, %v15002_v11 }
 0x27e   : > { %v3222_v0 = vrot.slane %v14980_v42, 1 }
 0x27f   : > { %v2058_v19 = vsel %vm1878_vm8, %v2053_v57, %v2057_v51  ;;  %v4097_v57 = vrot.slane %v14981_v52, 1 }
 0x280   : > { %v16681_v15 = vpop.permute.xlu0 %3414  ;;  %2099 = vrot.lane.b32.xlu1 %v2058_v19, %s15833_s28  ;;  %v3223_v56 = vsel %vm2312_vm7, %v3221_v49, %v3222_v0  ;;  %v3801_v19 = vshrl.u32 %v14987_v61, 16  ;;  %v3822_v49 = vrot.slane %v3820_v40, 1  ;;  %v4103_v0 = vrot.slane %v14992_v41, 1  ;;  %v4166_v29 = vld [vmem:[#allocation4 + $0x50] sm:$0xff] }
 0x281   : > { %v16685_v46 = vpop.permute.xlu1 %2083  ;;  %3457 = vst.msk [vmem:[#allocation4 + $0x80] sm:$0xff] %vm2409_vm13, %v16681_v15  ;;  %v2838_v15 = vsel %vm1878_vm8, %v2833_v47, %v2837_v48  ;;  %3255 = vrot.lane.b32.xlu0 %v3223_v56, %s15833_s28  ;;  %v4099_v10 = vsel %vm2312_vm7, %v4097_v57, %v4098_v63  ;;  %v14993_v47 = vld [vmem:[#allocation2 + $0x8c] ss:$0 sps:$4 sm:$0x11]   ;;  %v15000_v48 = vld [vmem:[#allocation2 + $0xb4] sm:$0xff]   ;;  %4459 = vmatprep.mubr.bf16.mxu1 %v4166_v29 }
 0x282   : > { %2991 = vst.msk [vmem:[#allocation4 + $0x68] sm:$0xff] %vm815_vm0, %v2838_v15  ;;  %4147 = vst.msk [vmem:[#allocation4 + $0xb8] sm:$0xff] %vm815_vm0, %v4099_v10  ;;  %v4104_v54 = vrot.slane %v14993_v47, 1  ;;  %v14994_v15 = vld [vmem:[#allocation2 + $0xb4] sm:$0xfe]   ;;  %v2062_v20 = vshll.u32 %v15000_v48, 16 }
 0x283   : > { %3279 = vst.msk [vmem:[#allocation4 + $0x68] sm:$0xff] %vm2119_vm12, %v16638_v18  ;;  %v4100_v18 = vrot.slane %v14985_v1, 1  ;;  %2126 = vst.msk [vmem:[#allocation4 + $0x90] sm:$0xff] %vm2119_vm12, %v16685_v46  ;;  %v14995_v56 = vld [vmem:[#allocation2 + $0xbc] ss:$0 sps:$4 sm:$0x11]  }
 0x284   : > { %v16688_v44 = vpop.permute.xlu0 %3241  ;;  %2097 = vrot.lane.b32.xlu1 %v2046_v45, %s15833_s28  ;;  %3456 = vst.msk [vmem:[#allocation4 + $0x68] sm:$0xff] %vm2409_vm13, %v16608_v30  ;;  %v14988_v30 = vld [vmem:[#allocation2 + $0xbc] ss:$0 sps:$4 sm:$0x11]   ;;  %v3817_v45 = vrot.slane %v3815_v37, 1  ;;  %2416 = vst.msk [vmem:[#allocation4 + $0x90] sm:$0xff] %vm2409_vm13, %v16663_v50  ;;  %v4105_v60 = vsel %vm2312_vm7, %v4103_v0, %v4104_v54 }
 0x285   : > { %v16694_v38 = vpop.permute.xlu1 %2081  ;;  %3888 = vst.msk [vmem:[#allocation4 + $0x68] sm:$0xff] %vm2586_vm14, %v16653_v35  ;;  %v4102_v28 = vsel %vm2312_vm7, %v4100_v18, %v4101_v25  ;;  %v3808_v5 = vshll.u32 %v14988_v30, 16  ;;  %v14989_v35 = vld [vmem:[#allocation2 + $0xb4] sm:$0xff]   ;;  %v2358_v8 = vrot.slane %v14994_v15, 1  ;;  %v2060_v1 = vshrl.u32 %v15000_v48, 16  ;;  %v15006_v54 = vld [vmem:[#allocation2 + $0xc0] sm:$0xff]  }
 0x286   : > { %4148 = vst.msk [vmem:[#allocation4 + $0xd0] sm:$0xff] %vm815_vm0, %v4102_v28  ;;  %v3818_v52 = vor.u32 %v3817_v45, %v3813_v36  ;;  %v14996_v10 = vld [vmem:[#allocation2 + $0x90] sm:$0xfe]   ;;  %4149 = vst.msk [vmem:[#allocation4 + $0xe8] sm:$0xff] %vm815_vm0, %v4105_v60  ;;  %v15007_v15 = vld [vmem:[#allocation2 + $0xa8] sm:$0xfe]  }
 0x287   : > { %v3810_v6 = vrot.slane %v3808_v5, 1  ;;  %v14997_v50 = vld [vmem:[#allocation2 + $0x98] ss:$0 sps:$4 sm:$0x11]   ;;  %v4106_v14 = vrot.slane %v14996_v10, 1  ;;  %v2064_v5 = vrot.slane %v2062_v20, 1 }
 0x288   : > { %v16696_v59 = vpop.permute.xlu0 %3239  ;;  %2389 = vrot.lane.b32.xlu1 %v2357_v17, %s15832_s21  ;;  %v3823_v63 = vsel %vm1878_vm8, %v3818_v52, %v3822_v49  ;;  %v4107_v18 = vrot.slane %v14997_v50, 1  ;;  %v14999_v17 = vld [vmem:[#allocation2 + $0xc8] ss:$0 sps:$4 sm:$0x11]  }
 0x289   : > { %v16703_v55 = vpop.permute.xlu1 %2552  ;;  %v4179_v33 = vld [vmem:[#allocation4 + $0xb8] sm:$0xff]  ;;  %v3225_v28 = vrot.slane %v14999_v17, 1  ;;  %v2065_v36 = vor.u32 %v2064_v5, %v2060_v1  ;;  %v15005_v45 = vld [vmem:[#allocation2 + $0xa4] ss:$0 sps:$4 sm:$0x11]  }
 0x28a   : > { %14569 = vmatmul.mubr.msk.bf16.gmra.mrb[48].mxu0 %vm815_vm0, %v4179_v33  ;;  %v4108_v25 = vsel %vm2312_vm7, %v4106_v14, %v4107_v18  ;;  %v4165_v33 = vld [vmem:[#allocation4 + $0x48] sm:$0xff]  ;;  %v4110_v0 = vrot.slane %v15005_v45, 1  ;;  %v15008_v60 = vld [vmem:[#allocation2 + $0xb0] ss:$0 sps:$4 sm:$0x11]  }
 0x28b   : > { %4150 = vst.msk [vmem:[#allocation4 + $0x100] sm:$0xff] %vm815_vm0, %v4108_v25  ;;  %4460 = vmatmul.mubr.bf16.gmra.mrb[8].mxu1 %v4165_v33  ;;  %v4113_v29 = vrot.slane %v15008_v60, 1  ;;  %v15010_v50 = vld [vmem:[#allocation2 + $0x68] ss:$0 sps:$4 sm:$0x11]   ;;  %v15011_v14 = vld [vmem:[#allocation2 + $0x3c] sm:$0xff]  }
 0x28c   : > { %v16709_v2 = vpop.permute.xlu0 %3848  ;;  %2566 = vrot.lane.b32.xlu1 %v14989_v35, %s15834_s27  ;;  %v506_v35 = vld [vmem:[#allocation2 + $0xcc] sm:$0x1]  ;;  %v4169_v47 = vld [vmem:[#allocation4 + $0x68] sm:$0xff]  ;;  %v562_v18 = vld [vmem:[#allocation2 + $0xd4] sm:$0x1]  ;;  %1691 = vst.msk [vmem:[#allocation4 + $0x78] sm:$0xff] %vm815_vm0, %v15011_v14 }
 0x28d   : > { %v16715_v23 = vpop.permute.xlu1 %2550  ;;  %v4182_v57 = vld [vmem:[#allocation4 + $0xd0] sm:$0xff]  ;;  %v507_v11 = vsel %vm16145_vm3, 0, %v506_v35  ;;  %v4185_v40 = vld [vmem:[#allocation4 + $0xe8] sm:$0xff]  ;;  %4467 = vmatprep.mubr.bf16.mxu1 %v4169_v47  ;;  %2125 = vst.msk [vmem:[#allocation4 + $0x78] sm:$0xff] %vm2119_vm12, %v16694_v38  ;;  %v4168_v45 = vld [vmem:[#allocation4 + $0x60] sm:$0xff] }
 0x28e   : > { %2593 = vst.msk [vmem:[#allocation4 + $0x90] sm:$0xff] %vm2586_vm14, %v16715_v23  ;;  %14572 = vmatprep.mubr.msk.bf16.mxu0 %vm815_vm0, %v4182_v57  ;;  %508 = vst [vmem:[#allocation2 + $0xcc] sm:$0x1] %v507_v11 }
 0x28f   : > { %2415 = vst.msk [vmem:[#allocation4 + $0x78] sm:$0xff] %vm2409_vm13, %v16674_v12  ;;  %v15016_v12 = vld [vmem:[#allocation2 + $0xb4] sm:$0xfe]  }
 0x290   : > { %v3847_v22 = vpop.permute.xlu0 %3846  ;;  %2592 = vst.msk [vmem:[#allocation4 + $0x78] sm:$0xff] %vm2586_vm14, %v16640_v21 }
 0x291   : > { %v16721_v34 = vpop.permute.xlu1 %2377  ;;  %3889 = vst.msk [vmem:[#allocation4 + $0x80] sm:$0xff] %vm2586_vm14, %v3847_v22  ;;  %v3805_v22 = vrot.slane %v3803_v31, 1 }
 0x292   : > { %14573 = vmatmul.mubr.msk.bf16.gmra.mrb[52].mxu0 %vm815_vm0, %v4185_v40  ;;  %v4188_v57 = vld [vmem:[#allocation4 + $0x100] sm:$0xff] }
 0x293   : > { %v3806_v32 = vor.u32 %v3805_v22, %v3801_v19  ;;  %v2359_v19 = vrot.slane %v14995_v56, 1  ;;  %v14998_v22 = vld [vmem:[#allocation2 + $0xc0] sm:$0xfe]   ;;  %14576 = vmatprep.mubr.msk.bf16.mxu0 %vm815_vm0, %v4188_v57  ;;  %4468 = vmatmul.mubr.bf16.gmra.mrb[12].mxu1 %v4168_v45  ;;  %v15027_v45 = vld [vmem:[#allocation2 + $0x90] sm:$0xff]  }
 0x294   : > { %v16725_v58 = vpop.permute.xlu0 %3420  ;;  %v3224_v30 = vrot.slane %v14998_v22, 1 }
 0x295   : > { %v16731_v43 = vpop.permute.xlu1 %2375  ;;  %v3811_v61 = vsel %vm1878_vm8, %v3806_v32, %v3810_v6  ;;  %v2360_v31 = vsel %vm2312_vm7, %v2358_v8, %v2359_v19  ;;  %v15001_v32 = vld [vmem:[#allocation2 + $0xbc] ss:$0 sps:$4 sm:$0x11]   ;;  %v4112_v8 = vrot.slane %v15007_v15, 1  ;;  %v15009_v19 = vld [vmem:[#allocation2 + $0x60] sm:$0xff]   ;;  %v15003_v10 = vld [vmem:[#allocation2 + $0xcc] sm:$0xff]  }
 0x296   : > { %3862 = vrot.lane.b32.xlu0 %v3811_v61, %s15834_s27  ;;  %2391 = vrot.lane.b32.xlu1 %v2360_v31, %s15832_s21  ;;  %v3226_v6 = vsel %vm2312_vm7, %v3224_v30, %v3225_v28  ;;  %v2067_v37 = vshll.u32 %v15001_v32, 16  ;;  %v15004_v61 = vld [vmem:[#allocation2 + $0x9c] sm:$0xfe]   ;;  %v2864_v1 = vshrl.u32 %v15009_v19, 16  ;;  %v2866_v31 = vshll.u32 %v15009_v19, 16  ;;  %v15012_v22 = vld [vmem:[#allocation2 + $0xcc] sm:$0xff]  }
 0x297   : > { %v4109_v49 = vrot.slane %v15004_v61, 1  ;;  %v4114_v20 = vsel %vm2312_vm7, %v4112_v8, %v4113_v29  ;;  %v2871_v30 = vshll.u32 %v15010_v50, 16  ;;  %v563_v28 = vsel %vm16191_vm6, 0, %v562_v18  ;;  %v15014_v32 = vld [vmem:[#allocation2 + $0x54] sm:$0xff]  }
 0x298   : > { %v16737_v51 = vpop.permute.xlu0 %3418  ;;  %v2069_v41 = vrot.slane %v2067_v37, 1  ;;  %4152 = vst.msk [vmem:[#allocation4 + $0x130] sm:$0xff] %vm815_vm0, %v4114_v20  ;;  %v2868_v25 = vrot.slane %v2866_v31, 1  ;;  %564 = vst [vmem:[#allocation2 + $0xd4] sm:$0x1] %v563_v28  ;;  %v3827_v35 = vshll.u32 %v15012_v22, 16 }
 0x299   : > { %v16742_v4 = vpop.permute.xlu1 %2087  ;;  %v15015_v37 = vld [vmem:[#allocation2 + $0x5c] ss:$0 sps:$4 sm:$0x11]   ;;  %v2852_v11 = vshrl.u32 %v15014_v32, 16  ;;  %v2854_v33 = vshll.u32 %v15014_v32, 16  ;;  %v4172_v57 = vld [vmem:[#allocation4 + $0x80] sm:$0xff] }
 0x29a   : > { %3864 = vrot.lane.b32.xlu0 %v3823_v63, %s15834_s27  ;;  %v2070_v48 = vsel %vm1878_vm8, %v2065_v36, %v2069_v41  ;;  %v4111_v63 = vsel %vm2312_vm7, %v4109_v49, %v4110_v0  ;;  %v2873_v36 = vrot.slane %v2871_v30, 1  ;;  %v3825_v41 = vshrl.u32 %v15012_v22, 16  ;;  %v15017_v49 = vld [vmem:[#allocation2 + $0xbc] ss:$0 sps:$4 sm:$0x11]   ;;  %v15020_v0 = vld [vmem:[#allocation2 + $0x60] sm:$0xff]   ;;  %4475 = vmatprep.mubr.bf16.mxu1 %v4172_v57 }
 0x29b   : > { %2101 = vrot.lane.b32.xlu1 %v2070_v48, %s15833_s28  ;;  %4151 = vst.msk [vmem:[#allocation4 + $0x118] sm:$0xff] %vm815_vm0, %v4111_v63  ;;  %v3829_v61 = vrot.slane %v3827_v35, 1  ;;  %v2856_v47 = vrot.slane %v2854_v33, 1  ;;  %v2859_v48 = vshll.u32 %v15015_v37, 16  ;;  %v4115_v8 = vrot.slane %v15016_v12, 1  ;;  %1694 = vst.msk [vmem:[#allocation4 + $0xc0] sm:$0xff] %vm815_vm0, %v15020_v0 }
 0x29c   : > { %v16750_v13 = vpop.permute.xlu0 %3245  ;;  %v4116_v19 = vrot.slane %v15017_v49, 1  ;;  %2128 = vst.msk [vmem:[#allocation4 + $0xc0] sm:$0xff] %vm2119_vm12, %v16742_v4  ;;  %v15023_v50 = vld [vmem:[#allocation2 + $0x54] sm:$0xff]   ;;  %v15019_v31 = vld [vmem:[#allocation2 + $0xc8] ss:$0 sps:$4 sm:$0x11]  }
 0x29d   : > { %v16756_v26 = vpop.permute.xlu1 %2085  ;;  %v2857_v21 = vor.u32 %v2856_v47, %v2852_v11  ;;  %v2861_v15 = vrot.slane %v2859_v48, 1  ;;  %2418 = vst.msk [vmem:[#allocation4 + $0xc0] sm:$0xff] %vm2409_vm13, %v16721_v34  ;;  %v3830_v20 = vor.u32 %v3829_v61, %v3825_v41  ;;  %v4171_v4 = vld [vmem:[#allocation4 + $0x78] sm:$0xff]  ;;  %v4119_v22 = vrot.slane %v15019_v31, 1  ;;  %v15026_v11 = vld [vmem:[#allocation2 + $0x78] sm:$0xff]   ;;  %v4174_v0 = vld [vmem:[#allocation4 + $0x90] sm:$0xff] }
 0x29e   : > { %3257 = vrot.lane.b32.xlu0 %v3226_v6, %s15833_s28  ;;  %v2869_v6 = vor.u32 %v2868_v25, %v2864_v1  ;;  %v15018_v1 = vld [vmem:[#allocation2 + $0xc0] sm:$0xfe]   ;;  %1693 = vst.msk [vmem:[#allocation4 + $0xa8] sm:$0xff] %vm815_vm0, %v15023_v50  ;;  %4476 = vmatmul.mubr.bf16.gmra.mrb[16].mxu1 %v4171_v4  ;;  %v15025_v35 = vld [vmem:[#allocation2 + $0x74] ss:$0 sps:$4 sm:$0x11]  }
 0x29f   : > { %2568 = vrot.lane.b32.xlu1 %v15006_v54, %s15834_s27  ;;  %v4194_v60 = vld [vmem:[#allocation4 + $0x130] sm:$0xff]  ;;  %v15013_v29 = vld [vmem:[#allocation2 + $0xd4] ss:$0 sps:$4 sm:$0x11]   ;;  %2127 = vst.msk [vmem:[#allocation4 + $0xa8] sm:$0xff] %vm2119_vm12, %v16756_v26  ;;  %v15024_v26 = vld [vmem:[#allocation2 + $0x6c] sm:$0xff]  }
 0x2a0   : > { %v16759_v27 = vpop.permute.xlu0 %3243  ;;  %v2874_v38 = vsel %vm1878_vm8, %v2869_v6, %v2873_v36  ;;  %v3832_v18 = vshll.u32 %v15013_v29, 16  ;;  %2417 = vst.msk [vmem:[#allocation4 + $0xa8] sm:$0xff] %vm2409_vm13, %v16731_v43  ;;  %v2876_v36 = vshrl.u32 %v15024_v26, 16  ;;  %v2878_v37 = vshll.u32 %v15024_v26, 16  ;;  %v15030_v29 = vld [vmem:[#allocation2 + $0x84] sm:$0xff]  }
 0x2a1   : > { %v16763_v39 = vpop.permute.xlu1 %2556  ;;  %2994 = vst.msk [vmem:[#allocation4 + $0xb0] sm:$0xff] %vm815_vm0, %v2874_v38  ;;  %v2883_v41 = vshll.u32 %v15025_v35, 16  ;;  %1696 = vst.msk [vmem:[#allocation4 + $0xf0] sm:$0xff] %vm815_vm0, %v15026_v11  ;;  %v2914_v57 = vshll.u32 %v15027_v45, 16 }
 0x2a2   : > { %3434 = vrot.lane.b32.xlu0 %v15003_v10, %s15832_s21  ;;  %v4191_v40 = vld [vmem:[#allocation4 + $0x118] sm:$0xff]  ;;  %3282 = vst.msk [vmem:[#allocation4 + $0xb0] sm:$0xff] %vm2119_vm12, %v16688_v44  ;;  %v15021_v10 = vld [vmem:[#allocation2 + $0x78] sm:$0xff]   ;;  %v2862_v44 = vsel %vm1878_vm8, %v2857_v21, %v2861_v15  ;;  %v3834_v25 = vrot.slane %v3832_v18, 1  ;;  %v2912_v15 = vshrl.u32 %v15027_v45, 16 }
 0x2a3   : > { %14577 = vmatmul.mubr.msk.bf16.gmra.mrb[56].mxu0 %vm815_vm0, %v4191_v40  ;;  %3459 = vst.msk [vmem:[#allocation4 + $0xb0] sm:$0xff] %vm2409_vm13, %v16737_v51  ;;  %v4117_v51 = vsel %vm2312_vm7, %v4115_v8, %v4116_v19  ;;  %v2888_v14 = vshrl.u32 %v15021_v10, 16  ;;  %v2890_v30 = vshll.u32 %v15021_v10, 16  ;;  %v2885_v12 = vrot.slane %v2883_v41, 1  ;;  %v15029_v19 = vld [vmem:[#allocation2 + $0x6c] sm:$0xff]   ;;  %v15039_v41 = vld [vmem:[#allocation2 + $0x9c] sm:$0xff]  }
 0x2a4   : > { %v16766_v42 = vpop.permute.xlu0 %3852  ;;  %14580 = vmatprep.mubr.msk.bf16.mxu0 %vm815_vm0, %v4194_v60  ;;  %2993 = vst.msk [vmem:[#allocation4 + $0x98] sm:$0xff] %vm815_vm0, %v2862_v44  ;;  %4153 = vst.msk [vmem:[#allocation4 + $0x148] sm:$0xff] %vm815_vm0, %v4117_v51  ;;  %v3835_v28 = vsel %vm1878_vm8, %v3830_v20, %v3834_v25  ;;  %v15028_v21 = vld [vmem:[#allocation2 + $0x98] ss:$0 sps:$4 sm:$0x11]   ;;  %v2900_v51 = vshrl.u32 %v15030_v29, 16 }
 0x2a5   : > { %v16780_v46 = vpop.permute.xlu1 %2554  ;;  %3281 = vst.msk [vmem:[#allocation4 + $0x98] sm:$0xff] %vm2119_vm12, %v16696_v59  ;;  %v15022_v59 = vld [vmem:[#allocation2 + $0x80] ss:$0 sps:$4 sm:$0x11]   ;;  %v2919_v10 = vshll.u32 %v15028_v21, 16  ;;  %v15033_v18 = vld [vmem:[#allocation2 + $0xa8] sm:$0xff]  }
 0x2a6   : > { %2595 = vst.msk [vmem:[#allocation4 + $0xc0] sm:$0xff] %vm2586_vm14, %v16780_v46  ;;  %2594 = vst.msk [vmem:[#allocation4 + $0xa8] sm:$0xff] %vm2586_vm14, %v16703_v55  ;;  %v2895_v32 = vshll.u32 %v15022_v59, 16  ;;  %3866 = vrot.lane.b32.xlu0 %v3835_v28, %s15834_s27  ;;  %v2880_v55 = vrot.slane %v2878_v37, 1  ;;  %v15036_v59 = vld [vmem:[#allocation2 + $0x9c] sm:$0xff]  }
 0x2a7   : > { %3458 = vst.msk [vmem:[#allocation4 + $0x98] sm:$0xff] %vm2409_vm13, %v16666_v62  ;;  %v2921_v50 = vrot.slane %v2919_v10, 1  ;;  %v2926_v35 = vshll.u32 %v15036_v59, 16  ;;  %v677_v10 = vld [vmem:[#allocation3 + $0xd4] sm:$0x1] }
 0x2a8   : > { %v16785_v23 = vpop.permute.xlu0 %3850  ;;  %3890 = vst.msk [vmem:[#allocation4 + $0x98] sm:$0xff] %vm2586_vm14, %v16709_v2  ;;  %v2892_v2 = vrot.slane %v2890_v30, 1  ;;  %v2897_v43 = vrot.slane %v2895_v32, 1  ;;  %v2881_v49 = vor.u32 %v2880_v55, %v2876_v36  ;;  %v15037_v32 = vld [vmem:[#allocation2 + $0xa4] ss:$0 sps:$4 sm:$0x11]  }
 0x2a9   : > { %v16793_v16 = vpop.permute.xlu1 %2381  ;;  %3891 = vst.msk [vmem:[#allocation4 + $0xb0] sm:$0xff] %vm2586_vm14, %v16785_v23  ;;  %v4118_v23 = vrot.slane %v15018_v1, 1  ;;  %v2902_v1 = vshll.u32 %v15030_v29, 16  ;;  %v2928_v37 = vrot.slane %v2926_v35, 1  ;;  %v2931_v11 = vshll.u32 %v15037_v32, 16  ;;  %v15040_v55 = vld [vmem:[#allocation2 + $0xb4] sm:$0xff]  }
 0x2aa   : > { %v2893_v40 = vor.u32 %v2892_v2, %v2888_v14  ;;  %1695 = vst.msk [vmem:[#allocation4 + $0xd8] sm:$0xff] %vm815_vm0, %v15029_v19  ;;  %v15032_v14 = vld [vmem:[#allocation2 + $0x90] sm:$0xff]   ;;  %v2924_v2 = vshrl.u32 %v15036_v59, 16  ;;  %1699 = vst.msk [vmem:[#allocation4 + $0x138] sm:$0xff] %vm815_vm0, %v15039_v41  ;;  %v15051_v41 = vld [vmem:[#allocation3] sm:$0xfe]  }
 0x2ab   : > { %v4120_v62 = vsel %vm2312_vm7, %v4118_v23, %v4119_v22  ;;  %v4197_v33 = vld [vmem:[#allocation4 + $0x148] sm:$0xff]  ;;  %1698 = vst.msk [vmem:[#allocation4 + $0x120] sm:$0xff] %vm815_vm0, %v15032_v14  ;;  %v15035_v23 = vld [vmem:[#allocation2 + $0x84] sm:$0xff]   ;;  %v2938_v22 = vshll.u32 %v15033_v18, 16 }
 0x2ac   : > { %v16790_v9 = vpop.permute.xlu0 %3424  ;;  %4154 = vst.msk [vmem:[#allocation4 + $0x160] sm:$0xff] %vm815_vm0, %v4120_v62  ;;  %14581 = vmatmul.mubr.msk.bf16.gmra.mrb[60].mxu0 %vm815_vm0, %v4197_v33  ;;  %v2898_v48 = vsel %vm1878_vm8, %v2893_v40, %v2897_v43  ;;  %1697 = vst.msk [vmem:[#allocation4 + $0x108] sm:$0xff] %vm815_vm0, %v15035_v23  ;;  %v575_v14 = vld [vmem:[#allocation3 + $0xc] sm:$0x1]  ;;  %v15047_v23 = vld [vmem:[#allocation3 + $0xcc] sm:$0xfe]  }
 0x2ad   : > { %v16804_v56 = vpop.permute.xlu1 %2379  ;;  %2996 = vst.msk [vmem:[#allocation4 + $0xe0] sm:$0xff] %vm815_vm0, %v2898_v48  ;;  %v2940_v30 = vrot.slane %v2938_v22, 1  ;;  %v4180_v33 = vld [vmem:[#allocation4 + $0xc0] sm:$0xff]  ;;  %v2948_v48 = vshrl.u32 %v15040_v55, 16 }
 0x2ae   : > { %3284 = vst.msk [vmem:[#allocation4 + $0xe0] sm:$0xff] %vm2119_vm12, %v16750_v13  ;;  %v15031_v13 = vld [vmem:[#allocation2 + $0x8c] ss:$0 sps:$4 sm:$0x11]   ;;  %v578_v22 = vld [vmem:[#allocation3 + $0x18] sm:$0x1] }
 0x2af   : > { %v4175_v47 = vld [vmem:[#allocation4 + $0x98] sm:$0xff]  ;;  %v2907_v31 = vshll.u32 %v15031_v13, 16  ;;  %v678_v13 = vsel %vm16191_vm6, 0, %v677_v10 }
 0x2b0   : > { %v16801_v52 = vpop.permute.xlu0 %3422  ;;  %v4178_v61 = vld [vmem:[#allocation4 + $0xb0] sm:$0xff]  ;;  %4483 = vmatprep.mubr.bf16.mxu1 %v4175_v47  ;;  %679 = vst [vmem:[#allocation3 + $0xd4] sm:$0x1] %v678_v13 }
 0x2b1   : > { %v16818_v5 = vpop.permute.xlu1 %2091  ;;  %4484 = vmatmul.mubr.bf16.gmra.mrb[20].mxu1 %v4174_v0  ;;  %3461 = vst.msk [vmem:[#allocation4 + $0xe0] sm:$0xff] %vm2409_vm13, %v16801_v52  ;;  %v2909_v4 = vrot.slane %v2907_v31, 1  ;;  %v15042_v47 = vld [vmem:[#allocation2 + $0xc0] sm:$0xff]  }
 0x2b2   : > { %2130 = vst.msk [vmem:[#allocation4 + $0xf0] sm:$0xff] %vm2119_vm12, %v16818_v5  ;;  %v2886_v5 = vsel %vm1878_vm8, %v2881_v49, %v2885_v12  ;;  %4491 = vmatprep.mubr.bf16.mxu1 %v4178_v61  ;;  %v2929_v61 = vor.u32 %v2928_v37, %v2924_v2  ;;  %v2950_v12 = vshll.u32 %v15040_v55, 16  ;;  %v15043_v49 = vld [vmem:[#allocation2 + $0xc8] ss:$0 sps:$4 sm:$0x11]   ;;  %v2960_v0 = vshrl.u32 %v15042_v47, 16 }
 0x2b3   : > { %2420 = vst.msk [vmem:[#allocation4 + $0xf0] sm:$0xff] %vm2409_vm13, %v16793_v16  ;;  %v4200_v8 = vld [vmem:[#allocation4 + $0x160] sm:$0xff]  ;;  %v2916_v16 = vrot.slane %v2914_v57, 1  ;;  %v2962_v21 = vshll.u32 %v15042_v47, 16 }
 0x2b4   : > { %v16812_v17 = vpop.permute.xlu0 %3249  ;;  %14584 = vmatprep.mubr.msk.bf16.mxu0 %vm815_vm0, %v4200_v8  ;;  %2995 = vst.msk [vmem:[#allocation4 + $0xc8] sm:$0xff] %vm815_vm0, %v2886_v5  ;;  %v2952_v57 = vrot.slane %v2950_v12, 1  ;;  %v15044_v8 = vld [vmem:[#allocation2 + $0xb4] sm:$0xff]  }
 0x2b5   : > { %v16833_v63 = vpop.permute.xlu1 %2089  ;;  %3283 = vst.msk [vmem:[#allocation4 + $0xc8] sm:$0xff] %vm2119_vm12, %v16759_v27  ;;  %v2917_v44 = vor.u32 %v2916_v16, %v2912_v15  ;;  %v4177_v27 = vld [vmem:[#allocation4 + $0xa8] sm:$0xff]  ;;  %v2964_v5 = vrot.slane %v2962_v21, 1  ;;  %v2967_v16 = vshll.u32 %v15043_v49, 16  ;;  %v635_v21 = vld [vmem:[#allocation3 + $0x2c] sm:$0x1] }
 0x2b6   : > { %2129 = vst.msk [vmem:[#allocation4 + $0xd8] sm:$0xff] %vm2119_vm12, %v16833_v63  ;;  %v2953_v29 = vor.u32 %v2952_v57, %v2948_v48  ;;  %v581_v48 = vld [vmem:[#allocation3 + $0x24] sm:$0x1] }
 0x2b7   : > { %3460 = vst.msk [vmem:[#allocation4 + $0xc8] sm:$0xff] %vm2409_vm13, %v16725_v58  ;;  %2419 = vst.msk [vmem:[#allocation4 + $0xd8] sm:$0xff] %vm2409_vm13, %v16804_v56  ;;  %v2922_v20 = vsel %vm1878_vm8, %v2917_v44, %v2921_v50  ;;  %v2904_v58 = vrot.slane %v2902_v1, 1  ;;  %v15034_v56 = vld [vmem:[#allocation2 + $0xb0] ss:$0 sps:$4 sm:$0x11]   ;;  %v2965_v50 = vor.u32 %v2964_v5, %v2960_v0 }
 0x2b8   : > { %v16829_v54 = vpop.permute.xlu0 %3247  ;;  %3892 = vst.msk [vmem:[#allocation4 + $0xc8] sm:$0xff] %vm2586_vm14, %v16766_v42  ;;  %2596 = vst.msk [vmem:[#allocation4 + $0xd8] sm:$0xff] %vm2586_vm14, %v16763_v39  ;;  %v2936_v42 = vshrl.u32 %v15033_v18, 16  ;;  %v2943_v39 = vshll.u32 %v15034_v56, 16  ;;  %v15045_v44 = vld [vmem:[#allocation2 + $0xcc] sm:$0xfe]  }
 0x2b9   : > { %v16864_v46 = vpop.permute.xlu1 %2560  ;;  %2998 = vst.msk [vmem:[#allocation4 + $0x110] sm:$0xff] %vm815_vm0, %v2922_v20  ;;  %4492 = vmatmul.mubr.bf16.gmra.mrb[24].mxu1 %v4177_v27  ;;  %v2905_v25 = vor.u32 %v2904_v58, %v2900_v51  ;;  %1701 = vst.msk [vmem:[#allocation4 + $0x168] sm:$0xff] %vm815_vm0, %v15044_v8  ;;  %v15046_v51 = vld [vmem:[#allocation2 + $0xd4] ss:$0 sps:$4 sm:$0x11]   ;;  %v4121_v31 = vrot.slane %v15045_v44, 1 }
 0x2ba   : > { %3286 = vst.msk [vmem:[#allocation4 + $0x110] sm:$0xff] %vm2119_vm12, %v16812_v17  ;;  %v2945_v28 = vrot.slane %v2943_v39, 1  ;;  %v2941_v17 = vor.u32 %v2940_v30, %v2936_v42  ;;  %v4122_v18 = vrot.slane %v15046_v51, 1  ;;  %v576_v58 = vsel %vm16145_vm3, 0, %v575_v14  ;;  %v572_v30 = vld [vmem:[#allocation3] sm:$0x1] }
 0x2bb   : > { %v2910_v26 = vsel %vm1878_vm8, %v2905_v25, %v2909_v4  ;;  %v629_v4 = vld [vmem:[#allocation3 + $0x14] sm:$0x1]  ;;  %577 = vst [vmem:[#allocation3 + $0xc] sm:$0x1] %v576_v58  ;;  %v579_v39 = vsel %vm16145_vm3, 0, %v578_v22  ;;  %v582_v0 = vsel %vm16145_vm3, 0, %v581_v48 }
 0x2bc   : > { %v16858_v34 = vpop.permute.xlu0 %3856  ;;  %2997 = vst.msk [vmem:[#allocation4 + $0xf8] sm:$0xff] %vm815_vm0, %v2910_v26  ;;  %v2946_v40 = vsel %vm1878_vm8, %v2941_v17, %v2945_v28  ;;  %v630_v42 = vsel %vm16191_vm6, 0, %v629_v4  ;;  %v4123_v25 = vsel %vm2312_vm7, %v4121_v31, %v4122_v18  ;;  %580 = vst [vmem:[#allocation3 + $0x18] sm:$0x1] %v579_v39  ;;  %v626_v26 = vld [vmem:[#allocation3 + $0x8] sm:$0x1] }
 0x2bd   : > { %v2559_v38 = vpop.permute.xlu1 %2558  ;;  %3285 = vst.msk [vmem:[#allocation4 + $0xf8] sm:$0xff] %vm2119_vm12, %v16829_v54  ;;  %v2933_v54 = vrot.slane %v2931_v11, 1  ;;  %631 = vst [vmem:[#allocation3 + $0x14] sm:$0x1] %v630_v42  ;;  %v632_v28 = vld [vmem:[#allocation3 + $0x20] sm:$0x1] }
 0x2be   : > { %2597 = vst.msk [vmem:[#allocation4 + $0xf0] sm:$0xff] %vm2586_vm14, %v2559_v38  ;;  %v15041_v38 = vld [vmem:[#allocation2 + $0xbc] ss:$0 sps:$4 sm:$0x11]   ;;  %v627_v2 = vsel %vm16191_vm6, 0, %v626_v26  ;;  %v633_v35 = vsel %vm16191_vm6, 0, %v632_v28 }
 0x2bf   : > { %v4181_v43 = vld [vmem:[#allocation4 + $0xc8] sm:$0xff]  ;;  %3462 = vst.msk [vmem:[#allocation4 + $0xf8] sm:$0xff] %vm2409_vm13, %v16790_v9  ;;  %v2934_v9 = vsel %vm1878_vm8, %v2929_v61, %v2933_v54  ;;  %v4183_v27 = vld [vmem:[#allocation4 + $0xd8] sm:$0xff]  ;;  %v7844_v17 = vrot.slane %v15047_v23, 1  ;;  %628 = vst [vmem:[#allocation3 + $0x8] sm:$0x1] %v627_v2 }
 0x2c0   : > { %v3855_v6 = vpop.permute.xlu0 %3854  ;;  %4499 = vmatprep.mubr.bf16.mxu1 %v4181_v43  ;;  %3894 = vst.msk [vmem:[#allocation4 + $0xf8] sm:$0xff] %vm2586_vm14, %v16858_v34  ;;  %v2955_v34 = vshll.u32 %v15041_v38, 16  ;;  %634 = vst [vmem:[#allocation3 + $0x20] sm:$0x1] %v633_v35  ;;  %v636_v8 = vsel %vm16191_vm6, 0, %v635_v21  ;;  %v15069_v28 = vld [vmem:[#allocation12 + $0x80] sm:$0xff]  }
 0x2c1   : > { %3893 = vst.msk [vmem:[#allocation4 + $0xe0] sm:$0xff] %vm2586_vm14, %v3855_v6  ;;  %v16896_v52 = vpop.permute.xlu1 %2385  ;;  %v15038_v6 = vld [vmem:[#allocation2 + $0xa8] sm:$0xff]   ;;  %4500 = vmatmul.mubr.bf16.gmra.mrb[28].mxu1 %v4180_v33  ;;  %583 = vst [vmem:[#allocation3 + $0x24] sm:$0x1] %v582_v0  ;;  %14588 = vmatprep.subr.bf16.mxu1 %v15069_v28  ;;  %v17013_v0 = vld [vmem:[#allocation10] ss:$0 sm:$0xff] }
 0x2c2   : > { %1700 = vst.msk [vmem:[#allocation4 + $0x150] sm:$0xff] %vm815_vm0, %v15038_v6  ;;  %3000 = vst.msk [vmem:[#allocation4 + $0x140] sm:$0xff] %vm815_vm0, %v2946_v40  ;;  %v2957_v19 = vrot.slane %v2955_v34, 1  ;;  %v6038_v34 = vrot.slane %v15051_v41, 1  ;;  %v584_v31 = vld [vmem:[#allocation3 + $0x30] sm:$0x1]  ;;  %14589 = vmatpush3.bf16.msra.mxu1 %v15069_v28 }
 0x2c3   : > { %2999 = vst.msk [vmem:[#allocation4 + $0x128] sm:$0xff] %vm815_vm0, %v2934_v9  ;;  %4155 = vst.msk [vmem:[#allocation4 + $0x178] sm:$0xff] %vm815_vm0, %v4123_v25  ;;  %v585_v14 = vsel %vm16145_vm3, 0, %v584_v31  ;;  %v593_v41 = vld [vmem:[#allocation3 + $0x54] sm:$0x1] }
 0x2c4   : > { %v16880_v60 = vpop.permute.xlu0 %3428  ;;  %v2958_v1 = vsel %vm1878_vm8, %v2953_v29, %v2957_v19  ;;  %637 = vst [vmem:[#allocation3 + $0x2c] sm:$0x1] %v636_v8  ;;  %586 = vst [vmem:[#allocation3 + $0x30] sm:$0x1] %v585_v14 }
 0x2c5   : > { %3001 = vst.msk [vmem:[#allocation4 + $0x158] sm:$0xff] %vm815_vm0, %v2958_v1  ;;  %v4186_v43 = vld [vmem:[#allocation4 + $0xf0] sm:$0xff] }
 0x2c6   : > { %v16913_v62 = vpop.permute.xlu1 %2383  ;;  %v15050_v40 = vld [vmem:[#allocation3 + $0x8] ss:$0 sps:$4 sm:$0x11]  }
 0x2c7   : > { %v4187_v56 = vld [vmem:[#allocation4 + $0xf8] sm:$0xff]  ;;  %v5614_v55 = vshll.u32 %v15050_v40, 16 }
 0x2c8   : > { %v3427_v63 = vpop.permute.xlu0 %3426  ;;  %v4184_v36 = vld [vmem:[#allocation4 + $0xe0] sm:$0xff] }
 0x2c9   : > { %3463 = vst.msk [vmem:[#allocation4 + $0x110] sm:$0xff] %vm2409_vm13, %v3427_v63  ;;  %4507 = vmatprep.mubr.bf16.mxu1 %v4184_v36  ;;  %v5616_v9 = vrot.slane %v5614_v55, 1 }
 0x2ca   : > { %4508 = vmatmul.mubr.bf16.gmra.mrb[32].mxu1 %v4183_v27  ;;  %v4203_v33 = vld [vmem:[#allocation4 + $0x178] sm:$0xff] }
 0x2cb   : > { %4515 = vmatprep.mubr.bf16.mxu1 %v4187_v56  ;;  %14585 = vmatmul.mubr.msk.bf16.gmra.mrb[64].mxu0 %vm815_vm0, %v4203_v33  ;;  %v587_v56 = vld [vmem:[#allocation3 + $0x3c] sm:$0x1] }
 0x2cc   : > { %v588_v22 = vsel %vm16145_vm3, 0, %v587_v56 }
 0x2cd   : > { %589 = vst [vmem:[#allocation3 + $0x3c] sm:$0x1] %v588_v22 }
 0x2ce   : > { %v3254_v15 = vpop.permute.xlu0 %3253 }
 0x2cf   : > { %3288 = vst.msk [vmem:[#allocation4 + $0x140] sm:$0xff] %vm2119_vm12, %v3254_v15 }
 0x2d2   : > { %4516 = vmatmul.mubr.bf16.gmra.mrb[36].mxu1 %v4186_v43 }
 0x2d5   : > { %v2096_v45 = vpop.permute.xlu1 %2095 }
 0x2d6   : > { %2132 = vst.msk [vmem:[#allocation4 + $0x120] sm:$0xff] %vm2119_vm12, %v2096_v45  ;;  %v15052_v45 = vld [vmem:[#allocation3 + $0x8] ss:$0 sps:$4 sm:$0x11]  }
 0x2d7   : > { %2422 = vst.msk [vmem:[#allocation4 + $0x120] sm:$0xff] %vm2409_vm13, %v16896_v52  ;;  %v2969_v52 = vrot.slane %v2967_v16, 1  ;;  %v6039_v49 = vrot.slane %v15052_v45, 1 }
 0x2d9   : > { %v2094_v20 = vpop.permute.xlu1 %2093  ;;  %v2970_v63 = vsel %vm1878_vm8, %v2965_v50, %v2969_v52  ;;  %v6040_v5 = vsel %vm2312_vm7, %v6038_v34, %v6039_v49  ;;  %v599_v49 = vld [vmem:[#allocation3 + $0x6c] sm:$0x1] }
 0x2da   : > { %2131 = vst.msk [vmem:[#allocation4 + $0x108] sm:$0xff] %vm2119_vm12, %v2094_v20  ;;  %v638_v20 = vld [vmem:[#allocation3 + $0x38] sm:$0x1]  ;;  %v600_v21 = vsel %vm16145_vm3, 0, %v599_v49 }
 0x2db   : > { %3002 = vst.msk [vmem:[#allocation4 + $0x170] sm:$0xff] %vm815_vm0, %v2970_v63  ;;  %v3252_v59 = vpop.permute.xlu0 %3251  ;;  %v639_v18 = vsel %vm16191_vm6, 0, %v638_v20  ;;  %601 = vst [vmem:[#allocation3 + $0x6c] sm:$0x1] %v600_v21 }
 0x2dc   : > { %2421 = vst.msk [vmem:[#allocation4 + $0x108] sm:$0xff] %vm2409_vm13, %v16913_v62  ;;  %v573_v62 = vsel %vm16145_vm3, 0, %v572_v30  ;;  %640 = vst [vmem:[#allocation3 + $0x38] sm:$0x1] %v639_v18  ;;  %v5174_v18 = vld [vmem:[#allocation3 + $0xc] sm:$0xf] }
 0x2dd   : > { %2598 = vst.msk [vmem:[#allocation4 + $0x108] sm:$0xff] %vm2586_vm14, %v16864_v46  ;;  %v2565_v32 = vpop.permute.xlu1 %2564  ;;  %v15048_v46 = vld [vmem:[#allocation3 + $0xd4] ss:$0 sps:$4 sm:$0x11]   ;;  %574 = vst [vmem:[#allocation3] sm:$0x1] %v573_v62 }
 0x2de   : > { %3287 = vst.msk [vmem:[#allocation4 + $0x128] sm:$0xff] %vm2119_vm12, %v3252_v59  ;;  %v7845_v6 = vrot.slane %v15048_v46, 1  ;;  %v641_v59 = vld [vmem:[#allocation3 + $0x44] sm:$0x1]  ;;  %v590_v62 = vld [vmem:[#allocation3 + $0x48] sm:$0x1] }
 0x2df   : > { %3464 = vst.msk [vmem:[#allocation4 + $0x128] sm:$0xff] %vm2409_vm13, %v16880_v60  ;;  %v3861_v36 = vpop.permute.xlu0 %3860  ;;  %v642_v30 = vsel %vm16191_vm6, 0, %v641_v59  ;;  %v591_v35 = vsel %vm16145_vm3, 0, %v590_v62  ;;  %v5178_v59 = vld [vmem:[#allocation3 + $0x14] sm:$0x1] }
 0x2e0   : > { %3896 = vst.msk [vmem:[#allocation4 + $0x128] sm:$0xff] %vm2586_vm14, %v3861_v36  ;;  %v7846_v11 = vsel %vm2312_vm7, %v7844_v17, %v7845_v6  ;;  %643 = vst [vmem:[#allocation3 + $0x44] sm:$0x1] %v642_v30 }
 0x2e1   : > { %v2563_v37 = vpop.permute.xlu1 %2562  ;;  %7878 = vst.msk [vmem:[#allocation4 + $0x178] sm:$0xff] %vm815_vm0, %v7846_v11  ;;  %592 = vst [vmem:[#allocation3 + $0x48] sm:$0x1] %v591_v35  ;;  %v644_v11 = vld [vmem:[#allocation3 + $0x50] sm:$0x1] }
 0x2e2   : > { %2599 = vst.msk [vmem:[#allocation4 + $0x120] sm:$0xff] %vm2586_vm14, %v2563_v37 }
 0x2e3   : > { %v3859_v38 = vpop.permute.xlu0 %3858 }
 0x2e4   : > { %v15049_v60 = vld [vmem:[#allocation3] sm:$0xff]   ;;  %3895 = vst.msk [vmem:[#allocation4 + $0x110] sm:$0xff] %vm2586_vm14, %v3859_v38 }
 0x2e5   : > { %v5607_v61 = vshrl.u32 %v15049_v60, 16  ;;  %v5609_v54 = vshll.u32 %v15049_v60, 16  ;;  %v4189_v10 = vld [vmem:[#allocation4 + $0x108] sm:$0xff]  ;;  %v645_v60 = vsel %vm16191_vm6, 0, %v644_v11 }
 0x2e6   : > { %646 = vst [vmem:[#allocation3 + $0x50] sm:$0x1] %v645_v60  ;;  %v596_v38 = vld [vmem:[#allocation3 + $0x60] sm:$0x1] }
 0x2e7   : > { %v5611_v47 = vrot.slane %v5609_v54, 1  ;;  %v3433_v19 = vpop.permute.xlu0 %3432  ;;  %v4193_v13 = vld [vmem:[#allocation4 + $0x128] sm:$0xff]  ;;  %v647_v54 = vld [vmem:[#allocation3 + $0x5c] sm:$0x1] }
 0x2e8   : > { %v648_v55 = vsel %vm16191_vm6, 0, %v647_v54 }
 0x2e9   : > { %v5612_v12 = vor.u32 %v5611_v47, %v5607_v61  ;;  %v2388_v15 = vpop.permute.xlu1 %2387  ;;  %v4192_v50 = vld [vmem:[#allocation4 + $0x120] sm:$0xff]  ;;  %v594_v61 = vsel %vm16145_vm3, 0, %v593_v41  ;;  %649 = vst [vmem:[#allocation3 + $0x5c] sm:$0x1] %v648_v55  ;;  %v597_v47 = vsel %vm16145_vm3, 0, %v596_v38 }
 0x2ea   : > { %595 = vst [vmem:[#allocation3 + $0x54] sm:$0x1] %v594_v61  ;;  %598 = vst [vmem:[#allocation3 + $0x60] sm:$0x1] %v597_v47 }
 0x2eb   : > { %v5617_v57 = vsel %vm1878_vm8, %v5612_v12, %v5616_v9  ;;  %v4190_v16 = vld [vmem:[#allocation4 + $0x110] sm:$0xff]  ;;  %v3431_v44 = vpop.permute.xlu0 %3430 }
 0x2ec   : > { %5798 = vrot.lane.b32.xlu1 %v5617_v57, %s15833_s28  ;;  %4523 = vmatprep.mubr.bf16.mxu1 %v4190_v16  ;;  %3465 = vst.msk [vmem:[#allocation4 + $0x140] sm:$0xff] %vm2409_vm13, %v3431_v44  ;;  %v650_v12 = vld [vmem:[#allocation3 + $0x68] sm:$0x1] }
 0x2ed   : > { %4524 = vmatmul.mubr.bf16.gmra.mrb[40].mxu1 %v4189_v10  ;;  %v651_v34 = vsel %vm16191_vm6, 0, %v650_v12  ;;  %v5181_v12 = vld [vmem:[#allocation3 + $0x18] sm:$0xf] }
 0x2ee   : > { %4531 = vmatprep.mubr.bf16.mxu1 %v4193_v13  ;;  %652 = vst [vmem:[#allocation3 + $0x68] sm:$0x1] %v651_v34 }
 0x2f0   : > { %6086 = vrot.lane.b32.xlu1 %v6040_v5, %s15832_s21 }
 0x2f2   : > { %v2100_v29 = vpop.permute.xlu1 %2099 }
 0x2f3   : > { %2134 = vst.msk [vmem:[#allocation4 + $0x150] sm:$0xff] %vm2119_vm12, %v2100_v29  ;;  %v3256_v51 = vpop.permute.xlu0 %3255 }
 0x2f4   : > { %3289 = vst.msk [vmem:[#allocation4 + $0x158] sm:$0xff] %vm2119_vm12, %v3256_v51 }
 0x2f5   : > { %4532 = vmatmul.mubr.bf16.gmra.mrb[44].mxu1 %v4192_v50  ;;  %3466 = vst.msk [vmem:[#allocation4 + $0x158] sm:$0xff] %vm2409_vm13, %v3433_v19 }
 0x2f6   : > { %v2098_v52 = vpop.permute.xlu1 %2097 }
 0x2f7   : > { %2133 = vst.msk [vmem:[#allocation4 + $0x138] sm:$0xff] %vm2119_vm12, %v2098_v52  ;;  %v653_v52 = vld [vmem:[#allocation3 + $0x74] sm:$0x1] }
 0x2f8   : > { %2423 = vst.msk [vmem:[#allocation4 + $0x138] sm:$0xff] %vm2409_vm13, %v2388_v15  ;;  %v654_v31 = vsel %vm16191_vm6, 0, %v653_v52 }
 0x2f9   : > { %2600 = vst.msk [vmem:[#allocation4 + $0x138] sm:$0xff] %vm2586_vm14, %v2565_v32  ;;  %v15075_v32 = vld [vmem:[#allocation12 + $0x88] sm:$0xff]   ;;  %655 = vst [vmem:[#allocation3 + $0x74] sm:$0x1] %v654_v31 }
 0x2fa   : > { %v2390_v1 = vpop.permute.xlu1 %2389  ;;  %14590 = vmatprep.subr.bf16.mxu1 %v15075_v32 }
 0x2fb   : > { %2424 = vst.msk [vmem:[#allocation4 + $0x150] sm:$0xff] %vm2409_vm13, %v2390_v1  ;;  %14591 = vmatpush3.bf16.msra.mxu1 %v15075_v32 }
 0x2fe   : > { %v2567_v27 = vpop.permute.xlu1 %2566 }
 0x2ff   : > { %2601 = vst.msk [vmem:[#allocation4 + $0x150] sm:$0xff] %vm2586_vm14, %v2567_v27 }
 0x300   : > { %v4195_v42 = vld [vmem:[#allocation4 + $0x138] sm:$0xff] }
 0x306   : > { %v4198_v2 = vld [vmem:[#allocation4 + $0x150] sm:$0xff] }
 0x308   : > { %v3863_v63 = vpop.permute.xlu0 %3862  ;;  %v2392_v23 = vpop.permute.xlu1 %2391 }
 0x309   : > { %3897 = vst.msk [vmem:[#allocation4 + $0x140] sm:$0xff] %vm2586_vm14, %v3863_v63 }
 0x30c   : > { %v3865_v58 = vpop.permute.xlu0 %3864 }
 0x30d   : > { %3898 = vst.msk [vmem:[#allocation4 + $0x158] sm:$0xff] %vm2586_vm14, %v3865_v58  ;;  %v2102_v26 = vpop.permute.xlu1 %2101 }
 0x30e   : > { %2135 = vst.msk [vmem:[#allocation4 + $0x168] sm:$0xff] %vm2119_vm12, %v2102_v26 }
 0x30f   : > { %2425 = vst.msk [vmem:[#allocation4 + $0x168] sm:$0xff] %vm2409_vm13, %v2392_v23 }
 0x310   : > { %v4196_v4 = vld [vmem:[#allocation4 + $0x140] sm:$0xff]  ;;  %v3258_v25 = vpop.permute.xlu0 %3257 }
 0x311   : > { %4539 = vmatprep.mubr.bf16.mxu1 %v4196_v4  ;;  %3290 = vst.msk [vmem:[#allocation4 + $0x170] sm:$0xff] %vm2119_vm12, %v3258_v25  ;;  %v2569_v46 = vpop.permute.xlu1 %2568 }
 0x312   : > { %4540 = vmatmul.mubr.bf16.gmra.mrb[48].mxu1 %v4195_v42  ;;  %2602 = vst.msk [vmem:[#allocation4 + $0x168] sm:$0xff] %vm2586_vm14, %v2569_v46  ;;  %v602_v46 = vld [vmem:[#allocation3 + $0x78] sm:$0x1] }
 0x314   : > { %v4199_v39 = vld [vmem:[#allocation4 + $0x158] sm:$0xff]  ;;  %v3435_v6 = vpop.permute.xlu0 %3434 }
 0x315   : > { %4547 = vmatprep.mubr.bf16.mxu1 %v4199_v39  ;;  %3467 = vst.msk [vmem:[#allocation4 + $0x170] sm:$0xff] %vm2409_vm13, %v3435_v6 }
 0x318   : > { %v3867_v45 = vpop.permute.xlu0 %3866 }
 0x319   : > { %3899 = vst.msk [vmem:[#allocation4 + $0x170] sm:$0xff] %vm2586_vm14, %v3867_v45  ;;  %v4201_v48 = vld [vmem:[#allocation4 + $0x168] sm:$0xff] }
 0x31a   : > { %4548 = vmatmul.mubr.bf16.gmra.mrb[52].mxu1 %v4198_v2 }
 0x320   : > { %v4202_v9 = vld [vmem:[#allocation4 + $0x170] sm:$0xff] }
 0x321   : > { %4555 = vmatprep.mubr.bf16.mxu1 %v4202_v9 }
 0x322   : > { %4556 = vmatmul.mubr.bf16.gmra.mrb[56].mxu1 %v4201_v48 }
 0x325   : > { %v14142_v17 = vpop.f32.mrb[32].mxu0 }
 0x326   : > { %v14143_v43 = vpop.f32.mrb[33].mxu0 }
 0x327   : > { %v14144_v36 = vadd.f32 %v14143_v43, %v14142_v17  ;;  %v14145_v37 = vpop.f32.mrb[34].mxu0  ;;  %v603_v43 = vsel %vm16145_vm3, 0, %v602_v46  ;;  %v15133_v46 = vld [vmem:[#allocation12] sm:$0xff]  }
 0x328   : > { %v14146_v33 = vpop.f32.mrb[35].mxu0  ;;  %604 = vst [vmem:[#allocation3 + $0x78] sm:$0x1] %v603_v43 }
 0x329   : > { %v14147_v40 = vadd.f32 %v14146_v33, %v14145_v37  ;;  %v4438_v57 = vadd.f32 %v14144_v36, %v17013_v0 }
 0x32b   : > { %v4441_v16 = vadd.f32 %v14147_v40, %v17013_v0 }
 0x338   : > { %v14558_v15 = vpop.f32.mrb[36].mxu0 }
 0x339   : > { %v4598_v8 = vpop.f32.mrb[37].mxu0 }
 0x33a   : > { %v4599_v19 = vadd.f32 %v4598_v8, %v4438_v57  ;;  %v14559_v5 = vpop.f32.mrb[38].mxu0 }
 0x33b   : > { %v4601_v10 = vpop.f32.mrb[39].mxu0 }
 0x33c   : > { %v4725_v29 = vmax.f32 %v4599_v19, 0.0  ;;  %v4602_v13 = vadd.f32 %v4601_v10, %v4441_v16  ;;  %v5185_v19 = vld [vmem:[#allocation3 + $0x20] sm:$0x1] }
 0x33d   : > { %v14148_v63 = vpop.f32.mrb[0].mxu1 }
 0x33e   : > { %v14012_v44 = vpack.c.bf16 %v4725_v29, %v4725_v29  ;;  %v4726_v50 = vmax.f32 %v4602_v13, 0.0  ;;  %v14149_v58 = vpop.f32.mrb[1].mxu1 }
 0x33f   : > { %v14150_v22 = vadd.f32 %v14149_v58, %v14148_v63  ;;  %v14151_v25 = vpop.f32.mrb[2].mxu1 }
 0x340   : > { %v4854_v51 = vshrl.u32 %v14012_v44, 16  ;;  %v14013_v1 = vpack.c.bf16 %v4726_v50, %v4726_v50  ;;  %v4857_v27 = vshll.u32 %v14012_v44, 16  ;;  %v14152_v26 = vpop.f32.mrb[3].mxu1 }
 0x341   : > { %v4446_v35 = vadd.f32 %v14150_v22, %v17013_v0  ;;  %v14153_v6 = vadd.f32 %v14152_v26, %v14151_v25 }
 0x342   : > { %v4856_v14 = vrot.slane %v4854_v51, 7  ;;  %v4862_v20 = vshrl.u32 %v14013_v1, 16  ;;  %v4865_v23 = vshll.u32 %v14013_v1, 16 }
 0x343   : > { %v4607_v11 = vadd.f32 %v14558_v15, %v4446_v35  ;;  %v4449_v33 = vadd.f32 %v14153_v6, %v17013_v0  ;;  %v15132_v35 = vld [vmem:[#allocation12 + $0x40] sm:$0xff]  }
 0x344   : > { %v4859_v4 = vor.u32 %v4857_v27, %v4856_v14  ;;  %v4864_v56 = vrot.slane %v4862_v20, 7  ;;  %v17021_v42 = vpop.f32.mrb[40].mxu0  ;;  %v4860_v39 = vrot.slane %v4856_v14, 4  ;;  %14256 = vmatprep.subr.bf16.mxu0 %v15132_v35 }
 0x345   : > { %v17023_v30 = vpop.f32.mrb[41].mxu0  ;;  %v4727_v60 = vmax.f32 %v4607_v11, 0.0  ;;  %v4610_v40 = vadd.f32 %v14559_v5, %v4449_v33  ;;  %v14154_v5 = vpop.f32.mrb[4].mxu1  ;;  %14257 = vmatpush3.bf16.msra.mxu0 %v15133_v46 }
 0x346   : > { %v5175_v28 = vsel %vm16257_vm10, %v4859_v4, %v5174_v18  ;;  %v4867_v32 = vor.u32 %v4865_v23, %v4864_v56  ;;  %v4869_v62 = vrot.slane %v4864_v56, 4  ;;  %v17027_v2 = vpop.f32.mrb[42].mxu0  ;;  %v14155_v29 = vpop.f32.mrb[5].mxu1 }
 0x347   : > { %5176 = vst [vmem:[#allocation3 + $0xc] sm:$0xf] %v5175_v28  ;;  %v17030_v17 = vpop.f32.mrb[43].mxu0  ;;  %v14014_v41 = vpack.c.bf16 %v4727_v60, %v4727_v60  ;;  %v4728_v61 = vmax.f32 %v4610_v40, 0.0  ;;  %v14156_v52 = vadd.f32 %v14155_v29, %v14154_v5  ;;  %v14157_v51 = vpop.f32.mrb[6].mxu1 }
 0x348   : > { %v4868_v36 = vsel %vm16264_vm11, %v4860_v39, %v4867_v32  ;;  %v5179_v37 = vsel %vm16145_vm3, %v4869_v62, %v5178_v59  ;;  %v14158_v27 = vpop.f32.mrb[7].mxu1  ;;  %v656_v39 = vld [vmem:[#allocation3 + $0x80] sm:$0x1] }
 0x349   : > { %5177 = vst.msk [vmem:[#allocation3 + $0x10] sm:$0xf] %vm443_vm4, %v4868_v36  ;;  %5180 = vst [vmem:[#allocation3 + $0x14] sm:$0x1] %v5179_v37  ;;  %v4871_v54 = vshrl.u32 %v14014_v41, 16  ;;  %v4874_v55 = vshll.u32 %v14014_v41, 16  ;;  %v14015_v45 = vpack.c.bf16 %v4728_v61, %v4728_v61  ;;  %v4454_v18 = vadd.f32 %v14156_v52, %v17013_v0 }
 0x34a   : > { %v14159_v58 = vadd.f32 %v14158_v27, %v14157_v51  ;;  %v657_v43 = vsel %vm16191_vm6, 0, %v656_v39  ;;  %v605_v36 = vld [vmem:[#allocation3 + $0x84] sm:$0x1] }
 0x34b   : > { %v4873_v47 = vrot.slane %v4871_v54, 7  ;;  %v4879_v49 = vshrl.u32 %v14015_v45, 16  ;;  %v4882_v8 = vshll.u32 %v14015_v45, 16  ;;  %v4615_v59 = vadd.f32 %v17023_v30, %v4454_v18  ;;  %658 = vst [vmem:[#allocation3 + $0x80] sm:$0x1] %v657_v43 }
 0x34c   : > { %v17040_v38 = vpop.f32.mrb[44].mxu0  ;;  %v4457_v26 = vadd.f32 %v14159_v58, %v17013_v0  ;;  %v606_v30 = vsel %vm16145_vm3, 0, %v605_v36 }
 0x34d   : > { %v17044_v34 = vpop.f32.mrb[45].mxu0  ;;  %v4876_v21 = vor.u32 %v4874_v55, %v4873_v47  ;;  %v4877_v15 = vrot.slane %v4873_v47, 4  ;;  %v4881_v16 = vrot.slane %v4879_v49, 7  ;;  %v4729_v37 = vmax.f32 %v4615_v59, 0.0  ;;  %607 = vst [vmem:[#allocation3 + $0x84] sm:$0x1] %v606_v30 }
 0x34e   : > { %v17046_v57 = vpop.f32.mrb[46].mxu0  ;;  %v4618_v11 = vadd.f32 %v17030_v17, %v4457_v26  ;;  %v5188_v17 = vld [vmem:[#allocation3 + $0x24] sm:$0xf] }
 0x34f   : > { %v17049_v10 = vpop.f32.mrb[47].mxu0  ;;  %v5182_v50 = vsel %vm16257_vm10, %v4876_v21, %v5181_v12  ;;  %v4884_v31 = vor.u32 %v4882_v8, %v4881_v16  ;;  %v4886_v14 = vrot.slane %v4881_v16, 4  ;;  %v14016_v40 = vpack.c.bf16 %v4729_v37, %v4729_v37 }
 0x350   : > { %v15054_v9 = vld [vmem:[#allocation3 + $0xc] sm:$0xff]   ;;  %v15056_v1 = vld [vmem:[#allocation3 + $0x14] ss:$0 sps:$4 sm:$0x11]   ;;  %5183 = vst [vmem:[#allocation3 + $0x18] sm:$0xf] %v5182_v50 }
 0x351   : > { %v17042_v48 = vld [vmem:[#allocation3 + $0xc] sm:$0xff]   ;;  %6262 = vrot.lane.b32.xlu1 %v15054_v9, %s15834_s27  ;;  %v6903_v4 = vrot.slane %v15056_v1, 1  ;;  %v15058_v23 = vld [vmem:[#allocation3 + $0x14] ss:$0 sps:$4 sm:$0x11]   ;;  %v4885_v22 = vsel %vm16264_vm11, %v4877_v15, %v4884_v31  ;;  %v5186_v25 = vsel %vm16145_vm3, %v4886_v14, %v5185_v19  ;;  %v4730_v41 = vmax.f32 %v4618_v11, 0.0 }
 0x352   : > { %v15055_v13 = vld [vmem:[#allocation3 + $0xc] sm:$0xfe]   ;;  %v5619_v44 = vshrl.u32 %v17042_v48, 16  ;;  %v5621_v63 = vshll.u32 %v17042_v48, 16  ;;  %5184 = vst.msk [vmem:[#allocation3 + $0x1c] sm:$0xf] %vm443_vm4, %v4885_v22 }
 0x353   : > { %v6902_v20 = vrot.slane %v15055_v13, 1  ;;  %v15057_v56 = vld [vmem:[#allocation3 + $0xc] sm:$0xfe]   ;;  %5187 = vst [vmem:[#allocation3 + $0x20] sm:$0x1] %v5186_v25  ;;  %v6042_v6 = vrot.slane %v15058_v23, 1  ;;  %v14017_v55 = vpack.c.bf16 %v4730_v41, %v4730_v41 }
 0x354   : > { %v6041_v32 = vrot.slane %v15057_v56, 1  ;;  %v15064_v62 = vld [vmem:[#allocation3 + $0x14] ss:$0 sps:$4 sm:$0x11]   ;;  %v5623_v61 = vrot.slane %v5621_v63, 1  ;;  %v4888_v54 = vshrl.u32 %v14016_v40, 16 }
 0x355   : > { %v6904_v28 = vsel %vm2312_vm7, %v6902_v20, %v6903_v4  ;;  %v5626_v33 = vshll.u32 %v15064_v62, 16  ;;  %v4891_v47 = vshll.u32 %v14016_v40, 16  ;;  %v4896_v12 = vshrl.u32 %v14017_v55, 16  ;;  %v5192_v15 = vld [vmem:[#allocation3 + $0x2c] sm:$0x1] }
 0x356   : > { %6950 = vrot.lane.b32.xlu0 %v6904_v28, %s15833_s28  ;;  %v6043_v60 = vsel %vm2312_vm7, %v6041_v32, %v6042_v6  ;;  %v4890_v48 = vrot.slane %v4888_v54, 7  ;;  %v4899_v49 = vshll.u32 %v14017_v55, 16  ;;  %v5624_v19 = vor.u32 %v5623_v61, %v5619_v44  ;;  %v15140_v61 = vld [vmem:[#allocation12 + $0x48] sm:$0xff]  }
 0x357   : > { %6088 = vrot.lane.b32.xlu1 %v6043_v60, %s15832_s21  ;;  %v5628_v45 = vrot.slane %v5626_v33, 1  ;;  %v4898_v29 = vrot.slane %v4896_v12, 7  ;;  %14258 = vmatprep.subr.bf16.mxu0 %v15140_v61 }
 0x358   : > { %v4893_v5 = vor.u32 %v4891_v47, %v4890_v48  ;;  %v4894_v16 = vrot.slane %v4890_v48, 4 }
 0x359   : > { %v15059_v9 = vld [vmem:[#allocation3 + $0x18] sm:$0xff]   ;;  %v4901_v14 = vor.u32 %v4899_v49, %v4898_v29  ;;  %v4903_v27 = vrot.slane %v4898_v29, 4  ;;  %v5629_v18 = vsel %vm1878_vm8, %v5624_v19, %v5628_v45 }
 0x35a   : > { %v15060_v21 = vld [vmem:[#allocation3 + $0x18] sm:$0xff]   ;;  %7127 = vrot.lane.b32.xlu0 %v15059_v9, %s15832_s21  ;;  %v15062_v13 = vld [vmem:[#allocation3 + $0x20] ss:$0 sps:$4 sm:$0x11]   ;;  %v5189_v1 = vsel %vm16257_vm10, %v4893_v5, %v5188_v17 }
 0x35b   : > { %v15061_v8 = vld [vmem:[#allocation3 + $0x18] sm:$0xfe]   ;;  %6264 = vrot.lane.b32.xlu1 %v15060_v21, %s15834_s27  ;;  %v6906_v20 = vrot.slane %v15062_v13, 1  ;;  %v15066_v63 = vld [vmem:[#allocation3 + $0x20] ss:$0 sps:$4 sm:$0x11]   ;;  %v4902_v23 = vsel %vm16264_vm11, %v4894_v16, %v4901_v14  ;;  %v5193_v22 = vsel %vm16145_vm3, %v4903_v27, %v5192_v15 }
 0x35c   : > { %v15065_v50 = vld [vmem:[#allocation3 + $0x18] sm:$0xff]   ;;  %v6905_v51 = vrot.slane %v15061_v8, 1  ;;  %5190 = vst [vmem:[#allocation3 + $0x24] sm:$0xf] %v5189_v1  ;;  %v7375_v59 = vshll.u32 %v15066_v63, 16 }
 0x35d   : > { %v17074_v52 = vpop.f32.mrb[48].mxu0  ;;  %v7368_v58 = vshrl.u32 %v15065_v50, 16  ;;  %v7370_v4 = vshll.u32 %v15065_v50, 16  ;;  %v15073_v56 = vld [vmem:[#allocation3 + $0x18] sm:$0xff]   ;;  %5191 = vst.msk [vmem:[#allocation3 + $0x28] sm:$0xf] %vm443_vm4, %v4902_v23 }
 0x35e   : > { %v17078_v31 = vpop.f32.mrb[49].mxu0  ;;  %v6907_v39 = vsel %vm2312_vm7, %v6905_v51, %v6906_v20  ;;  %v15067_v26 = vld [vmem:[#allocation3 + $0x18] sm:$0xfe]   ;;  %5194 = vst [vmem:[#allocation3 + $0x2c] sm:$0x1] %v5193_v22  ;;  %v7377_v62 = vrot.slane %v7375_v59, 1  ;;  %v5799_v23 = vpop.permute.xlu1 %5798 }
 0x35f   : > { %v17080_v44 = vpop.f32.mrb[50].mxu0  ;;  %5800 = vrot.lane.b32.xlu1 %v5629_v18, %s15833_s28  ;;  %6952 = vrot.lane.b32.xlu0 %v6907_v39, %s15833_s28  ;;  %v7372_v28 = vrot.slane %v7370_v4, 1  ;;  %v15068_v32 = vld [vmem:[#allocation3 + $0x20] ss:$0 sps:$4 sm:$0x11]   ;;  %v6044_v35 = vrot.slane %v15067_v26, 1 }
 0x360   : > { %v17087_v25 = vpop.f32.mrb[51].mxu0  ;;  %v15070_v46 = vld [vmem:[#allocation3 + $0x18] sm:$0xfe]   ;;  %v6045_v43 = vrot.slane %v15068_v32, 1  ;;  %v5633_v33 = vshll.u32 %v15073_v56, 16  ;;  %v5631_v41 = vshrl.u32 %v15073_v56, 16 }
 0x361   : > { %v7373_v6 = vor.u32 %v7372_v28, %v7368_v58  ;;  %v15071_v36 = vld [vmem:[#allocation3 + $0x20] ss:$0 sps:$4 sm:$0x11]   ;;  %v7799_v37 = vrot.slane %v15070_v46, 1  ;;  %v14160_v9 = vpop.f32.mrb[8].mxu1  ;;  %v15141_v46 = vld [vmem:[#allocation12 + $0x8] sm:$0xff]  }
 0x362   : > { %v15074_v11 = vld [vmem:[#allocation3 + $0x20] ss:$0 sps:$4 sm:$0x11]   ;;  %v6046_v60 = vsel %vm2312_vm7, %v6044_v35, %v6045_v43  ;;  %v7800_v40 = vrot.slane %v15071_v36, 1  ;;  %v5635_v54 = vrot.slane %v5633_v33, 1  ;;  %v14161_v15 = vpop.f32.mrb[9].mxu1  ;;  %14259 = vmatpush3.bf16.msra.mxu0 %v15141_v46 }
 0x363   : > { %v7378_v30 = vsel %vm1878_vm8, %v7373_v6, %v7377_v62  ;;  %6090 = vrot.lane.b32.xlu1 %v6046_v60, %s15832_s21  ;;  %v5638_v55 = vshll.u32 %v15074_v11, 16  ;;  %v14162_v5 = vadd.f32 %v14161_v15, %v14160_v9  ;;  %v14163_v16 = vpop.f32.mrb[10].mxu1 }
 0x364   : > { %7559 = vrot.lane.b32.xlu0 %v7378_v30, %s15834_s27  ;;  %v7801_v45 = vsel %vm2312_vm7, %v7799_v37, %v7800_v40  ;;  %v15053_v47 = vld [vmem:[#allocation3 + $0x24] sm:$0xfe]   ;;  %v5636_v17 = vor.u32 %v5635_v54, %v5631_v41  ;;  %v14164_v51 = vpop.f32.mrb[11].mxu1 }
 0x365   : > { %7863 = vst.msk [vmem:[#allocation4 + $0x10] sm:$0xff] %vm815_vm0, %v7801_v45  ;;  %v15072_v48 = vld [vmem:[#allocation3 + $0x24] sm:$0xff]   ;;  %v5640_v12 = vrot.slane %v5638_v55, 1  ;;  %v7802_v49 = vrot.slane %v15053_v47, 1  ;;  %v17099_v21 = vpop.f32.mrb[52].mxu0  ;;  %v4462_v63 = vadd.f32 %v14162_v5, %v17013_v0  ;;  %v14165_v18 = vadd.f32 %v14164_v51, %v14163_v16  ;;  %v15152_v47 = vld [vmem:[#allocation12 + $0x50] sm:$0xff]  }
 0x366   : > { %v15080_v8 = vld [vmem:[#allocation3 + $0x24] sm:$0xff]   ;;  %v17101_v19 = vpop.f32.mrb[53].mxu0  ;;  %v15077_v1 = vld [vmem:[#allocation3 + $0x2c] ss:$0 sps:$4 sm:$0x11]   ;;  %14260 = vmatprep.subr.bf16.mxu0 %v15152_v47 }
 0x367   : > { %v5641_v29 = vsel %vm1878_vm8, %v5636_v17, %v5640_v12  ;;  %v15076_v13 = vld [vmem:[#allocation3 + $0x24] sm:$0xfe]   ;;  %v17105_v50 = vpop.f32.mrb[54].mxu0  ;;  %v7380_v27 = vshrl.u32 %v15080_v8, 16  ;;  %v6909_v4 = vrot.slane %v15077_v1, 1  ;;  %v4623_v22 = vadd.f32 %v17021_v42, %v4462_v63  ;;  %v6087_v17 = vpop.permute.xlu1 %6086  ;;  %v15163_v1 = vld [vmem:[#allocation12 + $0x58] sm:$0xff]  }
 0x368   : > { %7129 = vrot.lane.b32.xlu0 %v15072_v48, %s15832_s21  ;;  %5802 = vrot.lane.b32.xlu1 %v5641_v29, %s15833_s28  ;;  %v15078_v14 = vld [vmem:[#allocation3 + $0x24] sm:$0xff]   ;;  %v17108_v20 = vpop.f32.mrb[55].mxu0  ;;  %v6908_v58 = vrot.slane %v15076_v13, 1  ;;  %v15079_v56 = vld [vmem:[#allocation3 + $0x2c] ss:$0 sps:$4 sm:$0x11]   ;;  %v4465_v39 = vadd.f32 %v14165_v18, %v17013_v0 }
 0x369   : > { %v15081_v26 = vld [vmem:[#allocation3 + $0x2c] ss:$0 sps:$4 sm:$0x11]   ;;  %v7382_v28 = vshll.u32 %v15080_v8, 16  ;;  %v15085_v32 = vld [vmem:[#allocation3 + $0x24] sm:$0xff]   ;;  %v7803_v35 = vrot.slane %v15079_v56, 1 }
 0x36a   : > { %v6910_v62 = vsel %vm2312_vm7, %v6908_v58, %v6909_v4  ;;  %v4731_v6 = vmax.f32 %v4623_v22, 0.0  ;;  %v4626_v43 = vadd.f32 %v17027_v2, %v4465_v39  ;;  %v7387_v36 = vshll.u32 %v15081_v26, 16  ;;  %v15151_v37 = vld [vmem:[#allocation3] sm:$0xff]   ;;  %v15083_v30 = vld [vmem:[#allocation3 + $0x2c] ss:$0 sps:$4 sm:$0x11]  }
 0x36b   : > { %v7384_v42 = vrot.slane %v7382_v28, 1  ;;  %v7804_v11 = vsel %vm2312_vm7, %v7802_v49, %v7803_v35  ;;  %v15082_v33 = vld [vmem:[#allocation3 + $0x24] sm:$0xfe]   ;;  %v5643_v60 = vshrl.u32 %v15085_v32, 16  ;;  %5414 = vst.msk [vmem:[#allocation4] sm:$0xff] %vm815_vm0, %v15151_v37  ;;  %v6048_v55 = vrot.slane %v15083_v30, 1 }
 0x36c   : > { %v7881_v59 = vld [vmem:[#allocation4 + $0x10] sm:$0xff]  ;;  %6266 = vrot.lane.b32.xlu1 %v15078_v14, %s15834_s27  ;;  %6954 = vrot.lane.b32.xlu0 %v6910_v62, %s15833_s28  ;;  %v14018_v40 = vpack.c.bf16 %v4731_v6, %v4731_v6  ;;  %v4732_v41 = vmax.f32 %v4626_v43, 0.0  ;;  %7864 = vst.msk [vmem:[#allocation4 + $0x28] sm:$0xff] %vm815_vm0, %v7804_v11  ;;  %v7389_v54 = vrot.slane %v7387_v36, 1  ;;  %v6047_v2 = vrot.slane %v15082_v33, 1  ;;  %v14166_v58 = vpop.f32.mrb[12].mxu1 }
 0x36d   : > { %14592 = vmatprep.mubr.msk.bf16.mxu1 %vm815_vm0, %v7881_v59  ;;  %v7385_v61 = vor.u32 %v7384_v42, %v7380_v27  ;;  %v5645_v45 = vshll.u32 %v15085_v32, 16  ;;  %5846 = vst.msk [vmem:[#allocation4] sm:$0xff] %vm2119_vm12, %v5799_v23  ;;  %v15086_v15 = vld [vmem:[#allocation3 + $0x2c] ss:$0 sps:$4 sm:$0x11]   ;;  %v14167_v22 = vpop.f32.mrb[13].mxu1 }
 0x36e   : > { %v4905_v9 = vshrl.u32 %v14018_v40, 16  ;;  %v4908_v48 = vshll.u32 %v14018_v40, 16  ;;  %v14019_v12 = vpack.c.bf16 %v4732_v41, %v4732_v41  ;;  %v15153_v8 = vld [vmem:[#allocation12 + $0x10] sm:$0xff]   ;;  %6134 = vst.msk [vmem:[#allocation4] sm:$0xff] %vm2409_vm13, %v6087_v17  ;;  %v6049_v16 = vsel %vm2312_vm7, %v6047_v2, %v6048_v55  ;;  %v5199_v23 = vld [vmem:[#allocation3 + $0x38] sm:$0x1] }
 0x36f   : > { %v7390_v49 = vsel %vm1878_vm8, %v7385_v61, %v7389_v54  ;;  %v5195_v5 = vld [vmem:[#allocation3 + $0x30] sm:$0xf]  ;;  %v5647_v29 = vrot.slane %v5645_v45, 1  ;;  %v659_v13 = vld [vmem:[#allocation3 + $0x8c] sm:$0x1]  ;;  %v5650_v4 = vshll.u32 %v15086_v15, 16  ;;  %14261 = vmatpush3.bf16.msra.mxu0 %v15153_v8  ;;  %v14168_v6 = vadd.f32 %v14167_v22, %v14166_v58 }
 0x370   : > { %7561 = vrot.lane.b32.xlu0 %v7390_v49, %s15834_s27  ;;  %v608_v51 = vld [vmem:[#allocation3 + $0x90] sm:$0x1]  ;;  %v4907_v27 = vrot.slane %v4905_v9, 7  ;;  %v4913_v63 = vshrl.u32 %v14019_v12, 16  ;;  %v4916_v18 = vshll.u32 %v14019_v12, 16  ;;  %6092 = vrot.lane.b32.xlu1 %v6049_v16, %s15832_s21  ;;  %v660_v59 = vsel %vm16191_vm6, 0, %v659_v13 }
 0x371   : > { %v5648_v39 = vor.u32 %v5647_v29, %v5643_v60  ;;  %v609_v26 = vsel %vm16145_vm3, 0, %v608_v51  ;;  %v662_v28 = vld [vmem:[#allocation3 + $0x98] sm:$0x1]  ;;  %14262 = vmatprep.subr.bf16.mxu0 %v15163_v1  ;;  %v14169_v43 = vpop.f32.mrb[14].mxu1  ;;  %661 = vst [vmem:[#allocation3 + $0x8c] sm:$0x1] %v660_v59  ;;  %v4470_v2 = vadd.f32 %v14168_v6, %v17013_v0 }
 0x372   : > { %v4910_v32 = vor.u32 %v4908_v48, %v4907_v27  ;;  %v4911_v62 = vrot.slane %v4907_v27, 4  ;;  %v4915_v46 = vrot.slane %v4913_v63, 7  ;;  %610 = vst [vmem:[#allocation3 + $0x90] sm:$0x1] %v609_v26  ;;  %v15164_v42 = vld [vmem:[#allocation12 + $0x18] sm:$0xff]   ;;  %v15169_v36 = vld [vmem:[#allocation3 + $0xc] sm:$0xff]  }
 0x373   : > { %v14170_v11 = vpop.f32.mrb[15].mxu1  ;;  %v7884_v33 = vld [vmem:[#allocation4 + $0x28] sm:$0xff]  ;;  %v5652_v30 = vrot.slane %v5650_v4, 1  ;;  %v663_v60 = vsel %vm16191_vm6, 0, %v662_v28  ;;  %14263 = vmatpush3.bf16.msra.mxu0 %v15164_v42  ;;  %v611_v45 = vld [vmem:[#allocation3 + $0x9c] sm:$0x1]  ;;  %v4631_v16 = vadd.f32 %v17044_v34, %v4470_v2 }
 0x374   : > { %v15173_v40 = vld [vmem:[#allocation12 + $0x60] sm:$0xff]   ;;  %v5196_v41 = vsel %vm16257_vm10, %v4910_v32, %v5195_v5  ;;  %v4918_v61 = vor.u32 %v4916_v18, %v4915_v46  ;;  %v4920_v54 = vrot.slane %v4915_v46, 4  ;;  %14593 = vmatmul.mubr.msk.bf16.vlgmr.msra.gmra.mrb[60].mxu1 %vm815_vm0, %v7884_v33  ;;  %664 = vst [vmem:[#allocation3 + $0x98] sm:$0x1] %v663_v60  ;;  %v14171_v47 = vadd.f32 %v14170_v11, %v14169_v43  ;;  %v665_v12 = vld [vmem:[#allocation3 + $0xa4] sm:$0x1] }
 0x375   : > { %v15168_v55 = vld [vmem:[#allocation3 + $0x14] ss:$0 sps:$4 sm:$0x11]   ;;  %5197 = vst [vmem:[#allocation3 + $0x30] sm:$0xf] %v5196_v41  ;;  %v5653_v17 = vsel %vm1878_vm8, %v5648_v39, %v5652_v30  ;;  %v6503_v9 = vshrl.u32 %v15169_v36, 16  ;;  %14264 = vmatprep.subr.bf16.mxu0 %v15173_v40 }
 0x376   : > { %v17126_v14 = vpop.f32.mrb[56].mxu0  ;;  %v6505_v48 = vshll.u32 %v15169_v36, 16  ;;  %v15174_v49 = vld [vmem:[#allocation12 + $0x20] sm:$0xff]   ;;  %v15197_v15 = vld [vmem:[#allocation3 + $0xc] sm:$0xff]   ;;  %v4919_v8 = vsel %vm16264_vm11, %v4911_v62, %v4918_v61  ;;  %v5200_v5 = vsel %vm16145_vm3, %v4920_v54, %v5199_v23  ;;  %5804 = vrot.lane.b32.xlu1 %v5653_v17, %s15833_s28  ;;  %v6510_v29 = vshll.u32 %v15168_v55, 16  ;;  %v14172_v34 = vpop.f32.mrb[16].mxu1 }
 0x377   : > { %v17129_v56 = vpop.f32.mrb[57].mxu0  ;;  %v614_v13 = vld [vmem:[#allocation3 + $0xa8] sm:$0x1]  ;;  %5198 = vst.msk [vmem:[#allocation3 + $0x34] sm:$0xf] %vm443_vm4, %v4919_v8  ;;  %v4473_v51 = vadd.f32 %v14171_v47, %v17013_v0  ;;  %v612_v27 = vsel %vm16145_vm3, 0, %v611_v45  ;;  %14265 = vmatpush3.bf16.msra.mxu0 %v15174_v49 }
 0x378   : > { %v17135_v35 = vpop.f32.mrb[58].mxu0  ;;  %5201 = vst [vmem:[#allocation3 + $0x38] sm:$0x1] %v5200_v5  ;;  %v6507_v1 = vrot.slane %v6505_v48, 1  ;;  %v666_v63 = vsel %vm16191_vm6, 0, %v665_v12  ;;  %5415 = vst.msk [vmem:[#allocation4 + $0x18] sm:$0xff] %vm815_vm0, %v15197_v15 }
 0x379   : > { %v17137_v37 = vpop.f32.mrb[59].mxu0  ;;  %v4733_v18 = vmax.f32 %v4631_v16, 0.0  ;;  %613 = vst [vmem:[#allocation3 + $0x9c] sm:$0x1] %v612_v27  ;;  %667 = vst [vmem:[#allocation3 + $0xa4] sm:$0x1] %v666_v63  ;;  %v4634_v23 = vadd.f32 %v17049_v10, %v4473_v51 }
 0x37a   : > { %v615_v58 = vsel %vm16145_vm3, 0, %v614_v13  ;;  %v668_v4 = vld [vmem:[#allocation3 + $0xb0] sm:$0x1]  ;;  %v14173_v22 = vpop.f32.mrb[17].mxu1  ;;  %v6512_v39 = vrot.slane %v6510_v29, 1  ;;  %v6508_v59 = vor.u32 %v6507_v1, %v6503_v9 }
 0x37b   : > { %616 = vst [vmem:[#allocation3 + $0xa8] sm:$0x1] %v615_v58  ;;  %v669_v26 = vsel %vm16191_vm6, 0, %v668_v4  ;;  %v14020_v28 = vpack.c.bf16 %v4733_v18, %v4733_v18  ;;  %v14174_v32 = vadd.f32 %v14173_v22, %v14172_v34  ;;  %v14175_v62 = vpop.f32.mrb[18].mxu1  ;;  %v4734_v46 = vmax.f32 %v4634_v23, 0.0 }
 0x37c   : > { %670 = vst [vmem:[#allocation3 + $0xb0] sm:$0x1] %v669_v26  ;;  %v14176_v6 = vpop.f32.mrb[19].mxu1  ;;  %v6513_v43 = vsel %vm1878_vm8, %v6508_v59, %v6512_v39  ;;  %v5202_v33 = vld [vmem:[#allocation3 + $0x3c] sm:$0xf]  ;;  %v15184_v59 = vld [vmem:[#allocation12 + $0x68] sm:$0xff]  }
 0x37d   : > { %v4922_v42 = vshrl.u32 %v14020_v28, 16  ;;  %v4925_v36 = vshll.u32 %v14020_v28, 16  ;;  %v4478_v11 = vadd.f32 %v14174_v32, %v17013_v0  ;;  %v14177_v10 = vadd.f32 %v14176_v6, %v14175_v62  ;;  %6710 = vst.msk [vmem:[#allocation4 + $0x8] sm:$0xff] %vm815_vm0, %v6513_v43  ;;  %v5206_v49 = vld [vmem:[#allocation3 + $0x44] sm:$0x1]  ;;  %14266 = vmatprep.subr.bf16.mxu0 %v15184_v59 }
 0x37e   : > { %v14021_v30 = vpack.c.bf16 %v4734_v46, %v4734_v46  ;;  %v15084_v54 = vld [vmem:[#allocation3 + $0x30] sm:$0xff]  }
 0x37f   : > { %v17167_v60 = vpop.f32.mrb[60].mxu0  ;;  %v4924_v40 = vrot.slane %v4922_v42, 7  ;;  %v4639_v41 = vadd.f32 %v17040_v38, %v4478_v11  ;;  %v4481_v61 = vadd.f32 %v14177_v10, %v17013_v0  ;;  %v15089_v2 = vld [vmem:[#allocation3 + $0x30] sm:$0xff]   ;;  %7131 = vrot.lane.b32.xlu0 %v15084_v54, %s15832_s21  ;;  %v15088_v18 = vld [vmem:[#allocation3 + $0x38] ss:$0 sps:$4 sm:$0x11]  }
 0x380   : > { %v17171_v55 = vpop.f32.mrb[61].mxu0  ;;  %v4930_v45 = vshrl.u32 %v14021_v30, 16  ;;  %v4933_v47 = vshll.u32 %v14021_v30, 16  ;;  %v17173_v17 = vld [vmem:[#allocation3 + $0x30] sm:$0xff]   ;;  %6268 = vrot.lane.b32.xlu1 %v15089_v2, %s15834_s27  ;;  %v6912_v46 = vrot.slane %v15088_v18, 1 }
 0x381   : > { %v4927_v9 = vor.u32 %v4925_v36, %v4924_v40  ;;  %v4928_v48 = vrot.slane %v4924_v40, 4  ;;  %v17175_v12 = vpop.f32.mrb[62].mxu0  ;;  %v4735_v15 = vmax.f32 %v4639_v41, 0.0  ;;  %v4642_v8 = vadd.f32 %v17046_v57, %v4481_v61  ;;  %v15087_v29 = vld [vmem:[#allocation3 + $0x30] sm:$0xfe]  }
 0x382   : > { %v4932_v38 = vrot.slane %v4930_v45, 7  ;;  %v17180_v5 = vpop.f32.mrb[63].mxu0  ;;  %v7392_v13 = vshrl.u32 %v17173_v17, 16  ;;  %v7394_v57 = vshll.u32 %v17173_v17, 16  ;;  %v17186_v34 = vld [vmem:[#allocation3 + $0x30] sm:$0xff]   ;;  %v6911_v39 = vrot.slane %v15087_v29, 1 }
 0x383   : > { %v5203_v51 = vsel %vm16257_vm10, %v4927_v9, %v5202_v33  ;;  %v14022_v1 = vpack.c.bf16 %v4735_v15, %v4735_v15  ;;  %v4736_v27 = vmax.f32 %v4642_v8, 0.0  ;;  %v5209_v42 = vld [vmem:[#allocation3 + $0x48] sm:$0xf]  ;;  %v15091_v10 = vld [vmem:[#allocation3 + $0x38] ss:$0 sps:$4 sm:$0x11]  }
 0x384   : > { %v14178_v16 = vpop.f32.mrb[20].mxu1  ;;  %5204 = vst [vmem:[#allocation3 + $0x3c] sm:$0xf] %v5203_v51  ;;  %v4935_v58 = vor.u32 %v4933_v47, %v4932_v38  ;;  %v4937_v4 = vrot.slane %v4932_v38, 4  ;;  %v15185_v33 = vld [vmem:[#allocation12 + $0x28] sm:$0xff]   ;;  %v6913_v61 = vsel %vm2312_vm7, %v6911_v39, %v6912_v46  ;;  %v7396_v47 = vrot.slane %v7394_v57, 1 }
 0x385   : > { %v14179_v63 = vpop.f32.mrb[21].mxu1  ;;  %v4939_v26 = vshrl.u32 %v14022_v1, 16  ;;  %v4942_v28 = vshll.u32 %v14022_v1, 16  ;;  %v14023_v32 = vpack.c.bf16 %v4736_v27, %v4736_v27  ;;  %v5213_v54 = vld [vmem:[#allocation3 + $0x50] sm:$0x1]  ;;  %6956 = vrot.lane.b32.xlu0 %v6913_v61, %s15833_s28  ;;  %v7399_v17 = vshll.u32 %v15091_v10, 16  ;;  %14267 = vmatpush3.bf16.msra.mxu0 %v15185_v33 }
 0x386   : > { %v14180_v23 = vadd.f32 %v14179_v63, %v14178_v16  ;;  %v14181_v22 = vpop.f32.mrb[22].mxu1  ;;  %v4936_v6 = vsel %vm16264_vm11, %v4928_v48, %v4935_v58  ;;  %v5207_v43 = vsel %vm16145_vm3, %v4937_v4, %v5206_v49  ;;  %v15092_v9 = vld [vmem:[#allocation3 + $0x30] sm:$0xfe]   ;;  %v15093_v8 = vld [vmem:[#allocation3 + $0x38] ss:$0 sps:$4 sm:$0x11]   ;;  %v7397_v51 = vor.u32 %v7396_v47, %v7392_v13 }
 0x387   : > { %v14182_v62 = vpop.f32.mrb[23].mxu1  ;;  %5205 = vst.msk [vmem:[#allocation3 + $0x40] sm:$0xf] %vm443_vm4, %v4936_v6  ;;  %5208 = vst [vmem:[#allocation3 + $0x44] sm:$0x1] %v5207_v43  ;;  %v4941_v30 = vrot.slane %v4939_v26, 7 }
 0x388   : > { %v4486_v36 = vadd.f32 %v14180_v23, %v17013_v0  ;;  %v14183_v11 = vadd.f32 %v14182_v62, %v14181_v22  ;;  %v4947_v40 = vshrl.u32 %v14023_v32, 16  ;;  %v4950_v41 = vshll.u32 %v14023_v32, 16  ;;  %v15094_v18 = vld [vmem:[#allocation3 + $0x30] sm:$0xfe]  }
 0x389   : > { %v4944_v48 = vor.u32 %v4942_v28, %v4941_v30  ;;  %v4945_v49 = vrot.slane %v4941_v30, 4  ;;  %v5655_v38 = vshrl.u32 %v17186_v34, 16  ;;  %v7401_v1 = vrot.slane %v7399_v17, 1  ;;  %v15095_v22 = vld [vmem:[#allocation3 + $0x38] ss:$0 sps:$4 sm:$0x11]  }
 0x38a   : > { %v4647_v2 = vadd.f32 %v17078_v31, %v4486_v36  ;;  %v4489_v45 = vadd.f32 %v14183_v11, %v17013_v0  ;;  %v4949_v15 = vrot.slane %v4947_v40, 7  ;;  %v6050_v63 = vrot.slane %v15092_v9, 1  ;;  %v5216_v43 = vld [vmem:[#allocation3 + $0x54] sm:$0xf]  ;;  %v5220_v40 = vld [vmem:[#allocation3 + $0x5c] sm:$0x1] }
 0x38b   : > { %v5210_v0 = vsel %vm16257_vm10, %v4944_v48, %v5209_v42  ;;  %v7402_v4 = vsel %vm1878_vm8, %v7397_v51, %v7401_v1  ;;  %v6051_v23 = vrot.slane %v15093_v8, 1  ;;  %v7805_v59 = vrot.slane %v15094_v18, 1  ;;  %v15098_v30 = vld [vmem:[#allocation3 + $0x38] ss:$0 sps:$4 sm:$0x11]  }
 0x38c   : > { %v4737_v16 = vmax.f32 %v4647_v2, 0.0  ;;  %v4650_v29 = vadd.f32 %v17087_v25, %v4489_v45  ;;  %v4952_v31 = vor.u32 %v4950_v41, %v4949_v15  ;;  %v4954_v27 = vrot.slane %v4949_v15, 4  ;;  %5211 = vst [vmem:[#allocation3 + $0x48] sm:$0xf] %v5210_v0  ;;  %v14184_v39 = vpop.f32.mrb[24].mxu1  ;;  %7563 = vrot.lane.b32.xlu0 %v7402_v4, %s15834_s27 }
 0x38d   : > { %v5657_v26 = vshll.u32 %v17186_v34, 16  ;;  %v6052_v46 = vsel %vm2312_vm7, %v6050_v63, %v6051_v23  ;;  %v7806_v42 = vrot.slane %v15095_v22, 1  ;;  %v5662_v45 = vshll.u32 %v15098_v30, 16  ;;  %v14185_v17 = vpop.f32.mrb[25].mxu1  ;;  %v17217_v1 = vld [vmem:[#allocation10] ss:$0 sm:$0xff] }
 0x38e   : > { %v14024_v57 = vpack.c.bf16 %v4737_v16, %v4737_v16  ;;  %v4738_v58 = vmax.f32 %v4650_v29, 0.0  ;;  %v4953_v25 = vsel %vm16264_vm11, %v4945_v49, %v4952_v31  ;;  %v5214_v13 = vsel %vm16145_vm3, %v4954_v27, %v5213_v54  ;;  %v15096_v6 = vld [vmem:[#allocation3 + $0x3c] sm:$0xff]   ;;  %6094 = vrot.lane.b32.xlu1 %v6052_v46, %s15832_s21  ;;  %v15100_v9 = vld [vmem:[#allocation3 + $0x44] ss:$0 sps:$4 sm:$0x11]   ;;  %v14187_v49 = vpop.f32.mrb[26].mxu1 }
 0x38f   : > { %5212 = vst.msk [vmem:[#allocation3 + $0x4c] sm:$0xf] %vm443_vm4, %v4953_v25  ;;  %5215 = vst [vmem:[#allocation3 + $0x50] sm:$0x1] %v5214_v13  ;;  %v5659_v36 = vrot.slane %v5657_v26, 1  ;;  %v7807_v34 = vsel %vm2312_vm7, %v7805_v59, %v7806_v42  ;;  %v14186_v48 = vadd.f32 %v14185_v17, %v14184_v39  ;;  %v5664_v29 = vrot.slane %v5662_v45, 1 }
 0x390   : > { %v4956_v28 = vshrl.u32 %v14024_v57, 16  ;;  %v4959_v32 = vshll.u32 %v14024_v57, 16  ;;  %v14025_v62 = vpack.c.bf16 %v4738_v58, %v4738_v58  ;;  %7133 = vrot.lane.b32.xlu0 %v15096_v6, %s15832_s21  ;;  %7865 = vst.msk [vmem:[#allocation4 + $0x40] sm:$0xff] %vm815_vm0, %v7807_v34  ;;  %v15099_v47 = vld [vmem:[#allocation3 + $0x3c] sm:$0xfe]   ;;  %v14188_v58 = vpop.f32.mrb[27].mxu1 }
 0x391   : > { %v5660_v41 = vor.u32 %v5659_v36, %v5655_v38  ;;  %v6914_v51 = vrot.slane %v15099_v47, 1  ;;  %v6915_v38 = vrot.slane %v15100_v9, 1  ;;  %v4494_v0 = vadd.f32 %v17217_v1, %v14186_v48  ;;  %v15102_v18 = vld [vmem:[#allocation3 + $0x3c] sm:$0xfe]  }
 0x392   : > { %v4958_v11 = vrot.slane %v4956_v28, 7  ;;  %v4964_v10 = vshrl.u32 %v14025_v62, 16  ;;  %v4967_v33 = vshll.u32 %v14025_v62, 16  ;;  %v15103_v57 = vld [vmem:[#allocation3 + $0x44] ss:$0 sps:$4 sm:$0x11]   ;;  %v14189_v39 = vadd.f32 %v14188_v58, %v14187_v49 }
 0x393   : > { %v5665_v63 = vsel %vm1878_vm8, %v5660_v41, %v5664_v29  ;;  %v6916_v4 = vsel %vm2312_vm7, %v6914_v51, %v6915_v38  ;;  %v15101_v23 = vld [vmem:[#allocation3 + $0x3c] sm:$0xff]   ;;  %v4655_v22 = vadd.f32 %v17074_v52, %v4494_v0  ;;  %v7808_v25 = vrot.slane %v15102_v18, 1  ;;  %v15105_v26 = vld [vmem:[#allocation3 + $0x44] ss:$0 sps:$4 sm:$0x11]  }
 0x394   : > { %v4961_v61 = vor.u32 %v4959_v32, %v4958_v11  ;;  %v4962_v54 = vrot.slane %v4958_v11, 4  ;;  %v4966_v2 = vrot.slane %v4964_v10, 7  ;;  %5806 = vrot.lane.b32.xlu1 %v5665_v63, %s15833_s28  ;;  %6958 = vrot.lane.b32.xlu0 %v6916_v4, %s15833_s28  ;;  %v7809_v13 = vrot.slane %v15103_v57, 1  ;;  %v15104_v59 = vld [vmem:[#allocation3 + $0x3c] sm:$0xff]   ;;  %v5227_v57 = vld [vmem:[#allocation3 + $0x68] sm:$0x1] }
 0x395   : > { %v4739_v32 = vmax.f32 %v4655_v22, 0.0  ;;  %v4497_v62 = vadd.f32 %v17217_v1, %v14189_v39  ;;  %v7406_v6 = vshll.u32 %v15104_v59, 16  ;;  %v15106_v36 = vld [vmem:[#allocation3 + $0x3c] sm:$0xfe]  }
 0x396   : > { %v5217_v15 = vsel %vm16257_vm10, %v4961_v61, %v5216_v43  ;;  %v4969_v8 = vor.u32 %v4967_v33, %v4966_v2  ;;  %v4971_v16 = vrot.slane %v4966_v2, 4  ;;  %v7810_v46 = vsel %vm2312_vm7, %v7808_v25, %v7809_v13  ;;  %v15107_v11 = vld [vmem:[#allocation3 + $0x44] ss:$0 sps:$4 sm:$0x11]   ;;  %v15109_v10 = vld [vmem:[#allocation3 + $0x3c] sm:$0xff]   ;;  %v15108_v48 = vld [vmem:[#allocation3 + $0x48] sm:$0xff]  }
 0x397   : > { %5218 = vst [vmem:[#allocation3 + $0x54] sm:$0xf] %v5217_v15  ;;  %v7887_v28 = vld [vmem:[#allocation4 + $0x40] sm:$0xff]  ;;  %v7411_v43 = vshll.u32 %v15105_v26, 16  ;;  %v14026_v52 = vpack.c.bf16 %v4739_v32, %v4739_v32  ;;  %7866 = vst.msk [vmem:[#allocation4 + $0x58] sm:$0xff] %vm815_vm0, %v7810_v46  ;;  %v4658_v42 = vadd.f32 %v17080_v44, %v4497_v62  ;;  %v7404_v33 = vshrl.u32 %v15104_v59, 16 }
 0x398   : > { %v4970_v31 = vsel %vm16264_vm11, %v4962_v54, %v4969_v8  ;;  %v5221_v27 = vsel %vm16145_vm3, %v4971_v16, %v5220_v40  ;;  %14596 = vmatprep.mubr.msk.bf16.mxu1 %vm815_vm0, %v7887_v28  ;;  %6270 = vrot.lane.b32.xlu1 %v15101_v23, %s15834_s27  ;;  %v7408_v30 = vrot.slane %v7406_v6, 1  ;;  %v6053_v61 = vrot.slane %v15106_v36, 1  ;;  %v5223_v2 = vld [vmem:[#allocation3 + $0x60] sm:$0xf]  ;;  %v14190_v8 = vpop.f32.mrb[28].mxu1 }
 0x399   : > { %5219 = vst.msk [vmem:[#allocation3 + $0x58] sm:$0xf] %vm443_vm4, %v4970_v31  ;;  %5222 = vst [vmem:[#allocation3 + $0x5c] sm:$0x1] %v5221_v27  ;;  %v4973_v40 = vshrl.u32 %v14026_v52, 16  ;;  %v4740_v34 = vmax.f32 %v4658_v42, 0.0 }
 0x39a   : > { %v7413_v41 = vrot.slane %v7411_v43, 1  ;;  %v4976_v54 = vshll.u32 %v14026_v52, 16  ;;  %v7409_v45 = vor.u32 %v7408_v30, %v7404_v33  ;;  %v6054_v47 = vrot.slane %v15107_v11, 1  ;;  %v15110_v49 = vld [vmem:[#allocation3 + $0x44] ss:$0 sps:$4 sm:$0x11]  }
 0x39b   : > { %v4975_v17 = vrot.slane %v4973_v40, 7  ;;  %v14027_v9 = vpack.c.bf16 %v4740_v34, %v4740_v34  ;;  %v5669_v15 = vshll.u32 %v15109_v10, 16  ;;  %v5667_v29 = vshrl.u32 %v15109_v10, 16  ;;  %v14191_v51 = vpop.f32.mrb[29].mxu1  ;;  %v15111_v39 = vld [vmem:[#allocation3 + $0x48] sm:$0xfe]  }
 0x39c   : > { %v7414_v44 = vsel %vm1878_vm8, %v7409_v45, %v7413_v41  ;;  %v6055_v16 = vsel %vm2312_vm7, %v6053_v61, %v6054_v47  ;;  %v14193_v63 = vpop.f32.mrb[30].mxu1  ;;  %v5674_v4 = vshll.u32 %v15110_v49, 16  ;;  %v14192_v23 = vadd.f32 %v14191_v51, %v14190_v8  ;;  %v15112_v26 = vld [vmem:[#allocation3 + $0x50] ss:$0 sps:$4 sm:$0x11]   ;;  %v15114_v10 = vld [vmem:[#allocation3 + $0x48] sm:$0xff]  }
 0x39d   : > { %v4978_v38 = vor.u32 %v4976_v54, %v4975_v17  ;;  %v4979_v0 = vrot.slane %v4975_v17, 4  ;;  %v4981_v31 = vshrl.u32 %v14027_v9, 16  ;;  %v4984_v27 = vshll.u32 %v14027_v9, 16  ;;  %7565 = vrot.lane.b32.xlu0 %v7414_v44, %s15834_s27  ;;  %6096 = vrot.lane.b32.xlu1 %v6055_v16, %s15832_s21  ;;  %v14194_v22 = vpop.f32.mrb[31].mxu1  ;;  %v15116_v61 = vld [vmem:[#allocation3 + $0x48] sm:$0xfe]  }
 0x39e   : > { %v7890_v18 = vld [vmem:[#allocation4 + $0x58] sm:$0xff]  ;;  %v5671_v58 = vrot.slane %v5669_v15, 1  ;;  %v14195_v59 = vadd.f32 %v14194_v22, %v14193_v63  ;;  %v5676_v32 = vrot.slane %v5674_v4, 1  ;;  %v4502_v62 = vadd.f32 %v17217_v1, %v14192_v23  ;;  %v15113_v47 = vld [vmem:[#allocation3 + $0x48] sm:$0xff]  }
 0x39f   : > { %v5224_v25 = vsel %vm16257_vm10, %v4978_v38, %v5223_v2  ;;  %14597 = vmatmul.mubr.msk.bf16.gmra.mrb[64].mxu1 %vm815_vm0, %v7890_v18  ;;  %v4983_v13 = vrot.slane %v4981_v31, 7  ;;  %v6917_v46 = vrot.slane %v15111_v39, 1  ;;  %v6918_v42 = vrot.slane %v15112_v26, 1  ;;  %v15115_v33 = vld [vmem:[#allocation3 + $0x50] ss:$0 sps:$4 sm:$0x11]  }
 0x3a0   : > { %5225 = vst [vmem:[#allocation3 + $0x60] sm:$0xf] %v5224_v25  ;;  %v5672_v28 = vor.u32 %v5671_v58, %v5667_v29  ;;  %v4505_v52 = vadd.f32 %v17217_v1, %v14195_v59  ;;  %v4663_v11 = vadd.f32 %v17101_v19, %v4502_v62  ;;  %v7418_v19 = vshll.u32 %v15114_v10, 16  ;;  %v15117_v9 = vld [vmem:[#allocation3 + $0x50] ss:$0 sps:$4 sm:$0x11]  }
 0x3a1   : > { %v4986_v6 = vor.u32 %v4984_v27, %v4983_v13  ;;  %v4988_v43 = vrot.slane %v4983_v13, 4  ;;  %7135 = vrot.lane.b32.xlu0 %v15108_v48, %s15832_s21  ;;  %v6919_v41 = vsel %vm2312_vm7, %v6917_v46, %v6918_v42  ;;  %v7423_v2 = vshll.u32 %v15115_v33, 16  ;;  %v15118_v44 = vld [vmem:[#allocation3 + $0x48] sm:$0xfe]   ;;  %v5234_v58 = vld [vmem:[#allocation3 + $0x74] sm:$0x1] }
 0x3a2   : > { %v5677_v36 = vsel %vm1878_vm8, %v5672_v28, %v5676_v32  ;;  %v4666_v34 = vadd.f32 %v17108_v20, %v4505_v52  ;;  %v4741_v54 = vmax.f32 %v4663_v11, 0.0  ;;  %v7416_v17 = vshrl.u32 %v15114_v10, 16  ;;  %v15119_v16 = vld [vmem:[#allocation3 + $0x50] ss:$0 sps:$4 sm:$0x11]   ;;  %v15121_v18 = vld [vmem:[#allocation3 + $0x48] sm:$0xff]  }
 0x3a3   : > { %v4987_v30 = vsel %vm16264_vm11, %v4979_v0, %v4986_v6  ;;  %v5228_v40 = vsel %vm16145_vm3, %v4988_v43, %v5227_v57  ;;  %5808 = vrot.lane.b32.xlu1 %v5677_v36, %s15833_s28  ;;  %v7420_v49 = vrot.slane %v7418_v19, 1  ;;  %v6056_v15 = vrot.slane %v15116_v61, 1  ;;  %v5230_v31 = vld [vmem:[#allocation3 + $0x6c] sm:$0xf]  ;;  %v15120_v13 = vld [vmem:[#allocation3 + $0x54] sm:$0xff]   ;;  %v14196_v36 = vpop.f32.mrb[32].mxu1 }
 0x3a4   : > { %5226 = vst.msk [vmem:[#allocation3 + $0x64] sm:$0xf] %vm443_vm4, %v4987_v30  ;;  %5229 = vst [vmem:[#allocation3 + $0x68] sm:$0x1] %v5228_v40  ;;  %v4742_v45 = vmax.f32 %v4666_v34, 0.0  ;;  %v14028_v48 = vpack.c.bf16 %v4741_v54, %v4741_v54  ;;  %v6057_v20 = vrot.slane %v15117_v9, 1 }
 0x3a5   : > { %6960 = vrot.lane.b32.xlu0 %v6919_v41, %s15833_s28  ;;  %v7421_v51 = vor.u32 %v7420_v49, %v7416_v17  ;;  %v7425_v38 = vrot.slane %v7423_v2, 1  ;;  %v7811_v63 = vrot.slane %v15118_v44, 1  ;;  %v7812_v22 = vrot.slane %v15119_v16, 1  ;;  %v15122_v59 = vld [vmem:[#allocation3 + $0x50] ss:$0 sps:$4 sm:$0x11]  }
 0x3a6   : > { %v14029_v8 = vpack.c.bf16 %v4742_v45, %v4742_v45  ;;  %v4990_v29 = vshrl.u32 %v14028_v48, 16  ;;  %v4993_v0 = vshll.u32 %v14028_v48, 16  ;;  %v6058_v23 = vsel %vm2312_vm7, %v6056_v15, %v6057_v20  ;;  %v15123_v10 = vld [vmem:[#allocation3 + $0x54] sm:$0xfe]   ;;  %v14197_v30 = vpop.f32.mrb[33].mxu1 }
 0x3a7   : > { %6272 = vrot.lane.b32.xlu1 %v15113_v47, %s15834_s27  ;;  %v7426_v4 = vsel %vm1878_vm8, %v7421_v51, %v7425_v38  ;;  %v5681_v26 = vshll.u32 %v15121_v18, 16  ;;  %v7813_v62 = vsel %vm2312_vm7, %v7811_v63, %v7812_v22  ;;  %v5679_v46 = vshrl.u32 %v15121_v18, 16  ;;  %v15124_v33 = vld [vmem:[#allocation3 + $0x5c] ss:$0 sps:$4 sm:$0x11]   ;;  %v14199_v54 = vpop.f32.mrb[34].mxu1 }
 0x3a8   : > { %v4998_v27 = vshrl.u32 %v14029_v8, 16  ;;  %v4992_v57 = vrot.slane %v4990_v29, 7  ;;  %v5001_v25 = vshll.u32 %v14029_v8, 16  ;;  %7867 = vst.msk [vmem:[#allocation4 + $0x70] sm:$0xff] %vm815_vm0, %v7813_v62  ;;  %v5686_v42 = vshll.u32 %v15122_v59, 16  ;;  %v14200_v9 = vpop.f32.mrb[35].mxu1 }
 0x3a9   : > { %7567 = vrot.lane.b32.xlu0 %v7426_v4, %s15834_s27  ;;  %v5683_v52 = vrot.slane %v5681_v26, 1  ;;  %v6920_v19 = vrot.slane %v15123_v10, 1  ;;  %v6921_v2 = vrot.slane %v15124_v33, 1  ;;  %v14198_v45 = vadd.f32 %v14197_v30, %v14196_v36  ;;  %v15126_v17 = vld [vmem:[#allocation3 + $0x54] sm:$0xfe]  }
 0x3aa   : > { %v5000_v39 = vrot.slane %v4998_v27, 7  ;;  %v4995_v28 = vor.u32 %v4993_v0, %v4992_v57  ;;  %v4996_v32 = vrot.slane %v4992_v57, 4  ;;  %v5688_v61 = vrot.slane %v5686_v42, 1  ;;  %v15128_v48 = vld [vmem:[#allocation3 + $0x54] sm:$0xff]  }
 0x3ab   : > { %6098 = vrot.lane.b32.xlu1 %v6058_v23, %s15832_s21  ;;  %v5684_v41 = vor.u32 %v5683_v52, %v5679_v46  ;;  %v6922_v49 = vsel %vm2312_vm7, %v6920_v19, %v6921_v2  ;;  %v15125_v15 = vld [vmem:[#allocation3 + $0x54] sm:$0xff]   ;;  %v4510_v8 = vadd.f32 %v17217_v1, %v14198_v45  ;;  %v15127_v20 = vld [vmem:[#allocation3 + $0x5c] ss:$0 sps:$4 sm:$0x11]   ;;  %v14201_v44 = vadd.f32 %v14200_v9, %v14199_v54  ;;  %v14202_v46 = vpop.f32.mrb[36].mxu1  ;;  %v15134_v33 = vld [vmem:[#allocation3 + $0x60] sm:$0xff]  }
 0x3ac   : > { %v5003_v6 = vor.u32 %v5001_v25, %v5000_v39  ;;  %v5005_v43 = vrot.slane %v5000_v39, 4  ;;  %v5231_v11 = vsel %vm16257_vm10, %v4995_v28, %v5230_v31  ;;  %v7814_v16 = vrot.slane %v15126_v17, 1  ;;  %v15129_v27 = vld [vmem:[#allocation3 + $0x5c] ss:$0 sps:$4 sm:$0x11]   ;;  %v15135_v62 = vld [vmem:[#allocation3 + $0x54] sm:$0xff]  }
 0x3ad   : > { %5232 = vst [vmem:[#allocation3 + $0x6c] sm:$0xf] %v5231_v11  ;;  %7137 = vrot.lane.b32.xlu0 %v15120_v13, %s15832_s21  ;;  %v5689_v47 = vsel %vm1878_vm8, %v5684_v41, %v5688_v61  ;;  %v7428_v29 = vshrl.u32 %v15128_v48, 16  ;;  %v4671_v38 = vadd.f32 %v17099_v21, %v4510_v8  ;;  %v7815_v0 = vrot.slane %v15127_v20, 1  ;;  %v15130_v22 = vld [vmem:[#allocation3 + $0x54] sm:$0xfe]  }
 0x3ae   : > { %v5004_v40 = vsel %vm16264_vm11, %v4996_v32, %v5003_v6  ;;  %v5235_v34 = vsel %vm16145_vm3, %v5005_v43, %v5234_v58  ;;  %v4513_v31 = vadd.f32 %v17217_v1, %v14201_v44  ;;  %v7430_v63 = vshll.u32 %v15128_v48, 16  ;;  %v15131_v39 = vld [vmem:[#allocation3 + $0x5c] ss:$0 sps:$4 sm:$0x11]   ;;  %v14203_v42 = vpop.f32.mrb[37].mxu1  ;;  %v15142_v45 = vld [vmem:[#allocation3 + $0x60] sm:$0xff]  }
 0x3af   : > { %5233 = vst.msk [vmem:[#allocation3 + $0x70] sm:$0xf] %vm443_vm4, %v5004_v40  ;;  %5236 = vst [vmem:[#allocation3 + $0x74] sm:$0x1] %v5235_v34  ;;  %5810 = vrot.lane.b32.xlu1 %v5689_v47, %s15833_s28  ;;  %v7893_v51 = vld [vmem:[#allocation4 + $0x70] sm:$0xff]  ;;  %v4743_v57 = vmax.f32 %v4671_v38, 0.0  ;;  %v7816_v58 = vsel %vm2312_vm7, %v7814_v16, %v7815_v0  ;;  %v14204_v48 = vadd.f32 %v14203_v42, %v14202_v46 }
 0x3b0   : > { %14600 = vmatprep.mubr.msk.bf16.mxu1 %vm815_vm0, %v7893_v51  ;;  %v4674_v4 = vadd.f32 %v17105_v50, %v4513_v31  ;;  %v7432_v23 = vrot.slane %v7430_v63, 1  ;;  %7868 = vst.msk [vmem:[#allocation4 + $0x88] sm:$0xff] %vm815_vm0, %v7816_v58  ;;  %v7435_v21 = vshll.u32 %v15129_v27, 16  ;;  %v6059_v26 = vrot.slane %v15130_v22, 1  ;;  %v5237_v50 = vld [vmem:[#allocation3 + $0x78] sm:$0xf] }
 0x3b1   : > { %6962 = vrot.lane.b32.xlu0 %v6922_v49, %s15833_s28  ;;  %v14030_v25 = vpack.c.bf16 %v4743_v57, %v4743_v57  ;;  %v6060_v32 = vrot.slane %v15131_v39, 1  ;;  %v15136_v52 = vld [vmem:[#allocation3 + $0x5c] ss:$0 sps:$4 sm:$0x11]   ;;  %v5693_v30 = vshll.u32 %v15135_v62, 16  ;;  %v14205_v40 = vpop.f32.mrb[38].mxu1  ;;  %v4518_v38 = vadd.f32 %v17217_v1, %v14204_v48 }
 0x3b2   : > { %v4744_v13 = vmax.f32 %v4674_v4, 0.0  ;;  %v7433_v59 = vor.u32 %v7432_v23, %v7428_v29  ;;  %v7437_v28 = vrot.slane %v7435_v21, 1  ;;  %v5691_v54 = vshrl.u32 %v15135_v62, 16  ;;  %v14206_v2 = vpop.f32.mrb[39].mxu1  ;;  %v5241_v17 = vld [vmem:[#allocation3 + $0x80] sm:$0x1] }
 0x3b3   : > { %6274 = vrot.lane.b32.xlu1 %v15125_v15, %s15834_s27  ;;  %v5007_v6 = vshrl.u32 %v14030_v25, 16  ;;  %v5010_v36 = vshll.u32 %v14030_v25, 16  ;;  %v6061_v10 = vsel %vm2312_vm7, %v6059_v26, %v6060_v32  ;;  %v5698_v19 = vshll.u32 %v15136_v52, 16  ;;  %v15137_v29 = vld [vmem:[#allocation3 + $0x60] sm:$0xfe]  }
 0x3b4   : > { %v14031_v43 = vpack.c.bf16 %v4744_v13, %v4744_v13  ;;  %v7438_v11 = vsel %vm1878_vm8, %v7433_v59, %v7437_v28  ;;  %v5695_v9 = vrot.slane %v5693_v30, 1  ;;  %v14207_v49 = vadd.f32 %v14206_v2, %v14205_v40  ;;  %v15138_v31 = vld [vmem:[#allocation3 + $0x68] ss:$0 sps:$4 sm:$0x11]   ;;  %v15149_v25 = vld [vmem:[#allocation3 + $0x60] sm:$0xff]  }
 0x3b5   : > { %v5009_v41 = vrot.slane %v5007_v6, 7  ;;  %7569 = vrot.lane.b32.xlu0 %v7438_v11, %s15834_s27  ;;  %v5700_v16 = vrot.slane %v5698_v19, 1  ;;  %v7440_v27 = vshrl.u32 %v15142_v45, 16  ;;  %v6923_v58 = vrot.slane %v15137_v29, 1  ;;  %v15139_v26 = vld [vmem:[#allocation3 + $0x60] sm:$0xff]  }
 0x3b6   : > { %v5015_v61 = vshrl.u32 %v14031_v43, 16  ;;  %v5018_v47 = vshll.u32 %v14031_v43, 16  ;;  %v5696_v51 = vor.u32 %v5695_v9, %v5691_v54  ;;  %v4521_v0 = vadd.f32 %v17217_v1, %v14207_v49  ;;  %v15143_v28 = vld [vmem:[#allocation3 + $0x68] ss:$0 sps:$4 sm:$0x11]  }
 0x3b7   : > { %6100 = vrot.lane.b32.xlu1 %v6061_v10, %s15832_s21  ;;  %v5012_v15 = vor.u32 %v5010_v36, %v5009_v41  ;;  %v5013_v8 = vrot.slane %v5009_v41, 4  ;;  %v7896_v20 = vld [vmem:[#allocation4 + $0x88] sm:$0xff]  ;;  %v4679_v22 = vadd.f32 %v17129_v56, %v4518_v38  ;;  %v6924_v39 = vrot.slane %v15138_v31, 1  ;;  %v15145_v11 = vld [vmem:[#allocation3 + $0x68] ss:$0 sps:$4 sm:$0x11]  }
 0x3b8   : > { %v5017_v44 = vrot.slane %v5015_v61, 7  ;;  %14601 = vmatmul.mubr.msk.bf16.gmra.mrb[68].mxu1 %vm815_vm0, %v7896_v20  ;;  %v5701_v23 = vsel %vm1878_vm8, %v5696_v51, %v5700_v16  ;;  %v4682_v21 = vadd.f32 %v17137_v37, %v4521_v0  ;;  %v7442_v32 = vshll.u32 %v15142_v45, 16  ;;  %v15144_v52 = vld [vmem:[#allocation3 + $0x60] sm:$0xfe]   ;;  %v5248_v45 = vld [vmem:[#allocation3 + $0x8c] sm:$0x1] }
 0x3b9   : > { %v5238_v63 = vsel %vm16257_vm10, %v5012_v15, %v5237_v50  ;;  %7139 = vrot.lane.b32.xlu0 %v15134_v33, %s15832_s21  ;;  %v4745_v62 = vmax.f32 %v4679_v22, 0.0  ;;  %v6925_v37 = vsel %vm2312_vm7, %v6923_v58, %v6924_v39  ;;  %v7447_v43 = vshll.u32 %v15143_v28, 16  ;;  %v5244_v2 = vld [vmem:[#allocation3 + $0x84] sm:$0xf]  ;;  %v15154_v39 = vld [vmem:[#allocation3 + $0x6c] sm:$0xfe]  }
 0x3ba   : > { %v5022_v57 = vrot.slane %v5017_v44, 4  ;;  %5239 = vst [vmem:[#allocation3 + $0x78] sm:$0xf] %v5238_v63  ;;  %v4746_v56 = vmax.f32 %v4682_v21, 0.0  ;;  %v7444_v6 = vrot.slane %v7442_v32, 1  ;;  %v5703_v10 = vshrl.u32 %v15149_v25, 16 }
 0x3bb   : > { %5812 = vrot.lane.b32.xlu1 %v5701_v23, %s15833_s28  ;;  %v14032_v36 = vpack.c.bf16 %v4745_v62, %v4745_v62  ;;  %v7449_v30 = vrot.slane %v7447_v43, 1  ;;  %v6062_v40 = vrot.slane %v15144_v52, 1  ;;  %v15147_v9 = vld [vmem:[#allocation3 + $0x68] ss:$0 sps:$4 sm:$0x11]   ;;  %v5705_v49 = vshll.u32 %v15149_v25, 16 }
 0x3bc   : > { %v5242_v59 = vsel %vm16145_vm3, %v5022_v57, %v5241_v17  ;;  %v14033_v50 = vpack.c.bf16 %v4746_v56, %v4746_v56  ;;  %v7445_v33 = vor.u32 %v7444_v6, %v7440_v27  ;;  %v6063_v17 = vrot.slane %v15145_v11, 1  ;;  %v15148_v63 = vld [vmem:[#allocation3 + $0x6c] sm:$0xff]   ;;  %v15155_v25 = vld [vmem:[#allocation3 + $0x74] ss:$0 sps:$4 sm:$0x11]  }
 0x3bd   : > { %5243 = vst [vmem:[#allocation3 + $0x80] sm:$0x1] %v5242_v59  ;;  %6964 = vrot.lane.b32.xlu0 %v6925_v37, %s15833_s28  ;;  %v5024_v41 = vshrl.u32 %v14032_v36, 16  ;;  %v5027_v61 = vshll.u32 %v14032_v36, 16  ;;  %v7818_v29 = vrot.slane %v15147_v9, 1  ;;  %v5707_v51 = vrot.slane %v5705_v49, 1 }
 0x3be   : > { %v5032_v54 = vshrl.u32 %v14033_v50, 16  ;;  %v5035_v19 = vshll.u32 %v14033_v50, 16  ;;  %v6064_v16 = vsel %vm2312_vm7, %v6062_v40, %v6063_v17  ;;  %v15159_v59 = vld [vmem:[#allocation3 + $0x6c] sm:$0xff]   ;;  %v6926_v32 = vrot.slane %v15154_v39, 1 }
 0x3bf   : > { %6276 = vrot.lane.b32.xlu1 %v15139_v26, %s15834_s27  ;;  %v5708_v58 = vor.u32 %v5707_v51, %v5703_v10  ;;  %v6927_v62 = vrot.slane %v15155_v25, 1  ;;  %v7452_v6 = vshrl.u32 %v15159_v59, 16  ;;  %v15158_v36 = vld [vmem:[#allocation3 + $0x74] ss:$0 sps:$4 sm:$0x11]   ;;  %v15156_v11 = vld [vmem:[#allocation3 + $0x6c] sm:$0xff]  }
 0x3c0   : > { %v5034_v20 = vrot.slane %v5032_v54, 7  ;;  %v7821_v40 = vrot.slane %v15158_v36, 1  ;;  %v15161_v9 = vld [vmem:[#allocation3 + $0x6c] sm:$0xfe]  }
 0x3c1   : > { %v6928_v52 = vsel %vm2312_vm7, %v6926_v32, %v6927_v62 }
 0x3c2   : > { %v5037_v31 = vor.u32 %v5035_v19, %v5034_v20  ;;  %v5039_v27 = vrot.slane %v5034_v20, 4  ;;  %v6065_v20 = vrot.slane %v15161_v9, 1 }
 0x3c3   : > { %v6263_v18 = vpop.permute.xlu1 %6262  ;;  %6102 = vrot.lane.b32.xlu1 %v6064_v16, %s15832_s21  ;;  %v15166_v16 = vld [vmem:[#allocation3 + $0x6c] sm:$0xff]  }
 0x3c4   : > { %6310 = vst.msk [vmem:[#allocation4] sm:$0xff] %vm2586_vm14, %v6263_v18  ;;  %v5020_v18 = vor.u32 %v5018_v47, %v5017_v44  ;;  %v7450_v47 = vsel %vm1878_vm8, %v7445_v33, %v7449_v30 }
 0x3c5   : > { %7571 = vrot.lane.b32.xlu0 %v7450_v47, %s15834_s27 }
 0x3c6   : > { %v5021_v13 = vsel %vm16264_vm11, %v5013_v8, %v5020_v18  ;;  %v5026_v8 = vrot.slane %v5024_v41, 7  ;;  %v15150_v18 = vld [vmem:[#allocation3 + $0x68] ss:$0 sps:$4 sm:$0x11]   ;;  %v7454_v41 = vshll.u32 %v15159_v59, 16 }
 0x3c7   : > { %5240 = vst.msk [vmem:[#allocation3 + $0x7c] sm:$0xf] %vm443_vm4, %v5021_v13  ;;  %v5710_v21 = vshll.u32 %v15150_v18, 16  ;;  %v14208_v13 = vpop.f32.mrb[40].mxu1 }
 0x3c8   : > { %v6951_v34 = vpop.permute.xlu0 %6950  ;;  %v5029_v38 = vor.u32 %v5027_v61, %v5026_v8  ;;  %v5030_v0 = vrot.slane %v5026_v8, 4  ;;  %v14209_v56 = vpop.f32.mrb[41].mxu1  ;;  %v7456_v47 = vrot.slane %v7454_v41, 1 }
 0x3c9   : > { %6998 = vst.msk [vmem:[#allocation4 + $0x8] sm:$0xff] %vm2119_vm12, %v6951_v34  ;;  %v6089_v4 = vpop.permute.xlu1 %6088  ;;  %v15146_v34 = vld [vmem:[#allocation3 + $0x60] sm:$0xfe]   ;;  %7141 = vrot.lane.b32.xlu0 %v15148_v63, %s15832_s21  ;;  %v5712_v28 = vrot.slane %v5710_v21, 1  ;;  %v14210_v37 = vadd.f32 %v14209_v56, %v14208_v13 }
 0x3ca   : > { %v7817_v48 = vrot.slane %v15146_v34, 1  ;;  %v5245_v23 = vsel %vm16257_vm10, %v5029_v38, %v5244_v2  ;;  %v5038_v22 = vsel %vm16264_vm11, %v5030_v0, %v5037_v31  ;;  %v15160_v34 = vld [vmem:[#allocation3 + $0x74] ss:$0 sps:$4 sm:$0x11]   ;;  %v7457_v8 = vor.u32 %v7456_v47, %v7452_v6 }
 0x3cb   : > { %5246 = vst [vmem:[#allocation3 + $0x84] sm:$0xf] %v5245_v23  ;;  %5247 = vst.msk [vmem:[#allocation3 + $0x88] sm:$0xf] %vm443_vm4, %v5038_v22  ;;  %v5713_v43 = vsel %vm1878_vm8, %v5708_v58, %v5712_v28  ;;  %v4526_v10 = vadd.f32 %v17217_v1, %v14210_v37  ;;  %v7459_v17 = vshll.u32 %v15160_v34, 16  ;;  %v5715_v58 = vshrl.u32 %v15166_v16, 16 }
 0x3cc   : > { %v7128_v46 = vpop.permute.xlu0 %7127  ;;  %v7819_v57 = vsel %vm2312_vm7, %v7817_v48, %v7818_v29  ;;  %5814 = vrot.lane.b32.xlu1 %v5713_v43, %s15833_s28  ;;  %v15167_v31 = vld [vmem:[#allocation3 + $0x74] ss:$0 sps:$4 sm:$0x11]   ;;  %v5251_v22 = vld [vmem:[#allocation3 + $0x90] sm:$0xf] }
 0x3cd   : > { %7175 = vst.msk [vmem:[#allocation4 + $0x8] sm:$0xff] %vm2409_vm13, %v7128_v46  ;;  %v6265_v42 = vpop.permute.xlu1 %6264  ;;  %v14211_v46 = vpop.f32.mrb[42].mxu1  ;;  %6966 = vrot.lane.b32.xlu0 %v6928_v52, %s15833_s28  ;;  %v4687_v54 = vadd.f32 %v17126_v14, %v4526_v10  ;;  %v7461_v14 = vrot.slane %v7459_v17, 1  ;;  %v5722_v21 = vshll.u32 %v15167_v31, 16  ;;  %v5255_v37 = vld [vmem:[#allocation3 + $0x98] sm:$0x1] }
 0x3ce   : > { %7869 = vst.msk [vmem:[#allocation4 + $0xa0] sm:$0xff] %vm815_vm0, %v7819_v57  ;;  %v14212_v50 = vpop.f32.mrb[43].mxu1  ;;  %v15165_v57 = vld [vmem:[#allocation3 + $0x78] sm:$0xff]   ;;  %v15171_v34 = vld [vmem:[#allocation3 + $0x80] ss:$0 sps:$4 sm:$0x11]  }
 0x3cf   : > { %v14213_v33 = vadd.f32 %v14212_v50, %v14211_v46  ;;  %v14214_v2 = vpop.f32.mrb[44].mxu1  ;;  %v4747_v48 = vmax.f32 %v4687_v54, 0.0  ;;  %v7462_v0 = vsel %vm1878_vm8, %v7457_v8, %v7461_v14  ;;  %v15175_v32 = vld [vmem:[#allocation3 + $0x78] sm:$0xff]   ;;  %v5724_v50 = vrot.slane %v5722_v21, 1 }
 0x3d0   : > { %6278 = vrot.lane.b32.xlu1 %v15156_v11, %s15834_s27  ;;  %v15170_v11 = vld [vmem:[#allocation3 + $0x78] sm:$0xfe]   ;;  %v6930_v9 = vrot.slane %v15171_v34, 1 }
 0x3d1   : > { %v5801_v15 = vpop.permute.xlu1 %5800  ;;  %v17311_v44 = vpop.permute.xlu0 %6952  ;;  %v4529_v19 = vadd.f32 %v17217_v1, %v14213_v33  ;;  %v14034_v29 = vpack.c.bf16 %v4747_v48, %v4747_v48  ;;  %7573 = vrot.lane.b32.xlu0 %v7462_v0, %s15834_s27  ;;  %v15177_v0 = vld [vmem:[#allocation3 + $0x78] sm:$0xfe]  }
 0x3d2   : > { %5847 = vst.msk [vmem:[#allocation4 + $0x18] sm:$0xff] %vm2119_vm12, %v5801_v15  ;;  %v15162_v15 = vld [vmem:[#allocation3 + $0x74] ss:$0 sps:$4 sm:$0x11]   ;;  %v6068_v21 = vrot.slane %v15177_v0, 1  ;;  %v15181_v34 = vld [vmem:[#allocation3 + $0x84] sm:$0xff]  }
 0x3d3   : > { %6135 = vst.msk [vmem:[#allocation4 + $0x18] sm:$0xff] %vm2409_vm13, %v6089_v4  ;;  %v5249_v4 = vsel %vm16145_vm3, %v5039_v27, %v5248_v45  ;;  %v4690_v49 = vadd.f32 %v17135_v35, %v4529_v19  ;;  %v6066_v38 = vrot.slane %v15162_v15, 1  ;;  %v5041_v27 = vshrl.u32 %v14034_v29, 16  ;;  %v14215_v35 = vpop.f32.mrb[45].mxu1  ;;  %v15186_v0 = vld [vmem:[#allocation3 + $0x84] sm:$0xfe]  }
 0x3d4   : > { %6311 = vst.msk [vmem:[#allocation4 + $0x18] sm:$0xff] %vm2586_vm14, %v6265_v42  ;;  %5250 = vst [vmem:[#allocation3 + $0x8c] sm:$0x1] %v5249_v4  ;;  %v15157_v42 = vld [vmem:[#allocation3 + $0x6c] sm:$0xfe]   ;;  %v5044_v23 = vshll.u32 %v14034_v29, 16  ;;  %v14216_v39 = vadd.f32 %v14215_v35, %v14214_v2 }
 0x3d5   : > { %v7820_v30 = vrot.slane %v15157_v42, 1  ;;  %v7899_v61 = vld [vmem:[#allocation4 + $0xa0] sm:$0xff]  ;;  %v4748_v51 = vmax.f32 %v4690_v49, 0.0  ;;  %v6067_v18 = vsel %vm2312_vm7, %v6065_v20, %v6066_v38  ;;  %v5717_v4 = vshll.u32 %v15166_v16, 16  ;;  %v14217_v25 = vpop.f32.mrb[46].mxu1  ;;  %v17345_v13 = vpop.permute.xlu1 %6090  ;;  %7143 = vrot.lane.b32.xlu0 %v15165_v57, %s15832_s21 }
 0x3d6   : > { %v7560_v26 = vpop.permute.xlu0 %7559  ;;  %14604 = vmatprep.mubr.msk.bf16.mxu1 %vm815_vm0, %v7899_v61  ;;  %6104 = vrot.lane.b32.xlu1 %v6067_v18, %s15832_s21  ;;  %v5043_v59 = vrot.slane %v5041_v27, 7  ;;  %v14218_v28 = vpop.f32.mrb[47].mxu1  ;;  %v4534_v6 = vadd.f32 %v17217_v1, %v14216_v39  ;;  %v6929_v2 = vrot.slane %v15170_v11, 1  ;;  %v15176_v49 = vld [vmem:[#allocation3 + $0x80] ss:$0 sps:$4 sm:$0x11]  }
 0x3d7   : > { %7607 = vst.msk [vmem:[#allocation4 + $0x8] sm:$0xff] %vm2586_vm14, %v7560_v26  ;;  %v7822_v45 = vsel %vm2312_vm7, %v7820_v30, %v7821_v40  ;;  %v14035_v63 = vpack.c.bf16 %v4748_v51, %v4748_v51  ;;  %v5719_v46 = vrot.slane %v5717_v4, 1  ;;  %v14219_v43 = vadd.f32 %v14218_v28, %v14217_v25  ;;  %v15172_v16 = vld [vmem:[#allocation3 + $0x78] sm:$0xff]   ;;  %v15178_v57 = vld [vmem:[#allocation3 + $0x80] ss:$0 sps:$4 sm:$0x11]  }
 0x3d8   : > { %7870 = vst.msk [vmem:[#allocation4 + $0xb8] sm:$0xff] %vm815_vm0, %v7822_v45  ;;  %v5046_v42 = vor.u32 %v5044_v23, %v5043_v59  ;;  %v5047_v10 = vrot.slane %v5043_v59, 4  ;;  %v4695_v30 = vadd.f32 %v17171_v55, %v4534_v6  ;;  %v7466_v15 = vshll.u32 %v15175_v32, 16  ;;  %v5258_v23 = vld [vmem:[#allocation3 + $0x9c] sm:$0xf] }
 0x3d9   : > { %v5049_v26 = vshrl.u32 %v14035_v63, 16  ;;  %v5052_v56 = vshll.u32 %v14035_v63, 16  ;;  %v5720_v33 = vor.u32 %v5719_v46, %v5715_v58  ;;  %v4537_v40 = vadd.f32 %v17217_v1, %v14219_v43  ;;  %v17371_v39 = vld [vmem:[#allocation10] ss:$0 sm:$0xff] }
 0x3da   : > { %v17352_v41 = vpop.permute.xlu0 %7129  ;;  %v5252_v61 = vsel %vm16257_vm10, %v5046_v42, %v5251_v22  ;;  %v4749_v47 = vmax.f32 %v4695_v30, 0.0  ;;  %v17358_v48 = vpop.permute.xlu1 %5802  ;;  %v7464_v29 = vshrl.u32 %v15175_v32, 16  ;;  %v7468_v51 = vrot.slane %v7466_v15, 1  ;;  %v15179_v46 = vld [vmem:[#allocation3 + $0x78] sm:$0xfe]  }
 0x3db   : > { %v5051_v36 = vrot.slane %v5049_v26, 7  ;;  %5253 = vst [vmem:[#allocation3 + $0x90] sm:$0xf] %v5252_v61  ;;  %v5725_v45 = vsel %vm1878_vm8, %v5720_v33, %v5724_v50  ;;  %v4698_v17 = vadd.f32 %v17180_v5, %v4537_v40  ;;  %v6931_v5 = vsel %vm2312_vm7, %v6929_v2, %v6930_v9  ;;  %v15180_v6 = vld [vmem:[#allocation3 + $0x80] ss:$0 sps:$4 sm:$0x11]  }
 0x3dc   : > { %5816 = vrot.lane.b32.xlu1 %v5725_v45, %s15833_s28  ;;  %v14036_v8 = vpack.c.bf16 %v4749_v47, %v4749_v47  ;;  %6968 = vrot.lane.b32.xlu0 %v6931_v5, %s15833_s28  ;;  %v7471_v38 = vshll.u32 %v15176_v49, 16  ;;  %v7469_v22 = vor.u32 %v7468_v51, %v7464_v29  ;;  %v6069_v32 = vrot.slane %v15178_v57, 1  ;;  %v5262_v50 = vld [vmem:[#allocation3 + $0xa4] sm:$0x1]  ;;  %v5265_v51 = vld [vmem:[#allocation3 + $0xa8] sm:$0xf] }
 0x3dd   : > { %v5054_v54 = vor.u32 %v5052_v56, %v5051_v36  ;;  %v5056_v19 = vrot.slane %v5051_v36, 4  ;;  %v4750_v14 = vmax.f32 %v4698_v17, 0.0  ;;  %v7823_v33 = vrot.slane %v15179_v46, 1  ;;  %v15183_v9 = vld [vmem:[#allocation3 + $0x80] ss:$0 sps:$4 sm:$0x11]  }
 0x3de   : > { %v5058_v27 = vshrl.u32 %v14036_v8, 16  ;;  %v5061_v63 = vshll.u32 %v14036_v8, 16  ;;  %v17368_v35 = vpop.permute.xlu0 %6954  ;;  %v7473_v4 = vrot.slane %v7471_v38, 1  ;;  %v6070_v11 = vsel %vm2312_vm7, %v6068_v21, %v6069_v32  ;;  %v15189_v46 = vld [vmem:[#allocation3 + $0x84] sm:$0xfe]  }
 0x3df   : > { %v7902_v62 = vld [vmem:[#allocation4 + $0xb8] sm:$0xff]  ;;  %v5055_v55 = vsel %vm16264_vm11, %v5047_v10, %v5054_v54  ;;  %v5256_v1 = vsel %vm16145_vm3, %v5056_v19, %v5255_v37  ;;  %v14037_v18 = vpack.c.bf16 %v4750_v14, %v4750_v14  ;;  %v7824_v30 = vrot.slane %v15180_v6, 1  ;;  %v15182_v19 = vld [vmem:[#allocation3 + $0x78] sm:$0xff]  }
 0x3e0   : > { %14605 = vmatmul.mubr.msk.bf16.gmra.mrb[72].mxu1 %vm815_vm0, %v7902_v62  ;;  %5254 = vst.msk [vmem:[#allocation3 + $0x94] sm:$0xf] %vm443_vm4, %v5055_v55  ;;  %5257 = vst [vmem:[#allocation3 + $0x98] sm:$0x1] %v5256_v1  ;;  %6280 = vrot.lane.b32.xlu1 %v15172_v16, %s15834_s27  ;;  %v5060_v59 = vrot.slane %v5058_v27, 7  ;;  %v17374_v62 = vpop.permute.xlu1 %6266  ;;  %v7474_v56 = vsel %vm1878_vm8, %v7469_v22, %v7473_v4  ;;  %v5727_v49 = vshrl.u32 %v15182_v19, 16 }
 0x3e1   : > { %v5066_v26 = vshrl.u32 %v14037_v18, 16  ;;  %v5069_v28 = vshll.u32 %v14037_v18, 16  ;;  %7575 = vrot.lane.b32.xlu0 %v7474_v56, %s15834_s27  ;;  %v7825_v47 = vsel %vm2312_vm7, %v7823_v33, %v7824_v30  ;;  %v5729_v15 = vshll.u32 %v15182_v19, 16  ;;  %v5269_v33 = vld [vmem:[#allocation3 + $0xb0] sm:$0x1]  ;;  %v15195_v19 = vld [vmem:[#allocation3 + $0x18] sm:$0xff]  }
 0x3e2   : > { %v5064_v42 = vrot.slane %v5060_v59, 4  ;;  %v17383_v2 = vpop.permute.xlu0 %7561  ;;  %7871 = vst.msk [vmem:[#allocation4 + $0xd0] sm:$0xff] %vm815_vm0, %v7825_v47  ;;  %v5734_v16 = vshll.u32 %v15183_v9, 16  ;;  %v7826_v30 = vrot.slane %v15189_v46, 1 }
 0x3e3   : > { %v5068_v36 = vrot.slane %v5066_v26, 7  ;;  %v5731_v38 = vrot.slane %v5729_v15, 1  ;;  %v17413_v15 = vpop.f32.mrb[64].mxu0 }
 0x3e4   : > { %6106 = vrot.lane.b32.xlu1 %v6070_v11, %s15832_s21  ;;  %v17393_v8 = vpop.permute.xlu1 %6092  ;;  %v5736_v18 = vrot.slane %v5734_v16, 1  ;;  %v15188_v11 = vld [vmem:[#allocation3 + $0x84] sm:$0xff]   ;;  %v617_v16 = vld [vmem:[#allocation3 + $0xb4] sm:$0x1] }
 0x3e5   : > { %v14220_v52 = vpop.f32.mrb[48].mxu1  ;;  %v5071_v61 = vor.u32 %v5069_v28, %v5068_v36  ;;  %v5073_v54 = vrot.slane %v5068_v36, 4  ;;  %7145 = vrot.lane.b32.xlu0 %v15181_v34, %s15832_s21 }
 0x3e6   : > { %v14221_v20 = vpop.f32.mrb[49].mxu1 }
 0x3e7   : > { %v14222_v31 = vadd.f32 %v14221_v20, %v14220_v52  ;;  %v14223_v58 = vpop.f32.mrb[50].mxu1  ;;  %v5063_v52 = vor.u32 %v5061_v63, %v5060_v59  ;;  %v5072_v55 = vsel %vm16264_vm11, %v5064_v42, %v5071_v61  ;;  %v5263_v1 = vsel %vm16145_vm3, %v5073_v54, %v5262_v50  ;;  %v15192_v61 = vld [vmem:[#allocation3 + $0x8c] ss:$0 sps:$4 sm:$0x11]  }
 0x3e8   : > { %v14224_v43 = vpop.f32.mrb[51].mxu1  ;;  %5261 = vst.msk [vmem:[#allocation3 + $0xa0] sm:$0xf] %vm443_vm4, %v5072_v55  ;;  %5264 = vst [vmem:[#allocation3 + $0xa4] sm:$0x1] %v5263_v1 }
 0x3e9   : > { %v4542_v25 = vadd.f32 %v17371_v39, %v14222_v31  ;;  %v14225_v40 = vadd.f32 %v14224_v43, %v14223_v58  ;;  %v15187_v31 = vld [vmem:[#allocation3 + $0x8c] ss:$0 sps:$4 sm:$0x11]   ;;  %v5732_v58 = vor.u32 %v5731_v38, %v5727_v49  ;;  %v17401_v43 = vpop.permute.xlu1 %5804  ;;  %v15193_v49 = vld [vmem:[#allocation3 + $0x84] sm:$0xfe]  }
 0x3ea   : > { %v6933_v22 = vrot.slane %v15187_v31, 1  ;;  %v7905_v42 = vld [vmem:[#allocation4 + $0xd0] sm:$0xff] }
 0x3eb   : > { %v4703_v37 = vadd.f32 %v17167_v60, %v4542_v25  ;;  %v5259_v60 = vsel %vm16257_vm10, %v5063_v52, %v5258_v23  ;;  %v4545_v17 = vadd.f32 %v17371_v39, %v14225_v40  ;;  %v6932_v23 = vrot.slane %v15186_v0, 1  ;;  %v15191_v25 = vld [vmem:[#allocation3 + $0x84] sm:$0xff]   ;;  %14608 = vmatprep.mubr.msk.bf16.mxu1 %vm815_vm0, %v7905_v42 }
 0x3ec   : > { %5260 = vst [vmem:[#allocation3 + $0x9c] sm:$0xf] %v5259_v60  ;;  %v5737_v56 = vsel %vm1878_vm8, %v5732_v58, %v5736_v18  ;;  %v7476_v40 = vshrl.u32 %v15191_v25, 16  ;;  %v7478_v54 = vshll.u32 %v15191_v25, 16  ;;  %v671_v25 = vld [vmem:[#allocation3 + $0xbc] sm:$0x1] }
 0x3ed   : > { %v4751_v10 = vmax.f32 %v4703_v37, 0.0  ;;  %v4706_v20 = vadd.f32 %v17175_v12, %v4545_v17  ;;  %v14226_v29 = vpop.f32.mrb[52].mxu1  ;;  %v6934_v37 = vsel %vm2312_vm7, %v6932_v23, %v6933_v22  ;;  %5818 = vrot.lane.b32.xlu1 %v5737_v56, %s15833_s28  ;;  %v15196_v18 = vld [vmem:[#allocation3 + $0x20] ss:$0 sps:$4 sm:$0x11]   ;;  %v618_v22 = vsel %vm16145_vm3, 0, %v617_v16 }
 0x3ee   : > { %v14227_v57 = vpop.f32.mrb[53].mxu1  ;;  %6970 = vrot.lane.b32.xlu0 %v6934_v37, %s15833_s28  ;;  %v7480_v1 = vrot.slane %v7478_v54, 1  ;;  %619 = vst [vmem:[#allocation3 + $0xb4] sm:$0x1] %v618_v22  ;;  %v15201_v37 = vld [vmem:[#allocation3 + $0x90] sm:$0xff]  }
 0x3ef   : > { %v14038_v45 = vpack.c.bf16 %v4751_v10, %v4751_v10  ;;  %v4752_v63 = vmax.f32 %v4706_v20, 0.0  ;;  %v14228_v4 = vadd.f32 %v14227_v57, %v14226_v29  ;;  %v14229_v21 = vpop.f32.mrb[54].mxu1  ;;  %v15190_v10 = vld [vmem:[#allocation3 + $0x8c] ss:$0 sps:$4 sm:$0x11]  }
 0x3f0   : > { %v14230_v32 = vpop.f32.mrb[55].mxu1  ;;  %v7827_v60 = vrot.slane %v15190_v10, 1  ;;  %v15194_v20 = vld [vmem:[#allocation3 + $0x8c] ss:$0 sps:$4 sm:$0x11]   ;;  %v7481_v31 = vor.u32 %v7480_v1, %v7476_v40 }
 0x3f1   : > { %v5075_v14 = vshrl.u32 %v14038_v45, 16  ;;  %v5078_v5 = vshll.u32 %v14038_v45, 16  ;;  %v17397_v59 = vpop.permute.xlu0 %7131  ;;  %v14039_v28 = vpack.c.bf16 %v4752_v63, %v4752_v63  ;;  %v14231_v6 = vadd.f32 %v14230_v32, %v14229_v21  ;;  %6282 = vrot.lane.b32.xlu1 %v15188_v11, %s15834_s27  ;;  %v4710_v63 = vpop.f32.mrb[65].mxu0  ;;  %v15200_v57 = vld [vmem:[#allocation12 + $0x30] sm:$0xff]  }
 0x3f2   : > { %v4550_v45 = vadd.f32 %v17371_v39, %v14228_v4  ;;  %v7828_v55 = vsel %vm2312_vm7, %v7826_v30, %v7827_v60  ;;  %v6072_v23 = vrot.slane %v15194_v20, 1  ;;  %v17426_v21 = vpop.f32.mrb[66].mxu0  ;;  %v672_v32 = vsel %vm16191_vm6, 0, %v671_v25  ;;  %v15203_v40 = vld [vmem:[#allocation3 + $0x8c] ss:$0 sps:$4 sm:$0x11]  }
 0x3f3   : > { %v5077_v27 = vrot.slane %v5075_v14, 7  ;;  %v5083_v36 = vshrl.u32 %v14039_v28, 16  ;;  %v5086_v50 = vshll.u32 %v14039_v28, 16  ;;  %v15198_v14 = vld [vmem:[#allocation12 + $0x70] sm:$0xff]   ;;  %7872 = vst.msk [vmem:[#allocation4 + $0xe8] sm:$0xff] %vm815_vm0, %v7828_v55  ;;  %v4553_v29 = vadd.f32 %v17371_v39, %v14231_v6  ;;  %v4713_v56 = vpop.f32.mrb[67].mxu0 }
 0x3f4   : > { %14268 = vmatprep.subr.bf16.mxu0 %v15198_v14  ;;  %v4711_v4 = vadd.f32 %v4710_v63, %v4550_v45  ;;  %v6522_v28 = vshll.u32 %v15196_v18, 16  ;;  %673 = vst [vmem:[#allocation3 + $0xbc] sm:$0x1] %v672_v32 }
 0x3f5   : > { %v5080_v26 = vor.u32 %v5078_v5, %v5077_v27  ;;  %v5081_v12 = vrot.slane %v5077_v27, 4  ;;  %v5085_v34 = vrot.slane %v5083_v36, 7  ;;  %v7483_v5 = vshll.u32 %v15192_v61, 16  ;;  %14269 = vmatpush3.bf16.msra.mxu0 %v15200_v57  ;;  %v15202_v36 = vld [vmem:[#allocation3 + $0x84] sm:$0xff]   ;;  %v14232_v45 = vpop.f32.mrb[56].mxu1 }
 0x3f6   : > { %v6071_v27 = vrot.slane %v15193_v49, 1  ;;  %v4714_v42 = vadd.f32 %v4713_v56, %v4553_v29  ;;  %v6524_v10 = vrot.slane %v6522_v28, 1  ;;  %v5739_v54 = vshrl.u32 %v15202_v36, 16  ;;  %v14233_v14 = vpop.f32.mrb[57].mxu1 }
 0x3f7   : > { %v5266_v52 = vsel %vm16257_vm10, %v5080_v26, %v5265_v51  ;;  %v17409_v47 = vpop.permute.xlu0 %6956  ;;  %v5088_v17 = vor.u32 %v5086_v50, %v5085_v34  ;;  %v5090_v9 = vrot.slane %v5085_v34, 4  ;;  %v17417_v51 = vpop.permute.xlu1 %6268  ;;  %v7485_v58 = vrot.slane %v7483_v5, 1  ;;  %v674_v5 = vld [vmem:[#allocation3 + $0xc8] sm:$0x1] }
 0x3f8   : > { %5267 = vst [vmem:[#allocation3 + $0xa8] sm:$0xf] %v5266_v52  ;;  %v6515_v26 = vshrl.u32 %v15195_v19, 16  ;;  %v6073_v6 = vsel %vm2312_vm7, %v6071_v27, %v6072_v23  ;;  %v4753_v52 = vmax.f32 %v4711_v4, 0.0  ;;  %v4754_v30 = vmax.f32 %v4714_v42, 0.0  ;;  %v15207_v42 = vld [vmem:[#allocation3 + $0x18] sm:$0xff]  }
 0x3f9   : > { %v5089_v38 = vsel %vm16264_vm11, %v5081_v12, %v5088_v17  ;;  %v5270_v0 = vsel %vm16145_vm3, %v5090_v9, %v5269_v33  ;;  %v6517_v12 = vshll.u32 %v15195_v19, 16  ;;  %v7486_v46 = vsel %vm1878_vm8, %v7481_v31, %v7485_v58  ;;  %6108 = vrot.lane.b32.xlu1 %v6073_v6, %s15832_s21  ;;  %v620_v17 = vld [vmem:[#allocation3 + $0xc0] sm:$0x1]  ;;  %v5272_v27 = vld [vmem:[#allocation3 + $0xb4] sm:$0xf]  ;;  %5416 = vst.msk [vmem:[#allocation4 + $0x30] sm:$0xff] %vm815_vm0, %v15207_v42 }
 0x3fa   : > { %5268 = vst.msk [vmem:[#allocation3 + $0xac] sm:$0xf] %vm443_vm4, %v5089_v38  ;;  %5271 = vst [vmem:[#allocation3 + $0xb0] sm:$0x1] %v5270_v0  ;;  %7577 = vrot.lane.b32.xlu0 %v7486_v46, %s15834_s27  ;;  %v14040_v33 = vpack.c.bf16 %v4753_v52, %v4753_v52  ;;  %v7908_v60 = vld [vmem:[#allocation4 + $0xe8] sm:$0xff]  ;;  %v5741_v19 = vshll.u32 %v15202_v36, 16  ;;  %v14041_v1 = vpack.c.bf16 %v4754_v30, %v4754_v30 }
 0x3fb   : > { %v6519_v11 = vrot.slane %v6517_v12, 1  ;;  %14609 = vmatmul.mubr.msk.bf16.gmra.mrb[76].mxu1 %vm815_vm0, %v7908_v60  ;;  %v5746_v49 = vshll.u32 %v15203_v40, 16  ;;  %v621_v29 = vsel %vm16145_vm3, 0, %v620_v17  ;;  %v14234_v38 = vadd.f32 %v14233_v14, %v14232_v45  ;;  %v14235_v0 = vpop.f32.mrb[58].mxu1  ;;  %v5276_v23 = vld [vmem:[#allocation3 + $0xbc] sm:$0x1] }
 0x3fc   : > { %v5092_v9 = vshrl.u32 %v14040_v33, 16  ;;  %v5095_v55 = vshll.u32 %v14040_v33, 16  ;;  %v5743_v16 = vrot.slane %v5741_v19, 1  ;;  %v5100_v63 = vshrl.u32 %v14041_v1, 16  ;;  %622 = vst [vmem:[#allocation3 + $0xc0] sm:$0x1] %v621_v29 }
 0x3fd   : > { %v6520_v61 = vor.u32 %v6519_v11, %v6515_v26  ;;  %v5103_v18 = vshll.u32 %v14041_v1, 16  ;;  %v5748_v57 = vrot.slane %v5746_v49, 1  ;;  %v4558_v4 = vadd.f32 %v17371_v39, %v14234_v38  ;;  %v14236_v26 = vpop.f32.mrb[59].mxu1  ;;  %v15205_v52 = vld [vmem:[#allocation3 + $0x98] ss:$0 sps:$4 sm:$0x11]  }
 0x3fe   : > { %v17432_v50 = vpop.permute.xlu0 %7563  ;;  %7147 = vrot.lane.b32.xlu0 %v15201_v37, %s15832_s21  ;;  %v5094_v31 = vrot.slane %v5092_v9, 7  ;;  %v5744_v22 = vor.u32 %v5743_v16, %v5739_v54  ;;  %v675_v25 = vsel %vm16191_vm6, 0, %v674_v5  ;;  %v5102_v32 = vrot.slane %v5100_v63, 7  ;;  %v15204_v37 = vld [vmem:[#allocation3 + $0x90] sm:$0xfe]   ;;  %5848 = vst.msk [vmem:[#allocation4 + $0x30] sm:$0xff] %vm2119_vm12, %v17358_v48 }
 0x3ff   : > { %v6525_v20 = vsel %vm1878_vm8, %v6520_v61, %v6524_v10  ;;  %676 = vst [vmem:[#allocation3 + $0xc8] sm:$0x1] %v675_v25  ;;  %v14237_v56 = vadd.f32 %v14236_v26, %v14235_v0  ;;  %v4719_v6 = vadd.f32 %v17413_v15, %v4558_v4  ;;  %v15206_v10 = vld [vmem:[#allocation3 + $0x90] sm:$0xff]   ;;  %v6935_v15 = vrot.slane %v15204_v37, 1  ;;  %6136 = vst.msk [vmem:[#allocation4 + $0x30] sm:$0xff] %vm2409_vm13, %v17345_v13  ;;  %v15214_v5 = vld [vmem:[#allocation3 + $0x24] sm:$0xff]  }
 0x400   : > { %v17436_v34 = vpop.permute.xlu1 %6094  ;;  %6711 = vst.msk [vmem:[#allocation4 + $0x20] sm:$0xff] %vm815_vm0, %v6525_v20  ;;  %v5097_v12 = vor.u32 %v5095_v55, %v5094_v31  ;;  %v5098_v28 = vrot.slane %v5094_v31, 4  ;;  %v5105_v36 = vor.u32 %v5103_v18, %v5102_v32  ;;  %v5107_v11 = vrot.slane %v5102_v32, 4  ;;  %v15208_v33 = vld [vmem:[#allocation12 + $0x78] sm:$0xff]  }
 0x401   : > { %6999 = vst.msk [vmem:[#allocation4 + $0x20] sm:$0xff] %vm2119_vm12, %v17311_v44  ;;  %v5749_v44 = vsel %vm1878_vm8, %v5744_v22, %v5748_v57  ;;  %v15209_v30 = vld [vmem:[#allocation12 + $0x38] sm:$0xff]   ;;  %v4755_v40 = vmax.f32 %v4719_v6, 0.0  ;;  %v6936_v60 = vrot.slane %v15205_v52, 1  ;;  %14270 = vmatprep.subr.bf16.mxu0 %v15208_v33  ;;  %v6529_v37 = vshll.u32 %v15214_v5, 16 }
 0x402   : > { %v17444_v58 = vpop.permute.xlu0 %7133  ;;  %7176 = vst.msk [vmem:[#allocation4 + $0x20] sm:$0xff] %vm2409_vm13, %v17352_v41  ;;  %v5273_v24 = vsel %vm16257_vm10, %v5097_v12, %v5272_v27  ;;  %5820 = vrot.lane.b32.xlu1 %v5749_v44, %s15833_s28  ;;  %v4561_v41 = vadd.f32 %v17371_v39, %v14237_v56  ;;  %v15210_v61 = vld [vmem:[#allocation3 + $0x90] sm:$0xff]   ;;  %v5277_v54 = vsel %vm16145_vm3, %v5107_v11, %v5276_v23  ;;  %v15211_v55 = vld [vmem:[#allocation3 + $0x98] ss:$0 sps:$4 sm:$0x11]   ;;  %v7880_v23 = vld [vmem:[#allocation4 + $0x8] sm:$0xff] }
 0x403   : > { %7608 = vst.msk [vmem:[#allocation4 + $0x20] sm:$0xff] %vm2586_vm14, %v17383_v2  ;;  %5274 = vst [vmem:[#allocation3 + $0xb4] sm:$0xf] %v5273_v24  ;;  %v5106_v2 = vsel %vm16264_vm11, %v5098_v28, %v5105_v36  ;;  %v14042_v17 = vpack.c.bf16 %v4755_v40, %v4755_v40  ;;  %v6937_v9 = vsel %vm2312_vm7, %v6935_v15, %v6936_v60  ;;  %14271 = vmatpush3.bf16.msra.mxu0 %v15209_v30  ;;  %v5279_v20 = vld [vmem:[#allocation3 + $0xc0] sm:$0xf]  ;;  %v7879_v42 = vld [vmem:[#allocation4] sm:$0xff] }
 0x404   : > { %v4722_v19 = vadd.f32 %v17426_v21, %v4561_v41  ;;  %5275 = vst.msk [vmem:[#allocation3 + $0xb8] sm:$0xf] %vm443_vm4, %v5106_v2  ;;  %5278 = vst [vmem:[#allocation3 + $0xbc] sm:$0x1] %v5277_v54  ;;  %6972 = vrot.lane.b32.xlu0 %v6937_v9, %s15833_s28  ;;  %v7490_v48 = vshll.u32 %v15210_v61, 16  ;;  %v7488_v49 = vshrl.u32 %v15210_v61, 16  ;;  %8158 = vmatprep.mubr.bf16.mxu0 %v7880_v23 }
 0x405   : > { %6312 = vst.msk [vmem:[#allocation4 + $0x30] sm:$0xff] %vm2586_vm14, %v17374_v62  ;;  %v5109_v1 = vshrl.u32 %v14042_v17, 16  ;;  %v7495_v14 = vshll.u32 %v15211_v55, 16  ;;  %v15212_v38 = vld [vmem:[#allocation3 + $0x90] sm:$0xfe]   ;;  %v5112_v31 = vshll.u32 %v14042_v17, 16 }
 0x406   : > { %v17453_v46 = vpop.permute.xlu1 %5806  ;;  %v17471_v39 = vpop.permute.xlu0 %6958  ;;  %v4756_v21 = vmax.f32 %v4722_v19, 0.0  ;;  %6284 = vrot.lane.b32.xlu1 %v15206_v10, %s15834_s27  ;;  %v7492_v29 = vrot.slane %v7490_v48, 1  ;;  %v15213_v13 = vld [vmem:[#allocation3 + $0x98] ss:$0 sps:$4 sm:$0x11]   ;;  %v6074_v57 = vrot.slane %v15212_v38, 1  ;;  %8159 = vmatmul.mubr.bf16.vlgmr.msra.gmra.mrb[68].mxu0 %v7879_v42 }
 0x407   : > { %v5111_v0 = vrot.slane %v5109_v1, 7  ;;  %v7497_v18 = vrot.slane %v7495_v14, 1  ;;  %v5283_v26 = vld [vmem:[#allocation3 + $0xc8] sm:$0x1]  ;;  %v6075_v12 = vrot.slane %v15213_v13, 1  ;;  %v6527_v11 = vshrl.u32 %v15214_v5, 16 }
 0x408   : > { %v14043_v16 = vpack.c.bf16 %v4756_v21, %v4756_v21  ;;  %v7493_v63 = vor.u32 %v7492_v29, %v7488_v49  ;;  %v15215_v52 = vld [vmem:[#allocation3 + $0x2c] ss:$0 sps:$4 sm:$0x11]   ;;  %v6531_v41 = vrot.slane %v6529_v37, 1  ;;  %v15219_v10 = vld [vmem:[#allocation3 + $0x90] sm:$0xff]   ;;  %v15218_v15 = vld [vmem:[#allocation3 + $0x9c] sm:$0xff]  }
 0x409   : > { %v5114_v62 = vor.u32 %v5112_v31, %v5111_v0  ;;  %v5115_v28 = vrot.slane %v5111_v0, 4  ;;  %v6076_v6 = vsel %vm2312_vm7, %v6074_v57, %v6075_v12  ;;  %v6534_v30 = vshll.u32 %v15215_v52, 16  ;;  %v15216_v40 = vld [vmem:[#allocation3 + $0x90] sm:$0xfe]   ;;  %v15224_v5 = vld [vmem:[#allocation3 + $0x24] sm:$0xff]   ;;  %v15227_v29 = vld [vmem:[#allocation3 + $0x9c] sm:$0xff]  }
 0x40a   : > { %v17473_v45 = vpop.permute.xlu1 %6270  ;;  %v5117_v27 = vshrl.u32 %v14043_v16, 16  ;;  %v5120_v25 = vshll.u32 %v14043_v16, 16  ;;  %v7498_v56 = vsel %vm1878_vm8, %v7493_v63, %v7497_v18  ;;  %6110 = vrot.lane.b32.xlu1 %v6076_v6, %s15832_s21  ;;  %v6532_v2 = vor.u32 %v6531_v41, %v6527_v11  ;;  %v15217_v54 = vld [vmem:[#allocation3 + $0x98] ss:$0 sps:$4 sm:$0x11]   ;;  %5417 = vst.msk [vmem:[#allocation4 + $0x48] sm:$0xff] %vm815_vm0, %v15224_v5 }
 0x40b   : > { %v5280_v44 = vsel %vm16257_vm10, %v5114_v62, %v5279_v20  ;;  %7579 = vrot.lane.b32.xlu0 %v7498_v56, %s15834_s27  ;;  %v5751_v19 = vshrl.u32 %v15219_v10, 16  ;;  %v6536_v9 = vrot.slane %v6534_v30, 1  ;;  %v7829_v55 = vrot.slane %v15216_v40, 1  ;;  %v15220_v14 = vld [vmem:[#allocation3 + $0x98] ss:$0 sps:$4 sm:$0x11]  }
 0x40c   : > { %v5119_v32 = vrot.slane %v5117_v27, 7  ;;  %5281 = vst [vmem:[#allocation3 + $0xc0] sm:$0xf] %v5280_v44  ;;  %v7830_v21 = vrot.slane %v15217_v54, 1  ;;  %v5753_v48 = vshll.u32 %v15219_v10, 16  ;;  %v5758_v13 = vshll.u32 %v15220_v14, 16 }
 0x40d   : > { %v6537_v49 = vsel %vm1878_vm8, %v6532_v2, %v6536_v9  ;;  %v15221_v0 = vld [vmem:[#allocation3 + $0x9c] sm:$0xfe]   ;;  %v15222_v31 = vld [vmem:[#allocation3 + $0xa4] ss:$0 sps:$4 sm:$0x11]   ;;  %5849 = vst.msk [vmem:[#allocation4 + $0x48] sm:$0xff] %vm2119_vm12, %v17401_v43 }
 0x40e   : > { %v5122_v24 = vor.u32 %v5120_v25, %v5119_v32  ;;  %v5124_v36 = vrot.slane %v5119_v32, 4  ;;  %6712 = vst.msk [vmem:[#allocation4 + $0x38] sm:$0xff] %vm815_vm0, %v6537_v49  ;;  %v7831_v20 = vsel %vm2312_vm7, %v7829_v55, %v7830_v21  ;;  %v5755_v16 = vrot.slane %v5753_v48, 1  ;;  %v15225_v43 = vld [vmem:[#allocation3 + $0x9c] sm:$0xfe]   ;;  %v15231_v42 = vld [vmem:[#allocation3 + $0x30] sm:$0xff]  }
 0x40f   : > { %v17483_v22 = vpop.permute.xlu0 %7565  ;;  %v17485_v4 = vpop.permute.xlu1 %6096  ;;  %7149 = vrot.lane.b32.xlu0 %v15218_v15, %s15832_s21  ;;  %7000 = vst.msk [vmem:[#allocation4 + $0x38] sm:$0xff] %vm2119_vm12, %v17368_v35  ;;  %v5760_v63 = vrot.slane %v5758_v13, 1  ;;  %v6938_v18 = vrot.slane %v15221_v0, 1  ;;  %v6939_v57 = vrot.slane %v15222_v31, 1  ;;  %v7500_v35 = vshrl.u32 %v15227_v29, 16  ;;  %v7883_v11 = vld [vmem:[#allocation4 + $0x20] sm:$0xff] }
 0x410   : > { %v5123_v60 = vsel %vm16264_vm11, %v5115_v28, %v5122_v24  ;;  %v5284_v61 = vsel %vm16145_vm3, %v5124_v36, %v5283_v26  ;;  %7873 = vst.msk [vmem:[#allocation4 + $0x100] sm:$0xff] %vm815_vm0, %v7831_v20  ;;  %v5756_v27 = vor.u32 %v5755_v16, %v5751_v19  ;;  %v15226_v25 = vld [vmem:[#allocation3 + $0xa4] ss:$0 sps:$4 sm:$0x11]   ;;  %v7502_v26 = vshll.u32 %v15227_v29, 16  ;;  %8166 = vmatprep.mubr.bf16.mxu0 %v7883_v11  ;;  %v15233_v21 = vld [vmem:[#allocation3 + $0xa8] sm:$0xff]  }
 0x411   : > { %5282 = vst.msk [vmem:[#allocation3 + $0xc4] sm:$0xf] %vm443_vm4, %v5123_v60  ;;  %5285 = vst [vmem:[#allocation3 + $0xc8] sm:$0x1] %v5284_v61  ;;  %v6940_v62 = vsel %vm2312_vm7, %v6938_v18, %v6939_v57  ;;  %v7833_v28 = vrot.slane %v15226_v25, 1  ;;  %v6541_v61 = vshll.u32 %v15231_v42, 16 }
 0x412   : > { %7177 = vst.msk [vmem:[#allocation4 + $0x38] sm:$0xff] %vm2409_vm13, %v17397_v59  ;;  %6137 = vst.msk [vmem:[#allocation4 + $0x48] sm:$0xff] %vm2409_vm13, %v17393_v8  ;;  %v5761_v59 = vsel %vm1878_vm8, %v5756_v27, %v5760_v63  ;;  %v15223_v8 = vld [vmem:[#allocation3 + $0x9c] sm:$0xff]   ;;  %v15228_v32 = vld [vmem:[#allocation3 + $0xa4] ss:$0 sps:$4 sm:$0x11]  }
 0x413   : > { %v17493_v33 = vpop.permute.xlu0 %7135  ;;  %7609 = vst.msk [vmem:[#allocation4 + $0x38] sm:$0xff] %vm2586_vm14, %v17432_v50  ;;  %6313 = vst.msk [vmem:[#allocation4 + $0x48] sm:$0xff] %vm2586_vm14, %v17417_v51  ;;  %5822 = vrot.lane.b32.xlu1 %v5761_v59, %s15833_s28  ;;  %6974 = vrot.lane.b32.xlu0 %v6940_v62, %s15833_s28  ;;  %v7832_v50 = vrot.slane %v15225_v43, 1  ;;  %v7504_v51 = vrot.slane %v7502_v26, 1  ;;  %v7507_v6 = vshll.u32 %v15228_v32, 16  ;;  %v6539_v54 = vshrl.u32 %v15231_v42, 16 }
 0x414   : > { %v15229_v52 = vld [vmem:[#allocation3 + $0x9c] sm:$0xfe]   ;;  %v15230_v36 = vld [vmem:[#allocation3 + $0xa4] ss:$0 sps:$4 sm:$0x11]   ;;  %v6543_v9 = vrot.slane %v6541_v61, 1 }
 0x415   : > { %v17499_v17 = vpop.permute.xlu1 %5808  ;;  %v7834_v37 = vsel %vm2312_vm7, %v7832_v50, %v7833_v28  ;;  %v7505_v44 = vor.u32 %v7504_v51, %v7500_v35  ;;  %v17538_v41 = vld [vmem:[#allocation3 + $0xb4] sm:$0xfe]   ;;  %v7509_v10 = vrot.slane %v7507_v6, 1  ;;  %v6077_v30 = vrot.slane %v15229_v52, 1  ;;  %v15234_v48 = vld [vmem:[#allocation3 + $0x9c] sm:$0xff]   ;;  %v15240_v52 = vld [vmem:[#allocation3 + $0xa8] sm:$0xff]  }
 0x416   : > { %7874 = vst.msk [vmem:[#allocation4 + $0x118] sm:$0xff] %vm815_vm0, %v7834_v37  ;;  %v6078_v15 = vrot.slane %v15230_v36, 1  ;;  %v15232_v60 = vld [vmem:[#allocation3 + $0x38] ss:$0 sps:$4 sm:$0x11]   ;;  %v6544_v20 = vor.u32 %v6543_v9, %v6539_v54  ;;  %v7882_v29 = vld [vmem:[#allocation4 + $0x18] sm:$0xff] }
 0x417   : > { %v17503_v1 = vpop.permute.xlu0 %6960  ;;  %v7911_v56 = vld [vmem:[#allocation4 + $0x100] sm:$0xff]  ;;  %6286 = vrot.lane.b32.xlu1 %v15223_v8, %s15834_s27  ;;  %v7510_v2 = vsel %vm1878_vm8, %v7505_v44, %v7509_v10  ;;  %v6546_v55 = vshll.u32 %v15232_v60, 16  ;;  %v15235_v49 = vld [vmem:[#allocation3 + $0xa4] ss:$0 sps:$4 sm:$0x11]   ;;  %v7838_v13 = vrot.slane %v17538_v41, 1  ;;  %8167 = vmatmul.mubr.bf16.gmra.mrb[72].mxu0 %v7882_v29 }
 0x418   : > { %14612 = vmatprep.mubr.msk.bf16.mxu1 %vm815_vm0, %v7911_v56  ;;  %7581 = vrot.lane.b32.xlu0 %v7510_v2, %s15834_s27  ;;  %v6079_v19 = vsel %vm2312_vm7, %v6077_v30, %v6078_v15  ;;  %v5765_v31 = vshll.u32 %v15234_v48, 16  ;;  %v5770_v27 = vshll.u32 %v15235_v49, 16  ;;  %v5763_v18 = vshrl.u32 %v15234_v48, 16  ;;  %v15236_v57 = vld [vmem:[#allocation3 + $0xa8] sm:$0xfe]   ;;  %v15241_v28 = vld [vmem:[#allocation3 + $0x30] sm:$0xff]  }
 0x419   : > { %v17508_v38 = vpop.permute.xlu1 %6272  ;;  %v6548_v16 = vrot.slane %v6546_v55, 1  ;;  %v15237_v35 = vld [vmem:[#allocation3 + $0xb0] ss:$0 sps:$4 sm:$0x11]   ;;  %v7835_v43 = vrot.slane %v15236_v57, 1  ;;  %v15242_v44 = vld [vmem:[#allocation3 + $0xa8] sm:$0xff]  }
 0x41a   : > { %v5767_v59 = vrot.slane %v5765_v31, 1  ;;  %v5772_v62 = vrot.slane %v5770_v27, 1  ;;  %v7836_v25 = vrot.slane %v15237_v35, 1  ;;  %v15238_v26 = vld [vmem:[#allocation3 + $0xa8] sm:$0xfe]   ;;  %5418 = vst.msk [vmem:[#allocation4 + $0x60] sm:$0xff] %vm815_vm0, %v15241_v28 }
 0x41b   : > { %v17524_v23 = vpop.permute.xlu0 %7567  ;;  %6112 = vrot.lane.b32.xlu1 %v6079_v19, %s15832_s21  ;;  %v6549_v63 = vsel %vm1878_vm8, %v6544_v20, %v6548_v16  ;;  %v15239_v50 = vld [vmem:[#allocation3 + $0xb0] ss:$0 sps:$4 sm:$0x11]   ;;  %v6941_v37 = vrot.slane %v15238_v26, 1  ;;  %5850 = vst.msk [vmem:[#allocation4 + $0x60] sm:$0xff] %vm2119_vm12, %v17453_v46  ;;  %v7514_v42 = vshll.u32 %v15242_v44, 16 }
 0x41c   : > { %7151 = vrot.lane.b32.xlu0 %v15233_v21, %s15832_s21  ;;  %6713 = vst.msk [vmem:[#allocation4 + $0x50] sm:$0xff] %vm815_vm0, %v6549_v63  ;;  %v5768_v8 = vor.u32 %v5767_v59, %v5763_v18  ;;  %v7837_v56 = vsel %vm2312_vm7, %v7835_v43, %v7836_v25  ;;  %v6942_v6 = vrot.slane %v15239_v50, 1  ;;  %v7512_v11 = vshrl.u32 %v15242_v44, 16  ;;  %v15244_v61 = vld [vmem:[#allocation3 + $0xa8] sm:$0xfe]   ;;  %v7886_v16 = vld [vmem:[#allocation4 + $0x38] sm:$0xff] }
 0x41d   : > { %v17528_v12 = vpop.permute.xlu1 %6098  ;;  %v7914_v0 = vld [vmem:[#allocation4 + $0x118] sm:$0xff]  ;;  %7001 = vst.msk [vmem:[#allocation4 + $0x50] sm:$0xff] %vm2119_vm12, %v17409_v47  ;;  %v7516_v30 = vrot.slane %v7514_v42, 1  ;;  %v6080_v19 = vrot.slane %v15244_v61, 1  ;;  %8174 = vmatprep.mubr.bf16.mxu0 %v7886_v16  ;;  %v15250_v59 = vld [vmem:[#allocation3 + $0xa8] sm:$0xff]  }
 0x41e   : > { %14613 = vmatmul.mubr.msk.bf16.gmra.mrb[80].mxu1 %vm815_vm0, %v7914_v0  ;;  %7178 = vst.msk [vmem:[#allocation4 + $0x50] sm:$0xff] %vm2409_vm13, %v17444_v58  ;;  %v5773_v47 = vsel %vm1878_vm8, %v5768_v8, %v5772_v62  ;;  %v15246_v58 = vld [vmem:[#allocation3 + $0x3c] sm:$0xff]   ;;  %v6943_v36 = vsel %vm2312_vm7, %v6941_v37, %v6942_v6  ;;  %6138 = vst.msk [vmem:[#allocation4 + $0x60] sm:$0xff] %vm2409_vm13, %v17436_v34  ;;  %v15245_v46 = vld [vmem:[#allocation3 + $0xb0] ss:$0 sps:$4 sm:$0x11]  }
 0x41f   : > { %v17534_v24 = vpop.permute.xlu0 %7137  ;;  %7610 = vst.msk [vmem:[#allocation4 + $0x50] sm:$0xff] %vm2586_vm14, %v17483_v22  ;;  %5824 = vrot.lane.b32.xlu1 %v5773_v47, %s15833_s28  ;;  %v15243_v22 = vld [vmem:[#allocation3 + $0xb0] ss:$0 sps:$4 sm:$0x11]   ;;  %v6553_v15 = vshll.u32 %v15246_v58, 16  ;;  %6314 = vst.msk [vmem:[#allocation4 + $0x60] sm:$0xff] %vm2586_vm14, %v17473_v45  ;;  %v7517_v54 = vor.u32 %v7516_v30, %v7512_v11 }
 0x420   : > { %7875 = vst.msk [vmem:[#allocation4 + $0x130] sm:$0xff] %vm815_vm0, %v7837_v56  ;;  %6976 = vrot.lane.b32.xlu0 %v6943_v36, %s15833_s28  ;;  %v7519_v60 = vshll.u32 %v15243_v22, 16  ;;  %v6081_v9 = vrot.slane %v15245_v46, 1  ;;  %v15247_v55 = vld [vmem:[#allocation3 + $0x44] ss:$0 sps:$4 sm:$0x11]  }
 0x421   : > { %v17540_v40 = vpop.permute.xlu1 %5810  ;;  %v6551_v49 = vshrl.u32 %v15246_v58, 16  ;;  %v6555_v20 = vrot.slane %v6553_v15, 1  ;;  %v6558_v0 = vshll.u32 %v15247_v55, 16  ;;  %v15248_v31 = vld [vmem:[#allocation3 + $0xbc] ss:$0 sps:$4 sm:$0x11]  }
 0x422   : > { %v7521_v34 = vrot.slane %v7519_v60, 1  ;;  %v6082_v29 = vsel %vm2312_vm7, %v6080_v19, %v6081_v9  ;;  %v15249_v18 = vld [vmem:[#allocation3 + $0xb4] sm:$0xff]   ;;  %v7839_v35 = vrot.slane %v15248_v31, 1  ;;  %v15251_v62 = vld [vmem:[#allocation3 + $0xb0] ss:$0 sps:$4 sm:$0x11]  }
 0x423   : > { %v17546_v14 = vpop.permute.xlu0 %6962  ;;  %6288 = vrot.lane.b32.xlu1 %v15240_v52, %s15834_s27  ;;  %v6556_v63 = vor.u32 %v6555_v20, %v6551_v49  ;;  %v6560_v57 = vrot.slane %v6558_v0, 1  ;;  %v7885_v43 = vld [vmem:[#allocation4 + $0x30] sm:$0xff]  ;;  %v5775_v50 = vshrl.u32 %v15250_v59, 16  ;;  %v5777_v28 = vshll.u32 %v15250_v59, 16  ;;  %v15252_v37 = vld [vmem:[#allocation3 + $0xb4] sm:$0xfe]  }
 0x424   : > { %v7522_v45 = vsel %vm1878_vm8, %v7517_v54, %v7521_v34  ;;  %v7840_v8 = vsel %vm2312_vm7, %v7838_v13, %v7839_v35  ;;  %8175 = vmatmul.mubr.bf16.gmra.mrb[76].mxu0 %v7885_v43  ;;  %v5782_v56 = vshll.u32 %v15251_v62, 16  ;;  %v15253_v44 = vld [vmem:[#allocation3 + $0xbc] ss:$0 sps:$4 sm:$0x11]   ;;  %v6944_v58 = vrot.slane %v15252_v37, 1  ;;  %v15258_v52 = vld [vmem:[#allocation3 + $0xb4] sm:$0xff]  }
 0x425   : > { %v17548_v5 = vpop.permute.xlu1 %6274  ;;  %7583 = vrot.lane.b32.xlu0 %v7522_v45, %s15834_s27  ;;  %v6561_v26 = vsel %vm1878_vm8, %v6556_v63, %v6560_v57  ;;  %7876 = vst.msk [vmem:[#allocation4 + $0x148] sm:$0xff] %vm815_vm0, %v7840_v8  ;;  %v15255_v47 = vld [vmem:[#allocation3 + $0x3c] sm:$0xff]   ;;  %v5779_v41 = vrot.slane %v5777_v28, 1  ;;  %v6945_v42 = vrot.slane %v15253_v44, 1  ;;  %v15260_v36 = vld [vmem:[#allocation3 + $0xb4] sm:$0xff]   ;;  %v7524_v15 = vshrl.u32 %v15258_v52, 16 }
 0x426   : > { %6714 = vst.msk [vmem:[#allocation4 + $0x68] sm:$0xff] %vm815_vm0, %v6561_v26  ;;  %v5784_v13 = vrot.slane %v5782_v56, 1  ;;  %5419 = vst.msk [vmem:[#allocation4 + $0x78] sm:$0xff] %vm815_vm0, %v15255_v47  ;;  %v15257_v30 = vld [vmem:[#allocation3 + $0xc8] ss:$0 sps:$4 sm:$0x11]  }
 0x427   : > { %v17559_v32 = vpop.permute.xlu0 %7569  ;;  %v7917_v48 = vld [vmem:[#allocation4 + $0x130] sm:$0xff]  ;;  %6114 = vrot.lane.b32.xlu1 %v6082_v29, %s15832_s21  ;;  %7002 = vst.msk [vmem:[#allocation4 + $0x68] sm:$0xff] %vm2119_vm12, %v17471_v39  ;;  %v5780_v39 = vor.u32 %v5779_v41, %v5775_v50  ;;  %5851 = vst.msk [vmem:[#allocation4 + $0x78] sm:$0xff] %vm2119_vm12, %v17499_v17  ;;  %v6946_v11 = vsel %vm2312_vm7, %v6944_v58, %v6945_v42  ;;  %v15254_v61 = vld [vmem:[#allocation3 + $0xb4] sm:$0xff]   ;;  %v7842_v46 = vrot.slane %v15257_v30, 1  ;;  %v5787_v19 = vshrl.u32 %v15260_v36, 16 }
 0x428   : > { %14616 = vmatprep.mubr.msk.bf16.mxu1 %vm815_vm0, %v7917_v48  ;;  %7179 = vst.msk [vmem:[#allocation4 + $0x68] sm:$0xff] %vm2409_vm13, %v17493_v33  ;;  %6139 = vst.msk [vmem:[#allocation4 + $0x78] sm:$0xff] %vm2409_vm13, %v17485_v4  ;;  %v15256_v33 = vld [vmem:[#allocation3 + $0xc0] sm:$0xfe]   ;;  %v7526_v4 = vshll.u32 %v15258_v52, 16  ;;  %v5789_v20 = vshll.u32 %v15260_v36, 16 }
 0x429   : > { %v17561_v51 = vpop.permute.xlu1 %6100  ;;  %7153 = vrot.lane.b32.xlu0 %v15249_v18, %s15832_s21  ;;  %7611 = vst.msk [vmem:[#allocation4 + $0x68] sm:$0xff] %vm2586_vm14, %v17524_v23  ;;  %v5785_v60 = vsel %vm1878_vm8, %v5780_v39, %v5784_v13  ;;  %6315 = vst.msk [vmem:[#allocation4 + $0x78] sm:$0xff] %vm2586_vm14, %v17508_v38  ;;  %v7841_v17 = vrot.slane %v15256_v33, 1  ;;  %v15259_v54 = vld [vmem:[#allocation3 + $0xbc] ss:$0 sps:$4 sm:$0x11]  }
 0x42a   : > { %v7531_v55 = vshll.u32 %v15259_v54, 16  ;;  %v15261_v48 = vld [vmem:[#allocation3 + $0xbc] ss:$0 sps:$4 sm:$0x11]   ;;  %v7528_v38 = vrot.slane %v7526_v4, 1  ;;  %v15262_v29 = vld [vmem:[#allocation3 + $0x48] sm:$0xff]  }
 0x42b   : > { %v17575_v10 = vpop.permute.xlu0 %7139  ;;  %5826 = vrot.lane.b32.xlu1 %v5785_v60, %s15833_s28  ;;  %v7843_v9 = vsel %vm2312_vm7, %v7841_v17, %v7842_v46  ;;  %v5794_v45 = vshll.u32 %v15261_v48, 16  ;;  %v7889_v0 = vld [vmem:[#allocation4 + $0x50] sm:$0xff]  ;;  %v5791_v18 = vrot.slane %v5789_v20, 1  ;;  %v15263_v57 = vld [vmem:[#allocation3 + $0x50] ss:$0 sps:$4 sm:$0x11]  }
 0x42c   : > { %v7920_v23 = vld [vmem:[#allocation4 + $0x148] sm:$0xff]  ;;  %7877 = vst.msk [vmem:[#allocation4 + $0x160] sm:$0xff] %vm815_vm0, %v7843_v9  ;;  %v7533_v16 = vrot.slane %v7531_v55, 1  ;;  %v7529_v63 = vor.u32 %v7528_v38, %v7524_v15  ;;  %8182 = vmatprep.mubr.bf16.mxu0 %v7889_v0  ;;  %v6563_v59 = vshrl.u32 %v15262_v29, 16  ;;  %v6565_v62 = vshll.u32 %v15262_v29, 16  ;;  %v15273_v48 = vld [vmem:[#allocation3 + $0x54] sm:$0xff]  }
 0x42d   : > { %v17580_v2 = vpop.permute.xlu1 %5812  ;;  %6978 = vrot.lane.b32.xlu0 %v6946_v11, %s15833_s28  ;;  %14617 = vmatmul.mubr.msk.bf16.gmra.mrb[84].mxu1 %vm815_vm0, %v7920_v23  ;;  %v5796_v35 = vrot.slane %v5794_v45, 1  ;;  %v5792_v26 = vor.u32 %v5791_v18, %v5787_v19  ;;  %v6570_v8 = vshll.u32 %v15263_v57, 16  ;;  %v7888_v50 = vld [vmem:[#allocation4 + $0x48] sm:$0xff]  ;;  %v15265_v37 = vld [vmem:[#allocation3 + $0xb4] sm:$0xfe]   ;;  %v6577_v45 = vshll.u32 %v15273_v48, 16 }
 0x42e   : > { %v7534_v43 = vsel %vm1878_vm8, %v7529_v63, %v7533_v16  ;;  %v6567_v28 = vrot.slane %v6565_v62, 1  ;;  %v15264_v56 = vld [vmem:[#allocation3 + $0xc0] sm:$0xff]   ;;  %8183 = vmatmul.mubr.bf16.gmra.mrb[80].mxu0 %v7888_v50  ;;  %v15266_v13 = vld [vmem:[#allocation3 + $0xbc] ss:$0 sps:$4 sm:$0x11]   ;;  %v6083_v42 = vrot.slane %v15265_v37, 1 }
 0x42f   : > { %v17583_v21 = vpop.permute.xlu0 %6964  ;;  %6290 = vrot.lane.b32.xlu1 %v15254_v61, %s15834_s27  ;;  %v5797_v47 = vsel %vm1878_vm8, %v5792_v26, %v5796_v35  ;;  %v6572_v41 = vrot.slane %v6570_v8, 1  ;;  %v6084_v39 = vrot.slane %v15266_v13, 1  ;;  %v15267_v11 = vld [vmem:[#allocation3 + $0xc0] sm:$0xfe]   ;;  %v15270_v61 = vld [vmem:[#allocation3 + $0x48] sm:$0xff]   ;;  %v6575_v16 = vshrl.u32 %v15273_v48, 16 }
 0x430   : > { %v6568_v52 = vor.u32 %v6567_v28, %v6563_v59  ;;  %v15268_v33 = vld [vmem:[#allocation3 + $0xc8] ss:$0 sps:$4 sm:$0x11]   ;;  %v6947_v60 = vrot.slane %v15267_v11, 1  ;;  %v15271_v17 = vld [vmem:[#allocation3 + $0xc0] sm:$0xff]   ;;  %5420 = vst.msk [vmem:[#allocation4 + $0x90] sm:$0xff] %vm815_vm0, %v15270_v61 }
 0x431   : > { %v17588_v27 = vpop.permute.xlu1 %6276  ;;  %7585 = vrot.lane.b32.xlu0 %v7534_v43, %s15834_s27  ;;  %v6085_v15 = vsel %vm2312_vm7, %v6083_v42, %v6084_v39  ;;  %v6948_v23 = vrot.slane %v15268_v33, 1  ;;  %v15269_v46 = vld [vmem:[#allocation3 + $0xc0] sm:$0xff]   ;;  %v15272_v19 = vld [vmem:[#allocation3 + $0xc8] ss:$0 sps:$4 sm:$0x11]   ;;  %v7536_v9 = vshrl.u32 %v15271_v17, 16 }
 0x432   : > { %v6573_v30 = vsel %vm1878_vm8, %v6568_v52, %v6572_v41  ;;  %v7538_v55 = vshll.u32 %v15271_v17, 16  ;;  %5852 = vst.msk [vmem:[#allocation4 + $0x90] sm:$0xff] %vm2119_vm12, %v17540_v40  ;;  %v7543_v38 = vshll.u32 %v15272_v19, 16  ;;  %v15274_v20 = vld [vmem:[#allocation3 + $0x5c] ss:$0 sps:$4 sm:$0x11]  }
 0x433   : > { %v7923_v58 = vld [vmem:[#allocation4 + $0x160] sm:$0xff]  ;;  %5828 = vrot.lane.b32.xlu1 %v5797_v47, %s15833_s28  ;;  %6715 = vst.msk [vmem:[#allocation4 + $0x80] sm:$0xff] %vm815_vm0, %v6573_v30  ;;  %v6949_v4 = vsel %vm2312_vm7, %v6947_v60, %v6948_v23  ;;  %v7892_v29 = vld [vmem:[#allocation4 + $0x68] sm:$0xff]  ;;  %v623_v40 = vld [vmem:[#allocation3 + $0xcc] sm:$0x1]  ;;  %v6582_v57 = vshll.u32 %v15274_v20, 16 }
 0x434   : > { %14620 = vmatprep.mubr.msk.bf16.mxu1 %vm815_vm0, %v7923_v58  ;;  %7003 = vst.msk [vmem:[#allocation4 + $0x80] sm:$0xff] %vm2119_vm12, %v17503_v1  ;;  %v7891_v0 = vld [vmem:[#allocation4 + $0x60] sm:$0xff]  ;;  %v7545_v18 = vrot.slane %v7543_v38, 1  ;;  %8190 = vmatprep.mubr.bf16.mxu0 %v7892_v29  ;;  %v15277_v35 = vld [vmem:[#allocation3 + $0xd4] ss:$0 sps:$4 sm:$0x11]  }
 0x435   : > { %v17603_v6 = vpop.permute.xlu1 %6102  ;;  %7155 = vrot.lane.b32.xlu0 %v15264_v56, %s15832_s21  ;;  %7180 = vst.msk [vmem:[#allocation4 + $0x80] sm:$0xff] %vm2409_vm13, %v17534_v24  ;;  %6140 = vst.msk [vmem:[#allocation4 + $0x90] sm:$0xff] %vm2409_vm13, %v17528_v12  ;;  %v7540_v24 = vrot.slane %v7538_v55, 1  ;;  %v624_v12 = vsel %vm16145_vm3, 0, %v623_v40  ;;  %v6579_v59 = vrot.slane %v6577_v45, 1  ;;  %v15278_v62 = vld [vmem:[#allocation3 + $0x54] sm:$0xff]  }
 0x436   : > { %7612 = vst.msk [vmem:[#allocation4 + $0x80] sm:$0xff] %vm2586_vm14, %v17559_v32  ;;  %6316 = vst.msk [vmem:[#allocation4 + $0x90] sm:$0xff] %vm2586_vm14, %v17548_v5  ;;  %8191 = vmatmul.mubr.bf16.gmra.mrb[84].mxu0 %v7891_v0  ;;  %v6584_v26 = vrot.slane %v6582_v57, 1  ;;  %v7555_v8 = vshll.u32 %v15277_v35, 16  ;;  %v15279_v28 = vld [vmem:[#allocation3 + $0x60] sm:$0xff]   ;;  %v7894_v33 = vld [vmem:[#allocation4 + $0x78] sm:$0xff] }
 0x437   : > { %v17592_v25 = vpop.permute.xlu0 %7571  ;;  %6116 = vrot.lane.b32.xlu1 %v6085_v15, %s15832_s21  ;;  %v7541_v32 = vor.u32 %v7540_v24, %v7536_v9  ;;  %625 = vst [vmem:[#allocation3 + $0xcc] sm:$0x1] %v624_v12  ;;  %v6580_v50 = vor.u32 %v6579_v59, %v6575_v16  ;;  %5421 = vst.msk [vmem:[#allocation4 + $0xa8] sm:$0xff] %vm815_vm0, %v15278_v62  ;;  %v15280_v56 = vld [vmem:[#allocation3 + $0x68] ss:$0 sps:$4 sm:$0x11]  }
 0x438   : > { %v17675_v47 = vrot.slane %v7555_v8, 1  ;;  %5853 = vst.msk [vmem:[#allocation4 + $0xa8] sm:$0xff] %vm2119_vm12, %v17580_v2  ;;  %v6587_v52 = vshrl.u32 %v15279_v28, 16  ;;  %v6589_v42 = vshll.u32 %v15279_v28, 16  ;;  %v6594_v39 = vshll.u32 %v15280_v56, 16  ;;  %v15281_v11 = vld [vmem:[#allocation3 + $0x60] sm:$0xff]  }
 0x439   : > { %6980 = vrot.lane.b32.xlu0 %v6949_v4, %s15833_s28  ;;  %v7546_v5 = vsel %vm1878_vm8, %v7541_v32, %v7545_v18  ;;  %v6585_v58 = vsel %vm1878_vm8, %v6580_v50, %v6584_v26  ;;  %6141 = vst.msk [vmem:[#allocation4 + $0xa8] sm:$0xff] %vm2409_vm13, %v17561_v51  ;;  %v15282_v15 = vld [vmem:[#allocation3 + $0x6c] sm:$0xff]   ;;  %v15283_v51 = vld [vmem:[#allocation3 + $0x74] ss:$0 sps:$4 sm:$0x11]   ;;  %v15287_v40 = vld [vmem:[#allocation3 + $0x78] sm:$0xff]  }
 0x43a   : > { %6716 = vst.msk [vmem:[#allocation4 + $0x98] sm:$0xff] %vm815_vm0, %v6585_v58  ;;  %v6591_v2 = vrot.slane %v6589_v42, 1  ;;  %v6596_v30 = vrot.slane %v6594_v39, 1  ;;  %5422 = vst.msk [vmem:[#allocation4 + $0xc0] sm:$0xff] %vm815_vm0, %v15281_v11  ;;  %v6606_v4 = vshll.u32 %v15283_v51, 16  ;;  %v15284_v19 = vld [vmem:[#allocation3 + $0x6c] sm:$0xff]  }
 0x43b   : > { %v17610_v22 = vpop.permute.xlu0 %7141  ;;  %6292 = vrot.lane.b32.xlu1 %v15269_v46, %s15834_s27  ;;  %6317 = vst.msk [vmem:[#allocation4 + $0xa8] sm:$0xff] %vm2586_vm14, %v17588_v27  ;;  %v6601_v46 = vshll.u32 %v15282_v15, 16  ;;  %v15286_v24 = vld [vmem:[#allocation3 + $0x80] ss:$0 sps:$4 sm:$0x11]   ;;  %v15288_v18 = vld [vmem:[#allocation3 + $0x84] sm:$0xff]  }
 0x43c   : > { %7004 = vst.msk [vmem:[#allocation4 + $0x98] sm:$0xff] %vm2119_vm12, %v17546_v14  ;;  %v6592_v17 = vor.u32 %v6591_v2, %v6587_v52  ;;  %v6599_v14 = vshrl.u32 %v15282_v15, 16  ;;  %v6618_v29 = vshll.u32 %v15286_v24, 16  ;;  %v6623_v62 = vshrl.u32 %v15288_v18, 16  ;;  %v15290_v26 = vld [vmem:[#allocation3 + $0x84] sm:$0xff]   ;;  %v15291_v50 = vld [vmem:[#allocation3 + $0x90] sm:$0xff]  }
 0x43d   : > { %7587 = vrot.lane.b32.xlu0 %v7546_v5, %s15834_s27  ;;  %v7895_v41 = vld [vmem:[#allocation4 + $0x80] sm:$0xff]  ;;  %7181 = vst.msk [vmem:[#allocation4 + $0x98] sm:$0xff] %vm2409_vm13, %v17575_v10  ;;  %v6603_v48 = vrot.slane %v6601_v46, 1  ;;  %v6625_v5 = vshll.u32 %v15288_v18, 16  ;;  %v6635_v42 = vshrl.u32 %v15291_v50, 16 }
 0x43e   : > { %v17622_v34 = vpop.permute.xlu1 %5814  ;;  %8198 = vmatprep.mubr.bf16.mxu0 %v7895_v41  ;;  %v15275_v23 = vld [vmem:[#allocation3 + $0xcc] sm:$0xff]   ;;  %7613 = vst.msk [vmem:[#allocation4 + $0x98] sm:$0xff] %vm2586_vm14, %v17592_v25  ;;  %v6597_v55 = vsel %vm1878_vm8, %v6592_v17, %v6596_v30  ;;  %v15285_v25 = vld [vmem:[#allocation3 + $0x78] sm:$0xff]   ;;  %v6620_v57 = vrot.slane %v6618_v29, 1  ;;  %v6637_v41 = vshll.u32 %v15291_v50, 16 }
 0x43f   : > { %v17626_v49 = vpop.permute.xlu0 %6966  ;;  %5854 = vst.msk [vmem:[#allocation4 + $0xc0] sm:$0xff] %vm2119_vm12, %v17622_v34  ;;  %v15276_v61 = vld [vmem:[#allocation3 + $0xcc] sm:$0xff]   ;;  %8199 = vmatmul.mubr.bf16.gmra.mrb[88].mxu0 %v7894_v33  ;;  %v6611_v20 = vshrl.u32 %v15285_v25, 16  ;;  %v6613_v16 = vshll.u32 %v15285_v25, 16  ;;  %v6627_v28 = vrot.slane %v6625_v5, 1  ;;  %v15294_v2 = vld [vmem:[#allocation3 + $0x9c] sm:$0xff]  }
 0x440   : > { %6142 = vst.msk [vmem:[#allocation4 + $0xc0] sm:$0xff] %vm2409_vm13, %v17603_v6  ;;  %v7548_v10 = vshrl.u32 %v15276_v61, 16  ;;  %v7550_v34 = vshll.u32 %v15276_v61, 16  ;;  %v6608_v6 = vrot.slane %v6606_v4, 1  ;;  %v6639_v11 = vrot.slane %v6637_v41, 1  ;;  %v15300_v29 = vld [vmem:[#allocation3 + $0xb4] sm:$0xff]  }
 0x441   : > { %7157 = vrot.lane.b32.xlu0 %v15275_v23, %s15832_s21  ;;  %5423 = vst.msk [vmem:[#allocation4 + $0xd8] sm:$0xff] %vm815_vm0, %v15284_v19  ;;  %6717 = vst.msk [vmem:[#allocation4 + $0xb0] sm:$0xff] %vm815_vm0, %v6597_v55  ;;  %v6628_v58 = vor.u32 %v6627_v28, %v6623_v62  ;;  %v6649_v23 = vshll.u32 %v15294_v2, 16  ;;  %v6647_v17 = vshrl.u32 %v15294_v2, 16  ;;  %v7926_v28 = vld [vmem:[#allocation4 + $0x178] sm:$0xff] }
 0x442   : > { %v17630_v31 = vpop.permute.xlu1 %6278  ;;  %v7552_v38 = vrot.slane %v7550_v34, 1  ;;  %7005 = vst.msk [vmem:[#allocation4 + $0xb0] sm:$0xff] %vm2119_vm12, %v17583_v21  ;;  %v6615_v21 = vrot.slane %v6613_v16, 1  ;;  %v7900_v15 = vld [vmem:[#allocation4 + $0xa8] sm:$0xff]  ;;  %v6640_v51 = vor.u32 %v6639_v11, %v6635_v42  ;;  %14621 = vmatmul.mubr.msk.bf16.gmra.mrb[88].mxu1 %vm815_vm0, %v7926_v28 }
 0x443   : > { %v17634_v44 = vpop.permute.xlu0 %7573  ;;  %6318 = vst.msk [vmem:[#allocation4 + $0xc0] sm:$0xff] %vm2586_vm14, %v17630_v31  ;;  %v6604_v31 = vor.u32 %v6603_v48, %v6599_v14  ;;  %v15296_v14 = vld [vmem:[#allocation3 + $0x9c] sm:$0xff]   ;;  %v6651_v19 = vrot.slane %v6649_v23, 1  ;;  %v15298_v24 = vld [vmem:[#allocation3 + $0xb0] ss:$0 sps:$4 sm:$0x11]  }
 0x444   : > { %7182 = vst.msk [vmem:[#allocation4 + $0xb0] sm:$0xff] %vm2409_vm13, %v17610_v22  ;;  %v15289_v22 = vld [vmem:[#allocation3 + $0x8c] ss:$0 sps:$4 sm:$0x11]   ;;  %v6616_v59 = vor.u32 %v6615_v21, %v6611_v20 }
 0x445   : > { %v6609_v0 = vsel %vm1878_vm8, %v6604_v31, %v6608_v6  ;;  %7614 = vst.msk [vmem:[#allocation4 + $0xb0] sm:$0xff] %vm2586_vm14, %v17634_v44  ;;  %v7897_v44 = vld [vmem:[#allocation4 + $0x90] sm:$0xff]  ;;  %v6630_v8 = vshll.u32 %v15289_v22, 16  ;;  %v6652_v48 = vor.u32 %v6651_v19, %v6647_v17  ;;  %v15301_v18 = vld [vmem:[#allocation3 + $0xbc] ss:$0 sps:$4 sm:$0x11]  }
 0x446   : > { %6718 = vst.msk [vmem:[#allocation4 + $0xc8] sm:$0xff] %vm815_vm0, %v6609_v0  ;;  %5424 = vst.msk [vmem:[#allocation4 + $0xf0] sm:$0xff] %vm815_vm0, %v15287_v40  ;;  %v6666_v0 = vshll.u32 %v15298_v24, 16  ;;  %v6673_v22 = vshll.u32 %v15300_v29, 16  ;;  %v6678_v62 = vshll.u32 %v15301_v18, 16 }
 0x447   : > { %v17648_v54 = vpop.permute.xlu0 %7143  ;;  %v17666_v63 = vpop.f32.mrb[60].mxu1  ;;  %7006 = vst.msk [vmem:[#allocation4 + $0xc8] sm:$0xff] %vm2119_vm12, %v17626_v49  ;;  %v6621_v49 = vsel %vm1878_vm8, %v6616_v59, %v6620_v57  ;;  %v6632_v52 = vrot.slane %v6630_v8, 1  ;;  %v6671_v57 = vshrl.u32 %v15300_v29, 16  ;;  %v15303_v8 = vld [vmem:[#allocation3 + $0xc0] sm:$0xff]  }
 0x448   : > { %v17638_v36 = vpop.permute.xlu1 %6104  ;;  %v17679_v13 = vpop.f32.mrb[61].mxu1  ;;  %7183 = vst.msk [vmem:[#allocation4 + $0xc8] sm:$0xff] %vm2409_vm13, %v17648_v54  ;;  %v15292_v54 = vld [vmem:[#allocation3 + $0x98] ss:$0 sps:$4 sm:$0x11]   ;;  %v6683_v11 = vshrl.u32 %v15303_v8, 16 }
 0x449   : > { %v17696_v27 = vpop.f32.mrb[62].mxu1  ;;  %5425 = vst.msk [vmem:[#allocation4 + $0x108] sm:$0xff] %vm815_vm0, %v15290_v26  ;;  %6719 = vst.msk [vmem:[#allocation4 + $0xe0] sm:$0xff] %vm815_vm0, %v6621_v49  ;;  %v6642_v33 = vshll.u32 %v15292_v54, 16  ;;  %v6633_v30 = vsel %vm1878_vm8, %v6628_v58, %v6632_v52  ;;  %v6675_v26 = vrot.slane %v6673_v22, 1 }
 0x44a   : > { %v17722_v12 = vpop.f32.mrb[63].mxu1  ;;  %6720 = vst.msk [vmem:[#allocation4 + $0xf8] sm:$0xff] %vm815_vm0, %v6633_v30  ;;  %5427 = vst.msk [vmem:[#allocation4 + $0x138] sm:$0xff] %vm815_vm0, %v15296_v14  ;;  %v7903_v21 = vld [vmem:[#allocation4 + $0xc0] sm:$0xff]  ;;  %v15305_v54 = vld [vmem:[#allocation3 + $0xcc] sm:$0xfe]  }
 0x44b   : > { %v15304_v49 = vld [vmem:[#allocation3 + $0xc8] ss:$0 sps:$4 sm:$0x11]   ;;  %v15306_v58 = vld [vmem:[#allocation3 + $0xd4] ss:$0 sps:$4 sm:$0x11]  }
 0x44c   : > { %v7901_v39 = vld [vmem:[#allocation4 + $0xb0] sm:$0xff]  ;;  %v6690_v41 = vshll.u32 %v15304_v49, 16  ;;  %v12064_v2 = vrot.slane %v15305_v54, 1  ;;  %v12065_v30 = vrot.slane %v15306_v58, 1 }
 0x44e   : > { %v17659_v1 = vpop.permute.xlu1 %5816  ;;  %v17670_v43 = vpop.permute.xlu0 %6968 }
 0x44f   : > { %5855 = vst.msk [vmem:[#allocation4 + $0xd8] sm:$0xff] %vm2119_vm12, %v17659_v1  ;;  %v7553_v1 = vor.u32 %v7552_v38, %v7548_v10  ;;  %7007 = vst.msk [vmem:[#allocation4 + $0xe0] sm:$0xff] %vm2119_vm12, %v17670_v43  ;;  %v15295_v43 = vld [vmem:[#allocation3 + $0xa4] ss:$0 sps:$4 sm:$0x11]   ;;  %v15297_v10 = vld [vmem:[#allocation3 + $0xa8] sm:$0xff]  }
 0x450   : > { %6143 = vst.msk [vmem:[#allocation4 + $0xd8] sm:$0xff] %vm2409_vm13, %v17638_v36  ;;  %v7898_v36 = vld [vmem:[#allocation4 + $0x98] sm:$0xff]  ;;  %v6659_v38 = vshrl.u32 %v15297_v10, 16  ;;  %v6661_v16 = vshll.u32 %v15297_v10, 16 }
 0x451   : > { %v7558_v35 = vsel %vm1878_vm8, %v7553_v1, %v17675_v47  ;;  %8206 = vmatprep.mubr.bf16.mxu0 %v7898_v36  ;;  %v15293_v47 = vld [vmem:[#allocation3 + $0x90] sm:$0xff]   ;;  %v6668_v36 = vrot.slane %v6666_v0, 1 }
 0x452   : > { %v6281_v37 = vpop.permute.xlu1 %6280  ;;  %7589 = vrot.lane.b32.xlu0 %v7558_v35, %s15834_s27  ;;  %8207 = vmatmul.mubr.bf16.gmra.mrb[92].mxu0 %v7897_v44  ;;  %5426 = vst.msk [vmem:[#allocation4 + $0x120] sm:$0xff] %vm815_vm0, %v15293_v47  ;;  %v15302_v35 = vld [vmem:[#allocation3 + $0xb4] sm:$0xff]   ;;  %v6685_v47 = vshll.u32 %v15303_v8, 16 }
 0x453   : > { %v17690_v60 = vpop.permute.xlu0 %7575  ;;  %6319 = vst.msk [vmem:[#allocation4 + $0xd8] sm:$0xff] %vm2586_vm14, %v6281_v37  ;;  %8214 = vmatprep.mubr.bf16.mxu0 %v7901_v39 }
 0x454   : > { %7615 = vst.msk [vmem:[#allocation4 + $0xc8] sm:$0xff] %vm2586_vm14, %v17690_v60  ;;  %v6644_v60 = vrot.slane %v6642_v33, 1  ;;  %v6687_v33 = vrot.slane %v6685_v47, 1 }
 0x455   : > { %5429 = vst.msk [vmem:[#allocation4 + $0x168] sm:$0xff] %vm815_vm0, %v15302_v35 }
 0x456   : > { %v6107_v9 = vpop.permute.xlu1 %6106  ;;  %v6645_v4 = vsel %vm1878_vm8, %v6640_v51, %v6644_v60  ;;  %v6692_v51 = vrot.slane %v6690_v41, 1 }
 0x457   : > { %v7146_v45 = vpop.permute.xlu0 %7145  ;;  %6721 = vst.msk [vmem:[#allocation4 + $0x110] sm:$0xff] %vm815_vm0, %v6645_v4 }
 0x458   : > { %7184 = vst.msk [vmem:[#allocation4 + $0xe0] sm:$0xff] %vm2409_vm13, %v7146_v45  ;;  %v15299_v45 = vld [vmem:[#allocation3 + $0xa8] sm:$0xff]  }
 0x459   : > { %5428 = vst.msk [vmem:[#allocation4 + $0x150] sm:$0xff] %vm815_vm0, %v15299_v45 }
 0x45a   : > { %8215 = vmatmul.mubr.bf16.gmra.mrb[96].mxu0 %v7900_v15  ;;  %v6688_v15 = vor.u32 %v6687_v33, %v6683_v11  ;;  %v7906_v60 = vld [vmem:[#allocation4 + $0xd8] sm:$0xff] }
 0x45b   : > { %v7904_v46 = vld [vmem:[#allocation4 + $0xc8] sm:$0xff] }
 0x45c   : > { %8222 = vmatprep.mubr.bf16.mxu0 %v7904_v46  ;;  %v6693_v23 = vsel %vm1878_vm8, %v6688_v15, %v6692_v51  ;;  %v8448_v15 = vld [vmem:[#allocation2 + $0xc] sm:$0xf] }
 0x45d   : > { %6725 = vst.msk [vmem:[#allocation4 + $0x170] sm:$0xff] %vm815_vm0, %v6693_v23  ;;  %v15332_v51 = vld [vmem:[#allocation15 + $0x80] sm:$0xff]  }
 0x45e   : > { %14624 = vmatprep.subr.bf16.mxu0 %v15332_v51 }
 0x45f   : > { %v5819_v32 = vpop.permute.xlu1 %5818  ;;  %14625 = vmatpush3.bf16.msra.mxu0 %v15332_v51 }
 0x460   : > { %5856 = vst.msk [vmem:[#allocation4 + $0xf0] sm:$0xff] %vm2119_vm12, %v5819_v32  ;;  %v6971_v56 = vpop.permute.xlu0 %6970  ;;  %v6663_v32 = vrot.slane %v6661_v16, 1 }
 0x461   : > { %6144 = vst.msk [vmem:[#allocation4 + $0xf0] sm:$0xff] %vm2409_vm13, %v6107_v9  ;;  %v6654_v9 = vshll.u32 %v15295_v43, 16  ;;  %v12066_v43 = vsel %vm2312_vm7, %v12064_v2, %v12065_v30 }
 0x462   : > { %7008 = vst.msk [vmem:[#allocation4 + $0xf8] sm:$0xff] %vm2119_vm12, %v6971_v56  ;;  %v6664_v59 = vor.u32 %v6663_v32, %v6659_v38  ;;  %8223 = vmatmul.mubr.bf16.gmra.mrb[100].mxu0 %v7903_v21  ;;  %v6676_v56 = vor.u32 %v6675_v26, %v6671_v57  ;;  %v15307_v38 = vld [vmem:[#allocation3] sm:$0xff]  }
 0x463   : > { %v6283_v37 = vpop.permute.xlu1 %6282  ;;  %v6656_v25 = vrot.slane %v6654_v9, 1  ;;  %12098 = vst.msk [vmem:[#allocation4 + $0x178] sm:$0xff] %vm815_vm0, %v12066_v43  ;;  %v9828_v45 = vshrl.u32 %v15307_v38, 16  ;;  %v9830_v29 = vshll.u32 %v15307_v38, 16  ;;  %v8449_v43 = vld [vmem:[#allocation2 + $0x10] sm:$0xf] }
 0x464   : > { %6320 = vst.msk [vmem:[#allocation4 + $0xf0] sm:$0xff] %vm2586_vm14, %v6283_v37  ;;  %v6669_v50 = vsel %vm1878_vm8, %v6664_v59, %v6668_v36  ;;  %v6680_v37 = vrot.slane %v6678_v62, 1  ;;  %v15310_v59 = vld [vmem:[#allocation3 + $0x8] ss:$0 sps:$4 sm:$0x11]  }
 0x465   : > { %v6657_v40 = vsel %vm1878_vm8, %v6652_v48, %v6656_v25  ;;  %6723 = vst.msk [vmem:[#allocation4 + $0x140] sm:$0xff] %vm815_vm0, %v6669_v50  ;;  %v9832_v0 = vrot.slane %v9830_v29, 1  ;;  %v10260_v26 = vrot.slane %v15310_v59, 1 }
 0x466   : > { %6722 = vst.msk [vmem:[#allocation4 + $0x128] sm:$0xff] %vm815_vm0, %v6657_v40  ;;  %v6681_v39 = vsel %vm1878_vm8, %v6676_v56, %v6680_v37 }
 0x467   : > { %6724 = vst.msk [vmem:[#allocation4 + $0x158] sm:$0xff] %vm815_vm0, %v6681_v39  ;;  %v9833_v36 = vor.u32 %v9832_v0, %v9828_v45  ;;  %v8452_v0 = vld [vmem:[#allocation2 + $0x1c] sm:$0xf] }
 0x46b   : > { %v6109_v55 = vpop.permute.xlu1 %6108  ;;  %v7909_v4 = vld [vmem:[#allocation4 + $0xf0] sm:$0xff] }
 0x46c   : > { %v7578_v61 = vpop.permute.xlu0 %7577 }
 0x46d   : > { %7616 = vst.msk [vmem:[#allocation4 + $0xe0] sm:$0xff] %vm2586_vm14, %v7578_v61 }
 0x470   : > { %v7148_v31 = vpop.permute.xlu0 %7147 }
 0x471   : > { %7185 = vst.msk [vmem:[#allocation4 + $0xf8] sm:$0xff] %vm2409_vm13, %v7148_v31  ;;  %v15308_v31 = vld [vmem:[#allocation3 + $0x8] ss:$0 sps:$4 sm:$0x11]  }
 0x472   : > { %v17749_v34 = vpop.f32.mrb[64].mxu1  ;;  %v9835_v40 = vshll.u32 %v15308_v31, 16 }
 0x473   : > { %v17752_v6 = vpop.f32.mrb[65].mxu1 }
 0x474   : > { %v17754_v20 = vpop.f32.mrb[66].mxu1  ;;  %v7907_v44 = vld [vmem:[#allocation4 + $0xe0] sm:$0xff]  ;;  %v5821_v5 = vpop.permute.xlu1 %5820  ;;  %v9837_v21 = vrot.slane %v9835_v40, 1  ;;  %v8451_v40 = vld [vmem:[#allocation2 + $0x18] sm:$0xf] }
 0x475   : > { %v17758_v1 = vpop.f32.mrb[67].mxu1  ;;  %5857 = vst.msk [vmem:[#allocation4 + $0x108] sm:$0xff] %vm2119_vm12, %v5821_v5  ;;  %8230 = vmatprep.mubr.bf16.mxu0 %v7907_v44  ;;  %v15309_v44 = vld [vmem:[#allocation3] sm:$0xfe]  }
 0x476   : > { %6145 = vst.msk [vmem:[#allocation4 + $0x108] sm:$0xff] %vm2409_vm13, %v6109_v55  ;;  %v6973_v52 = vpop.permute.xlu0 %6972  ;;  %8231 = vmatmul.mubr.bf16.gmra.mrb[104].mxu0 %v7906_v60  ;;  %v9838_v57 = vsel %vm1878_vm8, %v9833_v36, %v9837_v21  ;;  %v10259_v5 = vrot.slane %v15309_v44, 1  ;;  %v8454_v21 = vld [vmem:[#allocation2 + $0x24] sm:$0xf]  ;;  %v8524_v36 = vshrl.u32 %v8451_v40, 16 }
 0x477   : > { %7009 = vst.msk [vmem:[#allocation4 + $0x110] sm:$0xff] %vm2119_vm12, %v6973_v52  ;;  %10019 = vrot.lane.b32.xlu1 %v9838_v57, %s15833_s28  ;;  %v8527_v57 = vshll.u32 %v8451_v40, 16  ;;  %v8450_v44 = vld [vmem:[#allocation2 + $0x14] sm:$0x1]  ;;  %v8461_v40 = vld [vmem:[#allocation2 + $0x40] sm:$0xf] }
 0x478   : > { %v6285_v42 = vpop.permute.xlu1 %6284  ;;  %v10261_v50 = vsel %vm2312_vm7, %v10259_v5, %v10260_v26  ;;  %v8537_v5 = vshrl.u32 %v8452_v0, 16  ;;  %v8548_v26 = vshrl.u32 %v8454_v21, 16 }
 0x479   : > { %6321 = vst.msk [vmem:[#allocation4 + $0x108] sm:$0xff] %vm2586_vm14, %v6285_v42 }
 0x47b   : > { %10307 = vrot.lane.b32.xlu1 %v10261_v50, %s15832_s21  ;;  %v8458_v50 = vld [vmem:[#allocation2 + $0x34] sm:$0xf] }
 0x47c   : > { %v6111_v14 = vpop.permute.xlu1 %6110  ;;  %v8585_v51 = vshrl.u32 %v8458_v50, 16 }
 0x47d   : > { %v7580_v61 = vpop.permute.xlu0 %7579 }
 0x47e   : > { %7617 = vst.msk [vmem:[#allocation4 + $0xf8] sm:$0xff] %vm2586_vm14, %v7580_v61  ;;  %v8500_v61 = vshrl.u32 %v8448_v15, 16 }
 0x480   : > { %v7912_v35 = vld [vmem:[#allocation4 + $0x108] sm:$0xff]  ;;  %v8502_v31 = vrot.slane %v8500_v61, 4 }
 0x481   : > { %v7150_v17 = vpop.permute.xlu0 %7149 }
 0x482   : > { %7186 = vst.msk [vmem:[#allocation4 + $0x110] sm:$0xff] %vm2409_vm13, %v7150_v17  ;;  %v8503_v17 = vshll.u32 %v8448_v15, 16  ;;  %v8581_v15 = vshll.u32 %v8458_v50, 16 }
 0x485   : > { %v7910_v46 = vld [vmem:[#allocation4 + $0xf8] sm:$0xff]  ;;  %v5823_v19 = vpop.permute.xlu1 %5822  ;;  %v6975_v9 = vpop.permute.xlu0 %6974 }
 0x486   : > { %8238 = vmatprep.mubr.bf16.mxu0 %v7910_v46  ;;  %5858 = vst.msk [vmem:[#allocation4 + $0x120] sm:$0xff] %vm2119_vm12, %v5823_v19  ;;  %7010 = vst.msk [vmem:[#allocation4 + $0x128] sm:$0xff] %vm2119_vm12, %v6975_v9  ;;  %v8513_v46 = vshrl.u32 %v8449_v43, 16  ;;  %v15337_v9 = vld [vmem:[#allocation15 + $0x88] sm:$0xff]  }
 0x487   : > { %8239 = vmatmul.mubr.bf16.gmra.mrb[108].mxu0 %v7909_v4  ;;  %6146 = vst.msk [vmem:[#allocation4 + $0x120] sm:$0xff] %vm2409_vm13, %v6111_v14  ;;  %v8509_v14 = vshll.u32 %v8449_v43, 16  ;;  %14626 = vmatprep.subr.bf16.mxu0 %v15337_v9 }
 0x488   : > { %v8515_v29 = vrot.slane %v8513_v46, 4  ;;  %14627 = vmatpush3.bf16.msra.mxu0 %v15337_v9 }
 0x489   : > { %v6287_v25 = vpop.permute.xlu1 %6286  ;;  %v17820_v45 = vrot.slane %v8509_v14, 5 }
 0x48a   : > { %6322 = vst.msk [vmem:[#allocation4 + $0x120] sm:$0xff] %vm2586_vm14, %v6287_v25  ;;  %v7582_v16 = vpop.permute.xlu0 %7581 }
 0x48b   : > { %v17780_v10 = vpop.f32.mrb[68].mxu1  ;;  %7618 = vst.msk [vmem:[#allocation4 + $0x110] sm:$0xff] %vm2586_vm14, %v7582_v16  ;;  %v8505_v16 = vrot.slane %v8503_v17, 5  ;;  %v8516_v59 = vor.u32 %v8515_v29, %v17820_v45  ;;  %v8460_v17 = vld [vmem:[#allocation2 + $0x3c] sm:$0xf] }
 0x48c   : > { %19134 = vst [vmem:[#allocation23_spill] sm:$0xff] %v17780_v10  ;;  %v17783_v55 = vpop.f32.mrb[69].mxu1  ;;  %v8459_v29 = vld [vmem:[#allocation2 + $0x38] sm:$0x1] }
 0x48d   : > { %19135 = vst [vmem:[#allocation24_spill] sm:$0xff] %v17783_v55  ;;  %v17785_v48 = vpop.f32.mrb[70].mxu1  ;;  %v6113_v32 = vpop.permute.xlu1 %6112 }
 0x48e   : > { %19136 = vst [vmem:[#allocation25_spill] sm:$0xff] %v17785_v48  ;;  %v17787_v24 = vpop.f32.mrb[71].mxu1  ;;  %v7152_v18 = vpop.permute.xlu0 %7151 }
 0x48f   : > { %19137 = vst [vmem:[#allocation26_spill] sm:$0xff] %v17787_v24  ;;  %7187 = vst.msk [vmem:[#allocation4 + $0x128] sm:$0xff] %vm2409_vm13, %v7152_v18  ;;  %v8506_v18 = vor.u32 %v8505_v16, %v8502_v31 }
 0x491   : > { %v5825_v62 = vpop.permute.xlu1 %5824  ;;  %v7915_v52 = vld [vmem:[#allocation4 + $0x120] sm:$0xff] }
 0x492   : > { %v7913_v22 = vld [vmem:[#allocation4 + $0x110] sm:$0xff]  ;;  %5859 = vst.msk [vmem:[#allocation4 + $0x138] sm:$0xff] %vm2119_vm12, %v5825_v62  ;;  %v6977_v8 = vpop.permute.xlu0 %6976  ;;  %v8533_v62 = vshll.u32 %v8452_v0, 16 }
 0x493   : > { %8246 = vmatprep.mubr.bf16.mxu0 %v7913_v22  ;;  %6147 = vst.msk [vmem:[#allocation4 + $0x138] sm:$0xff] %vm2409_vm13, %v6113_v32  ;;  %v8455_v22 = vld [vmem:[#allocation2 + $0x28] sm:$0xf] }
 0x494   : > { %8247 = vmatmul.mubr.bf16.gmra.mrb[112].mxu0 %v7912_v35  ;;  %7011 = vst.msk [vmem:[#allocation4 + $0x140] sm:$0xff] %vm2119_vm12, %v6977_v8  ;;  %v8457_v35 = vld [vmem:[#allocation2 + $0x30] sm:$0xf]  ;;  %v8551_v8 = vshll.u32 %v8454_v21, 16 }
 0x495   : > { %v6289_v49 = vpop.permute.xlu1 %6288 }
 0x496   : > { %6323 = vst.msk [vmem:[#allocation4 + $0x138] sm:$0xff] %vm2586_vm14, %v6289_v49  ;;  %v8453_v49 = vld [vmem:[#allocation2 + $0x20] sm:$0x1]  ;;  %v8553_v61 = vrot.slane %v8551_v8, 5 }
 0x497   : > { %v7584_v28 = vpop.permute.xlu0 %7583  ;;  %v8543_v43 = vshll.u32 %v8453_v49, 16  ;;  %v8591_v49 = vshll.u32 %v8459_v29, 16 }
 0x498   : > { %7619 = vst.msk [vmem:[#allocation4 + $0x128] sm:$0xff] %vm2586_vm14, %v7584_v28  ;;  %v8557_v28 = vshll.u32 %v8455_v22, 16 }
 0x499   : > { %v6115_v37 = vpop.permute.xlu1 %6114 }
 0x49a   : > { %v17830_v46 = vrot.slane %v8557_v28, 5  ;;  %v8605_v28 = vshll.u32 %v8461_v40, 16 }
 0x49b   : > { %v7154_v56 = vpop.permute.xlu0 %7153 }
 0x49c   : > { %7188 = vst.msk [vmem:[#allocation4 + $0x140] sm:$0xff] %vm2409_vm13, %v7154_v56  ;;  %v8561_v56 = vshrl.u32 %v8455_v22, 16  ;;  %v8599_v22 = vshll.u32 %v8460_v17, 16 }
 0x49d   : > { %v5827_v11 = vpop.permute.xlu1 %5826  ;;  %v7918_v25 = vld [vmem:[#allocation4 + $0x138] sm:$0xff] }
 0x49e   : > { %5860 = vst.msk [vmem:[#allocation4 + $0x150] sm:$0xff] %vm2119_vm12, %v5827_v11  ;;  %v8526_v11 = vrot.slane %v8524_v36, 4  ;;  %v8587_v36 = vrot.slane %v8585_v51, 4  ;;  %v17865_v51 = vrot.slane %v8599_v22, 5 }
 0x49f   : > { %v7916_v41 = vld [vmem:[#allocation4 + $0x128] sm:$0xff]  ;;  %v6979_v39 = vpop.permute.xlu0 %6978  ;;  %6148 = vst.msk [vmem:[#allocation4 + $0x150] sm:$0xff] %vm2409_vm13, %v6115_v37  ;;  %v8572_v37 = vshrl.u32 %v8457_v35, 16 }
 0x4a0   : > { %8254 = vmatprep.mubr.bf16.mxu0 %v7916_v41  ;;  %7012 = vst.msk [vmem:[#allocation4 + $0x158] sm:$0xff] %vm2119_vm12, %v6979_v39  ;;  %v8575_v41 = vshll.u32 %v8457_v35, 16  ;;  %v8519_v39 = vshll.u32 %v8450_v44, 16 }
 0x4a1   : > { %8255 = vmatmul.mubr.bf16.gmra.mrb[116].mxu0 %v7915_v52  ;;  %v6291_v33 = vpop.permute.xlu1 %6290  ;;  %v17824_v52 = vrot.slane %v8506_v18, 4  ;;  %v8574_v9 = vrot.slane %v8572_v37, 4  ;;  %v17843_v18 = vrot.slane %v8581_v15, 5 }
 0x4a2   : > { %6324 = vst.msk [vmem:[#allocation4 + $0x150] sm:$0xff] %vm2586_vm14, %v6291_v33  ;;  %v8529_v33 = vrot.slane %v8527_v57, 5  ;;  %v8596_v57 = vshrl.u32 %v8460_v17, 16  ;;  %v8521_v44 = vrot.slane %v8519_v39, 5 }
 0x4a3   : > { %v7586_v2 = vpop.permute.xlu0 %7585  ;;  %v8512_v37 = vsel %vm17839_vm2, %v17824_v52, %v17820_v45 }
 0x4a4   : > { %7620 = vst.msk [vmem:[#allocation4 + $0x140] sm:$0xff] %vm2586_vm14, %v7586_v2  ;;  %v17826_v2 = vrot.slane %v8516_v59, 4  ;;  %v8530_v16 = vor.u32 %v8529_v33, %v8526_v11  ;;  %v17860_v11 = vrot.slane %v8543_v43, 5  ;;  %v8588_v33 = vor.u32 %v8587_v36, %v17843_v18  ;;  %v8469_v36 = vld [vmem:[#allocation2 + $0x60] sm:$0xf] }
 0x4a5   : > { %v5829_v30 = vpop.permute.xlu1 %5828  ;;  %v17863_v15 = vrot.slane %v8596_v57, 4 }
 0x4a6   : > { %5861 = vst.msk [vmem:[#allocation4 + $0x168] sm:$0xff] %vm2119_vm12, %v5829_v30  ;;  %v17828_v30 = vrot.slane %v8533_v62, 5  ;;  %v17858_v39 = vrot.slane %v8530_v16, 4  ;;  %v17886_v57 = vrot.slane %v8588_v33, 4 }
 0x4a7   : > { %v7156_v60 = vpop.permute.xlu0 %7155  ;;  %v8602_v22 = vor.u32 %v17865_v51, %v17863_v15 }
 0x4a8   : > { %7189 = vst.msk [vmem:[#allocation4 + $0x158] sm:$0xff] %vm2409_vm13, %v7156_v60  ;;  %v8539_v60 = vrot.slane %v8537_v5, 4 }
 0x4a9   : > { %v6117_v23 = vpop.permute.xlu1 %6116  ;;  %v7921_v0 = vld [vmem:[#allocation4 + $0x150] sm:$0xff] }
 0x4aa   : > { %6149 = vst.msk [vmem:[#allocation4 + $0x168] sm:$0xff] %vm2409_vm13, %v6117_v23  ;;  %v8550_v23 = vrot.slane %v8548_v26, 4  ;;  %v8540_v59 = vor.u32 %v8539_v60, %v17828_v30  ;;  %v8609_v60 = vshrl.u32 %v8461_v40, 16 }
 0x4ab   : > { %v6981_v4 = vpop.permute.xlu0 %6980  ;;  %v7919_v19 = vld [vmem:[#allocation4 + $0x140] sm:$0xff] }
 0x4ac   : > { %7013 = vst.msk [vmem:[#allocation4 + $0x170] sm:$0xff] %vm2119_vm12, %v6981_v4  ;;  %8262 = vmatprep.mubr.bf16.mxu0 %v7919_v19  ;;  %v8456_v4 = vld [vmem:[#allocation2 + $0x2c] sm:$0x1]  ;;  %v8563_v19 = vrot.slane %v8561_v56, 4  ;;  %v8554_v62 = vor.u32 %v8553_v61, %v8550_v23  ;;  %v8462_v56 = vld [vmem:[#allocation2 + $0x44] sm:$0x1] }
 0x4ad   : > { %v6293_v38 = vpop.permute.xlu1 %6292  ;;  %8263 = vmatmul.mubr.bf16.gmra.mrb[120].mxu0 %v7918_v25  ;;  %v8577_v25 = vrot.slane %v8575_v41, 5  ;;  %v8567_v5 = vshll.u32 %v8456_v4, 16  ;;  %v8522_v41 = vsel %vm17839_vm2, %v17826_v2, %v8521_v44  ;;  %v8463_v23 = vld [vmem:[#allocation2 + $0x48] sm:$0xf]  ;;  %v17867_v61 = vrot.slane %v8540_v59, 4 }
 0x4ae   : > { %6325 = vst.msk [vmem:[#allocation4 + $0x168] sm:$0xff] %vm2586_vm14, %v6293_v38  ;;  %v8564_v8 = vor.u32 %v8563_v19, %v17830_v46  ;;  %v17869_v17 = vrot.slane %v8554_v62, 4  ;;  %v8615_v52 = vshll.u32 %v8462_v56, 16  ;;  %v8464_v2 = vld [vmem:[#allocation2 + $0x4c] sm:$0xf]  ;;  %v17877_v19 = vrot.slane %v8591_v49, 5 }
 0x4af   : > { %v7588_v32 = vpop.permute.xlu0 %7587  ;;  %v8578_v50 = vor.u32 %v8577_v25, %v8574_v9  ;;  %v17871_v45 = vrot.slane %v8567_v5, 5  ;;  %v17879_v9 = vrot.slane %v8605_v28, 5  ;;  %v8466_v25 = vld [vmem:[#allocation2 + $0x54] sm:$0xf]  ;;  %v17884_v16 = vunpack.c.l.bf16 %v8522_v41  ;;  %v8470_v62 = vld [vmem:[#allocation2 + $0x64] sm:$0xf] }
 0x4b0   : > { %7621 = vst.msk [vmem:[#allocation4 + $0x158] sm:$0xff] %vm2586_vm14, %v7588_v32  ;;  %v17873_v4 = vrot.slane %v8564_v8, 4  ;;  %v8620_v29 = vshrl.u32 %v8463_v23, 16  ;;  %v8623_v40 = vshll.u32 %v8463_v23, 16  ;;  %v8611_v44 = vrot.slane %v8609_v60, 4 }
 0x4b1   : > { %v17875_v43 = vrot.slane %v8578_v50, 4  ;;  %v8629_v59 = vshll.u32 %v8464_v2, 16  ;;  %v17890_v5 = vrot.slane %v8615_v52, 5  ;;  %v8633_v8 = vshrl.u32 %v8464_v2, 16  ;;  %v8472_v28 = vld [vmem:[#allocation2 + $0x6c] sm:$0xf] }
 0x4b2   : > { %v8644_v50 = vshrl.u32 %v8466_v25, 16  ;;  %v8647_v49 = vshll.u32 %v8466_v25, 16  ;;  %v8465_v56 = vld [vmem:[#allocation2 + $0x50] sm:$0x1]  ;;  %v8668_v23 = vshrl.u32 %v8469_v36, 16  ;;  %v8625_v33 = vrot.slane %v8623_v40, 5 }
 0x4b3   : > { %v17802_v47 = vpop.f32.mrb[72].mxu1  ;;  %v7158_v14 = vpop.permute.xlu0 %7157  ;;  %19148 = vst [vmem:[#allocation35_spill] sm:$0xff] %v17890_v5  ;;  %v8612_v15 = vor.u32 %v8611_v44, %v17879_v9  ;;  %v17893_v51 = vrot.slane %v8629_v59, 5  ;;  %v8473_v60 = vld [vmem:[#allocation2 + $0x70] sm:$0xf]  ;;  %v8692_v52 = vshrl.u32 %v8472_v28, 16 }
 0x4b4   : > { %19138 = vst [vmem:[#allocation27_spill] sm:$0xff] %v17802_v47  ;;  %v17804_v54 = vpop.f32.mrb[73].mxu1  ;;  %7190 = vst.msk [vmem:[#allocation4 + $0x170] sm:$0xff] %vm2409_vm13, %v7158_v14  ;;  %v8635_v2 = vrot.slane %v8633_v8, 4  ;;  %v8646_v25 = vrot.slane %v8644_v50, 4  ;;  %v8649_v47 = vrot.slane %v8647_v49, 5 }
 0x4b5   : > { %19139 = vst [vmem:[#allocation28_spill] sm:$0xff] %v17804_v54  ;;  %v17806_v58 = vpop.f32.mrb[74].mxu1  ;;  %19149 = vst [vmem:[#allocation36_spill] sm:$0xff] %v17893_v51  ;;  %v8471_v59 = vld [vmem:[#allocation2 + $0x68] sm:$0x1]  ;;  %v8701_v24 = vshll.u32 %v8473_v60, 16 }
 0x4b6   : > { %19140 = vst [vmem:[#allocation29_spill] sm:$0xff] %v17806_v58  ;;  %v17808_v42 = vpop.f32.mrb[75].mxu1  ;;  %v8639_v58 = vshll.u32 %v8465_v56, 16  ;;  %v17899_v8 = vrot.slane %v8602_v22, 4  ;;  %v8694_v50 = vrot.slane %v8692_v52, 4  ;;  %v17901_v55 = vrot.slane %v8612_v15, 4 }
 0x4b7   : > { %19141 = vst [vmem:[#allocation30_spill] sm:$0xff] %v17808_v42  ;;  %v7922_v38 = vld [vmem:[#allocation4 + $0x158] sm:$0xff]  ;;  %v8468_v42 = vld [vmem:[#allocation2 + $0x5c] sm:$0x1]  ;;  %v8474_v56 = vld [vmem:[#allocation2 + $0x74] sm:$0x1] }
 0x4b8   : > { %8270 = vmatprep.mubr.bf16.mxu0 %v7922_v38  ;;  %v17882_v38 = vunpack.c.l.bf16 %v8512_v37  ;;  %19151 = vst [vmem:[#allocation38_spill] sm:$0xff] %v17901_v55  ;;  %v8687_v52 = vshll.u32 %v8471_v59, 16  ;;  %v17912_v55 = vrot.slane %v8701_v24, 5  ;;  %v8476_v24 = vld [vmem:[#allocation2 + $0x7c] sm:$0xf] }
 0x4b9   : > { %8271 = vmatmul.mubr.bf16.gmra.mrb[124].mxu0 %v7921_v0  ;;  %v8467_v0 = vld [vmem:[#allocation2 + $0x58] sm:$0xf] }
 0x4ba   : > { %v8653_v37 = vshll.u32 %v8467_v0, 16  ;;  %v8657_v41 = vshrl.u32 %v8467_v0, 16  ;;  %19153 = vst [vmem:[#allocation40_spill] sm:$0xff] %v17912_v55 }
 0x4bc   : > { %v17895_v0 = vrot.slane %v8653_v37, 5 }
 0x4c4   : > { %v7590_v14 = vpop.permute.xlu0 %7589 }
 0x4c5   : > { %7622 = vst.msk [vmem:[#allocation4 + $0x170] sm:$0xff] %vm2586_vm14, %v7590_v14  ;;  %v8671_v14 = vshll.u32 %v8469_v36, 16  ;;  %v8659_v36 = vrot.slane %v8657_v41, 4  ;;  %v8636_v41 = vor.u32 %v8635_v2, %v17893_v51 }
 0x4c7   : > { %v8673_v40 = vrot.slane %v8671_v14, 5  ;;  %v8650_v14 = vor.u32 %v8649_v47, %v8646_v25  ;;  %v8660_v22 = vor.u32 %v8659_v36, %v17895_v0  ;;  %v17915_v25 = vrot.slane %v8636_v41, 4 }
 0x4cc   : > { %v7925_v54 = vld [vmem:[#allocation4 + $0x170] sm:$0xff] }
 0x4cd   : > { %8278 = vmatprep.mubr.bf16.mxu0 %v7925_v54  ;;  %v17904_v54 = vrot.slane %v8639_v58, 5 }
 0x4ce   : > { %v17833_v31 = vpop.f32.mrb[76].mxu1 }
 0x4cf   : > { %19142 = vst [vmem:[#allocation31_spill] sm:$0xff] %v17833_v31  ;;  %v17835_v21 = vpop.f32.mrb[77].mxu1  ;;  %v8677_v31 = vshll.u32 %v8470_v62, 16  ;;  %19152 = vst [vmem:[#allocation39_spill] sm:$0xff] %v17904_v54  ;;  %v8711_v54 = vshll.u32 %v8474_v56, 16 }
 0x4d0   : > { %19143 = vst [vmem:[#allocation32_spill] sm:$0xff] %v17835_v21  ;;  %v17845_v35 = vpop.f32.mrb[78].mxu1  ;;  %v8695_v21 = vshll.u32 %v8472_v28, 16  ;;  %v8705_v28 = vshrl.u32 %v8473_v60, 16  ;;  %v8478_v56 = vld [vmem:[#allocation2 + $0x84] sm:$0xf] }
 0x4d1   : > { %19146 = vst [vmem:[#allocation33_spill] sm:$0xff] %v17845_v35  ;;  %v17848_v26 = vpop.f32.mrb[79].mxu1  ;;  %v8622_v35 = vrot.slane %v8620_v29, 4  ;;  %v8670_v29 = vrot.slane %v8668_v23, 4  ;;  %v17897_v44 = vrot.slane %v8677_v31, 5 }
 0x4d2   : > { %19147 = vst [vmem:[#allocation34_spill] sm:$0xff] %v17848_v26  ;;  %v8681_v26 = vshrl.u32 %v8470_v62, 16  ;;  %v7924_v62 = vld [vmem:[#allocation4 + $0x168] sm:$0xff]  ;;  %v8697_v49 = vrot.slane %v8695_v21, 5  ;;  %v17906_v23 = vld [vmem:[#allocation13] ss:$0 sm:$0xff] }
 0x4d3   : > { %v8626_v48 = vor.u32 %v8625_v33, %v8622_v35  ;;  %19150 = vst [vmem:[#allocation37_spill] sm:$0xff] %v17897_v44  ;;  %8279 = vmatmul.mubr.bf16.gmra.mrb[128].mxu0 %v7924_v62  ;;  %v8663_v35 = vshll.u32 %v8468_v42, 16  ;;  %v8475_v31 = vld [vmem:[#allocation2 + $0x78] sm:$0xf]  ;;  %v8674_v33 = vor.u32 %v8673_v40, %v8670_v29  ;;  %v8707_v42 = vrot.slane %v8705_v28, 4 }
 0x4d4   : > { %v8683_v10 = vrot.slane %v8681_v26, 4  ;;  %v8698_v2 = vor.u32 %v8697_v49, %v8694_v50  ;;  %v8716_v51 = vshrl.u32 %v8475_v31, 16  ;;  %v17919_v29 = vrot.slane %v8650_v14, 4 }
 0x4d5   : > { %v17909_v62 = vrot.slane %v8626_v48, 4  ;;  %v17917_v36 = vrot.slane %v8663_v35, 5  ;;  %v17921_v48 = vrot.slane %v8660_v22, 4  ;;  %v17923_v40 = vrot.slane %v8674_v33, 4  ;;  %v17938_v22 = vld [vmem:[#allocation2 + $0x80] sm:$0x1] }
 0x4d6   : > { %v8684_v15 = vor.u32 %v8683_v10, %v17897_v44  ;;  %v17925_v10 = vrot.slane %v8687_v52, 5  ;;  %v8719_v28 = vshll.u32 %v8475_v31, 16  ;;  %v17931_v41 = vrot.slane %v8698_v2, 4  ;;  %v8482_v31 = vld [vmem:[#allocation2 + $0x94] sm:$0xf] }
 0x4d7   : > { %19154 = vst [vmem:[#allocation41_spill] sm:$0xff] %v17921_v48  ;;  %19155 = vst [vmem:[#allocation42_spill] sm:$0xff] %v17923_v40  ;;  %v8708_v35 = vor.u32 %v8707_v42, %v17912_v55  ;;  %v17936_v14 = vrot.slane %v8716_v51, 4  ;;  %v8729_v52 = vshrl.u32 %v8476_v24, 16  ;;  %v8735_v51 = vshll.u32 %v17938_v22, 16 }
 0x4d8   : > { %19156 = vst [vmem:[#allocation43_spill] sm:$0xff] %v17925_v10  ;;  %v17929_v49 = vrot.slane %v8684_v15, 4  ;;  %19158 = vst [vmem:[#allocation45_spill] sm:$0xff] %v17931_v41  ;;  %v8743_v15 = vshll.u32 %v8478_v56, 16  ;;  %v8721_v42 = vrot.slane %v8719_v28, 5  ;;  %v8773_v55 = vshll.u32 %v8482_v31, 16 }
 0x4d9   : > { %v14272_v37 = vpop.f32.mrb[68].mxu0  ;;  %v17948_v28 = vrot.slane %v8708_v35, 4  ;;  %v8480_v22 = vld [vmem:[#allocation2 + $0x8c] sm:$0x1] }
 0x4da   : > { %v14273_v26 = vpop.f32.mrb[69].mxu0  ;;  %19157 = vst [vmem:[#allocation44_spill] sm:$0xff] %v17929_v49  ;;  %v8745_v10 = vrot.slane %v8743_v15, 5  ;;  %v17950_v44 = vrot.slane %v8773_v55, 5  ;;  %v8484_v15 = vld [vmem:[#allocation2 + $0x9c] sm:$0xf] }
 0x4db   : > { %v14274_v21 = vadd.f32 %v14273_v26, %v14272_v37  ;;  %v14275_v60 = vpop.f32.mrb[70].mxu0  ;;  %v8479_v37 = vld [vmem:[#allocation2 + $0x88] sm:$0xf]  ;;  %v17934_v26 = vrot.slane %v8711_v54, 5  ;;  %19160 = vst [vmem:[#allocation47_spill] sm:$0xff] %v17948_v28 }
 0x4dc   : > { %v14276_v58 = vpop.f32.mrb[71].mxu0  ;;  %v8753_v2 = vshrl.u32 %v8479_v37, 16  ;;  %19161 = vst [vmem:[#allocation48_spill] sm:$0xff] %v17950_v44  ;;  %v8485_v28 = vld [vmem:[#allocation2 + $0xa0] sm:$0xf] }
 0x4dd   : > { %v8161_v5 = vadd.f32 %v14274_v21, %v17906_v23  ;;  %v14277_v47 = vadd.f32 %v14276_v58, %v14275_v60  ;;  %19159 = vst [vmem:[#allocation46_spill] sm:$0xff] %v17934_v26  ;;  %v8481_v21 = vld [vmem:[#allocation2 + $0x90] sm:$0xf]  ;;  %v8740_v60 = vshrl.u32 %v8478_v56, 16  ;;  %v8749_v58 = vshll.u32 %v8479_v37, 16 }
 0x4de   : > { %v8764_v26 = vshrl.u32 %v8481_v21, 16  ;;  %v8767_v41 = vshll.u32 %v8481_v21, 16  ;;  %v8755_v37 = vrot.slane %v8753_v2, 4 }
 0x4df   : > { %v8322_v59 = vadd.f32 %v17679_v13, %v8161_v5  ;;  %v8164_v50 = vadd.f32 %v14277_v47, %v17906_v23  ;;  %v8725_v5 = vshll.u32 %v8476_v24, 16  ;;  %v8731_v24 = vrot.slane %v8729_v52, 4 }
 0x4e0   : > { %v8742_v49 = vrot.slane %v8740_v60, 4  ;;  %v17946_v56 = vrot.slane %v8749_v58, 5  ;;  %v8769_v21 = vrot.slane %v8767_v41, 5  ;;  %v8722_v52 = vor.u32 %v8721_v42, %v17936_v14  ;;  %v8483_v60 = vld [vmem:[#allocation2 + $0x98] sm:$0x1] }
 0x4e1   : > { %v8947_v33 = vadd.f32 %v17882_v38, %v8322_v59  ;;  %v8325_v13 = vadd.f32 %v17722_v12, %v8164_v50  ;;  %v8777_v38 = vshrl.u32 %v8482_v31, 16  ;;  %v17944_v50 = vrot.slane %v8725_v5, 5  ;;  %v9395_v58 = vld [vmem:[#allocation3 + $0xc] sm:$0xf] }
 0x4e2   : > { %v8756_v35 = vor.u32 %v8755_v37, %v17946_v56  ;;  %v8783_v42 = vshll.u32 %v8483_v60, 16  ;;  %v8797_v37 = vshll.u32 %v8485_v28, 16 }
 0x4e3   : > { %v14044_v47 = vpack.c.bf16 %v8947_v33, %v8947_v33  ;;  %v8948_v54 = vadd.f32 %v17884_v16, %v8325_v13  ;;  %v8766_v13 = vrot.slane %v8764_v26, 4  ;;  %v8779_v31 = vrot.slane %v8777_v38, 4  ;;  %v9399_v38 = vld [vmem:[#allocation3 + $0x14] sm:$0x1] }
 0x4e4   : > { %v8732_v2 = vor.u32 %v8731_v24, %v17944_v50  ;;  %v8791_v24 = vshll.u32 %v8484_v15, 16 }
 0x4e5   : > { %v9076_v59 = vshrl.u32 %v14044_v47, 16  ;;  %v14045_v12 = vpack.c.bf16 %v8948_v54, %v8948_v54  ;;  %v9079_v40 = vshll.u32 %v14044_v47, 16  ;;  %v8746_v47 = vor.u32 %v8745_v10, %v8742_v49 }
 0x4e6   : > { %v8780_v14 = vor.u32 %v8779_v31, %v17950_v44 }
 0x4e7   : > { %v9078_v33 = vrot.slane %v9076_v59, 7  ;;  %v9084_v16 = vshrl.u32 %v14045_v12, 16  ;;  %v9087_v48 = vshll.u32 %v14045_v12, 16  ;;  %v8759_v59 = vshll.u32 %v8480_v22, 16 }
 0x4e8   : > { %v8770_v12 = vor.u32 %v8769_v21, %v8766_v13  ;;  %v17967_v22 = vrot.slane %v8735_v51, 5  ;;  %v8801_v13 = vshrl.u32 %v8485_v28, 16  ;;  %v17969_v21 = vrot.slane %v8746_v47, 4 }
 0x4e9   : > { %v9081_v54 = vor.u32 %v9079_v40, %v9078_v33  ;;  %v9086_v5 = vrot.slane %v9084_v16, 7  ;;  %v9082_v26 = vrot.slane %v9078_v33, 4  ;;  %v8788_v16 = vshrl.u32 %v8484_v15, 16 }
 0x4ea   : > { %v17965_v33 = vrot.slane %v8732_v2, 4  ;;  %19162 = vst [vmem:[#allocation49_spill] sm:$0xff] %v17969_v21  ;;  %v17971_v31 = vrot.slane %v8759_v59, 5  ;;  %v14278_v60 = vpop.f32.mrb[72].mxu0  ;;  %v17977_v15 = vrot.slane %v8756_v35, 4  ;;  %v17987_v47 = vrot.slane %v8780_v14, 4 }
 0x4eb   : > { %v9396_v55 = vsel %vm16257_vm10, %v9081_v54, %v9395_v58  ;;  %v9089_v41 = vor.u32 %v9087_v48, %v9086_v5  ;;  %v9091_v40 = vrot.slane %v9086_v5, 4  ;;  %v17963_v48 = vrot.slane %v8722_v52, 4  ;;  %v17973_v54 = vld [vmem:[#allocation2 + $0xa4] sm:$0x1]  ;;  %v17975_v5 = vld [vmem:[#allocation2 + $0xa8] sm:$0xf] }
 0x4ec   : > { %9397 = vst [vmem:[#allocation3 + $0xc] sm:$0xf] %v9396_v55  ;;  %19163 = vst [vmem:[#allocation50_spill] sm:$0xff] %v17971_v31  ;;  %v17979_v58 = vrot.slane %v8770_v12, 4  ;;  %v17981_v52 = vrot.slane %v8783_v42, 5  ;;  %v14279_v28 = vpop.f32.mrb[73].mxu0  ;;  %v8536_v14 = vsel %vm17839_vm2, %v17858_v39, %v17828_v30  ;;  %v8560_v39 = vsel %vm17839_vm2, %v17869_v17, %v17830_v46 }
 0x4ed   : > { %v9090_v10 = vsel %vm16264_vm11, %v9082_v26, %v9089_v41  ;;  %v9400_v49 = vsel %vm16145_vm3, %v9091_v40, %v9399_v38  ;;  %19164 = vst [vmem:[#allocation51_spill] sm:$0xff] %v17977_v15  ;;  %v17983_v2 = vld [vmem:[#allocation2 + $0xac] sm:$0xf]  ;;  %19168 = vst [vmem:[#allocation55_spill] sm:$0xff] %v17987_v47  ;;  %v17989_v59 = vrot.slane %v8788_v16, 4  ;;  %v17991_v26 = vrot.slane %v8791_v24, 5 }
 0x4ee   : > { %9398 = vst.msk [vmem:[#allocation3 + $0x10] sm:$0xf] %vm443_vm4, %v9090_v10  ;;  %9401 = vst [vmem:[#allocation3 + $0x14] sm:$0x1] %v9400_v49  ;;  %v17993_v55 = vrot.slane %v8797_v37, 5  ;;  %v14280_v35 = vadd.f32 %v14279_v28, %v14278_v60  ;;  %v14281_v40 = vpop.f32.mrb[74].mxu0  ;;  %v8546_v60 = vsel %vm17839_vm2, %v17867_v61, %v17860_v11  ;;  %v8917_v47 = vunpack.c.l.bf16 %v8536_v14 }
 0x4ef   : > { %19165 = vst [vmem:[#allocation52_spill] sm:$0xff] %v17979_v58  ;;  %19166 = vst [vmem:[#allocation53_spill] sm:$0xff] %v17981_v52  ;;  %v17997_v38 = vrot.slane %v8801_v13, 4  ;;  %v8812_v42 = vshrl.u32 %v17975_v5, 16  ;;  %v14282_v16 = vpop.f32.mrb[75].mxu0  ;;  %v8815_v13 = vshll.u32 %v17975_v5, 16  ;;  %v8918_v52 = vunpack.c.l.bf16 %v8546_v60 }
 0x4f0   : > { %v8169_v24 = vadd.f32 %v14280_v35, %v17906_v23  ;;  %v14283_v37 = vadd.f32 %v14282_v16, %v14281_v40  ;;  %v8821_v12 = vshll.u32 %v17983_v2, 16  ;;  %v8490_v16 = vld [vmem:[#allocation2 + $0xb4] sm:$0xf]  ;;  %v9402_v21 = vld [vmem:[#allocation3 + $0x18] sm:$0xf] }
 0x4f1   : > { %v17985_v51 = vpop.f32.mrb[80].mxu1  ;;  %v8817_v46 = vrot.slane %v8815_v13, 5 }
 0x4f2   : > { %19167 = vst [vmem:[#allocation54_spill] sm:$0xff] %v17985_v51  ;;  %v17995_v41 = vpop.f32.mrb[81].mxu1  ;;  %v8172_v30 = vadd.f32 %v14283_v37, %v17906_v23  ;;  %v8825_v37 = vshrl.u32 %v17983_v2, 16  ;;  %v8836_v2 = vshrl.u32 %v8490_v16, 16 }
 0x4f3   : > { %19169 = vst [vmem:[#allocation56_spill] sm:$0xff] %v17995_v41  ;;  %v18001_v10 = vpop.f32.mrb[82].mxu1 }
 0x4f4   : > { %19170 = vst [vmem:[#allocation57_spill] sm:$0xff] %v18001_v10  ;;  %v18007_v49 = vpop.f32.mrb[83].mxu1  ;;  %v8330_v10 = vadd.f32 %v17666_v63, %v8169_v24  ;;  %v8333_v61 = vadd.f32 %v17696_v27, %v8172_v30  ;;  %v18024_v24 = vunpack.c.l.bf16 %v8560_v39  ;;  %v8794_v30 = vor.u32 %v17991_v26, %v17989_v59 }
 0x4f5   : > { %19171 = vst [vmem:[#allocation58_spill] sm:$0xff] %v18007_v49  ;;  %v15311_v28 = vld [vmem:[#allocation3 + $0xc] sm:$0xff]   ;;  %v15313_v5 = vld [vmem:[#allocation3 + $0x14] ss:$0 sps:$4 sm:$0x11]   ;;  %v8814_v39 = vrot.slane %v8812_v42, 4 }
 0x4f6   : > { %v15312_v35 = vld [vmem:[#allocation3 + $0xc] sm:$0xfe]   ;;  %10483 = vrot.lane.b32.xlu1 %v15311_v28, %s15834_s27  ;;  %v8949_v11 = vadd.f32 %v8917_v47, %v8330_v10  ;;  %v15315_v14 = vld [vmem:[#allocation3 + $0x14] ss:$0 sps:$4 sm:$0x11]   ;;  %v11124_v17 = vrot.slane %v15313_v5, 1  ;;  %v8950_v58 = vadd.f32 %v8918_v52, %v8333_v61 }
 0x4f7   : > { %v15316_v40 = vld [vmem:[#allocation3 + $0xc] sm:$0xff]   ;;  %v11123_v51 = vrot.slane %v15312_v35, 1  ;;  %v10263_v47 = vrot.slane %v15315_v14, 1  ;;  %v15317_v10 = vld [vmem:[#allocation3 + $0x14] ss:$0 sps:$4 sm:$0x11]  }
 0x4f8   : > { %v15314_v63 = vld [vmem:[#allocation3 + $0xc] sm:$0xfe]   ;;  %v14046_v28 = vpack.c.bf16 %v8949_v11, %v8949_v11  ;;  %v9842_v60 = vshll.u32 %v15316_v40, 16  ;;  %v8489_v35 = vld [vmem:[#allocation2 + $0xb0] sm:$0x1]  ;;  %v14047_v41 = vpack.c.bf16 %v8950_v58, %v8950_v58  ;;  %v9840_v52 = vshrl.u32 %v15316_v40, 16 }
 0x4f9   : > { %v10262_v44 = vrot.slane %v15314_v63, 1  ;;  %v11125_v27 = vsel %vm2312_vm7, %v11123_v51, %v11124_v17  ;;  %v9847_v61 = vshll.u32 %v15317_v10, 16  ;;  %v8839_v63 = vshll.u32 %v8490_v16, 16 }
 0x4fa   : > { %v9093_v49 = vshrl.u32 %v14046_v28, 16  ;;  %11171 = vrot.lane.b32.xlu0 %v11125_v27, %s15833_s28  ;;  %v9844_v11 = vrot.slane %v9842_v60, 1  ;;  %v9096_v14 = vshll.u32 %v14046_v28, 16  ;;  %v9101_v17 = vshrl.u32 %v14047_v41, 16 }
 0x4fb   : > { %v10264_v5 = vsel %vm2312_vm7, %v10262_v44, %v10263_v47  ;;  %v9849_v26 = vrot.slane %v9847_v61, 1  ;;  %v18037_v42 = vrot.slane %v8821_v12, 5  ;;  %v8827_v58 = vrot.slane %v8825_v37, 4  ;;  %v8493_v47 = vld [vmem:[#allocation2 + $0xc0] sm:$0xf] }
 0x4fc   : > { %10309 = vrot.lane.b32.xlu1 %v10264_v5, %s15832_s21  ;;  %v9095_v51 = vrot.slane %v9093_v49, 7  ;;  %v9845_v59 = vor.u32 %v9844_v11, %v9840_v52  ;;  %v9103_v27 = vrot.slane %v9101_v17, 7  ;;  %v9104_v31 = vshll.u32 %v14047_v41, 16  ;;  %v8491_v49 = vld [vmem:[#allocation2 + $0xb8] sm:$0xf]  ;;  %v14284_v5 = vpop.f32.mrb[76].mxu0 }
 0x4fd   : > { %v8831_v44 = vshll.u32 %v8489_v35, 16  ;;  %v8804_v16 = vor.u32 %v17997_v38, %v17993_v55  ;;  %v8838_v28 = vrot.slane %v8836_v2, 4  ;;  %v8841_v10 = vrot.slane %v8839_v63, 5  ;;  %v8494_v41 = vld [vmem:[#allocation2 + $0xc4] sm:$0xf]  ;;  %v14285_v52 = vpop.f32.mrb[77].mxu0 }
 0x4fe   : > { %v9098_v15 = vor.u32 %v9096_v14, %v9095_v51  ;;  %v9850_v40 = vsel %vm1878_vm8, %v9845_v59, %v9849_v26  ;;  %v9099_v13 = vrot.slane %v9095_v51, 4  ;;  %v9106_v60 = vor.u32 %v9104_v31, %v9103_v27  ;;  %v9406_v35 = vld [vmem:[#allocation3 + $0x20] sm:$0x1] }
 0x4ff   : > { %v9108_v37 = vrot.slane %v9103_v27, 4  ;;  %v8818_v11 = vor.u32 %v8817_v46, %v8814_v39  ;;  %v8828_v61 = vor.u32 %v8827_v58, %v18037_v42  ;;  %v8860_v38 = vshrl.u32 %v8493_v47, 16 }
 0x500   : > { %v9403_v12 = vsel %vm16257_vm10, %v9098_v15, %v9402_v21  ;;  %10021 = vrot.lane.b32.xlu1 %v9850_v40, %s15833_s28  ;;  %v8863_v14 = vshll.u32 %v8493_v47, 16  ;;  %v9107_v2 = vsel %vm16264_vm11, %v9099_v13, %v9106_v60  ;;  %v14286_v31 = vadd.f32 %v14285_v52, %v14284_v5  ;;  %v14287_v15 = vpop.f32.mrb[78].mxu0 }
 0x501   : > { %9404 = vst [vmem:[#allocation3 + $0x18] sm:$0xf] %v9403_v12  ;;  %v9407_v21 = vsel %vm16145_vm3, %v9108_v37, %v9406_v35  ;;  %v8845_v63 = vshll.u32 %v8491_v49, 16  ;;  %9405 = vst.msk [vmem:[#allocation3 + $0x1c] sm:$0xf] %vm443_vm4, %v9107_v2  ;;  %v14288_v51 = vpop.f32.mrb[79].mxu0  ;;  %v8842_v39 = vor.u32 %v8841_v10, %v8838_v28 }
 0x502   : > { %9408 = vst [vmem:[#allocation3 + $0x20] sm:$0x1] %v9407_v21  ;;  %v19172_v17 = vshll.u32 %v17973_v54, 16  ;;  %v8849_v59 = vshrl.u32 %v8491_v49, 16  ;;  %v8869_v26 = vshll.u32 %v8494_v41, 16  ;;  %v8177_v58 = vadd.f32 %v14286_v31, %v17906_v23 }
 0x503   : > { %v14289_v27 = vadd.f32 %v14288_v51, %v14287_v15  ;;  %v18056_v47 = vrot.slane %v8794_v30, 4  ;;  %v18058_v40 = vrot.slane %v8804_v16, 4  ;;  %v18060_v13 = vrot.slane %v8818_v11, 4  ;;  %v18072_v10 = vld [vmem:[#allocation2 + $0xbc] sm:$0x1] }
 0x504   : > { %v18053_v46 = vrot.slane %v19172_v17, 5  ;;  %v18062_v12 = vrot.slane %v8828_v61, 4  ;;  %v18064_v60 = vrot.slane %v8831_v44, 5  ;;  %v18066_v37 = vrot.slane %v8860_v38, 4  ;;  %v18089_v38 = vpop.f32.mrb[84].mxu1 }
 0x505   : > { %19173 = vst [vmem:[#allocation59_spill] sm:$0xff] %v18060_v13  ;;  %v8338_v54 = vadd.f32 %v17752_v6, %v8177_v58  ;;  %v8180_v49 = vadd.f32 %v14289_v27, %v17906_v23  ;;  %v18070_v28 = vrot.slane %v8845_v63, 5  ;;  %v18074_v30 = vrot.slane %v8863_v14, 5  ;;  %19178 = vst [vmem:[#allocation63_spill] sm:$0xff] %v18089_v38  ;;  %v18092_v2 = vpop.f32.mrb[85].mxu1  ;;  %v14290_v14 = vpop.f32.mrb[80].mxu0 }
 0x506   : > { %19174 = vst [vmem:[#allocation60_spill] sm:$0xff] %v18062_v12  ;;  %19175 = vst [vmem:[#allocation61_spill] sm:$0xff] %v18064_v60  ;;  %v18076_v16 = vrot.slane %v8842_v39, 4  ;;  %v18078_v5 = vrot.slane %v8849_v59, 4  ;;  %v18080_v35 = vrot.slane %v8869_v26, 5  ;;  %v8873_v44 = vshrl.u32 %v8494_v41, 16  ;;  %v10020_v12 = vpop.permute.xlu1 %10019 }
 0x507   : > { %v8951_v52 = vadd.f32 %v18024_v24, %v8338_v54  ;;  %v8341_v11 = vadd.f32 %v17758_v1, %v8180_v49  ;;  %v19177_v6 = vsel %vm17839_vm2, %v17873_v4, %v17871_v45  ;;  %v18094_v41 = vpop.f32.mrb[86].mxu1  ;;  %v9409_v49 = vld [vmem:[#allocation3 + $0x24] sm:$0xf] }
 0x508   : > { %19176 = vst [vmem:[#allocation62_spill] sm:$0xff] %v18076_v16  ;;  %v8920_v61 = vunpack.c.l.bf16 %v19177_v6  ;;  %v15318_v15 = vld [vmem:[#allocation3 + $0x18] sm:$0xff]   ;;  %19179 = vst [vmem:[#allocation64_spill] sm:$0xff] %v18094_v41  ;;  %v18096_v1 = vpop.f32.mrb[87].mxu1  ;;  %v18099_v17 = vrot.slane %v8873_v44, 4 }
 0x509   : > { %v14048_v21 = vpack.c.bf16 %v8951_v52, %v8951_v52  ;;  %v15319_v24 = vld [vmem:[#allocation3 + $0x18] sm:$0xff]   ;;  %11347 = vrot.lane.b32.xlu0 %v15318_v15, %s15832_s21  ;;  %v15321_v59 = vld [vmem:[#allocation3 + $0x20] ss:$0 sps:$4 sm:$0x11]   ;;  %v8584_v52 = vsel %vm17839_vm2, %v17875_v43, %v17843_v18  ;;  %v9413_v16 = vld [vmem:[#allocation3 + $0x2c] sm:$0x1] }
 0x50a   : > { %v8952_v31 = vadd.f32 %v8920_v61, %v8341_v11  ;;  %v15320_v45 = vld [vmem:[#allocation3 + $0x18] sm:$0xfe]   ;;  %10485 = vrot.lane.b32.xlu1 %v15319_v24, %s15834_s27  ;;  %v11127_v11 = vrot.slane %v15321_v59, 1  ;;  %v15323_v61 = vld [vmem:[#allocation3 + $0x20] ss:$0 sps:$4 sm:$0x11]  }
 0x50b   : > { %v9110_v63 = vshrl.u32 %v14048_v21, 16  ;;  %v15324_v4 = vld [vmem:[#allocation3 + $0x18] sm:$0xff]   ;;  %v9113_v39 = vshll.u32 %v14048_v21, 16  ;;  %v11126_v54 = vrot.slane %v15320_v45, 1  ;;  %v10266_v41 = vrot.slane %v15323_v61, 1 }
 0x50c   : > { %v14049_v51 = vpack.c.bf16 %v8952_v31, %v8952_v31  ;;  %v15322_v6 = vld [vmem:[#allocation3 + $0x18] sm:$0xfe]   ;;  %v11588_v24 = vshrl.u32 %v15324_v4, 16  ;;  %v11590_v38 = vshll.u32 %v15324_v4, 16 }
 0x50d   : > { %v9112_v26 = vrot.slane %v9110_v63, 7  ;;  %v15326_v31 = vld [vmem:[#allocation3 + $0x18] sm:$0xff]   ;;  %v14291_v63 = vpop.f32.mrb[81].mxu0  ;;  %v10265_v45 = vrot.slane %v15322_v6, 1 }
 0x50e   : > { %v9118_v58 = vshrl.u32 %v14049_v51, 16  ;;  %v9121_v27 = vshll.u32 %v14049_v51, 16  ;;  %v11128_v51 = vsel %vm2312_vm7, %v11126_v54, %v11127_v11  ;;  %v14292_v60 = vadd.f32 %v14291_v63, %v14290_v14  ;;  %v14293_v13 = vpop.f32.mrb[82].mxu0  ;;  %v15424_v63 = vld [vmem:[#allocation15] sm:$0xff]  }
 0x50f   : > { %v9115_v44 = vor.u32 %v9113_v39, %v9112_v26  ;;  %v9116_v15 = vrot.slane %v9112_v26, 4  ;;  %11173 = vrot.lane.b32.xlu0 %v11128_v51, %s15833_s28  ;;  %v15325_v39 = vld [vmem:[#allocation3 + $0x20] ss:$0 sps:$4 sm:$0x11]   ;;  %v8594_v54 = vsel %vm17839_vm2, %v17886_v57, %v17877_v19  ;;  %v10267_v4 = vsel %vm2312_vm7, %v10265_v45, %v10266_v41  ;;  %v15419_v41 = vld [vmem:[#allocation15 + $0x40] sm:$0xff]  }
 0x510   : > { %v9120_v21 = vrot.slane %v9118_v58, 7  ;;  %v15414_v26 = vld [vmem:[#allocation3] sm:$0xff]   ;;  %v14294_v58 = vpop.f32.mrb[83].mxu0  ;;  %v11592_v11 = vrot.slane %v11590_v38, 1  ;;  %v8185_v6 = vadd.f32 %v14292_v60, %v17906_v23  ;;  %10311 = vrot.lane.b32.xlu1 %v10267_v4, %s15832_s21  ;;  %v11595_v57 = vshll.u32 %v15325_v39, 16  ;;  %v10308_v38 = vpop.permute.xlu1 %10307  ;;  %14386 = vmatprep.subr.bf16.mxu1 %v15419_v41 }
 0x511   : > { %v9410_v18 = vsel %vm16257_vm10, %v9115_v44, %v9409_v49  ;;  %v14295_v61 = vadd.f32 %v14294_v58, %v14293_v13  ;;  %v15327_v44 = vld [vmem:[#allocation3 + $0x20] ss:$0 sps:$4 sm:$0x11]   ;;  %9635 = vst.msk [vmem:[#allocation4] sm:$0xff] %vm815_vm0, %v15414_v26  ;;  %v8921_v60 = vunpack.c.l.bf16 %v8584_v52  ;;  %v15328_v45 = vld [vmem:[#allocation3 + $0x18] sm:$0xfe]   ;;  %14387 = vmatpush3.bf16.msra.mxu1 %v15424_v63 }
 0x512   : > { %v9123_v43 = vor.u32 %v9121_v27, %v9120_v21  ;;  %v9125_v59 = vrot.slane %v9120_v21, 4  ;;  %9411 = vst [vmem:[#allocation3 + $0x24] sm:$0xf] %v9410_v18  ;;  %v8866_v27 = vor.u32 %v18074_v30, %v18066_v37  ;;  %v11593_v19 = vor.u32 %v11592_v11, %v11588_v24  ;;  %10067 = vst.msk [vmem:[#allocation4] sm:$0xff] %vm2119_vm12, %v10020_v12 }
 0x513   : > { %v9852_v37 = vshrl.u32 %v15326_v31, 16  ;;  %v9854_v30 = vshll.u32 %v15326_v31, 16  ;;  %v8346_v13 = vadd.f32 %v17749_v34, %v8185_v6  ;;  %v9859_v21 = vshll.u32 %v15327_v44, 16  ;;  %10355 = vst.msk [vmem:[#allocation4] sm:$0xff] %vm2409_vm13, %v10308_v38 }
 0x514   : > { %v9124_v14 = vsel %vm16264_vm11, %v9116_v15, %v9123_v43  ;;  %v9414_v49 = vsel %vm16145_vm3, %v9125_v59, %v9413_v16  ;;  %v18126_v16 = vld [vmem:[#allocation2 + $0xc8] sm:$0x1]  ;;  %v8188_v15 = vadd.f32 %v14295_v61, %v17906_v23  ;;  %v11597_v51 = vrot.slane %v11595_v57, 1  ;;  %v15329_v43 = vld [vmem:[#allocation3 + $0x20] ss:$0 sps:$4 sm:$0x11]  }
 0x515   : > { %9412 = vst.msk [vmem:[#allocation3 + $0x28] sm:$0xf] %vm443_vm4, %v9124_v14  ;;  %9415 = vst [vmem:[#allocation3 + $0x2c] sm:$0x1] %v9414_v49  ;;  %v9856_v24 = vrot.slane %v9854_v30, 1  ;;  %v8953_v31 = vadd.f32 %v8921_v60, %v8346_v13  ;;  %v8922_v18 = vunpack.c.l.bf16 %v8594_v54  ;;  %v18132_v59 = vrot.slane %v8866_v27, 4 }
 0x516   : > { %v8349_v12 = vadd.f32 %v17754_v20, %v8188_v15  ;;  %v11598_v34 = vsel %vm1878_vm8, %v11593_v19, %v11597_v51  ;;  %v9861_v39 = vrot.slane %v9859_v21, 1  ;;  %v12019_v26 = vrot.slane %v15328_v45, 1  ;;  %v14296_v61 = vpop.f32.mrb[84].mxu0  ;;  %v19181_v30 = vld [vmem:[#allocation38_spill] sm:$0xff]  ;;  %v9416_v21 = vld [vmem:[#allocation3 + $0x30] sm:$0xf] }
 0x517   : > { %v9857_v52 = vor.u32 %v9856_v24, %v9852_v37  ;;  %v14050_v58 = vpack.c.bf16 %v8953_v31, %v8953_v31  ;;  %11779 = vrot.lane.b32.xlu0 %v11598_v34, %s15834_s27  ;;  %v12020_v11 = vrot.slane %v15329_v43, 1  ;;  %v8879_v14 = vshll.u32 %v18126_v16, 16  ;;  %v14297_v57 = vpop.f32.mrb[85].mxu0  ;;  %v19180_v37 = vld [vmem:[#allocation35_spill] sm:$0xff]  ;;  %v19182_v31 = vld [vmem:[#allocation36_spill] sm:$0xff] }
 0x518   : > { %v8954_v4 = vadd.f32 %v8922_v18, %v8349_v12  ;;  %v8608_v20 = vsel %vm17839_vm2, %v17899_v8, %v17879_v9  ;;  %v8618_v38 = vsel %vm17839_vm2, %v19181_v30, %v19180_v37  ;;  %v14298_v60 = vadd.f32 %v14297_v57, %v14296_v61  ;;  %v14299_v15 = vpop.f32.mrb[86].mxu0  ;;  %v19183_v61 = vld [vmem:[#allocation24_spill] sm:$0xff] }
 0x519   : > { %v9862_v54 = vsel %vm1878_vm8, %v9857_v52, %v9861_v39  ;;  %v9127_v27 = vshrl.u32 %v14050_v58, 16  ;;  %v9130_v49 = vshll.u32 %v14050_v58, 16  ;;  %v12021_v44 = vsel %vm2312_vm7, %v12019_v26, %v12020_v11  ;;  %v14300_v51 = vpop.f32.mrb[87].mxu0  ;;  %v9420_v39 = vld [vmem:[#allocation3 + $0x38] sm:$0x1] }
 0x51a   : > { %v14051_v6 = vpack.c.bf16 %v8954_v4, %v8954_v4  ;;  %10023 = vrot.lane.b32.xlu1 %v9862_v54, %s15833_s28  ;;  %12083 = vst.msk [vmem:[#allocation4 + $0x10] sm:$0xff] %vm815_vm0, %v12021_v44  ;;  %v8923_v63 = vunpack.c.l.bf16 %v8608_v20  ;;  %v8632_v12 = vsel %vm17839_vm2, %v17909_v62, %v19182_v31  ;;  %v8193_v52 = vadd.f32 %v14298_v60, %v17906_v23 }
 0x51b   : > { %v9129_v8 = vrot.slane %v9127_v27, 7  ;;  %v14301_v26 = vadd.f32 %v14300_v51, %v14299_v15  ;;  %v8924_v58 = vunpack.c.l.bf16 %v8618_v38  ;;  %v8925_v37 = vunpack.c.l.bf16 %v8632_v12  ;;  %v15425_v51 = vld [vmem:[#allocation15 + $0x48] sm:$0xff]  }
 0x51c   : > { %v15330_v19 = vld [vmem:[#allocation3 + $0x24] sm:$0xff]   ;;  %v9135_v41 = vshrl.u32 %v14051_v6, 16  ;;  %v9138_v13 = vshll.u32 %v14051_v6, 16  ;;  %v15334_v45 = vld [vmem:[#allocation3 + $0x2c] ss:$0 sps:$4 sm:$0x11]   ;;  %v8354_v62 = vadd.f32 %v19183_v61, %v8193_v52  ;;  %14388 = vmatprep.subr.bf16.mxu1 %v15425_v51 }
 0x51d   : > { %v15331_v9 = vld [vmem:[#allocation3 + $0x24] sm:$0xff]   ;;  %11349 = vrot.lane.b32.xlu0 %v15330_v19, %s15832_s21  ;;  %v9132_v18 = vor.u32 %v9130_v49, %v9129_v8  ;;  %v9133_v43 = vrot.slane %v9129_v8, 4  ;;  %v11130_v11 = vrot.slane %v15334_v45, 1  ;;  %v15336_v49 = vld [vmem:[#allocation3 + $0x2c] ss:$0 sps:$4 sm:$0x11]   ;;  %v8196_v44 = vadd.f32 %v14301_v26, %v17906_v23 }
 0x51e   : > { %v15333_v24 = vld [vmem:[#allocation3 + $0x24] sm:$0xfe]   ;;  %v9137_v34 = vrot.slane %v9135_v41, 7  ;;  %10487 = vrot.lane.b32.xlu1 %v15331_v9, %s15834_s27  ;;  %v15339_v38 = vld [vmem:[#allocation3 + $0x2c] ss:$0 sps:$4 sm:$0x11]  }
 0x51f   : > { %v11129_v4 = vrot.slane %v15333_v24, 1  ;;  %v15335_v20 = vld [vmem:[#allocation3 + $0x24] sm:$0xfe]   ;;  %v9417_v54 = vsel %vm16257_vm10, %v9132_v18, %v9416_v21  ;;  %v10269_v15 = vrot.slane %v15336_v49, 1  ;;  %v14302_v21 = vpop.f32.mrb[88].mxu0  ;;  %v19184_v24 = vld [vmem:[#allocation26_spill] sm:$0xff] }
 0x520   : > { %v9140_v27 = vor.u32 %v9138_v13, %v9137_v34  ;;  %v9142_v6 = vrot.slane %v9137_v34, 4  ;;  %9418 = vst [vmem:[#allocation3 + $0x30] sm:$0xf] %v9417_v54  ;;  %v10268_v57 = vrot.slane %v15335_v20, 1  ;;  %v15338_v30 = vld [vmem:[#allocation3 + $0x24] sm:$0xff]   ;;  %v8955_v13 = vadd.f32 %v8923_v63, %v8354_v62  ;;  %v14303_v31 = vpop.f32.mrb[89].mxu0 }
 0x521   : > { %v11131_v19 = vsel %vm2312_vm7, %v11129_v4, %v11130_v11  ;;  %v15340_v9 = vld [vmem:[#allocation3 + $0x24] sm:$0xff]   ;;  %v8357_v45 = vadd.f32 %v19184_v24, %v8196_v44  ;;  %v11600_v12 = vshrl.u32 %v15338_v30, 16  ;;  %v11602_v18 = vshll.u32 %v15338_v30, 16  ;;  %v15341_v11 = vld [vmem:[#allocation3 + $0x2c] ss:$0 sps:$4 sm:$0x11]  }
 0x522   : > { %v9141_v8 = vsel %vm16264_vm11, %v9133_v43, %v9140_v27  ;;  %v9421_v41 = vsel %vm16145_vm3, %v9142_v6, %v9420_v39  ;;  %v12101_v60 = vld [vmem:[#allocation4 + $0x10] sm:$0xff]  ;;  %11175 = vrot.lane.b32.xlu0 %v11131_v19, %s15833_s28  ;;  %v11607_v43 = vshll.u32 %v15339_v38, 16  ;;  %v14052_v34 = vpack.c.bf16 %v8955_v13, %v8955_v13  ;;  %v14305_v39 = vpop.f32.mrb[90].mxu0  ;;  %v19185_v26 = vld [vmem:[#allocation39_spill] sm:$0xff]  ;;  %v9423_v24 = vld [vmem:[#allocation3 + $0x3c] sm:$0xf] }
 0x523   : > { %9419 = vst.msk [vmem:[#allocation3 + $0x34] sm:$0xf] %vm443_vm4, %v9141_v8  ;;  %9422 = vst [vmem:[#allocation3 + $0x38] sm:$0x1] %v9421_v41  ;;  %14628 = vmatprep.mubr.msk.bf16.mxu0 %vm815_vm0, %v12101_v60  ;;  %v10270_v63 = vsel %vm2312_vm7, %v10268_v57, %v10269_v15  ;;  %v14304_v52 = vadd.f32 %v14303_v31, %v14302_v21  ;;  %v8642_v4 = vsel %vm17839_vm2, %v17915_v25, %v19185_v26  ;;  %v14306_v54 = vpop.f32.mrb[91].mxu0  ;;  %v15430_v25 = vld [vmem:[#allocation15 + $0x8] sm:$0xff]  }
 0x524   : > { %v8956_v20 = vadd.f32 %v8924_v58, %v8357_v45  ;;  %10313 = vrot.lane.b32.xlu1 %v10270_v63, %s15832_s21  ;;  %v11604_v27 = vrot.slane %v11602_v18, 1  ;;  %v11609_v6 = vrot.slane %v11607_v43, 1  ;;  %v9864_v61 = vshrl.u32 %v15340_v9, 16  ;;  %v15342_v41 = vld [vmem:[#allocation3 + $0x24] sm:$0xfe]   ;;  %14389 = vmatpush3.bf16.msra.mxu1 %v15430_v25 }
 0x525   : > { %v9144_v62 = vshrl.u32 %v14052_v34, 16  ;;  %v9147_v49 = vshll.u32 %v14052_v34, 16  ;;  %v8201_v44 = vadd.f32 %v14304_v52, %v17906_v23  ;;  %v14307_v19 = vadd.f32 %v14306_v54, %v14305_v39  ;;  %v19186_v60 = vld [vmem:[#allocation23_spill] sm:$0xff]  ;;  %v15343_v51 = vld [vmem:[#allocation3 + $0x2c] ss:$0 sps:$4 sm:$0x11]  }
 0x526   : > { %v14053_v57 = vpack.c.bf16 %v8956_v20, %v8956_v20  ;;  %v11605_v30 = vor.u32 %v11604_v27, %v11600_v12  ;;  %v9866_v38 = vshll.u32 %v15340_v9, 16  ;;  %v9871_v8 = vshll.u32 %v15341_v11, 16  ;;  %v15435_v34 = vld [vmem:[#allocation15 + $0x50] sm:$0xff]   ;;  %v19187_v52 = vld [vmem:[#allocation25_spill] sm:$0xff] }
 0x527   : > { %v9146_v13 = vrot.slane %v9144_v62, 7  ;;  %v8362_v58 = vadd.f32 %v19186_v60, %v8201_v44  ;;  %v8204_v15 = vadd.f32 %v14307_v19, %v17906_v23  ;;  %v8926_v21 = vunpack.c.l.bf16 %v8642_v4  ;;  %14390 = vmatprep.subr.bf16.mxu1 %v15435_v34  ;;  %v9427_v27 = vld [vmem:[#allocation3 + $0x44] sm:$0x1]  ;;  %v14308_v19 = vpop.f32.mrb[92].mxu0  ;;  %v9430_v34 = vld [vmem:[#allocation3 + $0x48] sm:$0xf] }
 0x528   : > { %v9152_v45 = vshrl.u32 %v14053_v57, 16  ;;  %v9155_v31 = vshll.u32 %v14053_v57, 16  ;;  %v11610_v18 = vsel %vm1878_vm8, %v11605_v30, %v11609_v6  ;;  %v9868_v43 = vrot.slane %v9866_v38, 1 }
 0x529   : > { %v9149_v12 = vor.u32 %v9147_v49, %v9146_v13  ;;  %v9150_v9 = vrot.slane %v9146_v13, 4  ;;  %v8957_v63 = vadd.f32 %v8925_v37, %v8362_v58  ;;  %v8365_v39 = vadd.f32 %v19187_v52, %v8204_v15  ;;  %11781 = vrot.lane.b32.xlu0 %v11610_v18, %s15834_s27 }
 0x52a   : > { %v15344_v26 = vld [vmem:[#allocation3 + $0x30] sm:$0xff]   ;;  %v9154_v11 = vrot.slane %v9152_v45, 7  ;;  %v9869_v23 = vor.u32 %v9868_v43, %v9864_v61  ;;  %v9873_v4 = vrot.slane %v9871_v8, 1  ;;  %v12022_v20 = vrot.slane %v15342_v41, 1 }
 0x52b   : > { %v9424_v54 = vsel %vm16257_vm10, %v9149_v12, %v9423_v24  ;;  %v14054_v6 = vpack.c.bf16 %v8957_v63, %v8957_v63  ;;  %v8958_v62 = vadd.f32 %v8926_v21, %v8365_v39  ;;  %v12023_v44 = vrot.slane %v15343_v51, 1  ;;  %v15345_v49 = vld [vmem:[#allocation3 + $0x30] sm:$0xff]   ;;  %v15347_v25 = vld [vmem:[#allocation3 + $0x38] ss:$0 sps:$4 sm:$0x11]   ;;  %v14309_v63 = vpop.f32.mrb[93].mxu0 }
 0x52c   : > { %9425 = vst [vmem:[#allocation3 + $0x3c] sm:$0xf] %v9424_v54  ;;  %v9157_v37 = vor.u32 %v9155_v31, %v9154_v11  ;;  %v9159_v57 = vrot.slane %v9154_v11, 4  ;;  %v9874_v30 = vsel %vm1878_vm8, %v9869_v23, %v9873_v4  ;;  %v15346_v38 = vld [vmem:[#allocation3 + $0x30] sm:$0xfe]   ;;  %v11133_v21 = vrot.slane %v15347_v25, 1 }
 0x52d   : > { %v9161_v61 = vshrl.u32 %v14054_v6, 16  ;;  %v9164_v8 = vshll.u32 %v14054_v6, 16  ;;  %v14055_v41 = vpack.c.bf16 %v8958_v62, %v8958_v62  ;;  %10025 = vrot.lane.b32.xlu1 %v9874_v30, %s15833_s28  ;;  %v12024_v13 = vsel %vm2312_vm7, %v12022_v20, %v12023_v44  ;;  %11351 = vrot.lane.b32.xlu0 %v15344_v26, %s15832_s21  ;;  %v15348_v51 = vld [vmem:[#allocation3 + $0x30] sm:$0xfe]   ;;  %v14311_v23 = vpop.f32.mrb[94].mxu0 }
 0x52e   : > { %v9158_v60 = vsel %vm16264_vm11, %v9150_v9, %v9157_v37  ;;  %v9428_v58 = vsel %vm16145_vm3, %v9159_v57, %v9427_v27  ;;  %12084 = vst.msk [vmem:[#allocation4 + $0x28] sm:$0xff] %vm815_vm0, %v12024_v13  ;;  %v11132_v15 = vrot.slane %v15346_v38, 1  ;;  %v15349_v18 = vld [vmem:[#allocation3 + $0x38] ss:$0 sps:$4 sm:$0x11]   ;;  %v8656_v43 = vsel %vm17839_vm2, %v17919_v29, %v17895_v0  ;;  %v14312_v27 = vpop.f32.mrb[95].mxu0 }
 0x52f   : > { %9426 = vst.msk [vmem:[#allocation3 + $0x40] sm:$0xf] %vm443_vm4, %v9158_v60  ;;  %9429 = vst [vmem:[#allocation3 + $0x44] sm:$0x1] %v9428_v58  ;;  %v9163_v24 = vrot.slane %v9161_v61, 7  ;;  %v9169_v45 = vshrl.u32 %v14055_v41, 16  ;;  %v14310_v20 = vadd.f32 %v14309_v63, %v14308_v19  ;;  %v8927_v54 = vunpack.c.l.bf16 %v8656_v43 }
 0x530   : > { %v9172_v31 = vshll.u32 %v14055_v41, 16  ;;  %v11134_v12 = vsel %vm2312_vm7, %v11132_v15, %v11133_v21  ;;  %v10271_v9 = vrot.slane %v15348_v51, 1  ;;  %v10272_v11 = vrot.slane %v15349_v18, 1  ;;  %v9434_v4 = vld [vmem:[#allocation3 + $0x50] sm:$0x1]  ;;  %v14314_v38 = vpop.f32.mrb[96].mxu0 }
 0x531   : > { %v9166_v52 = vor.u32 %v9164_v8, %v9163_v24  ;;  %v9167_v39 = vrot.slane %v9163_v24, 4  ;;  %v9171_v26 = vrot.slane %v9169_v45, 7  ;;  %10489 = vrot.lane.b32.xlu1 %v15345_v49, %s15834_s27  ;;  %11177 = vrot.lane.b32.xlu0 %v11134_v12, %s15833_s28  ;;  %v19188_v0 = vld [vmem:[#allocation41_spill] sm:$0xff]  ;;  %v15351_v62 = vld [vmem:[#allocation3 + $0x38] ss:$0 sps:$4 sm:$0x11]   ;;  %v8852_v37 = vor.u32 %v18078_v5, %v18070_v28 }
 0x532   : > { %v8666_v29 = vsel %vm17839_vm2, %v19188_v0, %v17917_v36  ;;  %v15350_v6 = vld [vmem:[#allocation3 + $0x30] sm:$0xff]   ;;  %v10273_v19 = vsel %vm2312_vm7, %v10271_v9, %v10272_v11  ;;  %v18209_v25 = vld [vmem:[#allocation13] ss:$0 sm:$0xff]  ;;  %v14313_v36 = vadd.f32 %v14312_v27, %v14311_v23  ;;  %v11619_v58 = vshll.u32 %v15351_v62, 16 }
 0x533   : > { %v15352_v44 = vld [vmem:[#allocation3 + $0x30] sm:$0xff]   ;;  %v9431_v49 = vsel %vm16257_vm10, %v9166_v52, %v9430_v34  ;;  %v9174_v57 = vor.u32 %v9172_v31, %v9171_v26  ;;  %v9176_v30 = vrot.slane %v9171_v26, 4  ;;  %v8209_v61 = vadd.f32 %v18209_v25, %v14310_v20  ;;  %v15353_v15 = vld [vmem:[#allocation3 + $0x38] ss:$0 sps:$4 sm:$0x11]   ;;  %v19189_v51 = vld [vmem:[#allocation28_spill] sm:$0xff] }
 0x534   : > { %9432 = vst [vmem:[#allocation3 + $0x48] sm:$0xf] %v9431_v49  ;;  %v11612_v8 = vshrl.u32 %v15350_v6, 16  ;;  %v11614_v41 = vshll.u32 %v15350_v6, 16  ;;  %v9876_v21 = vshrl.u32 %v15352_v44, 16  ;;  %v8212_v45 = vadd.f32 %v18209_v25, %v14313_v36  ;;  %v19190_v52 = vld [vmem:[#allocation30_spill] sm:$0xff] }
 0x535   : > { %v9175_v13 = vsel %vm16264_vm11, %v9167_v39, %v9174_v57  ;;  %v9435_v5 = vsel %vm16145_vm3, %v9176_v30, %v9434_v4  ;;  %v12104_v60 = vld [vmem:[#allocation4 + $0x28] sm:$0xff]  ;;  %10315 = vrot.lane.b32.xlu1 %v10273_v19, %s15832_s21  ;;  %v8370_v24 = vadd.f32 %v19189_v51, %v8209_v61  ;;  %v9878_v18 = vshll.u32 %v15352_v44, 16  ;;  %v15354_v9 = vld [vmem:[#allocation3 + $0x30] sm:$0xfe]   ;;  %v14315_v30 = vpop.f32.mrb[97].mxu0  ;;  %v19192_v61 = vld [vmem:[#allocation42_spill] sm:$0xff] }
 0x536   : > { %9433 = vst.msk [vmem:[#allocation3 + $0x4c] sm:$0xf] %vm443_vm4, %v9175_v13  ;;  %9436 = vst [vmem:[#allocation3 + $0x50] sm:$0x1] %v9435_v5  ;;  %14629 = vmatmul.mubr.msk.bf16.vlgmr.msra.gmra.mrb[132].mxu0 %vm815_vm0, %v12104_v60  ;;  %v11616_v31 = vrot.slane %v11614_v41, 1  ;;  %v8928_v43 = vunpack.c.l.bf16 %v8666_v29  ;;  %v11621_v34 = vrot.slane %v11619_v58, 1  ;;  %v8373_v39 = vadd.f32 %v19190_v52, %v8212_v45 }
 0x537   : > { %v9883_v12 = vshll.u32 %v15353_v15, 16  ;;  %v8959_v63 = vadd.f32 %v8927_v54, %v8370_v24  ;;  %v9880_v11 = vrot.slane %v9878_v18, 1  ;;  %v15355_v23 = vld [vmem:[#allocation3 + $0x38] ss:$0 sps:$4 sm:$0x11]   ;;  %v12025_v20 = vrot.slane %v15354_v9, 1 }
 0x538   : > { %v11617_v26 = vor.u32 %v11616_v31, %v11612_v8  ;;  %v15356_v27 = vld [vmem:[#allocation3 + $0x3c] sm:$0xff]   ;;  %v18222_v0 = vrot.slane %v8852_v37, 4  ;;  %v8960_v62 = vadd.f32 %v8928_v43, %v8373_v39  ;;  %v12026_v29 = vrot.slane %v15355_v23, 1  ;;  %v19191_v19 = vld [vmem:[#allocation37_spill] sm:$0xff]  ;;  %v19194_v41 = vld [vmem:[#allocation44_spill] sm:$0xff] }
 0x539   : > { %v9885_v4 = vrot.slane %v9883_v12, 1  ;;  %v14056_v6 = vpack.c.bf16 %v8959_v63, %v8959_v63  ;;  %v9881_v44 = vor.u32 %v9880_v11, %v9876_v21  ;;  %v15357_v57 = vld [vmem:[#allocation3 + $0x3c] sm:$0xff]   ;;  %v8680_v36 = vsel %vm17839_vm2, %v19192_v61, %v19191_v19  ;;  %v15359_v15 = vld [vmem:[#allocation3 + $0x44] ss:$0 sps:$4 sm:$0x11]   ;;  %v14317_v21 = vpop.f32.mrb[98].mxu0 }
 0x53a   : > { %v11622_v49 = vsel %vm1878_vm8, %v11617_v26, %v11621_v34  ;;  %v15358_v54 = vld [vmem:[#allocation3 + $0x3c] sm:$0xfe]   ;;  %v14057_v60 = vpack.c.bf16 %v8960_v62, %v8960_v62  ;;  %v12027_v51 = vsel %vm2312_vm7, %v12025_v20, %v12026_v29  ;;  %v14316_v45 = vadd.f32 %v14315_v30, %v14314_v38  ;;  %v14318_v31 = vpop.f32.mrb[99].mxu0  ;;  %v9437_v9 = vld [vmem:[#allocation3 + $0x54] sm:$0xf] }
 0x53b   : > { %11783 = vrot.lane.b32.xlu0 %v11622_v49, %s15834_s27  ;;  %v19193_v8 = vld [vmem:[#allocation43_spill] sm:$0xff]  ;;  %v9178_v13 = vshrl.u32 %v14056_v6, 16  ;;  %v9181_v5 = vshll.u32 %v14056_v6, 16  ;;  %v9886_v58 = vsel %vm1878_vm8, %v9881_v44, %v9885_v4  ;;  %v11135_v24 = vrot.slane %v15358_v54, 1  ;;  %12085 = vst.msk [vmem:[#allocation4 + $0x40] sm:$0xff] %vm815_vm0, %v12027_v51 }
 0x53c   : > { %v8690_v37 = vsel %vm17839_vm2, %v19194_v41, %v19193_v8  ;;  %10027 = vrot.lane.b32.xlu1 %v9886_v58, %s15833_s28  ;;  %v9186_v43 = vshrl.u32 %v14057_v60, 16  ;;  %v9189_v34 = vshll.u32 %v14057_v60, 16  ;;  %v11136_v12 = vrot.slane %v15359_v15, 1  ;;  %v15360_v63 = vld [vmem:[#allocation3 + $0x3c] sm:$0xfe]  }
 0x53d   : > { %v9180_v18 = vrot.slane %v9178_v13, 7  ;;  %v15361_v52 = vld [vmem:[#allocation3 + $0x44] ss:$0 sps:$4 sm:$0x11]   ;;  %v8217_v39 = vadd.f32 %v18209_v25, %v14316_v45  ;;  %v8929_v26 = vunpack.c.l.bf16 %v8680_v36  ;;  %v14319_v11 = vadd.f32 %v14318_v31, %v14317_v21  ;;  %v15362_v4 = vld [vmem:[#allocation3 + $0x3c] sm:$0xff]  }
 0x53e   : > { %v8930_v23 = vunpack.c.l.bf16 %v8690_v37  ;;  %v9188_v6 = vrot.slane %v9186_v43, 7  ;;  %v11137_v62 = vsel %vm2312_vm7, %v11135_v24, %v11136_v12  ;;  %v9441_v49 = vld [vmem:[#allocation3 + $0x5c] sm:$0x1]  ;;  %v10274_v44 = vrot.slane %v15360_v63, 1  ;;  %v19195_v54 = vld [vmem:[#allocation27_spill] sm:$0xff] }
 0x53f   : > { %11353 = vrot.lane.b32.xlu0 %v15356_v27, %s15832_s21  ;;  %v9183_v20 = vor.u32 %v9181_v5, %v9180_v18  ;;  %v9184_v38 = vrot.slane %v9180_v18, 4  ;;  %v10275_v29 = vrot.slane %v15361_v52, 1  ;;  %v8378_v27 = vadd.f32 %v19195_v54, %v8217_v39  ;;  %v15363_v8 = vld [vmem:[#allocation3 + $0x44] ss:$0 sps:$4 sm:$0x11]   ;;  %v15364_v37 = vld [vmem:[#allocation3 + $0x3c] sm:$0xff]  }
 0x540   : > { %10491 = vrot.lane.b32.xlu1 %v15357_v57, %s15834_s27  ;;  %v8220_v30 = vadd.f32 %v18209_v25, %v14319_v11  ;;  %v9191_v61 = vor.u32 %v9189_v34, %v9188_v6  ;;  %v9193_v36 = vrot.slane %v9188_v6, 4  ;;  %v11624_v41 = vshrl.u32 %v15362_v4, 16  ;;  %v19196_v5 = vld [vmem:[#allocation29_spill] sm:$0xff]  ;;  %v15365_v24 = vld [vmem:[#allocation3 + $0x44] ss:$0 sps:$4 sm:$0x11]  }
 0x541   : > { %v9438_v19 = vsel %vm16257_vm10, %v9183_v20, %v9437_v9  ;;  %v10276_v13 = vsel %vm2312_vm7, %v10274_v44, %v10275_v29  ;;  %v8961_v57 = vadd.f32 %v8929_v26, %v8378_v27  ;;  %v11626_v58 = vshll.u32 %v15362_v4, 16  ;;  %v14320_v9 = vpop.f32.mrb[100].mxu0  ;;  %v15366_v20 = vld [vmem:[#allocation3 + $0x3c] sm:$0xfe]  }
 0x542   : > { %9439 = vst [vmem:[#allocation3 + $0x54] sm:$0xf] %v9438_v19  ;;  %v8381_v60 = vadd.f32 %v19196_v5, %v8220_v30  ;;  %v9192_v15 = vsel %vm16264_vm11, %v9184_v38, %v9191_v61  ;;  %v9442_v21 = vsel %vm16145_vm3, %v9193_v36, %v9441_v49  ;;  %v11631_v51 = vshll.u32 %v15363_v8, 16  ;;  %v12107_v31 = vld [vmem:[#allocation4 + $0x40] sm:$0xff]  ;;  %v15368_v49 = vld [vmem:[#allocation3 + $0x48] sm:$0xff]   ;;  %v14321_v44 = vpop.f32.mrb[101].mxu0 }
 0x543   : > { %11179 = vrot.lane.b32.xlu0 %v11137_v62, %s15833_s28  ;;  %v9888_v45 = vshrl.u32 %v15364_v37, 16  ;;  %9440 = vst.msk [vmem:[#allocation3 + $0x58] sm:$0xf] %vm443_vm4, %v9192_v15  ;;  %9443 = vst [vmem:[#allocation3 + $0x5c] sm:$0x1] %v9442_v21  ;;  %v14058_v18 = vpack.c.bf16 %v8961_v57, %v8961_v57  ;;  %v11628_v34 = vrot.slane %v11626_v58, 1  ;;  %14632 = vmatprep.mubr.msk.bf16.mxu0 %vm815_vm0, %v12107_v31 }
 0x544   : > { %10317 = vrot.lane.b32.xlu1 %v10276_v13, %s15832_s21  ;;  %v8962_v43 = vadd.f32 %v8930_v23, %v8381_v60  ;;  %v9890_v12 = vshll.u32 %v15364_v37, 16  ;;  %v11633_v63 = vrot.slane %v11631_v51, 1  ;;  %v9895_v52 = vshll.u32 %v15365_v24, 16  ;;  %v15367_v62 = vld [vmem:[#allocation3 + $0x44] ss:$0 sps:$4 sm:$0x11]  }
 0x545   : > { %v9195_v39 = vshrl.u32 %v14058_v18, 16  ;;  %v9198_v26 = vshll.u32 %v14058_v18, 16  ;;  %v11629_v4 = vor.u32 %v11628_v34, %v11624_v41  ;;  %v14323_v30 = vpop.f32.mrb[102].mxu0  ;;  %v9444_v19 = vld [vmem:[#allocation3 + $0x60] sm:$0xf]  ;;  %v12028_v36 = vrot.slane %v15366_v20, 1 }
 0x546   : > { %v14059_v11 = vpack.c.bf16 %v8962_v43, %v8962_v43  ;;  %v9892_v38 = vrot.slane %v9890_v12, 1  ;;  %v9897_v6 = vrot.slane %v9895_v52, 1  ;;  %v12029_v8 = vrot.slane %v15367_v62, 1  ;;  %v15369_v5 = vld [vmem:[#allocation3 + $0x48] sm:$0xff]   ;;  %v19198_v58 = vld [vmem:[#allocation45_spill] sm:$0xff]  ;;  %v19201_v20 = vld [vmem:[#allocation47_spill] sm:$0xff] }
 0x547   : > { %v9197_v29 = vrot.slane %v9195_v39, 7  ;;  %v11634_v27 = vsel %vm1878_vm8, %v11629_v4, %v11633_v63  ;;  %v14322_v37 = vadd.f32 %v14321_v44, %v14320_v9  ;;  %v19197_v60 = vld [vmem:[#allocation40_spill] sm:$0xff]  ;;  %v15371_v12 = vld [vmem:[#allocation3 + $0x50] ss:$0 sps:$4 sm:$0x11]   ;;  %v19200_v4 = vld [vmem:[#allocation46_spill] sm:$0xff] }
 0x548   : > { %v9203_v54 = vshrl.u32 %v14059_v11, 16  ;;  %v9206_v23 = vshll.u32 %v14059_v11, 16  ;;  %11785 = vrot.lane.b32.xlu0 %v11634_v27, %s15834_s27  ;;  %v9893_v61 = vor.u32 %v9892_v38, %v9888_v45  ;;  %v8704_v15 = vsel %vm17839_vm2, %v19198_v58, %v19197_v60  ;;  %v9448_v21 = vld [vmem:[#allocation3 + $0x68] sm:$0x1]  ;;  %v15370_v31 = vld [vmem:[#allocation3 + $0x48] sm:$0xfe]  }
 0x549   : > { %v9200_v41 = vor.u32 %v9198_v26, %v9197_v29  ;;  %v9201_v13 = vrot.slane %v9197_v29, 4  ;;  %v12030_v24 = vsel %vm2312_vm7, %v12028_v36, %v12029_v8  ;;  %v8225_v45 = vadd.f32 %v18209_v25, %v14322_v37  ;;  %v15372_v63 = vld [vmem:[#allocation3 + $0x48] sm:$0xfe]   ;;  %v14324_v11 = vpop.f32.mrb[103].mxu0  ;;  %v19203_v58 = vld [vmem:[#allocation34_spill] sm:$0xff] }
 0x54a   : > { %v9205_v57 = vrot.slane %v9203_v54, 7  ;;  %v9898_v51 = vsel %vm1878_vm8, %v9893_v61, %v9897_v6  ;;  %12086 = vst.msk [vmem:[#allocation4 + $0x58] sm:$0xff] %vm815_vm0, %v12030_v24  ;;  %v11138_v9 = vrot.slane %v15370_v31, 1  ;;  %v19199_v52 = vld [vmem:[#allocation32_spill] sm:$0xff]  ;;  %v8931_v26 = vunpack.c.l.bf16 %v8704_v15 }
 0x54b   : > { %v9445_v18 = vsel %vm16257_vm10, %v9200_v41, %v9444_v19  ;;  %10029 = vrot.lane.b32.xlu1 %v9898_v51, %s15833_s28  ;;  %v8386_v39 = vadd.f32 %v19199_v52, %v8225_v45  ;;  %v8714_v38 = vsel %vm17839_vm2, %v19201_v20, %v19200_v4  ;;  %v11139_v44 = vrot.slane %v15371_v12, 1  ;;  %v15373_v29 = vld [vmem:[#allocation3 + $0x50] ss:$0 sps:$4 sm:$0x11]   ;;  %v15374_v27 = vld [vmem:[#allocation3 + $0x48] sm:$0xff]  }
 0x54c   : > { %v9208_v43 = vor.u32 %v9206_v23, %v9205_v57  ;;  %v9210_v34 = vrot.slane %v9205_v57, 4  ;;  %9446 = vst [vmem:[#allocation3 + $0x60] sm:$0xf] %v9445_v18  ;;  %11355 = vrot.lane.b32.xlu0 %v15368_v49, %s15832_s21  ;;  %v14325_v49 = vadd.f32 %v14324_v11, %v14323_v30  ;;  %v10277_v54 = vrot.slane %v15372_v63, 1  ;;  %v15376_v51 = vld [vmem:[#allocation3 + $0x48] sm:$0xff]  }
 0x54d   : > { %v8963_v23 = vadd.f32 %v8931_v26, %v8386_v39  ;;  %v11140_v19 = vsel %vm2312_vm7, %v11138_v9, %v11139_v44  ;;  %v10278_v61 = vrot.slane %v15373_v29, 1  ;;  %v15375_v8 = vld [vmem:[#allocation3 + $0x50] ss:$0 sps:$4 sm:$0x11]   ;;  %v8932_v41 = vunpack.c.l.bf16 %v8714_v38  ;;  %v15378_v26 = vld [vmem:[#allocation3 + $0x48] sm:$0xfe]  }
 0x54e   : > { %v9209_v6 = vsel %vm16264_vm11, %v9201_v13, %v9208_v43  ;;  %v9449_v62 = vsel %vm16145_vm3, %v9210_v34, %v9448_v21  ;;  %v8228_v36 = vadd.f32 %v18209_v25, %v14325_v49  ;;  %v11638_v13 = vshll.u32 %v15374_v27, 16  ;;  %v15377_v24 = vld [vmem:[#allocation3 + $0x50] ss:$0 sps:$4 sm:$0x11]   ;;  %v9451_v11 = vld [vmem:[#allocation3 + $0x6c] sm:$0xf] }
 0x54f   : > { %9447 = vst.msk [vmem:[#allocation3 + $0x64] sm:$0xf] %vm443_vm4, %v9209_v6  ;;  %9450 = vst [vmem:[#allocation3 + $0x68] sm:$0x1] %v9449_v62  ;;  %10493 = vrot.lane.b32.xlu1 %v15369_v5, %s15834_s27  ;;  %v14060_v37 = vpack.c.bf16 %v8963_v23, %v8963_v23  ;;  %v19202_v30 = vshll.u32 %v18072_v10, 16  ;;  %v10279_v60 = vsel %vm2312_vm7, %v10277_v54, %v10278_v61  ;;  %v11636_v5 = vshrl.u32 %v15374_v27, 16 }
 0x550   : > { %11181 = vrot.lane.b32.xlu0 %v11140_v19, %s15833_s28  ;;  %v8389_v15 = vadd.f32 %v19203_v58, %v8228_v36  ;;  %v11643_v21 = vshll.u32 %v15375_v8, 16  ;;  %v11640_v43 = vrot.slane %v11638_v13, 1  ;;  %v9900_v12 = vshrl.u32 %v15376_v51, 16  ;;  %v15379_v38 = vld [vmem:[#allocation3 + $0x50] ss:$0 sps:$4 sm:$0x11]  }
 0x551   : > { %v18286_v57 = vrot.slane %v19202_v30, 5  ;;  %v12110_v31 = vld [vmem:[#allocation4 + $0x58] sm:$0xff]  ;;  %v9212_v45 = vshrl.u32 %v14060_v37, 16  ;;  %v9215_v18 = vshll.u32 %v14060_v37, 16  ;;  %v9902_v9 = vshll.u32 %v15376_v51, 16  ;;  %v14326_v61 = vpop.f32.mrb[104].mxu0 }
 0x552   : > { %14633 = vmatmul.mubr.msk.bf16.gmra.mrb[136].mxu0 %vm815_vm0, %v12110_v31  ;;  %v8964_v34 = vadd.f32 %v8932_v41, %v8389_v15  ;;  %v11645_v10 = vrot.slane %v11643_v21, 1  ;;  %v11641_v52 = vor.u32 %v11640_v43, %v11636_v5  ;;  %v9907_v39 = vshll.u32 %v15377_v24, 16  ;;  %v15380_v6 = vld [vmem:[#allocation3 + $0x54] sm:$0xff]   ;;  %v14327_v41 = vpop.f32.mrb[105].mxu0 }
 0x553   : > { %10319 = vrot.lane.b32.xlu1 %v10279_v60, %s15832_s21  ;;  %v9214_v63 = vrot.slane %v9212_v45, 7  ;;  %v9904_v20 = vrot.slane %v9902_v9, 1  ;;  %v12031_v19 = vrot.slane %v15378_v26, 1  ;;  %v12032_v8 = vrot.slane %v15379_v38, 1  ;;  %v15381_v37 = vld [vmem:[#allocation3 + $0x54] sm:$0xff]   ;;  %v14329_v5 = vpop.f32.mrb[106].mxu0 }
 0x554   : > { %v14061_v4 = vpack.c.bf16 %v8964_v34, %v8964_v34  ;;  %v11646_v29 = vsel %vm1878_vm8, %v11641_v52, %v11645_v10  ;;  %v9909_v49 = vrot.slane %v9907_v39, 1  ;;  %v15382_v60 = vld [vmem:[#allocation3 + $0x54] sm:$0xfe]   ;;  %v14328_v58 = vadd.f32 %v14327_v41, %v14326_v61  ;;  %v9455_v21 = vld [vmem:[#allocation3 + $0x74] sm:$0x1]  ;;  %v14330_v31 = vpop.f32.mrb[107].mxu0 }
 0x555   : > { %v9217_v62 = vor.u32 %v9215_v18, %v9214_v63  ;;  %v9218_v44 = vrot.slane %v9214_v63, 4  ;;  %11787 = vrot.lane.b32.xlu0 %v11646_v29, %s15834_s27  ;;  %v9905_v27 = vor.u32 %v9904_v20, %v9900_v12  ;;  %v8728_v15 = vsel %vm17839_vm2, %v17963_v48, %v17944_v50  ;;  %v15383_v24 = vld [vmem:[#allocation3 + $0x5c] ss:$0 sps:$4 sm:$0x11]   ;;  %v15384_v12 = vld [vmem:[#allocation3 + $0x54] sm:$0xfe]  }
 0x556   : > { %v9220_v54 = vshrl.u32 %v14061_v4, 16  ;;  %v9223_v23 = vshll.u32 %v14061_v4, 16  ;;  %v12033_v51 = vsel %vm2312_vm7, %v12031_v19, %v12032_v8  ;;  %v11141_v43 = vrot.slane %v15382_v60, 1  ;;  %v15385_v50 = vld [vmem:[#allocation3 + $0x5c] ss:$0 sps:$4 sm:$0x11]  }
 0x557   : > { %v9452_v36 = vsel %vm16257_vm10, %v9217_v62, %v9451_v11  ;;  %v9910_v30 = vsel %vm1878_vm8, %v9905_v27, %v9909_v49  ;;  %12087 = vst.msk [vmem:[#allocation4 + $0x70] sm:$0xff] %vm815_vm0, %v12033_v51  ;;  %v8233_v34 = vadd.f32 %v18209_v25, %v14328_v58  ;;  %v11142_v10 = vrot.slane %v15383_v24, 1  ;;  %v19204_v26 = vld [vmem:[#allocation31_spill] sm:$0xff]  ;;  %v15387_v62 = vld [vmem:[#allocation3 + $0x5c] ss:$0 sps:$4 sm:$0x11]  }
 0x558   : > { %9453 = vst [vmem:[#allocation3 + $0x6c] sm:$0xf] %v9452_v36  ;;  %v9222_v13 = vrot.slane %v9220_v54, 7  ;;  %10031 = vrot.lane.b32.xlu1 %v9910_v30, %s15833_s28  ;;  %v8933_v48 = vunpack.c.l.bf16 %v8728_v15  ;;  %v14331_v9 = vadd.f32 %v14330_v31, %v14329_v5  ;;  %v8738_v63 = vsel %vm17839_vm2, %v17965_v33, %v17967_v22  ;;  %v15388_v27 = vld [vmem:[#allocation3 + $0x54] sm:$0xff]  }
 0x559   : > { %11357 = vrot.lane.b32.xlu0 %v15380_v6, %s15832_s21  ;;  %v8394_v11 = vadd.f32 %v19204_v26, %v8233_v34  ;;  %v8876_v4 = vor.u32 %v18099_v17, %v18080_v35  ;;  %v11143_v20 = vsel %vm2312_vm7, %v11141_v43, %v11142_v10  ;;  %v10280_v38 = vrot.slane %v15384_v12, 1  ;;  %v15386_v6 = vld [vmem:[#allocation3 + $0x54] sm:$0xff]   ;;  %v15389_v19 = vld [vmem:[#allocation3 + $0x5c] ss:$0 sps:$4 sm:$0x11]  }
 0x55a   : > { %v9225_v45 = vor.u32 %v9223_v23, %v9222_v13  ;;  %v9227_v18 = vrot.slane %v9222_v13, 4  ;;  %v10281_v33 = vrot.slane %v15385_v50, 1  ;;  %v8236_v22 = vadd.f32 %v18209_v25, %v14331_v9  ;;  %v19205_v17 = vld [vmem:[#allocation33_spill] sm:$0xff]  ;;  %v15392_v50 = vld [vmem:[#allocation3 + $0x60] sm:$0xff]  }
 0x55b   : > { %v8934_v29 = vunpack.c.l.bf16 %v8738_v63  ;;  %v11650_v23 = vshll.u32 %v15386_v6, 16  ;;  %v18326_v61 = vrot.slane %v8879_v14, 5  ;;  %v11655_v8 = vshll.u32 %v15387_v62, 16  ;;  %v15390_v14 = vld [vmem:[#allocation3 + $0x54] sm:$0xfe]  }
 0x55c   : > { %v9226_v52 = vsel %vm16264_vm11, %v9218_v44, %v9225_v45  ;;  %v9456_v39 = vsel %vm16145_vm3, %v9227_v18, %v9455_v21  ;;  %10495 = vrot.lane.b32.xlu1 %v15381_v37, %s15834_s27  ;;  %v8965_v44 = vadd.f32 %v8933_v48, %v8394_v11  ;;  %v10282_v49 = vsel %vm2312_vm7, %v10280_v38, %v10281_v33  ;;  %v15391_v18 = vld [vmem:[#allocation3 + $0x5c] ss:$0 sps:$4 sm:$0x11]   ;;  %v9458_v48 = vld [vmem:[#allocation3 + $0x78] sm:$0xf] }
 0x55d   : > { %9454 = vst.msk [vmem:[#allocation3 + $0x70] sm:$0xf] %vm443_vm4, %v9226_v52  ;;  %9457 = vst [vmem:[#allocation3 + $0x74] sm:$0x1] %v9456_v39  ;;  %11183 = vrot.lane.b32.xlu0 %v11143_v20, %s15833_s28  ;;  %v8397_v54 = vadd.f32 %v19205_v17, %v8236_v22  ;;  %v18328_v37 = vrot.slane %v8876_v4, 4  ;;  %v11648_v30 = vshrl.u32 %v15386_v6, 16 }
 0x55e   : > { %v14062_v36 = vpack.c.bf16 %v8965_v44, %v8965_v44  ;;  %v12113_v41 = vld [vmem:[#allocation4 + $0x70] sm:$0xff]  ;;  %v11652_v60 = vrot.slane %v11650_v23, 1  ;;  %v9914_v58 = vshll.u32 %v15388_v27, 16  ;;  %v11657_v21 = vrot.slane %v11655_v8, 1  ;;  %v15393_v20 = vld [vmem:[#allocation3 + $0x60] sm:$0xff]   ;;  %v14332_v6 = vpop.f32.mrb[108].mxu0 }
 0x55f   : > { %v8966_v13 = vadd.f32 %v8934_v29, %v8397_v54  ;;  %14636 = vmatprep.mubr.msk.bf16.mxu0 %vm815_vm0, %v12113_v41  ;;  %v9912_v51 = vshrl.u32 %v15388_v27, 16  ;;  %v9919_v16 = vshll.u32 %v15389_v19, 16  ;;  %v12034_v12 = vrot.slane %v15390_v14, 1  ;;  %v15394_v22 = vld [vmem:[#allocation3 + $0x60] sm:$0xfe]   ;;  %v14333_v17 = vpop.f32.mrb[109].mxu0 }
 0x560   : > { %10321 = vrot.lane.b32.xlu1 %v10282_v49, %s15832_s21  ;;  %v9229_v5 = vshrl.u32 %v14062_v36, 16  ;;  %v11653_v31 = vor.u32 %v11652_v60, %v11648_v30  ;;  %v9916_v45 = vrot.slane %v9914_v58, 1  ;;  %v9232_v34 = vshll.u32 %v14062_v36, 16  ;;  %v9462_v44 = vld [vmem:[#allocation3 + $0x80] sm:$0x1]  ;;  %v19206_v54 = vld [vmem:[#allocation49_spill] sm:$0xff] }
 0x561   : > { %v14063_v24 = vpack.c.bf16 %v8966_v13, %v8966_v13  ;;  %v9921_v10 = vrot.slane %v9919_v16, 1  ;;  %v12035_v4 = vrot.slane %v15391_v18, 1  ;;  %v15395_v49 = vld [vmem:[#allocation3 + $0x68] ss:$0 sps:$4 sm:$0x11]   ;;  %v8752_v23 = vsel %vm17839_vm2, %v19206_v54, %v17946_v56 }
 0x562   : > { %v9231_v43 = vrot.slane %v9229_v5, 7  ;;  %v11658_v52 = vsel %vm1878_vm8, %v11653_v31, %v11657_v21  ;;  %v9917_v39 = vor.u32 %v9916_v45, %v9912_v51  ;;  %v11144_v36 = vrot.slane %v15394_v22, 1  ;;  %v15396_v13 = vld [vmem:[#allocation3 + $0x60] sm:$0xfe]   ;;  %v14335_v5 = vpop.f32.mrb[110].mxu0  ;;  %v19207_v31 = vld [vmem:[#allocation50_spill] sm:$0xff] }
 0x563   : > { %v9237_v9 = vshrl.u32 %v14063_v24, 16  ;;  %v9240_v63 = vshll.u32 %v14063_v24, 16  ;;  %11789 = vrot.lane.b32.xlu0 %v11658_v52, %s15834_s27  ;;  %v12036_v29 = vsel %vm2312_vm7, %v12034_v12, %v12035_v4  ;;  %v14334_v8 = vadd.f32 %v14333_v17, %v14332_v6  ;;  %v15397_v30 = vld [vmem:[#allocation3 + $0x68] ss:$0 sps:$4 sm:$0x11]   ;;  %v15398_v21 = vld [vmem:[#allocation3 + $0x60] sm:$0xff]  }
 0x564   : > { %v9234_v26 = vor.u32 %v9232_v34, %v9231_v43  ;;  %v9235_v11 = vrot.slane %v9231_v43, 4  ;;  %v9922_v33 = vsel %vm1878_vm8, %v9917_v39, %v9921_v10  ;;  %12088 = vst.msk [vmem:[#allocation4 + $0x88] sm:$0xff] %vm815_vm0, %v12036_v29  ;;  %v11145_v41 = vrot.slane %v15395_v49, 1  ;;  %v14336_v24 = vpop.f32.mrb[111].mxu0  ;;  %v19208_v45 = vld [vmem:[#allocation51_spill] sm:$0xff]  ;;  %v19209_v34 = vld [vmem:[#allocation56_spill] sm:$0xff] }
 0x565   : > { %v9239_v38 = vrot.slane %v9237_v9, 7  ;;  %10033 = vrot.lane.b32.xlu1 %v9922_v33, %s15833_s28  ;;  %v8241_v56 = vadd.f32 %v18209_v25, %v14334_v8  ;;  %v10283_v16 = vrot.slane %v15396_v13, 1  ;;  %v10284_v14 = vrot.slane %v15397_v30, 1  ;;  %v15400_v43 = vld [vmem:[#allocation3 + $0x60] sm:$0xff]   ;;  %v19212_v13 = vld [vmem:[#allocation52_spill] sm:$0xff] }
 0x566   : > { %v9459_v62 = vsel %vm16257_vm10, %v9234_v26, %v9458_v48  ;;  %v11146_v51 = vsel %vm2312_vm7, %v11144_v36, %v11145_v41  ;;  %v8762_v18 = vsel %vm17839_vm2, %v19208_v45, %v19207_v31  ;;  %v14337_v12 = vadd.f32 %v14336_v24, %v14335_v5  ;;  %v15401_v4 = vld [vmem:[#allocation3 + $0x68] ss:$0 sps:$4 sm:$0x11]   ;;  %v15404_v36 = vld [vmem:[#allocation3 + $0x6c] sm:$0xff]  }
 0x567   : > { %9460 = vst [vmem:[#allocation3 + $0x78] sm:$0xf] %v9459_v62  ;;  %v9242_v27 = vor.u32 %v9240_v63, %v9239_v38  ;;  %v9244_v19 = vrot.slane %v9239_v38, 4  ;;  %11359 = vrot.lane.b32.xlu0 %v15392_v50, %s15832_s21  ;;  %v8402_v10 = vadd.f32 %v19209_v34, %v8241_v56  ;;  %v15399_v50 = vld [vmem:[#allocation3 + $0x68] ss:$0 sps:$4 sm:$0x11]   ;;  %v10285_v63 = vsel %vm2312_vm7, %v10283_v16, %v10284_v14 }
 0x568   : > { %v10484_v15 = vpop.permute.xlu1 %10483  ;;  %v11660_v48 = vshrl.u32 %v15398_v21, 16  ;;  %v11662_v9 = vshll.u32 %v15398_v21, 16  ;;  %v8244_v39 = vadd.f32 %v18209_v25, %v14337_v12  ;;  %v8936_v38 = vunpack.c.l.bf16 %v8762_v18  ;;  %v14338_v6 = vpop.f32.mrb[112].mxu0  ;;  %v19211_v41 = vld [vmem:[#allocation48_spill] sm:$0xff] }
 0x569   : > { %10531 = vst.msk [vmem:[#allocation4] sm:$0xff] %vm2586_vm14, %v10484_v15  ;;  %v9243_v60 = vsel %vm16264_vm11, %v9235_v11, %v9242_v27  ;;  %v9463_v58 = vsel %vm16145_vm3, %v9244_v19, %v9462_v44  ;;  %v8935_v15 = vunpack.c.l.bf16 %v8752_v23  ;;  %10497 = vrot.lane.b32.xlu1 %v15393_v20, %s15834_s27  ;;  %v11667_v11 = vshll.u32 %v15399_v50, 16  ;;  %v19210_v44 = vld [vmem:[#allocation58_spill] sm:$0xff]  ;;  %v14339_v54 = vpop.f32.mrb[113].mxu0  ;;  %v15402_v19 = vld [vmem:[#allocation3 + $0x60] sm:$0xfe]  }
 0x56a   : > { %9461 = vst.msk [vmem:[#allocation3 + $0x7c] sm:$0xf] %vm443_vm4, %v9243_v60  ;;  %9464 = vst [vmem:[#allocation3 + $0x80] sm:$0x1] %v9463_v58  ;;  %v11664_v26 = vrot.slane %v11662_v9, 1  ;;  %v9924_v33 = vshrl.u32 %v15400_v43, 16  ;;  %v8405_v29 = vadd.f32 %v19210_v44, %v8244_v39  ;;  %v14340_v8 = vadd.f32 %v14339_v54, %v14338_v6 }
 0x56b   : > { %11185 = vrot.lane.b32.xlu0 %v11146_v51, %s15833_s28  ;;  %v8967_v52 = vadd.f32 %v8935_v15, %v8402_v10  ;;  %v12116_v20 = vld [vmem:[#allocation4 + $0x88] sm:$0xff]  ;;  %v9926_v22 = vshll.u32 %v15400_v43, 16  ;;  %v11669_v17 = vrot.slane %v11667_v11, 1  ;;  %v9931_v27 = vshll.u32 %v15401_v4, 16  ;;  %v14341_v51 = vpop.f32.mrb[114].mxu0  ;;  %v15405_v34 = vld [vmem:[#allocation3 + $0x6c] sm:$0xff]  }
 0x56c   : > { %14637 = vmatmul.mubr.msk.bf16.gmra.mrb[140].mxu0 %vm815_vm0, %v12116_v20  ;;  %v11665_v49 = vor.u32 %v11664_v26, %v11660_v48  ;;  %v8776_v30 = vsel %vm17839_vm2, %v19212_v13, %v19211_v41  ;;  %v8968_v15 = vadd.f32 %v8936_v38, %v8405_v29  ;;  %v15403_v21 = vld [vmem:[#allocation3 + $0x68] ss:$0 sps:$4 sm:$0x11]   ;;  %v12037_v24 = vrot.slane %v15402_v19, 1  ;;  %v9465_v10 = vld [vmem:[#allocation3 + $0x84] sm:$0xf]  ;;  %v18380_v11 = vpop.permute.xlu0 %11171 }
 0x56d   : > { %10323 = vrot.lane.b32.xlu1 %v10285_v63, %s15832_s21  ;;  %v14064_v62 = vpack.c.bf16 %v8967_v52, %v8967_v52  ;;  %v9928_v23 = vrot.slane %v9926_v22, 1  ;;  %v9933_v14 = vrot.slane %v9931_v27, 1  ;;  %v8249_v31 = vadd.f32 %v18209_v25, %v14340_v8  ;;  %v15406_v50 = vld [vmem:[#allocation3 + $0x6c] sm:$0xfe]   ;;  %v19213_v48 = vld [vmem:[#allocation54_spill] sm:$0xff]  ;;  %v19215_v39 = vld [vmem:[#allocation55_spill] sm:$0xff] }
 0x56e   : > { %v18369_v60 = vpop.permute.xlu1 %10309  ;;  %v11670_v5 = vsel %vm1878_vm8, %v11665_v49, %v11669_v17  ;;  %v14065_v18 = vpack.c.bf16 %v8968_v15, %v8968_v15  ;;  %v12038_v43 = vrot.slane %v15403_v21, 1  ;;  %v8937_v63 = vunpack.c.l.bf16 %v8776_v30  ;;  %v19214_v52 = vld [vmem:[#allocation53_spill] sm:$0xff]  ;;  %v14342_v29 = vpop.f32.mrb[115].mxu0  ;;  %v9469_v8 = vld [vmem:[#allocation3 + $0x8c] sm:$0x1] }
 0x56f   : > { %v9246_v58 = vshrl.u32 %v14064_v62, 16  ;;  %v9249_v56 = vshll.u32 %v14064_v62, 16  ;;  %11791 = vrot.lane.b32.xlu0 %v11670_v5, %s15834_s27  ;;  %v9929_v16 = vor.u32 %v9928_v23, %v9924_v33  ;;  %v8410_v9 = vadd.f32 %v19213_v48, %v8249_v31  ;;  %v15407_v22 = vld [vmem:[#allocation3 + $0x74] ss:$0 sps:$4 sm:$0x11]  }
 0x570   : > { %v8786_v26 = vsel %vm17839_vm2, %v19215_v39, %v19214_v52  ;;  %v9254_v38 = vshrl.u32 %v14065_v18, 16  ;;  %v9257_v33 = vshll.u32 %v14065_v18, 16  ;;  %v12039_v6 = vsel %vm2312_vm7, %v12037_v24, %v12038_v43  ;;  %v15408_v27 = vld [vmem:[#allocation3 + $0x6c] sm:$0xfe]  }
 0x571   : > { %v9248_v45 = vrot.slane %v9246_v58, 7  ;;  %v9934_v12 = vsel %vm1878_vm8, %v9929_v16, %v9933_v14  ;;  %v11147_v62 = vrot.slane %v15406_v50, 1  ;;  %v8969_v44 = vadd.f32 %v8937_v63, %v8410_v9  ;;  %12089 = vst.msk [vmem:[#allocation4 + $0xa0] sm:$0xff] %vm815_vm0, %v12039_v6  ;;  %v15409_v41 = vld [vmem:[#allocation3 + $0x74] ss:$0 sps:$4 sm:$0x11]  }
 0x572   : > { %10035 = vrot.lane.b32.xlu1 %v9934_v12, %s15833_s28  ;;  %v18385_v49 = vpop.permute.xlu1 %10021  ;;  %v9256_v54 = vrot.slane %v9254_v38, 7  ;;  %v11148_v23 = vrot.slane %v15407_v22, 1  ;;  %v14343_v19 = vadd.f32 %v14342_v29, %v14341_v51  ;;  %v8938_v30 = vunpack.c.l.bf16 %v8786_v26  ;;  %v15411_v31 = vld [vmem:[#allocation3 + $0x74] ss:$0 sps:$4 sm:$0x11]  }
 0x573   : > { %v9251_v4 = vor.u32 %v9249_v56, %v9248_v45  ;;  %v9252_v20 = vrot.slane %v9248_v45, 4  ;;  %11361 = vrot.lane.b32.xlu0 %v15404_v36, %s15832_s21  ;;  %v14066_v13 = vpack.c.bf16 %v8969_v44, %v8969_v44  ;;  %v15410_v36 = vld [vmem:[#allocation3 + $0x6c] sm:$0xff]   ;;  %v10286_v21 = vrot.slane %v15408_v27, 1  ;;  %v15413_v26 = vld [vmem:[#allocation3 + $0x74] ss:$0 sps:$4 sm:$0x11]  }
 0x574   : > { %v9259_v56 = vor.u32 %v9257_v33, %v9256_v54  ;;  %v9261_v15 = vrot.slane %v9256_v54, 4  ;;  %v11149_v5 = vsel %vm2312_vm7, %v11147_v62, %v11148_v23  ;;  %v10287_v16 = vrot.slane %v15409_v41, 1  ;;  %v19216_v50 = vld [vmem:[#allocation57_spill] sm:$0xff]  ;;  %v14344_v54 = vpop.f32.mrb[116].mxu0  ;;  %v15417_v41 = vld [vmem:[#allocation3 + $0x78] sm:$0xff]  }
 0x575   : > { %v9466_v17 = vsel %vm16257_vm10, %v9251_v4, %v9465_v10  ;;  %v9263_v14 = vshrl.u32 %v14066_v13, 16  ;;  %v9266_v51 = vshll.u32 %v14066_v13, 16  ;;  %v8252_v24 = vadd.f32 %v18209_v25, %v14343_v19  ;;  %v15412_v25 = vld [vmem:[#allocation3 + $0x6c] sm:$0xff]   ;;  %v14345_v13 = vpop.f32.mrb[117].mxu0 }
 0x576   : > { %9467 = vst [vmem:[#allocation3 + $0x84] sm:$0xf] %v9466_v17  ;;  %10499 = vrot.lane.b32.xlu1 %v15405_v34, %s15834_s27  ;;  %v9260_v45 = vsel %vm16264_vm11, %v9252_v20, %v9259_v56  ;;  %v9470_v18 = vsel %vm16145_vm3, %v9261_v15, %v9469_v8  ;;  %v11672_v43 = vshrl.u32 %v15410_v36, 16  ;;  %v11674_v10 = vshll.u32 %v15410_v36, 16  ;;  %v9472_v52 = vld [vmem:[#allocation3 + $0x90] sm:$0xf] }
 0x577   : > { %11187 = vrot.lane.b32.xlu0 %v11149_v5, %s15833_s28  ;;  %9468 = vst.msk [vmem:[#allocation3 + $0x88] sm:$0xf] %vm443_vm4, %v9260_v45  ;;  %9471 = vst [vmem:[#allocation3 + $0x8c] sm:$0x1] %v9470_v18  ;;  %v10288_v34 = vsel %vm2312_vm7, %v10286_v21, %v10287_v16  ;;  %v18402_v12 = vrot.slane %v9263_v14, 7  ;;  %v8413_v48 = vadd.f32 %v19216_v50, %v8252_v24  ;;  %v11679_v9 = vshll.u32 %v15411_v31, 16 }
 0x578   : > { %v11676_v39 = vrot.slane %v11674_v10, 1  ;;  %v12119_v4 = vld [vmem:[#allocation4 + $0xa0] sm:$0xff]  ;;  %v9936_v44 = vshrl.u32 %v15412_v25, 16  ;;  %v9938_v29 = vshll.u32 %v15412_v25, 16  ;;  %v9943_v17 = vshll.u32 %v15413_v26, 16 }
 0x579   : > { %v9268_v20 = vor.u32 %v9266_v51, %v18402_v12  ;;  %v9269_v38 = vrot.slane %v18402_v12, 4  ;;  %v8970_v33 = vadd.f32 %v8938_v30, %v8413_v48  ;;  %v11681_v22 = vrot.slane %v11679_v9, 1  ;;  %14640 = vmatprep.mubr.msk.bf16.mxu0 %vm815_vm0, %v12119_v4  ;;  %v15415_v19 = vld [vmem:[#allocation3 + $0x6c] sm:$0xfe]   ;;  %v18423_v45 = vld [vmem:[#allocation13] ss:$0 sm:$0xff] }
 0x57a   : > { %10325 = vrot.lane.b32.xlu1 %v10288_v34, %s15832_s21  ;;  %v11677_v62 = vor.u32 %v11676_v39, %v11672_v43  ;;  %v15416_v8 = vld [vmem:[#allocation3 + $0x74] ss:$0 sps:$4 sm:$0x11]   ;;  %v8800_v30 = vsel %vm17839_vm2, %v18056_v47, %v17993_v55  ;;  %v9940_v56 = vrot.slane %v9938_v29, 1  ;;  %v9945_v15 = vrot.slane %v9943_v17, 1  ;;  %v15418_v43 = vld [vmem:[#allocation3 + $0x78] sm:$0xff]  }
 0x57b   : > { %v18390_v58 = vpop.permute.xlu0 %11347  ;;  %v9473_v23 = vsel %vm16257_vm10, %v9268_v20, %v9472_v52  ;;  %v14067_v27 = vpack.c.bf16 %v8970_v33, %v8970_v33  ;;  %v14346_v5 = vadd.f32 %v14345_v13, %v14344_v54  ;;  %v12040_v14 = vrot.slane %v15415_v19, 1  ;;  %v15420_v10 = vld [vmem:[#allocation3 + $0x78] sm:$0xfe]   ;;  %v14347_v34 = vpop.f32.mrb[118].mxu0  ;;  %v9476_v50 = vld [vmem:[#allocation3 + $0x98] sm:$0x1] }
 0x57c   : > { %v18405_v63 = vpop.permute.xlu1 %10485  ;;  %9474 = vst [vmem:[#allocation3 + $0x90] sm:$0xf] %v9473_v23  ;;  %v11682_v36 = vsel %vm1878_vm8, %v11677_v62, %v11681_v22  ;;  %v12041_v51 = vrot.slane %v15416_v8, 1  ;;  %v9941_v31 = vor.u32 %v9940_v56, %v9936_v44  ;;  %v15421_v9 = vld [vmem:[#allocation3 + $0x80] ss:$0 sps:$4 sm:$0x11]   ;;  %v8939_v52 = vunpack.c.l.bf16 %v8800_v30 }
 0x57d   : > { %v9271_v21 = vshrl.u32 %v14067_v27, 16  ;;  %v9274_v16 = vshll.u32 %v14067_v27, 16  ;;  %11793 = vrot.lane.b32.xlu0 %v11682_v36, %s15834_s27  ;;  %v8257_v18 = vadd.f32 %v18423_v45, %v14346_v5  ;;  %v14348_v39 = vpop.f32.mrb[119].mxu0  ;;  %v11150_v20 = vrot.slane %v15420_v10, 1  ;;  %v15422_v62 = vld [vmem:[#allocation3 + $0x78] sm:$0xfe]  }
 0x57e   : > { %v12042_v47 = vsel %vm2312_vm7, %v12040_v14, %v12041_v51  ;;  %v9946_v48 = vsel %vm1878_vm8, %v9941_v31, %v9945_v15  ;;  %v14349_v33 = vadd.f32 %v14348_v39, %v14347_v34  ;;  %v11151_v22 = vrot.slane %v15421_v9, 1  ;;  %v15423_v44 = vld [vmem:[#allocation3 + $0x80] ss:$0 sps:$4 sm:$0x11]   ;;  %v15426_v30 = vld [vmem:[#allocation3 + $0x78] sm:$0xff]   ;;  %v18453_v14 = vld [vmem:[#allocation3 + $0xc] sm:$0xff]  }
 0x57f   : > { %v9273_v55 = vrot.slane %v9271_v21, 7  ;;  %12090 = vst.msk [vmem:[#allocation4 + $0xb8] sm:$0xff] %vm815_vm0, %v12042_v47  ;;  %v8418_v25 = vadd.f32 %v18092_v2, %v8257_v18  ;;  %10037 = vrot.lane.b32.xlu1 %v9946_v48, %s15833_s28  ;;  %v8810_v17 = vsel %vm17839_vm2, %v18058_v40, %v18053_v46  ;;  %v10289_v8 = vrot.slane %v15422_v62, 1  ;;  %v15427_v46 = vld [vmem:[#allocation3 + $0x80] ss:$0 sps:$4 sm:$0x11]  }
 0x580   : > { %v8260_v23 = vadd.f32 %v18423_v45, %v14349_v33  ;;  %v11152_v19 = vsel %vm2312_vm7, %v11150_v20, %v11151_v22  ;;  %v11684_v21 = vshrl.u32 %v15426_v30, 16  ;;  %v11686_v18 = vshll.u32 %v15426_v30, 16  ;;  %v15429_v47 = vld [vmem:[#allocation3 + $0x80] ss:$0 sps:$4 sm:$0x11]   ;;  %v15436_v30 = vld [vmem:[#allocation3 + $0x84] sm:$0xff]  }
 0x581   : > { %v18410_v6 = vpop.permute.xlu0 %11173  ;;  %v9276_v26 = vor.u32 %v9274_v16, %v9273_v55  ;;  %v9278_v4 = vrot.slane %v9273_v55, 4  ;;  %11363 = vrot.lane.b32.xlu0 %v15417_v41, %s15832_s21  ;;  %v8971_v29 = vadd.f32 %v8939_v52, %v8418_v25  ;;  %v10290_v41 = vrot.slane %v15423_v44, 1  ;;  %v15428_v16 = vld [vmem:[#allocation3 + $0x78] sm:$0xff]   ;;  %v15431_v34 = vld [vmem:[#allocation3 + $0x14] ss:$0 sps:$4 sm:$0x11]  }
 0x582   : > { %v18421_v24 = vpop.permute.xlu1 %10311  ;;  %v8421_v40 = vadd.f32 %v18096_v1, %v8260_v23  ;;  %v11691_v55 = vshll.u32 %v15427_v46, 16  ;;  %v9948_v1 = vshrl.u32 %v15428_v16, 16  ;;  %v9950_v10 = vshll.u32 %v15428_v16, 16  ;;  %v15439_v46 = vld [vmem:[#allocation3 + $0xc] sm:$0xff]   ;;  %v9483_v16 = vld [vmem:[#allocation3 + $0xa4] sm:$0x1] }
 0x583   : > { %v9277_v2 = vsel %vm16264_vm11, %v9269_v38, %v9276_v26  ;;  %v9477_v54 = vsel %vm16145_vm3, %v9278_v4, %v9476_v50  ;;  %v14068_v13 = vpack.c.bf16 %v8971_v29, %v8971_v29  ;;  %10501 = vrot.lane.b32.xlu1 %v15418_v43, %s15834_s27  ;;  %v8940_v38 = vunpack.c.l.bf16 %v8810_v17  ;;  %v9479_v50 = vld [vmem:[#allocation3 + $0x9c] sm:$0xf]  ;;  %9636 = vst.msk [vmem:[#allocation4 + $0x18] sm:$0xff] %vm815_vm0, %v15439_v46  ;;  %v19218_v46 = vld [vmem:[#allocation61_spill] sm:$0xff] }
 0x584   : > { %9475 = vst.msk [vmem:[#allocation3 + $0x94] sm:$0xf] %vm443_vm4, %v9277_v2  ;;  %9478 = vst [vmem:[#allocation3 + $0x98] sm:$0x1] %v9477_v54  ;;  %v10291_v56 = vsel %vm2312_vm7, %v10289_v8, %v10290_v41  ;;  %v11688_v9 = vrot.slane %v11686_v18, 1  ;;  %v11693_v25 = vrot.slane %v11691_v55, 1 }
 0x585   : > { %11189 = vrot.lane.b32.xlu0 %v11152_v19, %s15833_s28  ;;  %v9280_v15 = vshrl.u32 %v14068_v13, 16  ;;  %v9283_v5 = vshll.u32 %v14068_v13, 16  ;;  %v8972_v31 = vadd.f32 %v8940_v38, %v8421_v40  ;;  %v9955_v52 = vshll.u32 %v15429_v47, 16  ;;  %v15433_v17 = vld [vmem:[#allocation3 + $0x78] sm:$0xfe]   ;;  %v14350_v18 = vpop.f32.mrb[120].mxu0 }
 0x586   : > { %v12122_v51 = vld [vmem:[#allocation4 + $0xb8] sm:$0xff]  ;;  %v9952_v20 = vrot.slane %v9950_v10, 1  ;;  %v10731_v33 = vshll.u32 %v15431_v34, 16  ;;  %v11689_v44 = vor.u32 %v11688_v9, %v11684_v21  ;;  %v15438_v2 = vld [vmem:[#allocation15 + $0x10] sm:$0xff]   ;;  %v10724_v41 = vshrl.u32 %v18453_v14, 16  ;;  %v15440_v21 = vld [vmem:[#allocation15 + $0x58] sm:$0xff]  }
 0x587   : > { %14641 = vmatmul.mubr.msk.bf16.gmra.mrb[144].mxu0 %vm815_vm0, %v12122_v51  ;;  %v9282_v43 = vrot.slane %v9280_v15, 7  ;;  %10327 = vrot.lane.b32.xlu1 %v10291_v56, %s15832_s21  ;;  %v14069_v48 = vpack.c.bf16 %v8972_v31, %v8972_v31  ;;  %v9957_v29 = vrot.slane %v9955_v52, 1  ;;  %v15434_v13 = vld [vmem:[#allocation3 + $0x80] ss:$0 sps:$4 sm:$0x11]   ;;  %v10726_v56 = vshll.u32 %v18453_v14, 16 }
 0x588   : > { %v9953_v19 = vor.u32 %v9952_v20, %v9948_v1  ;;  %v10733_v8 = vrot.slane %v10731_v33, 1  ;;  %v11694_v38 = vsel %vm1878_vm8, %v11689_v44, %v11693_v25  ;;  %v12043_v15 = vrot.slane %v15433_v17, 1  ;;  %14391 = vmatpush3.bf16.msra.mxu1 %v15438_v2  ;;  %10068 = vst.msk [vmem:[#allocation4 + $0x18] sm:$0xff] %vm2119_vm12, %v18385_v49  ;;  %v15441_v10 = vld [vmem:[#allocation3 + $0x84] sm:$0xfe]   ;;  %v14351_v52 = vpop.f32.mrb[121].mxu0 }
 0x589   : > { %v18427_v12 = vpop.permute.xlu0 %11779  ;;  %v9285_v26 = vor.u32 %v9283_v5, %v9282_v43  ;;  %v9286_v4 = vrot.slane %v9282_v43, 4  ;;  %v9288_v22 = vshrl.u32 %v14069_v48, 16  ;;  %v9291_v62 = vshll.u32 %v14069_v48, 16  ;;  %v15437_v5 = vld [vmem:[#allocation3 + $0x84] sm:$0xff]   ;;  %11795 = vrot.lane.b32.xlu0 %v11694_v38, %s15834_s27  ;;  %14392 = vmatprep.subr.bf16.mxu1 %v15440_v21  ;;  %10356 = vst.msk [vmem:[#allocation4 + $0x18] sm:$0xff] %vm2409_vm13, %v18369_v60  ;;  %v14353_v44 = vpop.f32.mrb[122].mxu0 }
 0x58a   : > { %v9958_v51 = vsel %vm1878_vm8, %v9953_v19, %v9957_v29  ;;  %v12044_v31 = vrot.slane %v15434_v13, 1  ;;  %v10728_v43 = vrot.slane %v10726_v56, 1  ;;  %v15442_v9 = vld [vmem:[#allocation3 + $0x8c] ss:$0 sps:$4 sm:$0x11]   ;;  %10532 = vst.msk [vmem:[#allocation4 + $0x18] sm:$0xff] %vm2586_vm14, %v18405_v63 }
 0x58b   : > { %v9480_v23 = vsel %vm16257_vm10, %v9285_v26, %v9479_v50  ;;  %v9290_v40 = vrot.slane %v9288_v22, 7  ;;  %10039 = vrot.lane.b32.xlu1 %v9958_v51, %s15833_s28  ;;  %v15445_v49 = vld [vmem:[#allocation15 + $0x18] sm:$0xff]   ;;  %v11153_v60 = vrot.slane %v15441_v10, 1  ;;  %v14352_v22 = vadd.f32 %v14351_v52, %v14350_v18  ;;  %v15446_v29 = vld [vmem:[#allocation15 + $0x60] sm:$0xff]  }
 0x58c   : > { %v18443_v27 = vpop.permute.xlu1 %10023  ;;  %9481 = vst [vmem:[#allocation3 + $0x9c] sm:$0xf] %v9480_v23  ;;  %v12045_v1 = vsel %vm2312_vm7, %v12043_v15, %v12044_v31  ;;  %v10729_v48 = vor.u32 %v10728_v43, %v10724_v41  ;;  %v15443_v20 = vld [vmem:[#allocation3 + $0x84] sm:$0xfe]   ;;  %14393 = vmatpush3.bf16.msra.mxu1 %v15445_v49 }
 0x58d   : > { %v9293_v55 = vor.u32 %v9291_v62, %v9290_v40  ;;  %v9295_v47 = vrot.slane %v9290_v40, 4  ;;  %12091 = vst.msk [vmem:[#allocation4 + $0xd0] sm:$0xff] %vm815_vm0, %v12045_v1  ;;  %11365 = vrot.lane.b32.xlu0 %v15436_v30, %s15832_s21  ;;  %v15444_v33 = vld [vmem:[#allocation3 + $0x8c] ss:$0 sps:$4 sm:$0x11]   ;;  %v19217_v63 = vld [vmem:[#allocation59_spill] sm:$0xff]  ;;  %v8265_v19 = vadd.f32 %v18423_v45, %v14352_v22  ;;  %14394 = vmatprep.subr.bf16.mxu1 %v15446_v29 }
 0x58e   : > { %v10734_v26 = vsel %vm1878_vm8, %v10729_v48, %v10733_v8  ;;  %v8824_v62 = vsel %vm17839_vm2, %v19217_v63, %v18037_v42  ;;  %v10292_v2 = vrot.slane %v15443_v20, 1  ;;  %v10293_v23 = vrot.slane %v15444_v33, 1  ;;  %v14354_v8 = vpop.f32.mrb[123].mxu0  ;;  %v15447_v41 = vld [vmem:[#allocation3 + $0x84] sm:$0xff]   ;;  %v15456_v20 = vld [vmem:[#allocation15 + $0x68] sm:$0xff]  }
 0x58f   : > { %v18450_v36 = vpop.permute.xlu0 %11349  ;;  %v9294_v34 = vsel %vm16264_vm11, %v9286_v4, %v9293_v55  ;;  %v9484_v50 = vsel %vm16145_vm3, %v9295_v47, %v9483_v16  ;;  %10503 = vrot.lane.b32.xlu1 %v15437_v5, %s15834_s27  ;;  %v11154_v4 = vrot.slane %v15442_v9, 1  ;;  %10931 = vst.msk [vmem:[#allocation4 + $0x8] sm:$0xff] %vm815_vm0, %v10734_v26  ;;  %v8941_v42 = vunpack.c.l.bf16 %v8824_v62  ;;  %v19219_v40 = vld [vmem:[#allocation60_spill] sm:$0xff]  ;;  %v19220_v5 = vld [vmem:[#allocation63_spill] sm:$0xff] }
 0x590   : > { %v18457_v39 = vpop.permute.xlu1 %10487  ;;  %9482 = vst.msk [vmem:[#allocation3 + $0xa0] sm:$0xf] %vm443_vm4, %v9294_v34  ;;  %9485 = vst [vmem:[#allocation3 + $0xa4] sm:$0x1] %v9484_v50  ;;  %v14355_v30 = vadd.f32 %v14354_v8, %v14353_v44  ;;  %v15449_v56 = vld [vmem:[#allocation3 + $0x84] sm:$0xff]   ;;  %v10294_v15 = vsel %vm2312_vm7, %v10292_v2, %v10293_v23  ;;  %v8426_v21 = vadd.f32 %v19220_v5, %v8265_v19  ;;  %v11696_v16 = vshrl.u32 %v15447_v41, 16 }
 0x591   : > { %11219 = vst.msk [vmem:[#allocation4 + $0x8] sm:$0xff] %vm2119_vm12, %v18380_v11  ;;  %v11155_v17 = vsel %vm2312_vm7, %v11153_v60, %v11154_v4  ;;  %v8834_v11 = vsel %vm17839_vm2, %v19219_v40, %v19218_v46  ;;  %v15448_v38 = vld [vmem:[#allocation3 + $0x8c] ss:$0 sps:$4 sm:$0x11]   ;;  %v11698_v51 = vshll.u32 %v15447_v41, 16  ;;  %v9960_v43 = vshrl.u32 %v15449_v56, 16 }
 0x592   : > { %11191 = vrot.lane.b32.xlu0 %v11155_v17, %s15833_s28  ;;  %11395 = vst.msk [vmem:[#allocation4 + $0x8] sm:$0xff] %vm2409_vm13, %v18390_v58  ;;  %v8268_v18 = vadd.f32 %v18423_v45, %v14355_v30  ;;  %v11703_v55 = vshll.u32 %v15448_v38, 16  ;;  %v15450_v47 = vld [vmem:[#allocation3 + $0x8c] ss:$0 sps:$4 sm:$0x11]   ;;  %v8973_v1 = vadd.f32 %v8941_v42, %v8426_v21  ;;  %v9962_v34 = vshll.u32 %v15449_v56, 16 }
 0x593   : > { %11827 = vst.msk [vmem:[#allocation4 + $0x8] sm:$0xff] %vm2586_vm14, %v18427_v12  ;;  %10329 = vrot.lane.b32.xlu1 %v10294_v15, %s15832_s21  ;;  %v11700_v10 = vrot.slane %v11698_v51, 1  ;;  %v15451_v50 = vld [vmem:[#allocation15 + $0x20] sm:$0xff]   ;;  %v15452_v48 = vld [vmem:[#allocation3 + $0x20] ss:$0 sps:$4 sm:$0x11]   ;;  %v8942_v60 = vunpack.c.l.bf16 %v8834_v11 }
 0x594   : > { %v18459_v54 = vpop.permute.xlu0 %11175  ;;  %v12125_v58 = vld [vmem:[#allocation4 + $0xd0] sm:$0xff]  ;;  %v11705_v52 = vrot.slane %v11703_v55, 1  ;;  %v9967_v26 = vshll.u32 %v15450_v47, 16  ;;  %v15453_v4 = vld [vmem:[#allocation3 + $0x18] sm:$0xff]   ;;  %v14070_v33 = vpack.c.bf16 %v8973_v1, %v8973_v1  ;;  %v9964_v63 = vrot.slane %v9962_v34, 1  ;;  %14395 = vmatpush3.bf16.msra.mxu1 %v15451_v50  ;;  %v15457_v46 = vld [vmem:[#allocation3 + $0x90] sm:$0xff]  }
 0x595   : > { %14644 = vmatprep.mubr.msk.bf16.mxu0 %vm815_vm0, %v12125_v58  ;;  %v19221_v12 = vld [vmem:[#allocation64_spill] sm:$0xff]  ;;  %v11701_v22 = vor.u32 %v11700_v10, %v11696_v16  ;;  %v10743_v62 = vshll.u32 %v15452_v48, 16  ;;  %v10736_v17 = vshrl.u32 %v15453_v4, 16  ;;  %v10738_v2 = vshll.u32 %v15453_v4, 16  ;;  %14396 = vmatprep.subr.bf16.mxu1 %v15456_v20  ;;  %v15458_v5 = vld [vmem:[#allocation3 + $0x90] sm:$0xff]   ;;  %v15460_v48 = vld [vmem:[#allocation3 + $0x18] sm:$0xff]  }
 0x596   : > { %v18472_v14 = vpop.permute.xlu1 %10313  ;;  %v8429_v49 = vadd.f32 %v19221_v12, %v8268_v18  ;;  %v9969_v29 = vrot.slane %v9967_v26, 1  ;;  %v15454_v23 = vld [vmem:[#allocation3 + $0x84] sm:$0xfe]   ;;  %v9297_v19 = vshrl.u32 %v14070_v33, 16  ;;  %v9300_v8 = vshll.u32 %v14070_v33, 16  ;;  %v15459_v21 = vld [vmem:[#allocation15 + $0x28] sm:$0xff]  }
 0x597   : > { %v11706_v41 = vsel %vm1878_vm8, %v11701_v22, %v11705_v52  ;;  %v9965_v42 = vor.u32 %v9964_v63, %v9960_v43  ;;  %v15455_v30 = vld [vmem:[#allocation3 + $0x8c] ss:$0 sps:$4 sm:$0x11]   ;;  %v10745_v38 = vrot.slane %v10743_v62, 1  ;;  %v10740_v56 = vrot.slane %v10738_v2, 1  ;;  %v15461_v12 = vld [vmem:[#allocation15 + $0x70] sm:$0xff]  }
 0x598   : > { %v8974_v44 = vadd.f32 %v8942_v60, %v8429_v49  ;;  %11797 = vrot.lane.b32.xlu0 %v11706_v41, %s15834_s27  ;;  %v12046_v15 = vrot.slane %v15454_v23, 1  ;;  %v9299_v16 = vrot.slane %v9297_v19, 7  ;;  %v12047_v58 = vrot.slane %v15455_v30, 1  ;;  %v9486_v55 = vld [vmem:[#allocation3 + $0xa8] sm:$0xf]  ;;  %14397 = vmatpush3.bf16.msra.mxu1 %v15459_v21  ;;  %v14356_v49 = vpop.f32.mrb[124].mxu0 }
 0x599   : > { %v9970_v51 = vsel %vm1878_vm8, %v9965_v42, %v9969_v29  ;;  %v10741_v1 = vor.u32 %v10740_v56, %v10736_v17  ;;  %v15466_v26 = vld [vmem:[#allocation15 + $0x30] sm:$0xff]   ;;  %v9490_v20 = vld [vmem:[#allocation3 + $0xb0] sm:$0x1]  ;;  %9637 = vst.msk [vmem:[#allocation4 + $0x30] sm:$0xff] %vm815_vm0, %v15460_v48  ;;  %14398 = vmatprep.subr.bf16.mxu1 %v15461_v12  ;;  %v15462_v33 = vld [vmem:[#allocation3 + $0x90] sm:$0xfe]  }
 0x59a   : > { %v14071_v11 = vpack.c.bf16 %v8974_v44, %v8974_v44  ;;  %10041 = vrot.lane.b32.xlu1 %v9970_v51, %s15833_s28  ;;  %v9302_v10 = vor.u32 %v9300_v8, %v9299_v16  ;;  %v9303_v34 = vrot.slane %v9299_v16, 4  ;;  %v12048_v50 = vsel %vm2312_vm7, %v12046_v15, %v12047_v58  ;;  %v15463_v22 = vld [vmem:[#allocation3 + $0x98] ss:$0 sps:$4 sm:$0x11]   ;;  %v14357_v63 = vpop.f32.mrb[125].mxu0  ;;  %10069 = vst.msk [vmem:[#allocation4 + $0x30] sm:$0xff] %vm2119_vm12, %v18443_v27 }
 0x59b   : > { %v18484_v25 = vpop.permute.xlu0 %11781  ;;  %v10746_v52 = vsel %vm1878_vm8, %v10741_v1, %v10745_v38  ;;  %12092 = vst.msk [vmem:[#allocation4 + $0xe8] sm:$0xff] %vm815_vm0, %v12048_v50  ;;  %v14358_v17 = vadd.f32 %v14357_v63, %v14356_v49  ;;  %v18543_v2 = vpop.f32.mrb[88].mxu1  ;;  %v11156_v23 = vrot.slane %v15462_v33, 1  ;;  %v11157_v19 = vrot.slane %v15463_v22, 1  ;;  %v15464_v8 = vld [vmem:[#allocation3 + $0x90] sm:$0xfe]  }
 0x59c   : > { %v9305_v47 = vshrl.u32 %v14071_v11, 16  ;;  %v9308_v43 = vshll.u32 %v14071_v11, 16  ;;  %11367 = vrot.lane.b32.xlu0 %v15457_v46, %s15832_s21  ;;  %v9487_v4 = vsel %vm16257_vm10, %v9302_v10, %v9486_v55  ;;  %10932 = vst.msk [vmem:[#allocation4 + $0x20] sm:$0xff] %vm815_vm0, %v10746_v52  ;;  %14399 = vmatpush3.bf16.msra.mxu1 %v15466_v26  ;;  %v14359_v46 = vpop.f32.mrb[126].mxu0  ;;  %v8433_v11 = vpop.f32.mrb[89].mxu1  ;;  %v15467_v38 = vld [vmem:[#allocation15 + $0x78] sm:$0xff]  }
 0x59d   : > { %9488 = vst [vmem:[#allocation3 + $0xa8] sm:$0xf] %v9487_v4  ;;  %11220 = vst.msk [vmem:[#allocation4 + $0x20] sm:$0xff] %vm2119_vm12, %v18410_v6  ;;  %v19222_v6 = vld [vmem:[#allocation62_spill] sm:$0xff]  ;;  %v10295_v56 = vrot.slane %v15464_v8, 1  ;;  %v14360_v15 = vpop.f32.mrb[127].mxu0  ;;  %14400 = vmatprep.subr.bf16.mxu1 %v15467_v38 }
 0x59e   : > { %v9307_v60 = vrot.slane %v9305_v47, 7  ;;  %10505 = vrot.lane.b32.xlu1 %v15458_v5, %s15834_s27  ;;  %10357 = vst.msk [vmem:[#allocation4 + $0x30] sm:$0xff] %vm2409_vm13, %v18421_v24  ;;  %11396 = vst.msk [vmem:[#allocation4 + $0x20] sm:$0xff] %vm2409_vm13, %v18450_v36  ;;  %v8848_v41 = vsel %vm17839_vm2, %v19222_v6, %v18070_v28  ;;  %v15465_v24 = vld [vmem:[#allocation3 + $0x98] ss:$0 sps:$4 sm:$0x11]   ;;  %v8273_v36 = vadd.f32 %v18423_v45, %v14358_v17 }
 0x59f   : > { %v18499_v13 = vpop.permute.xlu1 %10025  ;;  %v18512_v31 = vpop.permute.xlu0 %11351  ;;  %10533 = vst.msk [vmem:[#allocation4 + $0x30] sm:$0xff] %vm2586_vm14, %v18457_v39  ;;  %11828 = vst.msk [vmem:[#allocation4 + $0x20] sm:$0xff] %vm2586_vm14, %v18484_v25  ;;  %v11158_v28 = vsel %vm2312_vm7, %v11156_v23, %v11157_v19  ;;  %v15468_v21 = vld [vmem:[#allocation3 + $0x90] sm:$0xff]   ;;  %v10296_v39 = vrot.slane %v15465_v24, 1  ;;  %v8943_v51 = vunpack.c.l.bf16 %v8848_v41  ;;  %v14361_v58 = vadd.f32 %v14360_v15, %v14359_v46  ;;  %v15477_v38 = vld [vmem:[#allocation3 + $0x9c] sm:$0xff]  }
 0x5a0   : > { %v9310_v44 = vor.u32 %v9308_v43, %v9307_v60  ;;  %v9312_v29 = vrot.slane %v9307_v60, 4  ;;  %v18566_v5 = vpop.f32.mrb[90].mxu1  ;;  %11193 = vrot.lane.b32.xlu0 %v11158_v28, %s15833_s28  ;;  %v8434_v16 = vadd.f32 %v8433_v11, %v8273_v36  ;;  %v15470_v55 = vld [vmem:[#allocation3 + $0x90] sm:$0xff]   ;;  %v15469_v43 = vld [vmem:[#allocation3 + $0x98] ss:$0 sps:$4 sm:$0x11]  }
 0x5a1   : > { %v11708_v1 = vshrl.u32 %v15468_v21, 16  ;;  %v11710_v10 = vshll.u32 %v15468_v21, 16  ;;  %v10297_v48 = vsel %vm2312_vm7, %v10295_v56, %v10296_v39  ;;  %v8276_v49 = vadd.f32 %v18423_v45, %v14361_v58  ;;  %v15471_v26 = vld [vmem:[#allocation3 + $0x98] ss:$0 sps:$4 sm:$0x11]   ;;  %v8436_v22 = vpop.f32.mrb[91].mxu1 }
 0x5a2   : > { %v9311_v27 = vsel %vm16264_vm11, %v9303_v34, %v9310_v44  ;;  %v9491_v30 = vsel %vm16145_vm3, %v9312_v29, %v9490_v20  ;;  %v12128_v25 = vld [vmem:[#allocation4 + $0xe8] sm:$0xff]  ;;  %v8858_v34 = vsel %vm17839_vm2, %v18222_v0, %v18286_v57  ;;  %v8975_v12 = vadd.f32 %v8943_v51, %v8434_v16  ;;  %10331 = vrot.lane.b32.xlu1 %v10297_v48, %s15832_s21  ;;  %v12099_v16 = vld [vmem:[#allocation4] sm:$0xff]  ;;  %v9493_v51 = vld [vmem:[#allocation3 + $0xb4] sm:$0xf] }
 0x5a3   : > { %v18517_v9 = vpop.permute.xlu1 %10489  ;;  %v18521_v40 = vpop.permute.xlu0 %11177  ;;  %9489 = vst.msk [vmem:[#allocation3 + $0xac] sm:$0xf] %vm443_vm4, %v9311_v27  ;;  %9492 = vst [vmem:[#allocation3 + $0xb0] sm:$0x1] %v9491_v30  ;;  %14645 = vmatmul.mubr.msk.bf16.gmra.mrb[148].mxu0 %vm815_vm0, %v12128_v25  ;;  %v11712_v60 = vrot.slane %v11710_v10, 1  ;;  %v11715_v52 = vshll.u32 %v15469_v43, 16  ;;  %v8944_v63 = vunpack.c.l.bf16 %v8858_v34  ;;  %v8437_v19 = vadd.f32 %v8436_v22, %v8276_v49 }
 0x5a4   : > { %v9972_v4 = vshrl.u32 %v15470_v55, 16  ;;  %v14072_v20 = vpack.c.bf16 %v8975_v12, %v8975_v12  ;;  %v9974_v33 = vshll.u32 %v15470_v55, 16  ;;  %v15472_v0 = vld [vmem:[#allocation15 + $0x38] sm:$0xff]   ;;  %v9979_v23 = vshll.u32 %v15471_v26, 16  ;;  %v15475_v55 = vld [vmem:[#allocation3 + $0x90] sm:$0xfe]  }
 0x5a5   : > { %v15473_v57 = vld [vmem:[#allocation3 + $0x24] sm:$0xff]   ;;  %v11713_v29 = vor.u32 %v11712_v60, %v11708_v1  ;;  %v11717_v17 = vrot.slane %v11715_v52, 1  ;;  %14401 = vmatpush3.bf16.msra.mxu1 %v15472_v0  ;;  %v15474_v27 = vld [vmem:[#allocation3 + $0x2c] ss:$0 sps:$4 sm:$0x11]   ;;  %v8976_v46 = vadd.f32 %v8944_v63, %v8437_v19  ;;  %v15478_v48 = vld [vmem:[#allocation3 + $0x9c] sm:$0xff]  }
 0x5a6   : > { %v9314_v8 = vshrl.u32 %v14072_v20, 16  ;;  %v9317_v6 = vshll.u32 %v14072_v20, 16  ;;  %v9976_v41 = vrot.slane %v9974_v33, 1  ;;  %v9981_v24 = vrot.slane %v9979_v23, 1  ;;  %v12100_v11 = vld [vmem:[#allocation4 + $0x8] sm:$0xff]  ;;  %v14362_v22 = vpop.f32.mrb[128].mxu0 }
 0x5a7   : > { %v18525_v18 = vpop.permute.xlu1 %10315  ;;  %v11718_v30 = vsel %vm1878_vm8, %v11713_v29, %v11717_v17  ;;  %v10748_v36 = vshrl.u32 %v15473_v57, 16  ;;  %v10750_v21 = vshll.u32 %v15473_v57, 16  ;;  %v10755_v39 = vshll.u32 %v15474_v27, 16  ;;  %12378 = vmatprep.mubr.bf16.mxu1 %v12100_v11  ;;  %v15476_v34 = vld [vmem:[#allocation3 + $0x98] ss:$0 sps:$4 sm:$0x11]  }
 0x5a8   : > { %v9316_v56 = vrot.slane %v9314_v8, 7  ;;  %11799 = vrot.lane.b32.xlu0 %v11718_v30, %s15834_s27  ;;  %v9977_v15 = vor.u32 %v9976_v41, %v9972_v4  ;;  %v14073_v58 = vpack.c.bf16 %v8976_v46, %v8976_v46  ;;  %12379 = vmatmul.mubr.bf16.vlgmr.msra.gmra.mrb[92].mxu1 %v12099_v16  ;;  %v12049_v26 = vrot.slane %v15475_v55, 1  ;;  %v14363_v0 = vpop.f32.mrb[129].mxu0  ;;  %v9497_v29 = vld [vmem:[#allocation3 + $0xbc] sm:$0x1]  ;;  %v15479_v8 = vld [vmem:[#allocation3 + $0x24] sm:$0xff]  }
 0x5a9   : > { %v10752_v10 = vrot.slane %v10750_v21, 1  ;;  %v10757_v52 = vrot.slane %v10755_v39, 1  ;;  %v12050_v33 = vrot.slane %v15476_v34, 1  ;;  %v14364_v19 = vadd.f32 %v14363_v0, %v14362_v22  ;;  %9638 = vst.msk [vmem:[#allocation4 + $0x48] sm:$0xff] %vm815_vm0, %v15479_v8  ;;  %v15484_v21 = vld [vmem:[#allocation3 + $0x9c] sm:$0xff]  }
 0x5aa   : > { %v9319_v25 = vor.u32 %v9317_v6, %v9316_v56  ;;  %v9320_v43 = vrot.slane %v9316_v56, 4  ;;  %v9982_v1 = vsel %vm1878_vm8, %v9977_v15, %v9981_v24  ;;  %v9322_v49 = vshrl.u32 %v14073_v58, 16  ;;  %v14365_v6 = vpop.f32.mrb[130].mxu0  ;;  %v15481_v15 = vld [vmem:[#allocation3 + $0xa4] ss:$0 sps:$4 sm:$0x11]  }
 0x5ab   : > { %10043 = vrot.lane.b32.xlu1 %v9982_v1, %s15833_s28  ;;  %v9325_v60 = vshll.u32 %v14073_v58, 16  ;;  %v10753_v20 = vor.u32 %v10752_v10, %v10748_v36  ;;  %v12051_v23 = vsel %vm2312_vm7, %v12049_v26, %v12050_v33  ;;  %v8872_v24 = vsel %vm17839_vm2, %v18132_v59, %v18080_v35  ;;  %v14366_v46 = vpop.f32.mrb[131].mxu0  ;;  %v15480_v36 = vld [vmem:[#allocation3 + $0x9c] sm:$0xfe]   ;;  %10070 = vst.msk [vmem:[#allocation4 + $0x48] sm:$0xff] %vm2119_vm12, %v18499_v13  ;;  %v15488_v26 = vld [vmem:[#allocation3 + $0x30] sm:$0xff]  }
 0x5ac   : > { %v9494_v4 = vsel %vm16257_vm10, %v9319_v25, %v9493_v51  ;;  %11369 = vrot.lane.b32.xlu0 %v15477_v38, %s15832_s21  ;;  %v9324_v63 = vrot.slane %v9322_v49, 7  ;;  %12093 = vst.msk [vmem:[#allocation4 + $0x100] sm:$0xff] %vm815_vm0, %v12051_v23  ;;  %v8281_v11 = vadd.f32 %v18423_v45, %v14364_v19  ;;  %v14367_v38 = vadd.f32 %v14366_v46, %v14365_v6  ;;  %v15486_v39 = vld [vmem:[#allocation3 + $0x9c] sm:$0xff]   ;;  %v15483_v58 = vld [vmem:[#allocation3 + $0xa4] ss:$0 sps:$4 sm:$0x11]  }
 0x5ad   : > { %v18536_v62 = vpop.permute.xlu0 %11783  ;;  %9495 = vst [vmem:[#allocation3 + $0xb4] sm:$0xf] %v9494_v4  ;;  %v10758_v17 = vsel %vm1878_vm8, %v10753_v20, %v10757_v52  ;;  %v8882_v56 = vsel %vm17839_vm2, %v18328_v37, %v18326_v61  ;;  %v8945_v61 = vunpack.c.l.bf16 %v8872_v24  ;;  %10358 = vst.msk [vmem:[#allocation4 + $0x48] sm:$0xff] %vm2409_vm13, %v18472_v14  ;;  %v11160_v51 = vrot.slane %v15481_v15, 1  ;;  %v15482_v13 = vld [vmem:[#allocation3 + $0x9c] sm:$0xfe]  }
 0x5ae   : > { %v18553_v42 = vpop.permute.xlu1 %10027  ;;  %v9327_v27 = vor.u32 %v9325_v60, %v9324_v63  ;;  %v9329_v30 = vrot.slane %v9324_v63, 4  ;;  %10933 = vst.msk [vmem:[#allocation4 + $0x38] sm:$0xff] %vm815_vm0, %v10758_v17  ;;  %v8442_v32 = vadd.f32 %v18543_v2, %v8281_v11  ;;  %v8284_v37 = vadd.f32 %v18423_v45, %v14367_v38  ;;  %v15485_v1 = vld [vmem:[#allocation3 + $0xa4] ss:$0 sps:$4 sm:$0x11]   ;;  %v12103_v17 = vld [vmem:[#allocation4 + $0x20] sm:$0xff] }
 0x5af   : > { %10507 = vrot.lane.b32.xlu1 %v15478_v48, %s15834_s27  ;;  %11221 = vst.msk [vmem:[#allocation4 + $0x38] sm:$0xff] %vm2119_vm12, %v18459_v54  ;;  %v11159_v54 = vrot.slane %v15480_v36, 1  ;;  %v10298_v14 = vrot.slane %v15482_v13, 1  ;;  %v10299_v45 = vrot.slane %v15483_v58, 1  ;;  %v11720_v10 = vshrl.u32 %v15484_v21, 16  ;;  %12386 = vmatprep.mubr.bf16.mxu1 %v12103_v17  ;;  %v15492_v11 = vld [vmem:[#allocation3 + $0xa8] sm:$0xff]  }
 0x5b0   : > { %v9328_v35 = vsel %vm16264_vm11, %v9320_v43, %v9327_v27  ;;  %v9498_v59 = vsel %vm16145_vm3, %v9329_v30, %v9497_v29  ;;  %11397 = vst.msk [vmem:[#allocation4 + $0x38] sm:$0xff] %vm2409_vm13, %v18512_v31  ;;  %v8946_v31 = vunpack.c.l.bf16 %v8882_v56  ;;  %v8977_v25 = vadd.f32 %v8945_v61, %v8442_v32  ;;  %v15487_v33 = vld [vmem:[#allocation3 + $0xa4] ss:$0 sps:$4 sm:$0x11]   ;;  %v9500_v38 = vld [vmem:[#allocation3 + $0xc0] sm:$0xf] }
 0x5b1   : > { %v18569_v47 = vpop.permute.xlu0 %11353  ;;  %9496 = vst.msk [vmem:[#allocation3 + $0xb8] sm:$0xf] %vm443_vm4, %v9328_v35  ;;  %9499 = vst [vmem:[#allocation3 + $0xbc] sm:$0x1] %v9498_v59  ;;  %v8445_v2 = vadd.f32 %v18566_v5, %v8284_v37  ;;  %v11161_v43 = vsel %vm2312_vm7, %v11159_v54, %v11160_v51  ;;  %v11722_v34 = vshll.u32 %v15484_v21, 16  ;;  %v9984_v48 = vshrl.u32 %v15486_v39, 16 }
 0x5b2   : > { %v18575_v50 = vpop.permute.xlu1 %10491  ;;  %11829 = vst.msk [vmem:[#allocation4 + $0x38] sm:$0xff] %vm2586_vm14, %v18536_v62  ;;  %10534 = vst.msk [vmem:[#allocation4 + $0x48] sm:$0xff] %vm2586_vm14, %v18517_v9  ;;  %11195 = vrot.lane.b32.xlu0 %v11161_v43, %s15833_s28  ;;  %v14074_v49 = vpack.c.bf16 %v8977_v25, %v8977_v25  ;;  %v11727_v52 = vshll.u32 %v15485_v1, 16  ;;  %v9986_v9 = vshll.u32 %v15486_v39, 16  ;;  %v10300_v5 = vsel %vm2312_vm7, %v10298_v14, %v10299_v45  ;;  %v12102_v61 = vld [vmem:[#allocation4 + $0x18] sm:$0xff] }
 0x5b3   : > { %v12131_v62 = vld [vmem:[#allocation4 + $0x100] sm:$0xff]  ;;  %v8978_v60 = vadd.f32 %v8946_v31, %v8445_v2  ;;  %v11724_v20 = vrot.slane %v11722_v34, 1  ;;  %10333 = vrot.lane.b32.xlu1 %v10300_v5, %s15832_s21  ;;  %v9991_v8 = vshll.u32 %v15487_v33, 16  ;;  %v10760_v6 = vshrl.u32 %v15488_v26, 16  ;;  %v9504_v51 = vld [vmem:[#allocation3 + $0xc8] sm:$0x1]  ;;  %12387 = vmatmul.mubr.bf16.gmra.mrb[96].mxu1 %v12102_v61 }
 0x5b4   : > { %14648 = vmatprep.mubr.msk.bf16.mxu0 %vm815_vm0, %v12131_v62  ;;  %v9331_v22 = vshrl.u32 %v14074_v49, 16  ;;  %v9334_v63 = vshll.u32 %v14074_v49, 16  ;;  %v11729_v29 = vrot.slane %v11727_v52, 1  ;;  %v9988_v19 = vrot.slane %v9986_v9, 1  ;;  %v15490_v31 = vld [vmem:[#allocation3 + $0x9c] sm:$0xfe]  }
 0x5b5   : > { %v18581_v44 = vpop.permute.xlu0 %11179  ;;  %v14075_v0 = vpack.c.bf16 %v8978_v60, %v8978_v60  ;;  %v11725_v23 = vor.u32 %v11724_v20, %v11720_v10  ;;  %v15489_v36 = vld [vmem:[#allocation3 + $0x38] ss:$0 sps:$4 sm:$0x11]   ;;  %v9993_v21 = vrot.slane %v9991_v8, 1  ;;  %v10762_v35 = vshll.u32 %v15488_v26, 16  ;;  %v15493_v60 = vld [vmem:[#allocation3 + $0xa8] sm:$0xff]  }
 0x5b6   : > { %v18584_v28 = vpop.permute.xlu1 %10317  ;;  %v9333_v30 = vrot.slane %v9331_v22, 7  ;;  %v9989_v15 = vor.u32 %v9988_v19, %v9984_v48  ;;  %v10767_v32 = vshll.u32 %v15489_v36, 16  ;;  %v15491_v25 = vld [vmem:[#allocation3 + $0xa4] ss:$0 sps:$4 sm:$0x11]   ;;  %v12052_v34 = vrot.slane %v15490_v31, 1 }
 0x5b7   : > { %v9339_v24 = vshrl.u32 %v14075_v0, 16  ;;  %v9342_v46 = vshll.u32 %v14075_v0, 16  ;;  %v11730_v56 = vsel %vm1878_vm8, %v11725_v23, %v11729_v29  ;;  %v10764_v58 = vrot.slane %v10762_v35, 1  ;;  %v15494_v26 = vld [vmem:[#allocation3 + $0x30] sm:$0xff]   ;;  %v15495_v7 = vld [vmem:[#allocation3 + $0xa8] sm:$0xfe]  }
 0x5b8   : > { %v9336_v59 = vor.u32 %v9334_v63, %v9333_v30  ;;  %v9337_v54 = vrot.slane %v9333_v30, 4  ;;  %11801 = vrot.lane.b32.xlu0 %v11730_v56, %s15834_s27  ;;  %v9994_v13 = vsel %vm1878_vm8, %v9989_v15, %v9993_v21  ;;  %v10769_v45 = vrot.slane %v10767_v32, 1  ;;  %9639 = vst.msk [vmem:[#allocation4 + $0x60] sm:$0xff] %vm815_vm0, %v15494_v26  ;;  %v15496_v3 = vld [vmem:[#allocation3 + $0xb0] ss:$0 sps:$4 sm:$0x11]  }
 0x5b9   : > { %v9341_v39 = vrot.slane %v9339_v24, 7  ;;  %10045 = vrot.lane.b32.xlu1 %v9994_v13, %s15833_s28  ;;  %v10765_v10 = vor.u32 %v10764_v58, %v10760_v6  ;;  %v12053_v48 = vrot.slane %v15491_v25, 1  ;;  %v15499_v5 = vld [vmem:[#allocation3 + $0xa8] sm:$0xff]   ;;  %10071 = vst.msk [vmem:[#allocation4 + $0x60] sm:$0xff] %vm2119_vm12, %v18553_v42  ;;  %v11162_v33 = vrot.slane %v15495_v7, 1  ;;  %v15503_v36 = vld [vmem:[#allocation3 + $0x3c] sm:$0xff]  }
 0x5ba   : > { %v18588_v12 = vpop.permute.xlu0 %11785  ;;  %v9501_v43 = vsel %vm16257_vm10, %v9336_v59, %v9500_v38  ;;  %v15497_v22 = vld [vmem:[#allocation3 + $0xa8] sm:$0xfe]   ;;  %10359 = vst.msk [vmem:[#allocation4 + $0x60] sm:$0xff] %vm2409_vm13, %v18525_v18  ;;  %v11163_v63 = vrot.slane %v15496_v3, 1  ;;  %v11734_v8 = vshll.u32 %v15499_v5, 16  ;;  %v12106_v21 = vld [vmem:[#allocation4 + $0x38] sm:$0xff] }
 0x5bb   : > { %v9344_v14 = vor.u32 %v9342_v46, %v9341_v39  ;;  %v9346_v1 = vrot.slane %v9341_v39, 4  ;;  %9502 = vst [vmem:[#allocation3 + $0xc0] sm:$0xf] %v9501_v43  ;;  %v10770_v52 = vsel %vm1878_vm8, %v10765_v10, %v10769_v45  ;;  %v12054_v9 = vsel %vm2312_vm7, %v12052_v34, %v12053_v48  ;;  %v15498_v0 = vld [vmem:[#allocation3 + $0xb0] ss:$0 sps:$4 sm:$0x11]   ;;  %12394 = vmatprep.mubr.bf16.mxu1 %v12106_v21 }
 0x5bc   : > { %11371 = vrot.lane.b32.xlu0 %v15492_v11, %s15832_s21  ;;  %10934 = vst.msk [vmem:[#allocation4 + $0x50] sm:$0xff] %vm815_vm0, %v10770_v52  ;;  %12094 = vst.msk [vmem:[#allocation4 + $0x118] sm:$0xff] %vm815_vm0, %v12054_v9  ;;  %v10301_v29 = vrot.slane %v15497_v22, 1  ;;  %v15501_v42 = vld [vmem:[#allocation3 + $0xa8] sm:$0xff]   ;;  %v11164_v17 = vsel %vm2312_vm7, %v11162_v33, %v11163_v63  ;;  %v10302_v23 = vrot.slane %v15498_v0, 1  ;;  %v11736_v30 = vrot.slane %v11734_v8, 1 }
 0x5bd   : > { %v18594_v57 = vpop.permute.xlu1 %10029  ;;  %v9345_v62 = vsel %vm16264_vm11, %v9337_v54, %v9344_v14  ;;  %v9505_v49 = vsel %vm16145_vm3, %v9346_v1, %v9504_v51  ;;  %10509 = vrot.lane.b32.xlu1 %v15493_v60, %s15834_s27  ;;  %11222 = vst.msk [vmem:[#allocation4 + $0x50] sm:$0xff] %vm2119_vm12, %v18521_v40  ;;  %v15500_v19 = vld [vmem:[#allocation3 + $0xb0] ss:$0 sps:$4 sm:$0x11]   ;;  %v9996_v56 = vshrl.u32 %v15501_v42, 16  ;;  %v10774_v39 = vshll.u32 %v15503_v36, 16 }
 0x5be   : > { %v18598_v41 = vpop.permute.xlu0 %11355  ;;  %9503 = vst.msk [vmem:[#allocation3 + $0xc4] sm:$0xf] %vm443_vm4, %v9345_v62  ;;  %9506 = vst [vmem:[#allocation3 + $0xc8] sm:$0x1] %v9505_v49  ;;  %v10303_v6 = vsel %vm2312_vm7, %v10301_v29, %v10302_v23  ;;  %v15507_v32 = vld [vmem:[#allocation3 + $0xb4] sm:$0xff]   ;;  %v10772_v13 = vshrl.u32 %v15503_v36, 16 }
 0x5bf   : > { %11398 = vst.msk [vmem:[#allocation4 + $0x50] sm:$0xff] %vm2409_vm13, %v18569_v47  ;;  %v11732_v47 = vshrl.u32 %v15499_v5, 16  ;;  %v15502_v24 = vld [vmem:[#allocation3 + $0xb0] ss:$0 sps:$4 sm:$0x11]   ;;  %v10776_v25 = vrot.slane %v10774_v39, 1 }
 0x5c0   : > { %11830 = vst.msk [vmem:[#allocation4 + $0x50] sm:$0xff] %vm2586_vm14, %v18588_v12  ;;  %10535 = vst.msk [vmem:[#allocation4 + $0x60] sm:$0xff] %vm2586_vm14, %v18575_v50  ;;  %11197 = vrot.lane.b32.xlu0 %v11164_v17, %s15833_s28  ;;  %v11739_v12 = vshll.u32 %v15500_v19, 16  ;;  %v9998_v50 = vshll.u32 %v15501_v42, 16  ;;  %v10003_v15 = vshll.u32 %v15502_v24, 16  ;;  %v15508_v45 = vld [vmem:[#allocation3 + $0xb4] sm:$0xff]  }
 0x5c1   : > { %v18623_v16 = vpop.permute.xlu1 %10493  ;;  %10335 = vrot.lane.b32.xlu1 %v10303_v6, %s15832_s21  ;;  %v11737_v11 = vor.u32 %v11736_v30, %v11732_v47  ;;  %v15504_v54 = vld [vmem:[#allocation3 + $0x44] ss:$0 sps:$4 sm:$0x11]   ;;  %v15505_v14 = vld [vmem:[#allocation3 + $0xa8] sm:$0xfe]   ;;  %v10777_v62 = vor.u32 %v10776_v25, %v10772_v13  ;;  %v15509_v9 = vld [vmem:[#allocation3 + $0x3c] sm:$0xff]  }
 0x5c2   : > { %v18634_v55 = vpop.permute.xlu0 %11181  ;;  %v11741_v38 = vrot.slane %v11739_v12, 1  ;;  %v10000_v59 = vrot.slane %v9998_v50, 1  ;;  %v10005_v51 = vrot.slane %v10003_v15, 1  ;;  %v10779_v43 = vshll.u32 %v15504_v54, 16  ;;  %v12105_v10 = vld [vmem:[#allocation4 + $0x30] sm:$0xff]  ;;  %9640 = vst.msk [vmem:[#allocation4 + $0x78] sm:$0xff] %vm815_vm0, %v15509_v9 }
 0x5c3   : > { %v12134_v18 = vld [vmem:[#allocation4 + $0x118] sm:$0xff]  ;;  %v12055_v60 = vrot.slane %v15505_v14, 1  ;;  %12395 = vmatmul.mubr.bf16.gmra.mrb[100].mxu1 %v12105_v10  ;;  %10072 = vst.msk [vmem:[#allocation4 + $0x78] sm:$0xff] %vm2119_vm12, %v18594_v57  ;;  %v15511_v33 = vld [vmem:[#allocation3 + $0xbc] ss:$0 sps:$4 sm:$0x11]  }
 0x5c4   : > { %14649 = vmatmul.mubr.msk.bf16.gmra.mrb[152].mxu0 %vm815_vm0, %v12134_v18  ;;  %v11742_v61 = vsel %vm1878_vm8, %v11737_v11, %v11741_v38  ;;  %v10001_v31 = vor.u32 %v10000_v59, %v9996_v56  ;;  %v15506_v1 = vld [vmem:[#allocation3 + $0xb0] ss:$0 sps:$4 sm:$0x11]   ;;  %v10781_v49 = vrot.slane %v10779_v43, 1  ;;  %v15510_v5 = vld [vmem:[#allocation3 + $0xb4] sm:$0xfe]  }
 0x5c5   : > { %v18639_v4 = vpop.permute.xlu1 %10319  ;;  %11803 = vrot.lane.b32.xlu0 %v11742_v61, %s15834_s27  ;;  %v12056_v52 = vrot.slane %v15506_v1, 1  ;;  %v15512_v22 = vld [vmem:[#allocation3 + $0xb4] sm:$0xff]   ;;  %10360 = vst.msk [vmem:[#allocation4 + $0x78] sm:$0xff] %vm2409_vm13, %v18584_v28  ;;  %v11165_v0 = vrot.slane %v15510_v5, 1  ;;  %v15516_v19 = vld [vmem:[#allocation3 + $0x48] sm:$0xff]  }
 0x5c6   : > { %v10006_v48 = vsel %vm1878_vm8, %v10001_v31, %v10005_v51  ;;  %v10782_v7 = vsel %vm1878_vm8, %v10777_v62, %v10781_v49  ;;  %v15513_v29 = vld [vmem:[#allocation3 + $0xbc] ss:$0 sps:$4 sm:$0x11]   ;;  %10536 = vst.msk [vmem:[#allocation4 + $0x78] sm:$0xff] %vm2586_vm14, %v18623_v16  ;;  %v10008_v42 = vshrl.u32 %v15512_v22, 16  ;;  %v10010_v57 = vshll.u32 %v15512_v22, 16 }
 0x5c7   : > { %v18644_v27 = vpop.permute.xlu0 %11787  ;;  %10047 = vrot.lane.b32.xlu1 %v10006_v48, %s15833_s28  ;;  %10935 = vst.msk [vmem:[#allocation4 + $0x68] sm:$0xff] %vm815_vm0, %v10782_v7  ;;  %v12057_v3 = vsel %vm2312_vm7, %v12055_v60, %v12056_v52  ;;  %v15514_v17 = vld [vmem:[#allocation3 + $0xb4] sm:$0xff]   ;;  %v10015_v23 = vshll.u32 %v15513_v29, 16  ;;  %v15515_v18 = vld [vmem:[#allocation3 + $0xbc] ss:$0 sps:$4 sm:$0x11]  }
 0x5c8   : > { %11223 = vst.msk [vmem:[#allocation4 + $0x68] sm:$0xff] %vm2119_vm12, %v18581_v44  ;;  %v11166_v44 = vrot.slane %v15511_v33, 1  ;;  %v10012_v8 = vrot.slane %v10010_v57, 1  ;;  %v11746_v6 = vshll.u32 %v15514_v17, 16  ;;  %v10784_v16 = vshrl.u32 %v15516_v19, 16  ;;  %v12109_v11 = vld [vmem:[#allocation4 + $0x50] sm:$0xff] }
 0x5c9   : > { %11373 = vrot.lane.b32.xlu0 %v15507_v32, %s15832_s21  ;;  %12095 = vst.msk [vmem:[#allocation4 + $0x130] sm:$0xff] %vm815_vm0, %v12057_v3  ;;  %v10017_v30 = vrot.slane %v10015_v23, 1  ;;  %v11751_v50 = vshll.u32 %v15515_v18, 16  ;;  %v10786_v36 = vshll.u32 %v15516_v19, 16  ;;  %12402 = vmatprep.mubr.bf16.mxu1 %v12109_v11  ;;  %v15518_v61 = vld [vmem:[#allocation3 + $0xb4] sm:$0xfe]  }
 0x5ca   : > { %v18648_v37 = vpop.permute.xlu1 %10031  ;;  %11399 = vst.msk [vmem:[#allocation4 + $0x68] sm:$0xff] %vm2409_vm13, %v18598_v41  ;;  %v11167_v28 = vsel %vm2312_vm7, %v11165_v0, %v11166_v44  ;;  %v11744_v41 = vshrl.u32 %v15514_v17, 16  ;;  %v10013_v12 = vor.u32 %v10012_v8, %v10008_v42  ;;  %v11748_v24 = vrot.slane %v11746_v6, 1  ;;  %v15517_v56 = vld [vmem:[#allocation3 + $0x50] ss:$0 sps:$4 sm:$0x11]  }
 0x5cb   : > { %v18651_v2 = vpop.permute.xlu0 %11357  ;;  %10511 = vrot.lane.b32.xlu1 %v15508_v45, %s15834_s27  ;;  %11831 = vst.msk [vmem:[#allocation4 + $0x68] sm:$0xff] %vm2586_vm14, %v18644_v27  ;;  %v11753_v54 = vrot.slane %v11751_v50, 1  ;;  %v10788_v39 = vrot.slane %v10786_v36, 1  ;;  %v10791_v32 = vshll.u32 %v15517_v56, 16  ;;  %v12058_v43 = vrot.slane %v15518_v61, 1  ;;  %v15522_v45 = vld [vmem:[#allocation3 + $0xc0] sm:$0xff]  }
 0x5cc   : > { %v10018_v21 = vsel %vm1878_vm8, %v10013_v12, %v10017_v30  ;;  %v11749_v59 = vor.u32 %v11748_v24, %v11744_v41  ;;  %v15519_v51 = vld [vmem:[#allocation3 + $0xbc] ss:$0 sps:$4 sm:$0x11]   ;;  %v15520_v1 = vld [vmem:[#allocation3 + $0xb4] sm:$0xfe]   ;;  %v12108_v62 = vld [vmem:[#allocation4 + $0x48] sm:$0xff] }
 0x5cd   : > { %11199 = vrot.lane.b32.xlu0 %v11167_v28, %s15833_s28  ;;  %v10789_v31 = vor.u32 %v10788_v39, %v10784_v16  ;;  %v10793_v25 = vrot.slane %v10791_v32, 1  ;;  %v12059_v14 = vrot.slane %v15519_v51, 1  ;;  %v15521_v48 = vld [vmem:[#allocation3 + $0xbc] ss:$0 sps:$4 sm:$0x11]   ;;  %v10304_v52 = vrot.slane %v15520_v1, 1  ;;  %12403 = vmatmul.mubr.bf16.gmra.mrb[104].mxu1 %v12108_v62 }
 0x5ce   : > { %v18661_v53 = vpop.permute.xlu1 %10495  ;;  %v11754_v13 = vsel %vm1878_vm8, %v11749_v59, %v11753_v54  ;;  %v15523_v9 = vld [vmem:[#allocation3 + $0x48] sm:$0xff]   ;;  %v10305_v3 = vrot.slane %v15521_v48, 1  ;;  %v15525_v33 = vld [vmem:[#allocation3 + $0xc0] sm:$0xfe]   ;;  %v15531_v23 = vld [vmem:[#allocation3 + $0x54] sm:$0xff]  }
 0x5cf   : > { %v18672_v20 = vpop.permute.xlu0 %11183  ;;  %10049 = vrot.lane.b32.xlu1 %v10018_v21, %s15833_s28  ;;  %v10794_v49 = vsel %vm1878_vm8, %v10789_v31, %v10793_v25  ;;  %v12060_v60 = vsel %vm2312_vm7, %v12058_v43, %v12059_v14  ;;  %9641 = vst.msk [vmem:[#allocation4 + $0x90] sm:$0xff] %vm815_vm0, %v15523_v9  ;;  %v15526_v22 = vld [vmem:[#allocation3 + $0xc8] ss:$0 sps:$4 sm:$0x11]   ;;  %v15524_v29 = vld [vmem:[#allocation3 + $0xc0] sm:$0xff]   ;;  %v11168_v44 = vrot.slane %v15525_v33, 1 }
 0x5d0   : > { %v12137_v38 = vld [vmem:[#allocation4 + $0x130] sm:$0xff]  ;;  %10936 = vst.msk [vmem:[#allocation4 + $0x80] sm:$0xff] %vm815_vm0, %v10794_v49  ;;  %12096 = vst.msk [vmem:[#allocation4 + $0x148] sm:$0xff] %vm815_vm0, %v12060_v60  ;;  %v10306_v5 = vsel %vm2312_vm7, %v10304_v52, %v10305_v3  ;;  %v11169_v42 = vrot.slane %v15526_v22, 1  ;;  %v10796_v12 = vshrl.u32 %v15531_v23, 16  ;;  %v10798_v24 = vshll.u32 %v15531_v23, 16 }
 0x5d1   : > { %14652 = vmatprep.mubr.msk.bf16.mxu0 %vm815_vm0, %v12137_v38  ;;  %11805 = vrot.lane.b32.xlu0 %v11754_v13, %s15834_s27  ;;  %11224 = vst.msk [vmem:[#allocation4 + $0x80] sm:$0xff] %vm2119_vm12, %v18634_v55  ;;  %10073 = vst.msk [vmem:[#allocation4 + $0x90] sm:$0xff] %vm2119_vm12, %v18648_v37  ;;  %v15529_v55 = vld [vmem:[#allocation3 + $0xc0] sm:$0xff]   ;;  %v15530_v28 = vld [vmem:[#allocation3 + $0xc8] ss:$0 sps:$4 sm:$0x11]  }
 0x5d2   : > { %v18682_v40 = vpop.permute.xlu1 %10321  ;;  %11400 = vst.msk [vmem:[#allocation4 + $0x80] sm:$0xff] %vm2409_vm13, %v18651_v2  ;;  %10361 = vst.msk [vmem:[#allocation4 + $0x90] sm:$0xff] %vm2409_vm13, %v18639_v4  ;;  %v15527_v37 = vld [vmem:[#allocation3 + $0xc0] sm:$0xfe]   ;;  %v11170_v19 = vsel %vm2312_vm7, %v11168_v44, %v11169_v42  ;;  %v11758_v8 = vshll.u32 %v15529_v55, 16  ;;  %v11756_v18 = vshrl.u32 %v15529_v55, 16 }
 0x5d3   : > { %10337 = vrot.lane.b32.xlu1 %v10306_v5, %s15832_s21  ;;  %10537 = vst.msk [vmem:[#allocation4 + $0x90] sm:$0xff] %vm2586_vm14, %v18661_v53  ;;  %v15528_v2 = vld [vmem:[#allocation3 + $0xc8] ss:$0 sps:$4 sm:$0x11]   ;;  %v12061_v17 = vrot.slane %v15527_v37, 1  ;;  %v11763_v6 = vshll.u32 %v15530_v28, 16 }
 0x5d4   : > { %v11760_v41 = vrot.slane %v11758_v8, 1  ;;  %v15532_v30 = vld [vmem:[#allocation3 + $0x5c] ss:$0 sps:$4 sm:$0x11]   ;;  %v12112_v50 = vld [vmem:[#allocation4 + $0x68] sm:$0xff]  ;;  %v10800_v59 = vrot.slane %v10798_v24, 1 }
 0x5d5   : > { %v18689_v46 = vpop.permute.xlu0 %11789  ;;  %11375 = vrot.lane.b32.xlu0 %v15522_v45, %s15832_s21  ;;  %v12111_v36 = vld [vmem:[#allocation4 + $0x60] sm:$0xff]  ;;  %v11765_v56 = vrot.slane %v11763_v6, 1  ;;  %v10803_v21 = vshll.u32 %v15532_v30, 16  ;;  %12410 = vmatprep.mubr.bf16.mxu1 %v12112_v50  ;;  %v15533_v54 = vld [vmem:[#allocation3 + $0xcc] sm:$0xff]   ;;  %v15537_v31 = vld [vmem:[#allocation3 + $0x60] sm:$0xff]  }
 0x5d6   : > { %11832 = vst.msk [vmem:[#allocation4 + $0x80] sm:$0xff] %vm2586_vm14, %v18689_v46  ;;  %v12062_v46 = vrot.slane %v15528_v2, 1  ;;  %v11761_v38 = vor.u32 %v11760_v41, %v11756_v18  ;;  %12411 = vmatmul.mubr.bf16.gmra.mrb[108].mxu1 %v12111_v36  ;;  %v15534_v39 = vld [vmem:[#allocation3 + $0x54] sm:$0xff]   ;;  %v15535_v32 = vld [vmem:[#allocation3 + $0xcc] sm:$0xff]   ;;  %v10801_v43 = vor.u32 %v10800_v59, %v10796_v12  ;;  %v10808_v49 = vshrl.u32 %v15537_v31, 16  ;;  %v15539_v55 = vld [vmem:[#allocation3 + $0x60] sm:$0xff]  }
 0x5d7   : > { %v18693_v35 = vpop.permute.xlu1 %10033  ;;  %v12140_v4 = vld [vmem:[#allocation4 + $0x148] sm:$0xff]  ;;  %10513 = vrot.lane.b32.xlu1 %v15524_v29, %s15834_s27  ;;  %v15536_v61 = vld [vmem:[#allocation3 + $0xd4] ss:$0 sps:$4 sm:$0x11]   ;;  %v10805_v13 = vrot.slane %v10803_v21, 1  ;;  %9642 = vst.msk [vmem:[#allocation4 + $0xa8] sm:$0xff] %vm815_vm0, %v15534_v39 }
 0x5d8   : > { %14653 = vmatmul.mubr.msk.bf16.gmra.mrb[156].mxu0 %vm815_vm0, %v12140_v4  ;;  %v12063_v53 = vsel %vm2312_vm7, %v12061_v17, %v12062_v46  ;;  %v11766_v51 = vsel %vm1878_vm8, %v11761_v38, %v11765_v56  ;;  %v11768_v14 = vshrl.u32 %v15535_v32, 16  ;;  %v11770_v1 = vshll.u32 %v15535_v32, 16  ;;  %10074 = vst.msk [vmem:[#allocation4 + $0xa8] sm:$0xff] %vm2119_vm12, %v18693_v35  ;;  %v15538_v62 = vld [vmem:[#allocation3 + $0x68] ss:$0 sps:$4 sm:$0x11]  }
 0x5d9   : > { %v18696_v58 = vpop.permute.xlu0 %11359  ;;  %11201 = vrot.lane.b32.xlu0 %v11170_v19, %s15833_s28  ;;  %12097 = vst.msk [vmem:[#allocation4 + $0x160] sm:$0xff] %vm815_vm0, %v12063_v53  ;;  %v11775_v45 = vshll.u32 %v15536_v61, 16  ;;  %v10810_v60 = vshll.u32 %v15537_v31, 16  ;;  %v10806_v52 = vsel %vm1878_vm8, %v10801_v43, %v10805_v13  ;;  %v10815_v22 = vshll.u32 %v15538_v62, 16  ;;  %v15540_v44 = vld [vmem:[#allocation3 + $0x6c] sm:$0xff]   ;;  %9643 = vst.msk [vmem:[#allocation4 + $0xc0] sm:$0xff] %vm815_vm0, %v15539_v55 }
 0x5da   : > { %10362 = vst.msk [vmem:[#allocation4 + $0xa8] sm:$0xff] %vm2409_vm13, %v18682_v40  ;;  %v11772_v9 = vrot.slane %v11770_v1, 1  ;;  %v12114_v2 = vld [vmem:[#allocation4 + $0x78] sm:$0xff]  ;;  %v10822_v4 = vshll.u32 %v15540_v44, 16  ;;  %v15543_v46 = vld [vmem:[#allocation3 + $0x78] sm:$0xff]   ;;  %v15546_v30 = vld [vmem:[#allocation3 + $0x84] sm:$0xff]  }
 0x5db   : > { %v18699_v34 = vpop.permute.xlu1 %10497  ;;  %v11777_v3 = vrot.slane %v11775_v45, 1  ;;  %10937 = vst.msk [vmem:[#allocation4 + $0x98] sm:$0xff] %vm815_vm0, %v10806_v52  ;;  %v10812_v35 = vrot.slane %v10810_v60, 1  ;;  %v10817_v42 = vrot.slane %v10815_v22, 1  ;;  %v15542_v17 = vld [vmem:[#allocation3 + $0x6c] sm:$0xff]   ;;  %v10834_v8 = vshll.u32 %v15543_v46, 16 }
 0x5dc   : > { %10538 = vst.msk [vmem:[#allocation4 + $0xa8] sm:$0xff] %vm2586_vm14, %v18699_v34  ;;  %v11773_v40 = vor.u32 %v11772_v9, %v11768_v14  ;;  %v15541_v34 = vld [vmem:[#allocation3 + $0x74] ss:$0 sps:$4 sm:$0x11]   ;;  %v15545_v53 = vld [vmem:[#allocation3 + $0x78] sm:$0xff]   ;;  %v10832_v41 = vshrl.u32 %v15543_v46, 16 }
 0x5dd   : > { %v18703_v26 = vpop.permute.xlu0 %11185  ;;  %11807 = vrot.lane.b32.xlu0 %v11766_v51, %s15834_s27  ;;  %v12115_v48 = vld [vmem:[#allocation4 + $0x80] sm:$0xff]  ;;  %11225 = vst.msk [vmem:[#allocation4 + $0x98] sm:$0xff] %vm2119_vm12, %v18672_v20  ;;  %v10813_v37 = vor.u32 %v10812_v35, %v10808_v49  ;;  %v10820_v20 = vshrl.u32 %v15540_v44, 16  ;;  %v10827_v19 = vshll.u32 %v15541_v34, 16  ;;  %v15548_v56 = vld [vmem:[#allocation3 + $0x84] sm:$0xff]   ;;  %v10844_v39 = vshrl.u32 %v15546_v30, 16 }
 0x5de   : > { %12418 = vmatprep.mubr.bf16.mxu1 %v12115_v48  ;;  %11401 = vst.msk [vmem:[#allocation4 + $0x98] sm:$0xff] %vm2409_vm13, %v18696_v58  ;;  %v11778_v23 = vsel %vm1878_vm8, %v11773_v40, %v11777_v3  ;;  %v15549_v51 = vld [vmem:[#allocation3 + $0x90] sm:$0xff]   ;;  %v15550_v13 = vld [vmem:[#allocation3 + $0x98] ss:$0 sps:$4 sm:$0x11]   ;;  %v15552_v52 = vld [vmem:[#allocation3 + $0x9c] sm:$0xff]  }
 0x5df   : > { %v18715_v63 = vpop.permute.xlu1 %10323  ;;  %12419 = vmatmul.mubr.bf16.gmra.mrb[112].mxu1 %v12114_v2  ;;  %v10818_v58 = vsel %vm1878_vm8, %v10813_v37, %v10817_v42  ;;  %9644 = vst.msk [vmem:[#allocation4 + $0xd8] sm:$0xff] %vm815_vm0, %v15542_v17  ;;  %9645 = vst.msk [vmem:[#allocation4 + $0xf0] sm:$0xff] %vm815_vm0, %v15545_v53  ;;  %v15551_v31 = vld [vmem:[#allocation3 + $0x90] sm:$0xff]   ;;  %v10856_v14 = vshrl.u32 %v15549_v51, 16  ;;  %v10858_v1 = vshll.u32 %v15549_v51, 16  ;;  %v10863_v62 = vshll.u32 %v15550_v13, 16 }
 0x5e0   : > { %v12143_v33 = vld [vmem:[#allocation4 + $0x160] sm:$0xff]  ;;  %10938 = vst.msk [vmem:[#allocation4 + $0xb0] sm:$0xff] %vm815_vm0, %v10818_v58  ;;  %9646 = vst.msk [vmem:[#allocation4 + $0x108] sm:$0xff] %vm815_vm0, %v15548_v56  ;;  %v10868_v22 = vshrl.u32 %v15552_v52, 16  ;;  %v10870_v55 = vshll.u32 %v15552_v52, 16  ;;  %v15555_v44 = vld [vmem:[#allocation3 + $0xa8] sm:$0xff]  }
 0x5e1   : > { %v18726_v47 = vpop.permute.xlu0 %11791  ;;  %14656 = vmatprep.mubr.msk.bf16.mxu0 %vm815_vm0, %v12143_v33  ;;  %11377 = vrot.lane.b32.xlu0 %v15533_v54, %s15832_s21  ;;  %11226 = vst.msk [vmem:[#allocation4 + $0xb0] sm:$0xff] %vm2119_vm12, %v18703_v26  ;;  %v10836_v26 = vrot.slane %v10834_v8, 1  ;;  %v10860_v60 = vrot.slane %v10858_v1, 1  ;;  %v10865_v35 = vrot.slane %v10863_v62, 1  ;;  %v10880_v58 = vshrl.u32 %v15555_v44, 16 }
 0x5e2   : > { %11833 = vst.msk [vmem:[#allocation4 + $0x98] sm:$0xff] %vm2586_vm14, %v18726_v47  ;;  %v10824_v47 = vrot.slane %v10822_v4, 1  ;;  %v10872_v2 = vrot.slane %v10870_v55, 1  ;;  %v15559_v8 = vld [vmem:[#allocation3 + $0xbc] ss:$0 sps:$4 sm:$0x11]  }
 0x5e3   : > { %v10837_v50 = vor.u32 %v10836_v26, %v10832_v41  ;;  %9647 = vst.msk [vmem:[#allocation4 + $0x120] sm:$0xff] %vm815_vm0, %v15551_v31  ;;  %v12120_v9 = vld [vmem:[#allocation4 + $0xa8] sm:$0xff]  ;;  %v10861_v33 = vor.u32 %v10860_v60, %v10856_v14  ;;  %v15560_v41 = vld [vmem:[#allocation3 + $0xb4] sm:$0xff]  }
 0x5e4   : > { %v18730_v27 = vpop.permute.xlu1 %10035  ;;  %v10873_v4 = vor.u32 %v10872_v2, %v10868_v22  ;;  %9650 = vst.msk [vmem:[#allocation4 + $0x168] sm:$0xff] %vm815_vm0, %v15560_v41 }
 0x5e5   : > { %v18732_v15 = vpop.permute.xlu0 %11361  ;;  %10075 = vst.msk [vmem:[#allocation4 + $0xc0] sm:$0xff] %vm2119_vm12, %v18730_v27  ;;  %11809 = vrot.lane.b32.xlu0 %v11778_v23, %s15834_s27  ;;  %v15544_v27 = vld [vmem:[#allocation3 + $0x80] ss:$0 sps:$4 sm:$0x11]   ;;  %v10866_v42 = vsel %vm1878_vm8, %v10861_v33, %v10865_v35 }
 0x5e6   : > { %10363 = vst.msk [vmem:[#allocation4 + $0xc0] sm:$0xff] %vm2409_vm13, %v18715_v63  ;;  %v10829_v63 = vrot.slane %v10827_v19, 1  ;;  %11402 = vst.msk [vmem:[#allocation4 + $0xb0] sm:$0xff] %vm2409_vm13, %v18732_v15  ;;  %v10839_v6 = vshll.u32 %v15544_v27, 16  ;;  %v15557_v19 = vld [vmem:[#allocation3 + $0xa8] sm:$0xff]  }
 0x5e7   : > { %v15547_v15 = vld [vmem:[#allocation3 + $0x8c] ss:$0 sps:$4 sm:$0x11]   ;;  %10942 = vst.msk [vmem:[#allocation4 + $0x110] sm:$0xff] %vm815_vm0, %v10866_v42  ;;  %9649 = vst.msk [vmem:[#allocation4 + $0x150] sm:$0xff] %vm815_vm0, %v15557_v19 }
 0x5e8   : > { %v18739_v10 = vpop.permute.xlu1 %10499  ;;  %v10841_v36 = vrot.slane %v10839_v6, 1  ;;  %v10851_v21 = vshll.u32 %v15547_v15, 16  ;;  %v15556_v23 = vld [vmem:[#allocation3 + $0xb0] ss:$0 sps:$4 sm:$0x11]  }
 0x5e9   : > { %v18743_v7 = vpop.permute.xlu0 %11187  ;;  %10539 = vst.msk [vmem:[#allocation4 + $0xc0] sm:$0xff] %vm2586_vm14, %v18739_v10  ;;  %v10825_v10 = vor.u32 %v10824_v47, %v10820_v20  ;;  %v12118_v24 = vld [vmem:[#allocation4 + $0x98] sm:$0xff]  ;;  %v10882_v20 = vshll.u32 %v15555_v44, 16  ;;  %v10887_v27 = vshll.u32 %v15556_v23, 16 }
 0x5ea   : > { %12426 = vmatprep.mubr.bf16.mxu1 %v12118_v24  ;;  %v10842_v54 = vsel %vm1878_vm8, %v10837_v50, %v10841_v36  ;;  %v15562_v15 = vld [vmem:[#allocation3 + $0xc8] ss:$0 sps:$4 sm:$0x11]   ;;  %v12146_v24 = vld [vmem:[#allocation4 + $0x178] sm:$0xff] }
 0x5eb   : > { %10940 = vst.msk [vmem:[#allocation4 + $0xe0] sm:$0xff] %vm815_vm0, %v10842_v54  ;;  %v10884_v47 = vrot.slane %v10882_v20, 1  ;;  %14657 = vmatmul.mubr.msk.bf16.gmra.mrb[160].mxu0 %vm815_vm0, %v12146_v24  ;;  %v10911_v56 = vshll.u32 %v15562_v15, 16 }
 0x5ec   : > { %v18761_v0 = vpop.permute.xlu1 %10325 }
 0x5ef   : > { %v18765_v57 = vpop.permute.xlu0 %11793 }
 0x5f0   : > { %11834 = vst.msk [vmem:[#allocation4 + $0xb0] sm:$0xff] %vm2586_vm14, %v18765_v57  ;;  %v10846_v57 = vshll.u32 %v15546_v30, 16  ;;  %v12123_v6 = vld [vmem:[#allocation4 + $0xc0] sm:$0xff]  ;;  %v10899_v30 = vshll.u32 %v15559_v8, 16 }
 0x5f1   : > { %v18772_v16 = vpop.permute.xlu1 %10037 }
 0x5f2   : > { %10076 = vst.msk [vmem:[#allocation4 + $0xd8] sm:$0xff] %vm2119_vm12, %v18772_v16  ;;  %v12117_v16 = vld [vmem:[#allocation4 + $0x90] sm:$0xff]  ;;  %v10848_v32 = vrot.slane %v10846_v57, 1  ;;  %v10901_v54 = vrot.slane %v10899_v30, 1 }
 0x5f3   : > { %v18775_v11 = vpop.permute.xlu0 %11363  ;;  %10364 = vst.msk [vmem:[#allocation4 + $0xd8] sm:$0xff] %vm2409_vm13, %v18761_v0  ;;  %v10830_v0 = vsel %vm1878_vm8, %v10825_v10, %v10829_v63  ;;  %12427 = vmatmul.mubr.bf16.gmra.mrb[116].mxu1 %v12117_v16  ;;  %v15558_v63 = vld [vmem:[#allocation3 + $0xb4] sm:$0xff]   ;;  %v10889_v10 = vrot.slane %v10887_v27, 1 }
 0x5f4   : > { %10939 = vst.msk [vmem:[#allocation4 + $0xc8] sm:$0xff] %vm815_vm0, %v10830_v0  ;;  %v10894_v26 = vshll.u32 %v15558_v63, 16  ;;  %v15561_v0 = vld [vmem:[#allocation3 + $0xc0] sm:$0xff]   ;;  %v10892_v50 = vshrl.u32 %v15558_v63, 16 }
 0x5f5   : > { %v18778_v25 = vpop.permute.xlu1 %10501  ;;  %11227 = vst.msk [vmem:[#allocation4 + $0xc8] sm:$0xff] %vm2119_vm12, %v18743_v7 }
 0x5f6   : > { %10540 = vst.msk [vmem:[#allocation4 + $0xd8] sm:$0xff] %vm2586_vm14, %v18778_v25  ;;  %v10853_v25 = vrot.slane %v10851_v21, 1  ;;  %v10896_v36 = vrot.slane %v10894_v26, 1 }
 0x5f7   : > { %v18787_v5 = vpop.permute.xlu0 %11189  ;;  %11403 = vst.msk [vmem:[#allocation4 + $0xc8] sm:$0xff] %vm2409_vm13, %v18775_v11  ;;  %v10849_v11 = vor.u32 %v10848_v32, %v10844_v39  ;;  %v12121_v45 = vld [vmem:[#allocation4 + $0xb0] sm:$0xff]  ;;  %v10904_v39 = vshrl.u32 %v15561_v0, 16 }
 0x5f8   : > { %11228 = vst.msk [vmem:[#allocation4 + $0xe0] sm:$0xff] %vm2119_vm12, %v18787_v5  ;;  %12434 = vmatprep.mubr.bf16.mxu1 %v12121_v45  ;;  %v15553_v5 = vld [vmem:[#allocation3 + $0xa4] ss:$0 sps:$4 sm:$0x11]   ;;  %v10897_v21 = vor.u32 %v10896_v36, %v10892_v50 }
 0x5f9   : > { %v10328_v29 = vpop.permute.xlu1 %10327  ;;  %v10854_v49 = vsel %vm1878_vm8, %v10849_v11, %v10853_v25  ;;  %v10875_v40 = vshll.u32 %v15553_v5, 16  ;;  %v10913_v11 = vrot.slane %v10911_v56, 1 }
 0x5fa   : > { %10941 = vst.msk [vmem:[#allocation4 + $0xf8] sm:$0xff] %vm815_vm0, %v10854_v49  ;;  %v10902_v13 = vsel %vm1878_vm8, %v10897_v21, %v10901_v54 }
 0x5fb   : > { %v11796_v28 = vpop.permute.xlu0 %11795  ;;  %12435 = vmatmul.mubr.bf16.gmra.mrb[120].mxu1 %v12120_v9  ;;  %v10877_v17 = vrot.slane %v10875_v40, 1  ;;  %10945 = vst.msk [vmem:[#allocation4 + $0x158] sm:$0xff] %vm815_vm0, %v10902_v13 }
 0x5fc   : > { %11835 = vst.msk [vmem:[#allocation4 + $0xc8] sm:$0xff] %vm2586_vm14, %v11796_v28 }
 0x5fd   : > { %v10040_v18 = vpop.permute.xlu1 %10039  ;;  %v10878_v28 = vsel %vm1878_vm8, %v10873_v4, %v10877_v17  ;;  %v12126_v14 = vld [vmem:[#allocation4 + $0xd8] sm:$0xff] }
 0x5fe   : > { %10077 = vst.msk [vmem:[#allocation4 + $0xf0] sm:$0xff] %vm2119_vm12, %v10040_v18  ;;  %v10885_v18 = vor.u32 %v10884_v47, %v10880_v58 }
 0x5ff   : > { %v11366_v12 = vpop.permute.xlu0 %11365  ;;  %10365 = vst.msk [vmem:[#allocation4 + $0xf0] sm:$0xff] %vm2409_vm13, %v10328_v29  ;;  %v15554_v29 = vld [vmem:[#allocation3 + $0x9c] sm:$0xff]  }
 0x600   : > { %11404 = vst.msk [vmem:[#allocation4 + $0xe0] sm:$0xff] %vm2409_vm13, %v11366_v12  ;;  %v10890_v12 = vsel %vm1878_vm8, %v10885_v18, %v10889_v10 }
 0x601   : > { %v10504_v38 = vpop.permute.xlu1 %10503  ;;  %9648 = vst.msk [vmem:[#allocation4 + $0x138] sm:$0xff] %vm815_vm0, %v15554_v29  ;;  %10943 = vst.msk [vmem:[#allocation4 + $0x128] sm:$0xff] %vm815_vm0, %v10878_v28 }
 0x602   : > { %10541 = vst.msk [vmem:[#allocation4 + $0xf0] sm:$0xff] %vm2586_vm14, %v10504_v38  ;;  %v10906_v38 = vshll.u32 %v15561_v0, 16 }
 0x603   : > { %v12124_v37 = vld [vmem:[#allocation4 + $0xc8] sm:$0xff]  ;;  %10944 = vst.msk [vmem:[#allocation4 + $0x140] sm:$0xff] %vm815_vm0, %v10890_v12 }
 0x604   : > { %v11192_v48 = vpop.permute.xlu0 %11191  ;;  %12442 = vmatprep.mubr.bf16.mxu1 %v12124_v37  ;;  %v10908_v32 = vrot.slane %v10906_v38, 1 }
 0x605   : > { %v10330_v3 = vpop.permute.xlu1 %10329  ;;  %11229 = vst.msk [vmem:[#allocation4 + $0xf8] sm:$0xff] %vm2119_vm12, %v11192_v48  ;;  %12443 = vmatmul.mubr.bf16.gmra.mrb[124].mxu1 %v12123_v6 }
 0x606   : > { %v10909_v31 = vor.u32 %v10908_v32, %v10904_v39 }
 0x608   : > { %v10914_v25 = vsel %vm1878_vm8, %v10909_v31, %v10913_v11  ;;  %v18932_v31 = vld [vmem:[#allocation16] ss:$0 sm:$0xff] }
 0x609   : > { %v18832_v59 = vpop.f32.mrb[132].mxu0  ;;  %10946 = vst.msk [vmem:[#allocation4 + $0x170] sm:$0xff] %vm815_vm0, %v10914_v25  ;;  %v12129_v33 = vld [vmem:[#allocation4 + $0xf0] sm:$0xff]  ;;  %vm12796_vm0 = vcmask 93184  }
 0x60a   : > { %v18838_v61 = vpop.f32.mrb[133].mxu0  ;;  %v11798_v34 = vpop.permute.xlu0 %11797 }
 0x60b   : > { %v18842_v7 = vpop.f32.mrb[134].mxu0  ;;  %11836 = vst.msk [vmem:[#allocation4 + $0xe0] sm:$0xff] %vm2586_vm14, %v11798_v34 }
 0x60c   : > { %v18846_v43 = vpop.f32.mrb[135].mxu0  ;;  %v10042_v46 = vpop.permute.xlu1 %10041 }
 0x60d   : > { %10078 = vst.msk [vmem:[#allocation4 + $0x108] sm:$0xff] %vm2119_vm12, %v10042_v46 }
 0x60e   : > { %10366 = vst.msk [vmem:[#allocation4 + $0x108] sm:$0xff] %vm2409_vm13, %v10330_v3  ;;  %v11368_v53 = vpop.permute.xlu0 %11367 }
 0x60f   : > { %11405 = vst.msk [vmem:[#allocation4 + $0xf8] sm:$0xff] %vm2409_vm13, %v11368_v53 }
 0x610   : > { %v10506_v16 = vpop.permute.xlu1 %10505 }
 0x611   : > { %10542 = vst.msk [vmem:[#allocation4 + $0x108] sm:$0xff] %vm2586_vm14, %v10506_v16 }
 0x612   : > { %v12127_v57 = vld [vmem:[#allocation4 + $0xe0] sm:$0xff]  ;;  %v11194_v51 = vpop.permute.xlu0 %11193 }
 0x613   : > { %12450 = vmatprep.mubr.bf16.mxu1 %v12127_v57  ;;  %11230 = vst.msk [vmem:[#allocation4 + $0x110] sm:$0xff] %vm2119_vm12, %v11194_v51 }
 0x614   : > { %v10332_v45 = vpop.permute.xlu1 %10331  ;;  %12451 = vmatmul.mubr.bf16.gmra.mrb[128].mxu1 %v12126_v14 }
 0x618   : > { %v12132_v34 = vld [vmem:[#allocation4 + $0x108] sm:$0xff] }
 0x61a   : > { %v11800_v60 = vpop.permute.xlu0 %11799 }
 0x61b   : > { %11837 = vst.msk [vmem:[#allocation4 + $0xf8] sm:$0xff] %vm2586_vm14, %v11800_v60 }
 0x61d   : > { %v10044_v52 = vpop.permute.xlu1 %10043 }
 0x61e   : > { %10079 = vst.msk [vmem:[#allocation4 + $0x120] sm:$0xff] %vm2119_vm12, %v10044_v52  ;;  %v11370_v9 = vpop.permute.xlu0 %11369 }
 0x61f   : > { %10367 = vst.msk [vmem:[#allocation4 + $0x120] sm:$0xff] %vm2409_vm13, %v10332_v45  ;;  %11406 = vst.msk [vmem:[#allocation4 + $0x110] sm:$0xff] %vm2409_vm13, %v11370_v9 }
 0x621   : > { %v10508_v3 = vpop.permute.xlu1 %10507 }
 0x622   : > { %10543 = vst.msk [vmem:[#allocation4 + $0x120] sm:$0xff] %vm2586_vm14, %v10508_v3  ;;  %v12130_v5 = vld [vmem:[#allocation4 + $0xf8] sm:$0xff] }
 0x623   : > { %12458 = vmatprep.mubr.bf16.mxu1 %v12130_v5 }
 0x624   : > { %12459 = vmatmul.mubr.bf16.gmra.mrb[132].mxu1 %v12129_v33  ;;  %v11196_v35 = vpop.permute.xlu0 %11195 }
 0x625   : > { %v18872_v1 = vpop.f32.mrb[136].mxu0  ;;  %11231 = vst.msk [vmem:[#allocation4 + $0x128] sm:$0xff] %vm2119_vm12, %v11196_v35  ;;  %v10334_v22 = vpop.permute.xlu1 %10333 }
 0x626   : > { %v18875_v48 = vpop.f32.mrb[137].mxu0 }
 0x627   : > { %v18877_v62 = vpop.f32.mrb[138].mxu0 }
 0x628   : > { %v18879_v49 = vpop.f32.mrb[139].mxu0 }
 0x629   : > { %v12135_v28 = vld [vmem:[#allocation4 + $0x120] sm:$0xff] }
 0x62a   : > { %v11802_v55 = vpop.permute.xlu0 %11801 }
 0x62b   : > { %11838 = vst.msk [vmem:[#allocation4 + $0x110] sm:$0xff] %vm2586_vm14, %v11802_v55  ;;  %v10046_v29 = vpop.permute.xlu1 %10045 }
 0x62c   : > { %10080 = vst.msk [vmem:[#allocation4 + $0x138] sm:$0xff] %vm2119_vm12, %v10046_v29 }
 0x62d   : > { %10368 = vst.msk [vmem:[#allocation4 + $0x138] sm:$0xff] %vm2409_vm13, %v10334_v22 }
 0x62e   : > { %v11372_v40 = vpop.permute.xlu0 %11371 }
 0x62f   : > { %11407 = vst.msk [vmem:[#allocation4 + $0x128] sm:$0xff] %vm2409_vm13, %v11372_v40  ;;  %v10510_v44 = vpop.permute.xlu1 %10509 }
 0x630   : > { %10544 = vst.msk [vmem:[#allocation4 + $0x138] sm:$0xff] %vm2586_vm14, %v10510_v44 }
 0x632   : > { %v12133_v42 = vld [vmem:[#allocation4 + $0x110] sm:$0xff]  ;;  %v11198_v20 = vpop.permute.xlu0 %11197 }
 0x633   : > { %12466 = vmatprep.mubr.bf16.mxu1 %v12133_v42  ;;  %11232 = vst.msk [vmem:[#allocation4 + $0x140] sm:$0xff] %vm2119_vm12, %v11198_v20  ;;  %v10336_v4 = vpop.permute.xlu1 %10335 }
 0x634   : > { %12467 = vmatmul.mubr.bf16.gmra.mrb[136].mxu1 %v12132_v34 }
 0x637   : > { %v11804_v58 = vpop.permute.xlu0 %11803  ;;  %v12138_v16 = vld [vmem:[#allocation4 + $0x138] sm:$0xff] }
 0x638   : > { %11839 = vst.msk [vmem:[#allocation4 + $0x128] sm:$0xff] %vm2586_vm14, %v11804_v58 }
 0x639   : > { %v10048_v19 = vpop.permute.xlu1 %10047 }
 0x63a   : > { %10081 = vst.msk [vmem:[#allocation4 + $0x150] sm:$0xff] %vm2119_vm12, %v10048_v19 }
 0x63b   : > { %v11374_v46 = vpop.permute.xlu0 %11373  ;;  %10369 = vst.msk [vmem:[#allocation4 + $0x150] sm:$0xff] %vm2409_vm13, %v10336_v4 }
 0x63c   : > { %11408 = vst.msk [vmem:[#allocation4 + $0x140] sm:$0xff] %vm2409_vm13, %v11374_v46 }
 0x63d   : > { %v10512_v47 = vpop.permute.xlu1 %10511 }
 0x63e   : > { %10545 = vst.msk [vmem:[#allocation4 + $0x150] sm:$0xff] %vm2586_vm14, %v10512_v47 }
 0x63f   : > { %v18892_v37 = vpop.f32.mrb[140].mxu0  ;;  %v12136_v27 = vld [vmem:[#allocation4 + $0x128] sm:$0xff]  ;;  %v11200_v63 = vpop.permute.xlu0 %11199 }
 0x640   : > { %v18894_v2 = vpop.f32.mrb[141].mxu0  ;;  %12474 = vmatprep.mubr.bf16.mxu1 %v12136_v27  ;;  %11233 = vst.msk [vmem:[#allocation4 + $0x158] sm:$0xff] %vm2119_vm12, %v11200_v63 }
 0x641   : > { %v18896_v17 = vpop.f32.mrb[142].mxu0  ;;  %12475 = vmatmul.mubr.bf16.gmra.mrb[140].mxu1 %v12135_v28  ;;  %v10050_v8 = vpop.permute.xlu1 %10049 }
 0x642   : > { %v18898_v23 = vpop.f32.mrb[143].mxu0  ;;  %10082 = vst.msk [vmem:[#allocation4 + $0x168] sm:$0xff] %vm2119_vm12, %v10050_v8 }
 0x643   : > { %v11806_v53 = vpop.permute.xlu0 %11805 }
 0x644   : > { %11840 = vst.msk [vmem:[#allocation4 + $0x140] sm:$0xff] %vm2586_vm14, %v11806_v53 }
 0x645   : > { %v10338_v30 = vpop.permute.xlu1 %10337  ;;  %v12141_v57 = vld [vmem:[#allocation4 + $0x150] sm:$0xff] }
 0x646   : > { %10370 = vst.msk [vmem:[#allocation4 + $0x168] sm:$0xff] %vm2409_vm13, %v10338_v30 }
 0x647   : > { %v11376_v41 = vpop.permute.xlu0 %11375 }
 0x648   : > { %11409 = vst.msk [vmem:[#allocation4 + $0x158] sm:$0xff] %vm2409_vm13, %v11376_v41 }
 0x649   : > { %v10514_v12 = vpop.permute.xlu1 %10513 }
 0x64a   : > { %10546 = vst.msk [vmem:[#allocation4 + $0x168] sm:$0xff] %vm2586_vm14, %v10514_v12 }
 0x64b   : > { %v12139_v0 = vld [vmem:[#allocation4 + $0x140] sm:$0xff]  ;;  %v11202_v15 = vpop.permute.xlu0 %11201 }
 0x64c   : > { %12482 = vmatprep.mubr.bf16.mxu1 %v12139_v0  ;;  %11234 = vst.msk [vmem:[#allocation4 + $0x170] sm:$0xff] %vm2119_vm12, %v11202_v15 }
 0x64d   : > { %12483 = vmatmul.mubr.bf16.gmra.mrb[144].mxu1 %v12138_v16 }
 0x64f   : > { %v11808_v24 = vpop.permute.xlu0 %11807 }
 0x650   : > { %11841 = vst.msk [vmem:[#allocation4 + $0x158] sm:$0xff] %vm2586_vm14, %v11808_v24 }
 0x651   : > { %v12144_v21 = vld [vmem:[#allocation4 + $0x168] sm:$0xff] }
 0x653   : > { %v11378_v50 = vpop.permute.xlu0 %11377 }
 0x654   : > { %11410 = vst.msk [vmem:[#allocation4 + $0x170] sm:$0xff] %vm2409_vm13, %v11378_v50 }
 0x657   : > { %v11810_v36 = vpop.permute.xlu0 %11809  ;;  %v12142_v38 = vld [vmem:[#allocation4 + $0x158] sm:$0xff] }
 0x658   : > { %11842 = vst.msk [vmem:[#allocation4 + $0x170] sm:$0xff] %vm2586_vm14, %v11810_v36  ;;  %12490 = vmatprep.mubr.bf16.mxu1 %v12142_v38 }
 0x659   : > { %12491 = vmatmul.mubr.bf16.gmra.mrb[148].mxu1 %v12141_v57 }
 0x65a   : > { %v18909_v18 = vpop.f32.mrb[144].mxu0 }
 0x65b   : > { %v18911_v10 = vpop.f32.mrb[145].mxu0 }
 0x65c   : > { %v18913_v6 = vpop.f32.mrb[146].mxu0 }
 0x65d   : > { %v18916_v26 = vpop.f32.mrb[147].mxu0 }
 0x65f   : > { %v12145_v56 = vld [vmem:[#allocation4 + $0x170] sm:$0xff] }
 0x660   : > { %12498 = vmatprep.mubr.bf16.mxu1 %v12145_v56 }
 0x661   : > { %12499 = vmatmul.mubr.bf16.gmra.mrb[152].mxu1 %v12144_v21 }
 0x676   : > { %v18924_v54 = vpop.f32.mrb[148].mxu0 }
 0x677   : > { %v18926_v39 = vpop.f32.mrb[149].mxu0 }
 0x678   : > { %v18928_v32 = vpop.f32.mrb[150].mxu0 }
 0x679   : > { %v18930_v51 = vpop.f32.mrb[151].mxu0 }
 0x67b   : > { %v14402_v13 = vpop.f32.mrb[92].mxu1 }
 0x67c   : > { %v14403_v11 = vpop.f32.mrb[93].mxu1 }
 0x67d   : > { %v14404_v25 = vadd.f32 %v14403_v11, %v14402_v13  ;;  %v14405_v14 = vpop.f32.mrb[94].mxu1 }
 0x67e   : > { %v14406_v45 = vpop.f32.mrb[95].mxu1 }
 0x67f   : > { %v12381_v60 = vadd.f32 %v14404_v25, %v18932_v31  ;;  %v14407_v52 = vadd.f32 %v14406_v45, %v14405_v14 }
 0x681   : > { %v12542_v9 = vadd.f32 %v18838_v61, %v12381_v60  ;;  %v12384_v3 = vadd.f32 %v14407_v52, %v18932_v31 }
 0x683   : > { %v14076_v5 = vpack.c.bf16 %v12542_v9, %v12542_v9  ;;  %v12545_v33 = vadd.f32 %v18846_v43, %v12384_v3 }
 0x685   : > { %12797 = vst.msk [vmem:[%s18942_s15] sm:$0xf] %vm12796_vm0, %v14076_v5  ;;  %v14077_v35 = vpack.c.bf16 %v12545_v33, %v12545_v33 }
 0x686   : > { %v14408_v61 = vpop.f32.mrb[96].mxu1 }
 0x687   : > { %12798 = vst.msk [vmem:[%s18942_s15 + $0x4] sm:$0xf] %vm12796_vm0, %v14077_v35  ;;  %v14409_v22 = vpop.f32.mrb[97].mxu1 }
 0x688   : > { %v14410_v55 = vadd.f32 %v14409_v22, %v14408_v61  ;;  %v14411_v29 = vpop.f32.mrb[98].mxu1 }
 0x689   : > { %v14412_v40 = vpop.f32.mrb[99].mxu1 }
 0x68a   : > { %v12389_v44 = vadd.f32 %v14410_v55, %v18932_v31  ;;  %v14413_v42 = vadd.f32 %v14412_v40, %v14411_v29 }
 0x68c   : > { %v12550_v34 = vadd.f32 %v18832_v59, %v12389_v44  ;;  %v12392_v20 = vadd.f32 %v14413_v42, %v18932_v31 }
 0x68e   : > { %v14078_v4 = vpack.c.bf16 %v12550_v34, %v12550_v34  ;;  %v12553_v43 = vadd.f32 %v18842_v7, %v12392_v20 }
 0x690   : > { %12799 = vst.msk [vmem:[%s18942_s15 + $0x8] sm:$0xf] %vm12796_vm0, %v14078_v4  ;;  %v14079_v58 = vpack.c.bf16 %v12553_v43, %v12553_v43 }
 0x692   : > { %12800 = vst.msk [vmem:[%s18942_s15 + $0xc] sm:$0xf] %vm12796_vm0, %v14079_v58 }
 0x696   : > { %v14414_v59 = vpop.f32.mrb[100].mxu1 }
 0x697   : > { %v18957_v19 = vpop.f32.mrb[152].mxu0  ;;  %v14415_v28 = vpop.f32.mrb[101].mxu1 }
 0x698   : > { %v18959_v46 = vpop.f32.mrb[153].mxu0  ;;  %v14416_v63 = vadd.f32 %v14415_v28, %v14414_v59  ;;  %v14417_v8 = vpop.f32.mrb[102].mxu1 }
 0x699   : > { %v18961_v47 = vpop.f32.mrb[154].mxu0  ;;  %v14418_v7 = vpop.f32.mrb[103].mxu1 }
 0x69a   : > { %v18963_v27 = vpop.f32.mrb[155].mxu0  ;;  %v12397_v53 = vadd.f32 %v14416_v63, %v18932_v31  ;;  %v14419_v41 = vadd.f32 %v14418_v7, %v14417_v8 }
 0x69c   : > { %v12558_v30 = vadd.f32 %v18875_v48, %v12397_v53  ;;  %v12400_v0 = vadd.f32 %v14419_v41, %v18932_v31 }
 0x69e   : > { %v14080_v16 = vpack.c.bf16 %v12558_v30, %v12558_v30  ;;  %v12561_v12 = vadd.f32 %v18879_v49, %v12400_v0 }
 0x6a0   : > { %12801 = vst.msk [vmem:[%s18942_s15 + $0x10] sm:$0xf] %vm12796_vm0, %v14080_v16  ;;  %v14081_v15 = vpack.c.bf16 %v12561_v12, %v12561_v12  ;;  %v14420_v24 = vpop.f32.mrb[104].mxu1 }
 0x6a1   : > { %v14421_v50 = vpop.f32.mrb[105].mxu1 }
 0x6a2   : > { %12802 = vst.msk [vmem:[%s18942_s15 + $0x14] sm:$0xf] %vm12796_vm0, %v14081_v15  ;;  %v14422_v36 = vadd.f32 %v14421_v50, %v14420_v24  ;;  %v14423_v38 = vpop.f32.mrb[106].mxu1 }
 0x6a3   : > { %v14424_v57 = vpop.f32.mrb[107].mxu1 }
 0x6a4   : > { %v12405_v56 = vadd.f32 %v14422_v36, %v18932_v31  ;;  %v14425_v48 = vadd.f32 %v14424_v57, %v14423_v38 }
 0x6a6   : > { %v12566_v21 = vadd.f32 %v18872_v1, %v12405_v56  ;;  %v12408_v13 = vadd.f32 %v14425_v48, %v18932_v31 }
 0x6a8   : > { %v14082_v49 = vpack.c.bf16 %v12566_v21, %v12566_v21  ;;  %v12569_v11 = vadd.f32 %v18877_v62, %v12408_v13 }
 0x6a9   : > { %v14426_v1 = vpop.f32.mrb[108].mxu1 }
 0x6aa   : > { %12803 = vst.msk [vmem:[%s18942_s15 + $0x18] sm:$0xf] %vm12796_vm0, %v14082_v49  ;;  %v14083_v45 = vpack.c.bf16 %v12569_v11, %v12569_v11  ;;  %v14427_v9 = vpop.f32.mrb[109].mxu1 }
 0x6ab   : > { %v18977_v25 = vpop.f32.mrb[156].mxu0  ;;  %v14428_v3 = vadd.f32 %v14427_v9, %v14426_v1  ;;  %v14429_v5 = vpop.f32.mrb[110].mxu1 }
 0x6ac   : > { %v18979_v14 = vpop.f32.mrb[157].mxu0  ;;  %12804 = vst.msk [vmem:[%s18942_s15 + $0x1c] sm:$0xf] %vm12796_vm0, %v14083_v45  ;;  %v14430_v62 = vpop.f32.mrb[111].mxu1 }
 0x6ad   : > { %v18983_v60 = vpop.f32.mrb[158].mxu0  ;;  %v12413_v33 = vadd.f32 %v14428_v3, %v18932_v31  ;;  %v14431_v35 = vadd.f32 %v14430_v62, %v14429_v5 }
 0x6ae   : > { %v18985_v52 = vpop.f32.mrb[159].mxu0 }
 0x6af   : > { %v12574_v61 = vadd.f32 %v18894_v2, %v12413_v33  ;;  %v12416_v22 = vadd.f32 %v14431_v35, %v18932_v31 }
 0x6b1   : > { %v14084_v55 = vpack.c.bf16 %v12574_v61, %v12574_v61  ;;  %v12577_v29 = vadd.f32 %v18898_v23, %v12416_v22 }
 0x6b2   : > { %v14432_v40 = vpop.f32.mrb[112].mxu1 }
 0x6b3   : > { %v14433_v44 = vpop.f32.mrb[113].mxu1  ;;  %12805 = vst.msk [vmem:[%s18942_s15 + $0x20] sm:$0xf] %vm12796_vm0, %v14084_v55  ;;  %v14085_v42 = vpack.c.bf16 %v12577_v29, %v12577_v29 }
 0x6b4   : > { %v14434_v34 = vadd.f32 %v14433_v44, %v14432_v40  ;;  %v14435_v20 = vpop.f32.mrb[114].mxu1 }
 0x6b5   : > { %v14436_v4 = vpop.f32.mrb[115].mxu1  ;;  %12806 = vst.msk [vmem:[%s18942_s15 + $0x24] sm:$0xf] %vm12796_vm0, %v14085_v42 }
 0x6b6   : > { %v12421_v43 = vadd.f32 %v14434_v34, %v18932_v31  ;;  %v14437_v2 = vadd.f32 %v14436_v4, %v14435_v20 }
 0x6b8   : > { %v12582_v58 = vadd.f32 %v18892_v37, %v12421_v43  ;;  %v12424_v59 = vadd.f32 %v14437_v2, %v18932_v31 }
 0x6ba   : > { %v14086_v23 = vpack.c.bf16 %v12582_v58, %v12582_v58  ;;  %v12585_v28 = vadd.f32 %v18896_v17, %v12424_v59 }
 0x6bc   : > { %12807 = vst.msk [vmem:[%s18942_s15 + $0x28] sm:$0xf] %vm12796_vm0, %v14086_v23  ;;  %v14087_v8 = vpack.c.bf16 %v12585_v28, %v12585_v28 }
 0x6be   : > { %12808 = vst.msk [vmem:[%s18942_s15 + $0x2c] sm:$0xf] %vm12796_vm0, %v14087_v8  ;;  %v19017_v45 = vpop.f32.mrb[160].mxu0 }
 0x6bf   : > { %v19019_v9 = vpop.f32.mrb[161].mxu0 }
 0x6c0   : > { %v19023_v33 = vpop.f32.mrb[162].mxu0 }
 0x6c1   : > { %v19025_v35 = vpop.f32.mrb[163].mxu0 }
 0x6c6   : > { %v14438_v63 = vpop.f32.mrb[116].mxu1 }
 0x6c7   : > { %v14439_v7 = vpop.f32.mrb[117].mxu1 }
 0x6c8   : > { %v14440_v53 = vadd.f32 %v14439_v7, %v14438_v63  ;;  %v14441_v41 = vpop.f32.mrb[118].mxu1 }
 0x6c9   : > { %v14442_v30 = vpop.f32.mrb[119].mxu1 }
 0x6ca   : > { %v12429_v0 = vadd.f32 %v14440_v53, %v18932_v31  ;;  %v14443_v37 = vadd.f32 %v14442_v30, %v14441_v41 }
 0x6cc   : > { %v12590_v16 = vadd.f32 %v18911_v10, %v12429_v0  ;;  %v12432_v12 = vadd.f32 %v14443_v37, %v18932_v31 }
 0x6ce   : > { %v14088_v17 = vpack.c.bf16 %v12590_v16, %v12590_v16  ;;  %v12593_v15 = vadd.f32 %v18916_v26, %v12432_v12  ;;  %v14444_v24 = vpop.f32.mrb[120].mxu1 }
 0x6cf   : > { %v14445_v50 = vpop.f32.mrb[121].mxu1 }
 0x6d0   : > { %12809 = vst.msk [vmem:[%s18942_s15 + $0x30] sm:$0xf] %vm12796_vm0, %v14088_v17  ;;  %v14089_v36 = vpack.c.bf16 %v12593_v15, %v12593_v15  ;;  %v14446_v38 = vadd.f32 %v14445_v50, %v14444_v24  ;;  %v14447_v57 = vpop.f32.mrb[122].mxu1 }
 0x6d1   : > { %v14448_v56 = vpop.f32.mrb[123].mxu1 }
 0x6d2   : > { %12810 = vst.msk [vmem:[%s18942_s15 + $0x34] sm:$0xf] %vm12796_vm0, %v14089_v36  ;;  %v12437_v48 = vadd.f32 %v14446_v38, %v18932_v31  ;;  %v14449_v21 = vadd.f32 %v14448_v56, %v14447_v57 }
 0x6d4   : > { %v12598_v10 = vadd.f32 %v18909_v18, %v12437_v48  ;;  %v12440_v13 = vadd.f32 %v14449_v21, %v18932_v31 }
 0x6d6   : > { %v14090_v26 = vpack.c.bf16 %v12598_v10, %v12598_v10  ;;  %v12601_v49 = vadd.f32 %v18913_v6, %v12440_v13 }
 0x6d8   : > { %v14450_v11 = vpop.f32.mrb[124].mxu1  ;;  %12811 = vst.msk [vmem:[%s18942_s15 + $0x38] sm:$0xf] %vm12796_vm0, %v14090_v26  ;;  %v14091_v3 = vpack.c.bf16 %v12601_v49, %v12601_v49 }
 0x6d9   : > { %v14451_v1 = vpop.f32.mrb[125].mxu1 }
 0x6da   : > { %v14452_v5 = vadd.f32 %v14451_v1, %v14450_v11  ;;  %v14453_v62 = vpop.f32.mrb[126].mxu1  ;;  %12812 = vst.msk [vmem:[%s18942_s15 + $0x3c] sm:$0xf] %vm12796_vm0, %v14091_v3 }
 0x6db   : > { %v14454_v18 = vpop.f32.mrb[127].mxu1 }
 0x6dc   : > { %v12445_v6 = vadd.f32 %v14452_v5, %v18932_v31  ;;  %v14455_v61 = vadd.f32 %v14454_v18, %v14453_v62 }
 0x6de   : > { %v12606_v22 = vadd.f32 %v18926_v39, %v12445_v6  ;;  %v12448_v55 = vadd.f32 %v14455_v61, %v18932_v31 }
 0x6e0   : > { %v14092_v29 = vpack.c.bf16 %v12606_v22, %v12606_v22  ;;  %v12609_v40 = vadd.f32 %v18930_v51, %v12448_v55 }
 0x6e2   : > { %12813 = vst.msk [vmem:[%s18942_s15 + $0x40] sm:$0xf] %vm12796_vm0, %v14092_v29  ;;  %v14093_v34 = vpack.c.bf16 %v12609_v40, %v12609_v40 }
 0x6e4   : > { %12814 = vst.msk [vmem:[%s18942_s15 + $0x44] sm:$0xf] %vm12796_vm0, %v14093_v34 }
 0x6e7   : > { %v14456_v44 = vpop.f32.mrb[128].mxu1 }
 0x6e8   : > { %v14457_v42 = vpop.f32.mrb[129].mxu1 }
 0x6e9   : > { %v14458_v20 = vadd.f32 %v14457_v42, %v14456_v44  ;;  %v14459_v4 = vpop.f32.mrb[130].mxu1 }
 0x6ea   : > { %v14460_v43 = vpop.f32.mrb[131].mxu1 }
 0x6eb   : > { %v12453_v2 = vadd.f32 %v14458_v20, %v18932_v31  ;;  %v14461_v39 = vadd.f32 %v14460_v43, %v14459_v4 }
 0x6ed   : > { %v12614_v58 = vadd.f32 %v18924_v54, %v12453_v2  ;;  %v12456_v59 = vadd.f32 %v14461_v39, %v18932_v31 }
 0x6ef   : > { %v14094_v23 = vpack.c.bf16 %v12614_v58, %v12614_v58  ;;  %v12617_v51 = vadd.f32 %v18928_v32, %v12456_v59 }
 0x6f1   : > { %12815 = vst.msk [vmem:[%s18942_s15 + $0x48] sm:$0xf] %vm12796_vm0, %v14094_v23  ;;  %v14095_v28 = vpack.c.bf16 %v12617_v51, %v12617_v51 }
 0x6f3   : > { %12816 = vst.msk [vmem:[%s18942_s15 + $0x4c] sm:$0xf] %vm12796_vm0, %v14095_v28 }
 0x6f7   : > { %v14462_v63 = vpop.f32.mrb[132].mxu1 }
 0x6f8   : > { %v14463_v8 = vpop.f32.mrb[133].mxu1 }
 0x6f9   : > { %v14464_v7 = vadd.f32 %v14463_v8, %v14462_v63  ;;  %v14465_v53 = vpop.f32.mrb[134].mxu1 }
 0x6fa   : > { %v14466_v41 = vpop.f32.mrb[135].mxu1 }
 0x6fb   : > { %v12461_v30 = vadd.f32 %v14464_v7, %v18932_v31  ;;  %v14467_v54 = vadd.f32 %v14466_v41, %v14465_v53 }
 0x6fd   : > { %v12622_v0 = vadd.f32 %v18959_v46, %v12461_v30  ;;  %v12464_v37 = vadd.f32 %v14467_v54, %v18932_v31 }
 0x6ff   : > { %v14096_v16 = vpack.c.bf16 %v12622_v0, %v12622_v0  ;;  %v12625_v32 = vadd.f32 %v18963_v27, %v12464_v37 }
 0x701   : > { %12817 = vst.msk [vmem:[%s18942_s15 + $0x50] sm:$0xf] %vm12796_vm0, %v14096_v16  ;;  %v14097_v12 = vpack.c.bf16 %v12625_v32, %v12625_v32 }
 0x703   : > { %12818 = vst.msk [vmem:[%s18942_s15 + $0x54] sm:$0xf] %vm12796_vm0, %v14097_v12 }
 0x707   : > { %v14468_v17 = vpop.f32.mrb[136].mxu1 }
 0x708   : > { %v14469_v15 = vpop.f32.mrb[137].mxu1 }
 0x709   : > { %v14470_v24 = vadd.f32 %v14469_v15, %v14468_v17  ;;  %v14471_v50 = vpop.f32.mrb[138].mxu1 }
 0x70a   : > { %v14472_v36 = vpop.f32.mrb[139].mxu1 }
 0x70b   : > { %v12469_v38 = vadd.f32 %v14470_v24, %v18932_v31  ;;  %v14473_v46 = vadd.f32 %v14472_v36, %v14471_v50 }
 0x70d   : > { %v12630_v57 = vadd.f32 %v18957_v19, %v12469_v38  ;;  %v12472_v56 = vadd.f32 %v14473_v46, %v18932_v31 }
 0x70f   : > { %v14098_v48 = vpack.c.bf16 %v12630_v57, %v12630_v57  ;;  %v12633_v27 = vadd.f32 %v18961_v47, %v12472_v56 }
 0x711   : > { %12819 = vst.msk [vmem:[%s18942_s15 + $0x58] sm:$0xf] %vm12796_vm0, %v14098_v48  ;;  %v14099_v21 = vpack.c.bf16 %v12633_v27, %v12633_v27 }
 0x713   : > { %12820 = vst.msk [vmem:[%s18942_s15 + $0x5c] sm:$0xf] %vm12796_vm0, %v14099_v21 }
 0x714   : > { %v14474_v10 = vpop.f32.mrb[140].mxu1 }
 0x715   : > { %v14475_v13 = vpop.f32.mrb[141].mxu1 }
 0x716   : > { %v14476_v26 = vadd.f32 %v14475_v13, %v14474_v10  ;;  %v14477_v49 = vpop.f32.mrb[142].mxu1 }
 0x717   : > { %v14478_v11 = vpop.f32.mrb[143].mxu1 }
 0x718   : > { %v12477_v1 = vadd.f32 %v14476_v26, %v18932_v31  ;;  %v14479_v19 = vadd.f32 %v14478_v11, %v14477_v49 }
 0x71a   : > { %v12638_v3 = vadd.f32 %v18979_v14, %v12477_v1  ;;  %v12480_v5 = vadd.f32 %v14479_v19, %v18932_v31 }
 0x71c   : > { %v14100_v62 = vpack.c.bf16 %v12638_v3, %v12638_v3  ;;  %v12641_v47 = vadd.f32 %v18985_v52, %v12480_v5 }
 0x71e   : > { %12821 = vst.msk [vmem:[%s18942_s15 + $0x60] sm:$0xf] %vm12796_vm0, %v14100_v62  ;;  %v14101_v18 = vpack.c.bf16 %v12641_v47, %v12641_v47 }
 0x720   : > { %12822 = vst.msk [vmem:[%s18942_s15 + $0x64] sm:$0xf] %vm12796_vm0, %v14101_v18  ;;  %v14480_v6 = vpop.f32.mrb[144].mxu1 }
 0x721   : > { %v14481_v61 = vpop.f32.mrb[145].mxu1 }
 0x722   : > { %v14482_v22 = vadd.f32 %v14481_v61, %v14480_v6  ;;  %v14483_v55 = vpop.f32.mrb[146].mxu1 }
 0x723   : > { %v14484_v29 = vpop.f32.mrb[147].mxu1 }
 0x724   : > { %v12485_v40 = vadd.f32 %v14482_v22, %v18932_v31  ;;  %v14485_v14 = vadd.f32 %v14484_v29, %v14483_v55 }
 0x726   : > { %v12646_v44 = vadd.f32 %v18977_v25, %v12485_v40  ;;  %v12488_v42 = vadd.f32 %v14485_v14, %v18932_v31 }
 0x728   : > { %v14102_v34 = vpack.c.bf16 %v12646_v44, %v12646_v44  ;;  %v12649_v52 = vadd.f32 %v18983_v60, %v12488_v42 }
 0x72a   : > { %12823 = vst.msk [vmem:[%s18942_s15 + $0x68] sm:$0xf] %vm12796_vm0, %v14102_v34  ;;  %v14103_v20 = vpack.c.bf16 %v12649_v52, %v12649_v52 }
 0x72c   : > { %12824 = vst.msk [vmem:[%s18942_s15 + $0x6c] sm:$0xf] %vm12796_vm0, %v14103_v20  ;;  %v14486_v4 = vpop.f32.mrb[148].mxu1 }
 0x72d   : > { %v14487_v43 = vpop.f32.mrb[149].mxu1 }
 0x72e   : > { %v14488_v2 = vadd.f32 %v14487_v43, %v14486_v4  ;;  %v14489_v39 = vpop.f32.mrb[150].mxu1 }
 0x72f   : > { %v14490_v58 = vpop.f32.mrb[151].mxu1 }
 0x730   : > { %v14491_v59 = vadd.f32 %v14490_v58, %v14489_v39  ;;  %v12493_v25 = vadd.f32 %v14488_v2, %v18932_v31 }
 0x732   : > { %v12654_v23 = vadd.f32 %v19019_v9, %v12493_v25  ;;  %v12496_v51 = vadd.f32 %v14491_v59, %v18932_v31 }
 0x734   : > { %v14104_v60 = vpack.c.bf16 %v12654_v23, %v12654_v23  ;;  %v12657_v28 = vadd.f32 %v19025_v35, %v12496_v51  ;;  %v14492_v63 = vpop.f32.mrb[152].mxu1 }
 0x735   : > { %v14493_v8 = vpop.f32.mrb[153].mxu1 }
 0x736   : > { %12825 = vst.msk [vmem:[%s18942_s15 + $0x70] sm:$0xf] %vm12796_vm0, %v14104_v60  ;;  %v14105_v7 = vpack.c.bf16 %v12657_v28, %v12657_v28  ;;  %v14494_v53 = vadd.f32 %v14493_v8, %v14492_v63  ;;  %v14495_v41 = vpop.f32.mrb[154].mxu1 }
 0x737   : > { %v14496_v30 = vpop.f32.mrb[155].mxu1 }
 0x738   : > { %12826 = vst.msk [vmem:[%s18942_s15 + $0x74] sm:$0xf] %vm12796_vm0, %v14105_v7  ;;  %v12501_v54 = vadd.f32 %v14494_v53, %v18932_v31  ;;  %v14497_v9 = vadd.f32 %v14496_v30, %v14495_v41 }
 0x73a   : > { %v12662_v0 = vadd.f32 %v19017_v45, %v12501_v54  ;;  %v12504_v37 = vadd.f32 %v14497_v9, %v18932_v31 }
 0x73c   : > { %v14106_v16 = vpack.c.bf16 %v12662_v0, %v12662_v0  ;;  %v12665_v35 = vadd.f32 %v19023_v33, %v12504_v37 }
 0x73e   : > { %12827 = vst.msk [vmem:[%s18942_s15 + $0x78] sm:$0xf] %vm12796_vm0, %v14106_v16  ;;  %v14107_v32 = vpack.c.bf16 %v12665_v35, %v12665_v35 }
 0x740   : > { %12828 = vst.msk [vmem:[%s18942_s15 + $0x7c] sm:$0xf] %vm12796_vm0, %v14107_v32 }
 0x741 PF: > { %s24_s30 = sadd.s32 1, %s15819_s30  }
 0x742   : > { %p21_p13 = scmp.ge.s32.totalorder %s24_s30, 4  }
 0x744   :  { %23 = sbr.rel (!%p21_p13) target bundleno = 5 (0x5), region = 125 }
 0x74b   :  { %12850 = vsyncpa [#allocation6], 1 }
 0x74c   :  { %12852 = vsyncpa [#allocation6 + $0x1], 1 }
 0x74d   :  { %12853 = vsyncpa [#allocation8], 1 }
 0x74e   :  { %12854 = vsyncpa [#allocation11], 1 }
 0x74f   :  { %12855 = vsyncpa [#allocation14], 1 }
 0x750   :  { %12856 = vsyncpa [#allocation17], 1 }

</bundles_post_ra>
